<compile_context>
chip_gen: v7x
topology: tpu7x:2x2x1
jax: 0.10.0
libtpu: 0.0.40
codegen_flags: <defaults>
</compile_context>

<pallas_src>
import math

import jax
import jax.numpy as jnp
from jax.experimental import pallas as pl
from jax.experimental.pallas import tpu as pltpu

D_MODEL = 128
D_K = D_V = 32
N_HEADS = 4
LN_EPS = 1e-5
MASK_FILL = -1000000000.0

_VMEM_BUDGET = 20 * 1024 * 1024        # per-step working-set target (safe on all gens)
_VMEM_LIMIT_CAP = 48 * 1024 * 1024     # stay well under v7x's 64 MiB physical VMEM


# ----------------------------------------------------------------------------
# Kernel
# ----------------------------------------------------------------------------
def _make_kernel(fuse_kv):
    """fuse_kv=True -> single block-diagonal (256,256) K/V weight (v6e/v7x)."""

    def kernel(*refs):
        if fuse_kv:
            (xq_ref, xk_ref, xv_ref, mask_ref,
             w0q_ref, wkv_ref, wfc_ref, out_ref, attn_ref) = refs
        else:
            (xq_ref, xk_ref, xv_ref, mask_ref,
             w0q_ref, wk_ref, wv_ref, wfc_ref, out_ref, attn_ref) = refs

        bt, seq, _ = mask_ref.shape              # batch tile / sequence (static)
        inv_sqrt_dk = 1.0 / math.sqrt(D_K)

        xq = xq_ref[...]                         # (bt*seq, d_model)

        # Fused residual (fc0) + Q projection: one (M,128)x(128,256) MXU pass.
        rq = jnp.dot(xq, w0q_ref[...], preferred_element_type=jnp.float32)
        residual = rq[:, :D_MODEL]               # fc0(input_Q)
        q = rq[:, D_MODEL:]                      # W_Q(input_Q)

        if fuse_kv:
            # Block-diagonal [[WK^T,0],[0,WV^T]]: one 256-wide MXU pass -> [K|V].
            # The concat is at a 128-lane boundary (vreg aligned -> cheap VMEM copy).
            xkv = jnp.concatenate([xk_ref[...], xv_ref[...]], axis=-1)
            kv = jnp.dot(xkv, wkv_ref[...], preferred_element_type=jnp.float32)
            k = kv[:, :D_MODEL]
            v = kv[:, D_MODEL:]
        else:
            k = jnp.dot(xk_ref[...], wk_ref[...], preferred_element_type=jnp.float32)
            v = jnp.dot(xv_ref[...], wv_ref[...], preferred_element_type=jnp.float32)

        wfc = wfc_ref[...]

        # masked_fill(mask, -1e9) as one mul+add per head (hoisted out of the loop):
        #   scores*scale + bias == where(mask, -1e9, scores/sqrt(d_k))   (exact)
        mask = mask_ref[...].astype(jnp.float32)  # 1.0 where masked
        scale = (1.0 - mask) * inv_sqrt_dk        # (bt, S, S)
        bias = mask * MASK_FILL

        ctx_parts = []
        for h in range(N_HEADS):                  # static unroll over heads
            sl = slice(h * D_K, (h + 1) * D_K)
            qh = q[:, sl].reshape(bt, seq, D_K)
            kh = k[:, sl].reshape(bt, seq, D_K)
            vh = v[:, sl].reshape(bt, seq, D_V)

            # Contract on the last dims -> no explicit K transpose (no XLU).
            scores = jnp.einsum('bqd,bkd->bqk', qh, kh,
                                preferred_element_type=jnp.float32)
            scores = scores * scale + bias

            m = jnp.max(scores, axis=-1, keepdims=True)
            e = jnp.exp(scores - m)
            attn = e / jnp.sum(e, axis=-1, keepdims=True)            # (bt, S, S)

            # Direct per-head store into the lane-padded attention output block
            # (no in-kernel concatenate; the HBM writeback of the whole block is
            # a full-128-lane unmasked store).
            attn_ref[:, h * seq:(h + 1) * seq] = attn.reshape(bt * seq, seq)

            ctx = jnp.einsum('bqk,bkd->bqd', attn, vh,
                             preferred_element_type=jnp.float32)      # (bt, S, d_v)
            ctx_parts.append(ctx.reshape(bt * seq, D_V))

        # fc: straight chain of per-head f32 dots into the accumulator, no VPU
        # ops interleaved between the dots (v7x can accumulate in the MRB).
        acc = residual
        for h in range(N_HEADS):
            acc = acc + jnp.dot(ctx_parts[h], wfc[h * D_V:(h + 1) * D_V, :],
                                preferred_element_type=jnp.float32)

        # Fresh nn.LayerNorm(d_model): weight=1, bias=0, biased variance.
        mean = jnp.mean(acc, axis=-1, keepdims=True)
        cent = acc - mean
        var = jnp.mean(cent * cent, axis=-1, keepdims=True)
        out_ref[...] = cent * jax.lax.rsqrt(var + LN_EPS)

    return kernel


# ----------------------------------------------------------------------------
# Tiling / generation heuristics (static, trace-time Python)
# ----------------------------------------------------------------------------
def _tpu_traits():
    kind = ""
    try:
        kind = jax.devices()[0].device_kind.lower()
    except Exception:
        pass
    wide_mxu = ("v6" in kind) or ("v7" in kind)   # 256-wide MXU -> fuse K/V
    megacore = ("v4" in kind) or ("v7" in kind)   # 2 TensorCores -> even grid
    return wide_mxu, megacore


def _step_vmem_bytes(bt, seq, attn_cols, fuse_kv):
    """Generous per-grid-step VMEM estimate (double-buffered blocks + intermediates)."""
    rows = bt * seq
    f32 = 4
    in_blocks = 3 * rows * D_MODEL * f32 + bt * seq * seq          # xq/xk/xv + int8 mask
    out_blocks = rows * D_MODEL * f32 + rows * attn_cols * f32
    kv_w = (2 * D_MODEL) * (2 * D_MODEL) if fuse_kv else 2 * D_MODEL * D_MODEL
    weights = (D_MODEL * 2 * D_MODEL + kv_w + D_MODEL * D_MODEL) * f32
    pipelined = 2 * (in_blocks + out_blocks + weights)             # double-buffered
    interm = rows * D_MODEL * f32 * 10 + N_HEADS * bt * seq * seq * f32 * 4
    return pipelined + interm


def _choose_bt(batch, seq, attn_cols, fuse_kv, megacore):
    """Largest batch tile (dividing B, legal (8,128) tiling) fitting the VMEM budget."""
    cands = [d for d in range(1, batch + 1)
             if batch % d == 0 and (d == batch or (d * seq) % 8 == 0)]
    feasible = [d for d in cands
                if _step_vmem_bytes(d, seq, attn_cols, fuse_kv) <= _VMEM_BUDGET]
    if feasible:
        bt = max(feasible)
    else:
        # TODO(synk): pathological shapes (no legal divisor under the budget) would
        # need a batch/seq padding path; fall back to the smallest legal tile.
        bt = min(cands)
    # Megacore chips (v4/v7x): if everything fits in one step, split into two so
    # dimension_semantics=("parallel",) actually uses both TensorCores.
    if megacore and batch // bt == 1 and batch % 2 == 0:
        half = batch // 2
        if half in cands and _step_vmem_bytes(half, seq, attn_cols, fuse_kv) <= _VMEM_BUDGET:
            bt = half
    return bt


# ----------------------------------------------------------------------------
# Wrapper
# ----------------------------------------------------------------------------
@jax.jit
def multi_head_attention(input_q, input_k, input_v, attn_mask,
                         w0, wq, wk, wv, wfc):
    """input_*: (B, S, 128) f32; attn_mask: (B, S, S) bool (True = masked).
    w*: PyTorch nn.Linear weights, shape (out_features, in_features)."""
    B, S, _ = input_q.shape
    attn_cols = ((N_HEADS * S + 127) // 128) * 128     # lane-dense (padded) attn width

    wide_mxu, megacore = _tpu_traits()
    fuse_kv = wide_mxu
    bt = _choose_bt(B, S, attn_cols, fuse_kv, megacore)
    grid = (B // bt,)
    vmem_est = _step_vmem_bytes(bt, S, attn_cols, fuse_kv)
    vmem_limit = int(min(max(vmem_est + (8 << 20), 24 << 20), _VMEM_LIMIT_CAP))

    # Weight prep (glue, not hot path): (out, in) -> (in, out); fuse fc0 & W_Q
    # into one 256-wide weight so residual and Q come from a single matmul.
    w0q = jnp.concatenate([w0.T, wq.T], axis=1)        # (128, 256)
    wfc_t = wfc.T                                      # (128, 128)
    mask_i8 = attn_mask.astype(jnp.int8)               # 1 byte/elem HBM traffic

    # Flatten B*S for the dense parts (free reshapes outside the kernel).
    xq2 = input_q.reshape(B * S, D_MODEL)
    xk2 = input_k.reshape(B * S, D_MODEL)
    xv2 = input_v.reshape(B * S, D_MODEL)

    act_spec = pl.BlockSpec((bt * S, D_MODEL), lambda b: (b, 0))
    w128_spec = pl.BlockSpec((D_MODEL, D_MODEL), lambda b: (0, 0))

    in_specs = [
        act_spec,                                                # input_Q
        act_spec,                                                # input_K
        act_spec,                                                # input_V
        pl.BlockSpec((bt, S, S), lambda b: (b, 0, 0)),           # mask (int8)
        pl.BlockSpec((D_MODEL, 2 * D_MODEL), lambda b: (0, 0)),  # [W0 | WQ]^T
    ]
    if fuse_kv:
        zero = jnp.zeros((D_MODEL, D_MODEL), jnp.float32)
        wkv = jnp.concatenate(
            [jnp.concatenate([wk.T, zero], axis=1),
             jnp.concatenate([zero, wv.T], axis=1)], axis=0)     # (256, 256) block-diag
        weight_args = (w0q, wkv, wfc_t)
        in_specs += [pl.BlockSpec((2 * D_MODEL, 2 * D_MODEL), lambda b: (0, 0)),
                     w128_spec]
    else:
        weight_args = (w0q, wk.T, wv.T, wfc_t)
        in_specs += [w128_spec, w128_spec, w128_spec]

    out_flat, attn_rows = pl.pallas_call(
        _make_kernel(fuse_kv),
        out_shape=(
            jax.ShapeDtypeStruct((B * S, D_MODEL), jnp.float32),
            jax.ShapeDtypeStruct((B * S, attn_cols), jnp.float32),
        ),
        grid_spec=pltpu.PrefetchScalarGridSpec(
            num_scalar_prefetch=0,
            grid=grid,
            in_specs=in_specs,
            out_specs=[
                act_spec,                                               # LN output
                pl.BlockSpec((bt * S, attn_cols), lambda b: (b, 0)),    # attn rows
            ],
        ),
        compiler_params=pltpu.CompilerParams(
            dimension_semantics=("parallel",),
            vmem_limit_bytes=vmem_limit),
    )(xq2, xk2, xv2, mask_i8, *weight_args)

    out = out_flat.reshape(B, S, D_MODEL)
    # attn_rows[b*S + i, h*S + j] == attn[b, h, i, j]; drop the lane pad and
    # un-interleave outside the kernel (pure layout plumbing).
    attn = attn_rows[:, :N_HEADS * S].reshape(B, S, N_HEADS, S).transpose(0, 2, 1, 3)
    # th.squeeze(output) is a no-op for B > 1 and S > 1 — nothing to do here.
    return out, attn


# ----------------------------------------------------------------------------
# Pure-JAX reference + demo
# ----------------------------------------------------------------------------
def _reference(input_q, input_k, input_v, attn_mask, w0, wq, wk, wv, wfc):
    B, S, _ = input_q.shape
    residual = input_q @ w0.T
    q = (input_q @ wq.T).reshape(B, S, N_HEADS, D_K).transpose(0, 2, 1, 3)
    k = (input_k @ wk.T).reshape(B, S, N_HEADS, D_K).transpose(0, 2, 1, 3)
    v = (input_v @ wv.T).reshape(B, S, N_HEADS, D_V).transpose(0, 2, 1, 3)
    scores = jnp.einsum('bhqd,bhkd->bhqk', q, k) / math.sqrt(D_K)
    scores = jnp.where(attn_mask[:, None, :, :], MASK_FILL, scores)
    attn = jax.nn.softmax(scores, axis=-1)
    ctx = jnp.einsum('bhqk,bhkd->bhqd', attn, v)
    ctx = ctx.transpose(0, 2, 1, 3).reshape(B, S, N_HEADS * D_V)
    out = ctx @ wfc.T
    y = out + residual
    mean = y.mean(-1, keepdims=True)
    var = ((y - mean) ** 2).mean(-1, keepdims=True)
    return (y - mean) / jnp.sqrt(var + LN_EPS), attn


if __name__ == "__main__":
    B, S = 32, 8
    key = jax.random.PRNGKey(0)
    keys = jax.random.split(key, 9)

    input_q = jax.random.normal(keys[0], (B, S, D_MODEL), jnp.float32)
    input_k = jax.random.normal(keys[1], (B, S, D_MODEL), jnp.float32)
    input_v = jax.random.normal(keys[2], (B, S, D_MODEL), jnp.float32)
    attn_mask = jax.random.uniform(keys[3], (B, S, S)) < 0.3  # bool, True = masked

    # Deterministic parameter init (PyTorch Linear weight shape: (out, in)).
    scale = 1.0 / math.sqrt(D_MODEL)
    w0 = jax.random.uniform(keys[4], (D_MODEL, D_MODEL), jnp.float32, -scale, scale)
    wq = jax.random.uniform(keys[5], (D_K * N_HEADS, D_MODEL), jnp.float32, -scale, scale)
    wk = jax.random.uniform(keys[6], (D_K * N_HEADS, D_MODEL), jnp.float32, -scale, scale)
    wv = jax.random.uniform(keys[7], (D_V * N_HEADS, D_MODEL), jnp.float32, -scale, scale)
    wfc = jax.random.uniform(keys[8], (D_MODEL, N_HEADS * D_V), jnp.float32, -scale, scale)

    out, attn = multi_head_attention(input_q, input_k, input_v, attn_mask,
                                     w0, wq, wk, wv, wfc)
    jax.block_until_ready((out, attn))

    ref_out, ref_attn = _reference(input_q, input_k, input_v, attn_mask,
                                   w0, wq, wk, wv, wfc)
    assert jnp.allclose(out, ref_out, atol=1e-4, rtol=1e-4), "output mismatch"
    assert jnp.allclose(attn, ref_attn, atol=1e-5, rtol=1e-5), "attn mismatch"

    print("KERNEL_OK")
</pallas_src>

<mosaic_0001>
module attributes {stable_mosaic.version = 11 : i64} {
  func.func @kernel(%arg0: i32, %arg1: memref<256x128xf32, #tpu.memory_space<vmem>>, %arg2: memref<256x128xf32, #tpu.memory_space<vmem>>, %arg3: memref<256x128xf32, #tpu.memory_space<vmem>>, %arg4: memref<32x8x8xi8, #tpu.memory_space<vmem>>, %arg5: memref<128x256xf32, #tpu.memory_space<vmem>>, %arg6: memref<128x128xf32, #tpu.memory_space<vmem>>, %arg7: memref<128x128xf32, #tpu.memory_space<vmem>>, %arg8: memref<128x128xf32, #tpu.memory_space<vmem>>, %arg9: memref<256x128xf32, #tpu.memory_space<vmem>>, %arg10: memref<256x128xf32, #tpu.memory_space<vmem>>) attributes {dimension_semantics = [#tpu.dimension_semantics<parallel>], iteration_bounds = array<i64: 1>, scalar_prefetch = 0 : i64, scratch_operands = 0 : i64, tpu.core_type = #tpu.core_type<tc>, window_params = [{transform_indices = @transform_0, window_bounds = array<i64: 256, 128>}, {transform_indices = @transform_1, window_bounds = array<i64: 256, 128>}, {transform_indices = @transform_2, window_bounds = array<i64: 256, 128>}, {transform_indices = @transform_3, window_bounds = array<i64: 32, 8, 8>}, {pipeline_mode = #tpu.pipeline_mode<synchronous>, transform_indices = @transform_4, window_bounds = array<i64: 128, 256>}, {pipeline_mode = #tpu.pipeline_mode<synchronous>, transform_indices = @transform_5, window_bounds = array<i64: 128, 128>}, {pipeline_mode = #tpu.pipeline_mode<synchronous>, transform_indices = @transform_6, window_bounds = array<i64: 128, 128>}, {pipeline_mode = #tpu.pipeline_mode<synchronous>, transform_indices = @transform_7, window_bounds = array<i64: 128, 128>}, {transform_indices = @transform_8, window_bounds = array<i64: 256, 128>}, {transform_indices = @transform_9, window_bounds = array<i64: 256, 128>}]} {
    %c0 = arith.constant 0 : index
    %c0_0 = arith.constant 0 : index
    %0 = vector.load %arg1[%c0, %c0_0] : memref<256x128xf32, #tpu.memory_space<vmem>>, vector<256x128xf32>
    %c0_1 = arith.constant 0 : index
    %c0_2 = arith.constant 0 : index
    %1 = vector.load %arg5[%c0_1, %c0_2] : memref<128x256xf32, #tpu.memory_space<vmem>>, vector<128x256xf32>
    %cst = arith.constant dense<0.000000e+00> : vector<256x256xf32>
    %2 = tpu.matmul %0, %1, %cst {dimension_numbers = #tpu.dot_dimension_numbers<[1], [0], [0], [1], [0, 0, 1, 1], [], []>} : vector<256x128xf32>, vector<128x256xf32>, vector<256x256xf32> -> vector<256x256xf32>
    %3 = vector.extract_strided_slice %2 {offsets = [0, 0], sizes = [256, 128], strides = [1, 1]} : vector<256x256xf32> to vector<256x128xf32>
    %4 = vector.extract_strided_slice %2 {offsets = [0, 128], sizes = [256, 128], strides = [1, 1]} : vector<256x256xf32> to vector<256x128xf32>
    %c0_3 = arith.constant 0 : index
    %c0_4 = arith.constant 0 : index
    %5 = vector.load %arg2[%c0_3, %c0_4] : memref<256x128xf32, #tpu.memory_space<vmem>>, vector<256x128xf32>
    %c0_5 = arith.constant 0 : index
    %c0_6 = arith.constant 0 : index
    %6 = vector.load %arg6[%c0_5, %c0_6] : memref<128x128xf32, #tpu.memory_space<vmem>>, vector<128x128xf32>
    %cst_7 = arith.constant dense<0.000000e+00> : vector<256x128xf32>
    %7 = tpu.matmul %5, %6, %cst_7 {dimension_numbers = #tpu.dot_dimension_numbers<[1], [0], [0], [1], [0, 0, 1, 1], [], []>} : vector<256x128xf32>, vector<128x128xf32>, vector<256x128xf32> -> vector<256x128xf32>
    %c0_8 = arith.constant 0 : index
    %c0_9 = arith.constant 0 : index
    %8 = vector.load %arg3[%c0_8, %c0_9] : memref<256x128xf32, #tpu.memory_space<vmem>>, vector<256x128xf32>
    %c0_10 = arith.constant 0 : index
    %c0_11 = arith.constant 0 : index
    %9 = vector.load %arg7[%c0_10, %c0_11] : memref<128x128xf32, #tpu.memory_space<vmem>>, vector<128x128xf32>
    %cst_12 = arith.constant dense<0.000000e+00> : vector<256x128xf32>
    %10 = tpu.matmul %8, %9, %cst_12 {dimension_numbers = #tpu.dot_dimension_numbers<[1], [0], [0], [1], [0, 0, 1, 1], [], []>} : vector<256x128xf32>, vector<128x128xf32>, vector<256x128xf32> -> vector<256x128xf32>
    %c0_13 = arith.constant 0 : index
    %c0_14 = arith.constant 0 : index
    %11 = vector.load %arg8[%c0_13, %c0_14] : memref<128x128xf32, #tpu.memory_space<vmem>>, vector<128x128xf32>
    %c0_15 = arith.constant 0 : index
    %c0_16 = arith.constant 0 : index
    %c0_17 = arith.constant 0 : index
    %12 = vector.load %arg4[%c0_15, %c0_16, %c0_17] : memref<32x8x8xi8, #tpu.memory_space<vmem>>, vector<32x8x8xi8>
    %13 = arith.sitofp %12 : vector<32x8x8xi8> to vector<32x8x8xf32>
    %cst_18 = arith.constant 1.000000e+00 : f32
    %14 = vector.broadcast %cst_18 : f32 to vector<32x8x8xf32>
    %15 = arith.subf %14, %13 : vector<32x8x8xf32>
    %cst_19 = arith.constant 0.176776692 : f32
    %16 = vector.broadcast %cst_19 : f32 to vector<32x8x8xf32>
    %17 = arith.mulf %15, %16 : vector<32x8x8xf32>
    %cst_20 = arith.constant -1.000000e+09 : f32
    %18 = vector.broadcast %cst_20 : f32 to vector<32x8x8xf32>
    %19 = arith.mulf %13, %18 : vector<32x8x8xf32>
    %20 = vector.extract_strided_slice %4 {offsets = [0, 0], sizes = [256, 32], strides = [1, 1]} : vector<256x128xf32> to vector<256x32xf32>
    %21 = vector.shape_cast %20 : vector<256x32xf32> to vector<32x8x32xf32>
    %22 = vector.extract_strided_slice %7 {offsets = [0, 0], sizes = [256, 32], strides = [1, 1]} : vector<256x128xf32> to vector<256x32xf32>
    %23 = vector.shape_cast %22 : vector<256x32xf32> to vector<32x8x32xf32>
    %24 = vector.extract_strided_slice %10 {offsets = [0, 0], sizes = [256, 32], strides = [1, 1]} : vector<256x128xf32> to vector<256x32xf32>
    %25 = vector.shape_cast %24 : vector<256x32xf32> to vector<32x8x32xf32>
    "tpu.trace_start"() <{level = 10 : i32, message = "bqd,bkd->bqk"}> : () -> ()
    %cst_21 = arith.constant dense<0.000000e+00> : vector<32x8x8xf32>
    %26 = tpu.matmul %21, %23, %cst_21 {dimension_numbers = #tpu.dot_dimension_numbers<[2], [2], [1], [1], [0, 0, 0, 1, 1, 1], [0], [0]>} : vector<32x8x32xf32>, vector<32x8x32xf32>, vector<32x8x8xf32> -> vector<32x8x8xf32>
    "tpu.trace_stop"() : () -> ()
    %27 = arith.mulf %26, %17 : vector<32x8x8xf32>
    %28 = arith.addf %27, %19 : vector<32x8x8xf32>
    %cst_22 = arith.constant dense<0xFF800000> : vector<32x8xf32>
    %29 = vector.multi_reduction <maximumf>, %28, %cst_22 [2] : vector<32x8x8xf32> to vector<32x8xf32>
    %30 = vector.shape_cast %29 : vector<32x8xf32> to vector<32x8x1xf32>
    %31 = vector.broadcast %30 : vector<32x8x1xf32> to vector<32x8x8xf32>
    %32 = arith.subf %28, %31 : vector<32x8x8xf32>
    %33 = math.exp %32 : vector<32x8x8xf32>
    %cst_23 = arith.constant dense<0.000000e+00> : vector<32x8xf32>
    %34 = vector.multi_reduction <add>, %33, %cst_23 [2] : vector<32x8x8xf32> to vector<32x8xf32>
    %35 = vector.shape_cast %34 : vector<32x8xf32> to vector<32x8x1xf32>
    %36 = vector.broadcast %35 : vector<32x8x1xf32> to vector<32x8x8xf32>
    %37 = arith.divf %33, %36 : vector<32x8x8xf32>
    %38 = vector.shape_cast %37 : vector<32x8x8xf32> to vector<256x8xf32>
    %c0_24 = arith.constant 0 : index
    %c0_25 = arith.constant 0 : index
    %39 = vector.load %arg10[%c0_24, %c0_25] : memref<256x128xf32, #tpu.memory_space<vmem>>, vector<256x8xf32>
    tpu.vector_store %arg10[%c0_24, %c0_25], %38 {strides = array<i32>} : memref<256x128xf32, #tpu.memory_space<vmem>>, vector<256x8xf32>,
    "tpu.trace_start"() <{level = 10 : i32, message = "bqk,bkd->bqd"}> : () -> ()
    %cst_26 = arith.constant dense<0.000000e+00> : vector<32x8x32xf32>
    %40 = tpu.matmul %37, %25, %cst_26 {dimension_numbers = #tpu.dot_dimension_numbers<[2], [1], [1], [2], [0, 0, 0, 1, 1, 2], [0], [0]>} : vector<32x8x8xf32>, vector<32x8x32xf32>, vector<32x8x32xf32> -> vector<32x8x32xf32>
    "tpu.trace_stop"() : () -> ()
    %41 = vector.shape_cast %40 : vector<32x8x32xf32> to vector<256x32xf32>
    %42 = vector.extract_strided_slice %4 {offsets = [0, 32], sizes = [256, 32], strides = [1, 1]} : vector<256x128xf32> to vector<256x32xf32>
    %43 = vector.shape_cast %42 : vector<256x32xf32> to vector<32x8x32xf32>
    %44 = vector.extract_strided_slice %7 {offsets = [0, 32], sizes = [256, 32], strides = [1, 1]} : vector<256x128xf32> to vector<256x32xf32>
    %45 = vector.shape_cast %44 : vector<256x32xf32> to vector<32x8x32xf32>
    %46 = vector.extract_strided_slice %10 {offsets = [0, 32], sizes = [256, 32], strides = [1, 1]} : vector<256x128xf32> to vector<256x32xf32>
    %47 = vector.shape_cast %46 : vector<256x32xf32> to vector<32x8x32xf32>
    "tpu.trace_start"() <{level = 10 : i32, message = "bqd,bkd->bqk"}> : () -> ()
    %cst_27 = arith.constant dense<0.000000e+00> : vector<32x8x8xf32>
    %48 = tpu.matmul %43, %45, %cst_27 {dimension_numbers = #tpu.dot_dimension_numbers<[2], [2], [1], [1], [0, 0, 0, 1, 1, 1], [0], [0]>} : vector<32x8x32xf32>, vector<32x8x32xf32>, vector<32x8x8xf32> -> vector<32x8x8xf32>
    "tpu.trace_stop"() : () -> ()
    %49 = arith.mulf %48, %17 : vector<32x8x8xf32>
    %50 = arith.addf %49, %19 : vector<32x8x8xf32>
    %cst_28 = arith.constant dense<0xFF800000> : vector<32x8xf32>
    %51 = vector.multi_reduction <maximumf>, %50, %cst_28 [2] : vector<32x8x8xf32> to vector<32x8xf32>
    %52 = vector.shape_cast %51 : vector<32x8xf32> to vector<32x8x1xf32>
    %53 = vector.broadcast %52 : vector<32x8x1xf32> to vector<32x8x8xf32>
    %54 = arith.subf %50, %53 : vector<32x8x8xf32>
    %55 = math.exp %54 : vector<32x8x8xf32>
    %cst_29 = arith.constant dense<0.000000e+00> : vector<32x8xf32>
    %56 = vector.multi_reduction <add>, %55, %cst_29 [2] : vector<32x8x8xf32> to vector<32x8xf32>
    %57 = vector.shape_cast %56 : vector<32x8xf32> to vector<32x8x1xf32>
    %58 = vector.broadcast %57 : vector<32x8x1xf32> to vector<32x8x8xf32>
    %59 = arith.divf %55, %58 : vector<32x8x8xf32>
    %60 = vector.shape_cast %59 : vector<32x8x8xf32> to vector<256x8xf32>
    %c0_30 = arith.constant 0 : index
    %c8 = arith.constant 8 : index
    %61 = vector.load %arg10[%c0_30, %c8] : memref<256x128xf32, #tpu.memory_space<vmem>>, vector<256x8xf32>
    tpu.vector_store %arg10[%c0_30, %c8], %60 {strides = array<i32>} : memref<256x128xf32, #tpu.memory_space<vmem>>, vector<256x8xf32>,
    "tpu.trace_start"() <{level = 10 : i32, message = "bqk,bkd->bqd"}> : () -> ()
    %cst_31 = arith.constant dense<0.000000e+00> : vector<32x8x32xf32>
    %62 = tpu.matmul %59, %47, %cst_31 {dimension_numbers = #tpu.dot_dimension_numbers<[2], [1], [1], [2], [0, 0, 0, 1, 1, 2], [0], [0]>} : vector<32x8x8xf32>, vector<32x8x32xf32>, vector<32x8x32xf32> -> vector<32x8x32xf32>
    "tpu.trace_stop"() : () -> ()
    %63 = vector.shape_cast %62 : vector<32x8x32xf32> to vector<256x32xf32>
    %64 = vector.extract_strided_slice %4 {offsets = [0, 64], sizes = [256, 32], strides = [1, 1]} : vector<256x128xf32> to vector<256x32xf32>
    %65 = vector.shape_cast %64 : vector<256x32xf32> to vector<32x8x32xf32>
    %66 = vector.extract_strided_slice %7 {offsets = [0, 64], sizes = [256, 32], strides = [1, 1]} : vector<256x128xf32> to vector<256x32xf32>
    %67 = vector.shape_cast %66 : vector<256x32xf32> to vector<32x8x32xf32>
    %68 = vector.extract_strided_slice %10 {offsets = [0, 64], sizes = [256, 32], strides = [1, 1]} : vector<256x128xf32> to vector<256x32xf32>
    %69 = vector.shape_cast %68 : vector<256x32xf32> to vector<32x8x32xf32>
    "tpu.trace_start"() <{level = 10 : i32, message = "bqd,bkd->bqk"}> : () -> ()
    %cst_32 = arith.constant dense<0.000000e+00> : vector<32x8x8xf32>
    %70 = tpu.matmul %65, %67, %cst_32 {dimension_numbers = #tpu.dot_dimension_numbers<[2], [2], [1], [1], [0, 0, 0, 1, 1, 1], [0], [0]>} : vector<32x8x32xf32>, vector<32x8x32xf32>, vector<32x8x8xf32> -> vector<32x8x8xf32>
    "tpu.trace_stop"() : () -> ()
    %71 = arith.mulf %70, %17 : vector<32x8x8xf32>
    %72 = arith.addf %71, %19 : vector<32x8x8xf32>
    %cst_33 = arith.constant dense<0xFF800000> : vector<32x8xf32>
    %73 = vector.multi_reduction <maximumf>, %72, %cst_33 [2] : vector<32x8x8xf32> to vector<32x8xf32>
    %74 = vector.shape_cast %73 : vector<32x8xf32> to vector<32x8x1xf32>
    %75 = vector.broadcast %74 : vector<32x8x1xf32> to vector<32x8x8xf32>
    %76 = arith.subf %72, %75 : vector<32x8x8xf32>
    %77 = math.exp %76 : vector<32x8x8xf32>
    %cst_34 = arith.constant dense<0.000000e+00> : vector<32x8xf32>
    %78 = vector.multi_reduction <add>, %77, %cst_34 [2] : vector<32x8x8xf32> to vector<32x8xf32>
    %79 = vector.shape_cast %78 : vector<32x8xf32> to vector<32x8x1xf32>
    %80 = vector.broadcast %79 : vector<32x8x1xf32> to vector<32x8x8xf32>
    %81 = arith.divf %77, %80 : vector<32x8x8xf32>
    %82 = vector.shape_cast %81 : vector<32x8x8xf32> to vector<256x8xf32>
    %c0_35 = arith.constant 0 : index
    %c16 = arith.constant 16 : index
    %83 = vector.load %arg10[%c0_35, %c16] : memref<256x128xf32, #tpu.memory_space<vmem>>, vector<256x8xf32>
    tpu.vector_store %arg10[%c0_35, %c16], %82 {strides = array<i32>} : memref<256x128xf32, #tpu.memory_space<vmem>>, vector<256x8xf32>,
    "tpu.trace_start"() <{level = 10 : i32, message = "bqk,bkd->bqd"}> : () -> ()
    %cst_36 = arith.constant dense<0.000000e+00> : vector<32x8x32xf32>
    %84 = tpu.matmul %81, %69, %cst_36 {dimension_numbers = #tpu.dot_dimension_numbers<[2], [1], [1], [2], [0, 0, 0, 1, 1, 2], [0], [0]>} : vector<32x8x8xf32>, vector<32x8x32xf32>, vector<32x8x32xf32> -> vector<32x8x32xf32>
    "tpu.trace_stop"() : () -> ()
    %85 = vector.shape_cast %84 : vector<32x8x32xf32> to vector<256x32xf32>
    %86 = vector.extract_strided_slice %4 {offsets = [0, 96], sizes = [256, 32], strides = [1, 1]} : vector<256x128xf32> to vector<256x32xf32>
    %87 = vector.shape_cast %86 : vector<256x32xf32> to vector<32x8x32xf32>
    %88 = vector.extract_strided_slice %7 {offsets = [0, 96], sizes = [256, 32], strides = [1, 1]} : vector<256x128xf32> to vector<256x32xf32>
    %89 = vector.shape_cast %88 : vector<256x32xf32> to vector<32x8x32xf32>
    %90 = vector.extract_strided_slice %10 {offsets = [0, 96], sizes = [256, 32], strides = [1, 1]} : vector<256x128xf32> to vector<256x32xf32>
    %91 = vector.shape_cast %90 : vector<256x32xf32> to vector<32x8x32xf32>
    "tpu.trace_start"() <{level = 10 : i32, message = "bqd,bkd->bqk"}> : () -> ()
    %cst_37 = arith.constant dense<0.000000e+00> : vector<32x8x8xf32>
    %92 = tpu.matmul %87, %89, %cst_37 {dimension_numbers = #tpu.dot_dimension_numbers<[2], [2], [1], [1], [0, 0, 0, 1, 1, 1], [0], [0]>} : vector<32x8x32xf32>, vector<32x8x32xf32>, vector<32x8x8xf32> -> vector<32x8x8xf32>
    "tpu.trace_stop"() : () -> ()
    %93 = arith.mulf %92, %17 : vector<32x8x8xf32>
    %94 = arith.addf %93, %19 : vector<32x8x8xf32>
    %cst_38 = arith.constant dense<0xFF800000> : vector<32x8xf32>
    %95 = vector.multi_reduction <maximumf>, %94, %cst_38 [2] : vector<32x8x8xf32> to vector<32x8xf32>
    %96 = vector.shape_cast %95 : vector<32x8xf32> to vector<32x8x1xf32>
    %97 = vector.broadcast %96 : vector<32x8x1xf32> to vector<32x8x8xf32>
    %98 = arith.subf %94, %97 : vector<32x8x8xf32>
    %99 = math.exp %98 : vector<32x8x8xf32>
    %cst_39 = arith.constant dense<0.000000e+00> : vector<32x8xf32>
    %100 = vector.multi_reduction <add>, %99, %cst_39 [2] : vector<32x8x8xf32> to vector<32x8xf32>
    %101 = vector.shape_cast %100 : vector<32x8xf32> to vector<32x8x1xf32>
    %102 = vector.broadcast %101 : vector<32x8x1xf32> to vector<32x8x8xf32>
    %103 = arith.divf %99, %102 : vector<32x8x8xf32>
    %104 = vector.shape_cast %103 : vector<32x8x8xf32> to vector<256x8xf32>
    %c0_40 = arith.constant 0 : index
    %c24 = arith.constant 24 : index
    %105 = vector.load %arg10[%c0_40, %c24] : memref<256x128xf32, #tpu.memory_space<vmem>>, vector<256x8xf32>
    tpu.vector_store %arg10[%c0_40, %c24], %104 {strides = array<i32>} : memref<256x128xf32, #tpu.memory_space<vmem>>, vector<256x8xf32>,
    "tpu.trace_start"() <{level = 10 : i32, message = "bqk,bkd->bqd"}> : () -> ()
    %cst_41 = arith.constant dense<0.000000e+00> : vector<32x8x32xf32>
    %106 = tpu.matmul %103, %91, %cst_41 {dimension_numbers = #tpu.dot_dimension_numbers<[2], [1], [1], [2], [0, 0, 0, 1, 1, 2], [0], [0]>} : vector<32x8x8xf32>, vector<32x8x32xf32>, vector<32x8x32xf32> -> vector<32x8x32xf32>
    "tpu.trace_stop"() : () -> ()
    %107 = vector.shape_cast %106 : vector<32x8x32xf32> to vector<256x32xf32>
    %108 = vector.extract_strided_slice %11 {offsets = [0, 0], sizes = [32, 128], strides = [1, 1]} : vector<128x128xf32> to vector<32x128xf32>
    %cst_42 = arith.constant dense<0.000000e+00> : vector<256x128xf32>
    %109 = tpu.matmul %41, %108, %cst_42 {dimension_numbers = #tpu.dot_dimension_numbers<[1], [0], [0], [1], [0, 0, 1, 1], [], []>} : vector<256x32xf32>, vector<32x128xf32>, vector<256x128xf32> -> vector<256x128xf32>
    %110 = arith.addf %3, %109 : vector<256x128xf32>
    %111 = vector.extract_strided_slice %11 {offsets = [32, 0], sizes = [32, 128], strides = [1, 1]} : vector<128x128xf32> to vector<32x128xf32>
    %cst_43 = arith.constant dense<0.000000e+00> : vector<256x128xf32>
    %112 = tpu.matmul %63, %111, %cst_43 {dimension_numbers = #tpu.dot_dimension_numbers<[1], [0], [0], [1], [0, 0, 1, 1], [], []>} : vector<256x32xf32>, vector<32x128xf32>, vector<256x128xf32> -> vector<256x128xf32>
    %113 = arith.addf %110, %112 : vector<256x128xf32>
    %114 = vector.extract_strided_slice %11 {offsets = [64, 0], sizes = [32, 128], strides = [1, 1]} : vector<128x128xf32> to vector<32x128xf32>
    %cst_44 = arith.constant dense<0.000000e+00> : vector<256x128xf32>
    %115 = tpu.matmul %85, %114, %cst_44 {dimension_numbers = #tpu.dot_dimension_numbers<[1], [0], [0], [1], [0, 0, 1, 1], [], []>} : vector<256x32xf32>, vector<32x128xf32>, vector<256x128xf32> -> vector<256x128xf32>
    %116 = arith.addf %113, %115 : vector<256x128xf32>
    %117 = vector.extract_strided_slice %11 {offsets = [96, 0], sizes = [32, 128], strides = [1, 1]} : vector<128x128xf32> to vector<32x128xf32>
    %cst_45 = arith.constant dense<0.000000e+00> : vector<256x128xf32>
    %118 = tpu.matmul %107, %117, %cst_45 {dimension_numbers = #tpu.dot_dimension_numbers<[1], [0], [0], [1], [0, 0, 1, 1], [], []>} : vector<256x32xf32>, vector<32x128xf32>, vector<256x128xf32> -> vector<256x128xf32>
    %119 = arith.addf %116, %118 : vector<256x128xf32>
    %cst_46 = arith.constant dense<0.000000e+00> : vector<256xf32>
    %120 = vector.multi_reduction <add>, %119, %cst_46 [1] : vector<256x128xf32> to vector<256xf32>
    %121 = vector.shape_cast %120 : vector<256xf32> to vector<256x1xf32>
    %cst_47 = arith.constant 1.280000e+02 : f32
    %122 = vector.broadcast %cst_47 : f32 to vector<256x1xf32>
    %123 = arith.divf %121, %122 : vector<256x1xf32>
    %124 = vector.broadcast %123 : vector<256x1xf32> to vector<256x128xf32>
    %125 = arith.subf %119, %124 : vector<256x128xf32>
    %126 = arith.mulf %125, %125 : vector<256x128xf32>
    %cst_48 = arith.constant dense<0.000000e+00> : vector<256xf32>
    %127 = vector.multi_reduction <add>, %126, %cst_48 [1] : vector<256x128xf32> to vector<256xf32>
    %128 = vector.shape_cast %127 : vector<256xf32> to vector<256x1xf32>
    %cst_49 = arith.constant 1.280000e+02 : f32
    %129 = vector.broadcast %cst_49 : f32 to vector<256x1xf32>
    %130 = arith.divf %128, %129 : vector<256x1xf32>
    %cst_50 = arith.constant 9.99999974E-6 : f32
    %131 = vector.broadcast %cst_50 : f32 to vector<256x1xf32>
    %132 = arith.addf %130, %131 : vector<256x1xf32>
    %133 = math.rsqrt %132 : vector<256x1xf32>
    %134 = vector.broadcast %133 : vector<256x1xf32> to vector<256x128xf32>
    %135 = arith.mulf %125, %134 : vector<256x128xf32>
    %c0_51 = arith.constant 0 : index
    %c0_52 = arith.constant 0 : index
    %136 = vector.load %arg9[%c0_51, %c0_52] : memref<256x128xf32, #tpu.memory_space<vmem>>, vector<256x128xf32>
    tpu.vector_store %arg9[%c0_51, %c0_52], %135 {strides = array<i32>} : memref<256x128xf32, #tpu.memory_space<vmem>>, vector<256x128xf32>,
    return
  }
  func.func @transform_0(%arg0: i32) -> (i32, i32) {
    %c0_i32 = arith.constant 0 : i32
    %c0_i32_0 = arith.constant 0 : i32
    return %arg0, %c0_i32 : i32, i32
  }
  func.func @transform_1(%arg0: i32) -> (i32, i32) {
    %c0_i32 = arith.constant 0 : i32
    %c0_i32_0 = arith.constant 0 : i32
    return %arg0, %c0_i32 : i32, i32
  }
  func.func @transform_2(%arg0: i32) -> (i32, i32) {
    %c0_i32 = arith.constant 0 : i32
    %c0_i32_0 = arith.constant 0 : i32
    return %arg0, %c0_i32 : i32, i32
  }
  func.func @transform_3(%arg0: i32) -> (i32, i32, i32) {
    %c0_i32 = arith.constant 0 : i32
    %c0_i32_0 = arith.constant 0 : i32
    %c0_i32_1 = arith.constant 0 : i32
    return %arg0, %c0_i32, %c0_i32_0 : i32, i32, i32
  }
  func.func @transform_4(%arg0: i32) -> (i32, i32) {
    %c0_i32 = arith.constant 0 : i32
    %c0_i32_0 = arith.constant 0 : i32
    %c0_i32_1 = arith.constant 0 : i32
    return %c0_i32, %c0_i32_0 : i32, i32
  }
  func.func @transform_5(%arg0: i32) -> (i32, i32) {
    %c0_i32 = arith.constant 0 : i32
    %c0_i32_0 = arith.constant 0 : i32
    %c0_i32_1 = arith.constant 0 : i32
    return %c0_i32, %c0_i32_0 : i32, i32
  }
  func.func @transform_6(%arg0: i32) -> (i32, i32) {
    %c0_i32 = arith.constant 0 : i32
    %c0_i32_0 = arith.constant 0 : i32
    %c0_i32_1 = arith.constant 0 : i32
    return %c0_i32, %c0_i32_0 : i32, i32
  }
  func.func @transform_7(%arg0: i32) -> (i32, i32) {
    %c0_i32 = arith.constant 0 : i32
    %c0_i32_0 = arith.constant 0 : i32
    %c0_i32_1 = arith.constant 0 : i32
    return %c0_i32, %c0_i32_0 : i32, i32
  }
  func.func @transform_8(%arg0: i32) -> (i32, i32) {
    %c0_i32 = arith.constant 0 : i32
    %c0_i32_0 = arith.constant 0 : i32
    return %arg0, %c0_i32 : i32, i32
  }
  func.func @transform_9(%arg0: i32) -> (i32, i32) {
    %c0_i32 = arith.constant 0 : i32
    %c0_i32_0 = arith.constant 0 : i32
    return %arg0, %c0_i32 : i32, i32
  }
}

</mosaic_0001>

<bundles_post_ra>
// kernel: multi_head_attention.1
= control target key start
LH: loop header
LB: loop body
LE: loop exit
PB: predicated region body
PF: predicated region fallthrough
CT: control target
= control target key end

     0   :  { %v35493_v7 = vmov 0.0   ;;  %s35403_s0 = inlined_call_operand.vmem [shape: f32[256,128], index: 0, kind: input, shape index: {}]   ;;  %s35404_s1 = inlined_call_operand.vmem [shape: f32[256,128], index: 1, kind: input, shape index: {}]   ;;  %s35405_s2 = inlined_call_operand.vmem [shape: f32[256,128], index: 2, kind: input, shape index: {}]   ;;  %s35406_s3 = inlined_call_operand.vmem [shape: s8[32,8,8], index: 3, kind: input, shape index: {}]   ;;  %s35407_s4 = inlined_call_operand.vmem [shape: f32[128,256], index: 4, kind: input, shape index: {}]   ;;  %s35408_s5 = inlined_call_operand.vmem [shape: f32[128,128], index: 5, kind: input, shape index: {}]   ;;  %s35409_s6 = inlined_call_operand.vmem [shape: f32[128,128], index: 6, kind: input, shape index: {}]   ;;  %s35410_s7 = inlined_call_operand.vmem [shape: f32[128,128], index: 7, kind: input, shape index: {}]   ;;  %s35411_s8 = inlined_call_operand.hbm [shape: f32[256,128], index: 8, kind: output, shape index: {0}]   ;;  %s35412_s9 = inlined_call_operand.vmem [shape: f32[256,128], index: 9, kind: output, shape index: {1}]  }
   0x1   :  { %v65_v0 = vld [vmem:[%s35407_s4 + $0x8] sm:$0xff]  ;;  %v67_v1 = vld [vmem:[%s35407_s4 + $0x18] sm:$0xff]  ;;  %v385_v2 = vld [vmem:[%s35408_s5] sm:$0xff]  ;;  %160 = vmatprep.mubr.f32.mxu0 %v35493_v7 }
   0x2   :  { %v27585_v3 = vpack.c.bf16 %v67_v1, %v65_v0  ;;  %v386_v4 = vld [vmem:[%s35408_s5 + $0x8] sm:$0xff]  ;;  %v64_v5 = vld [vmem:[%s35407_s4] sm:$0xff]  ;;  %v66_v6 = vld [vmem:[%s35407_s4 + $0x10] sm:$0xff] }
   0x3   :  { %v27617_v8 = vpack.c.bf16 %v386_v4, %v385_v2  ;;  %v27587_v9 = vpack.c.bf16 %v66_v6, %v64_v5  ;;  %v69_v10 = vld [vmem:[%s35407_s4 + $0x28] sm:$0xff]  ;;  %v71_v11 = vld [vmem:[%s35407_s4 + $0x38] sm:$0xff]  ;;  %v387_v12 = vld [vmem:[%s35408_s5 + $0x10] sm:$0xff] }
   0x4   :  { %27586 = vmatprep.subr.bf16.mxu0 %v27585_v3  ;;  %v27589_v13 = vpack.c.bf16 %v71_v11, %v69_v10  ;;  %v388_v14 = vld [vmem:[%s35408_s5 + $0x18] sm:$0xff]  ;;  %v68_v15 = vld [vmem:[%s35407_s4 + $0x20] sm:$0xff]  ;;  %v70_v16 = vld [vmem:[%s35407_s4 + $0x30] sm:$0xff] }
   0x5   :  { %27618 = vmatprep.subr.bf16.mxu1 %v27617_v8  ;;  %27588 = vmatpush1.bf16.msra.mxu0 %v27587_v9  ;;  %v27621_v17 = vpack.c.bf16 %v388_v14, %v387_v12  ;;  %v27591_v18 = vpack.c.bf16 %v70_v16, %v68_v15  ;;  %v73_v19 = vld [vmem:[%s35407_s4 + $0x48] sm:$0xff]  ;;  %v75_v20 = vld [vmem:[%s35407_s4 + $0x58] sm:$0xff]  ;;  %v389_v21 = vld [vmem:[%s35408_s5 + $0x20] sm:$0xff] }
   0x6   :  { %27620 = vmatpush3.bf16.msra.mxu1 %v27617_v8  ;;  %27590 = vmatprep.subr.bf16.mxu0 %v27589_v13  ;;  %v27593_v22 = vpack.c.bf16 %v75_v20, %v73_v19  ;;  %v390_v23 = vld [vmem:[%s35408_s5 + $0x28] sm:$0xff]  ;;  %v72_v24 = vld [vmem:[%s35407_s4 + $0x40] sm:$0xff]  ;;  %v74_v25 = vld [vmem:[%s35407_s4 + $0x50] sm:$0xff] }
   0x7   :  { %27622 = vmatprep.subr.bf16.mxu1 %v27621_v17  ;;  %v27625_v26 = vpack.c.bf16 %v390_v23, %v389_v21  ;;  %v77_v27 = vld [vmem:[%s35407_s4 + $0x68] sm:$0xff]  ;;  %v79_v28 = vld [vmem:[%s35407_s4 + $0x78] sm:$0xff]  ;;  %v391_v29 = vld [vmem:[%s35408_s5 + $0x30] sm:$0xff]  ;;  %v27595_v31 = vpack.c.bf16 %v74_v25, %v72_v24 }
   0x8   :  { %v392_v30 = vld [vmem:[%s35408_s5 + $0x38] sm:$0xff]  ;;  %v27597_v32 = vpack.c.bf16 %v79_v28, %v77_v27  ;;  %v76_v33 = vld [vmem:[%s35407_s4 + $0x60] sm:$0xff]  ;;  %v78_v34 = vld [vmem:[%s35407_s4 + $0x70] sm:$0xff] }
   0x9   :  { %27592 = vmatpush1.bf16.msra.mxu0 %v27591_v18  ;;  %v27629_v35 = vpack.c.bf16 %v392_v30, %v391_v29  ;;  %v81_v36 = vld [vmem:[%s35407_s4 + $0x88] sm:$0xff]  ;;  %v83_v37 = vld [vmem:[%s35407_s4 + $0x98] sm:$0xff]  ;;  %v393_v38 = vld [vmem:[%s35408_s5 + $0x40] sm:$0xff]  ;;  %v27599_v40 = vpack.c.bf16 %v78_v34, %v76_v33 }
   0xa   :  { %27624 = vmatpush3.bf16.msra.mxu1 %v27621_v17  ;;  %27594 = vmatprep.subr.bf16.mxu0 %v27593_v22  ;;  %v394_v39 = vld [vmem:[%s35408_s5 + $0x48] sm:$0xff]  ;;  %v27601_v41 = vpack.c.bf16 %v83_v37, %v81_v36  ;;  %v80_v42 = vld [vmem:[%s35407_s4 + $0x80] sm:$0xff]  ;;  %v82_v43 = vld [vmem:[%s35407_s4 + $0x90] sm:$0xff] }
   0xb   :  { %27626 = vmatprep.subr.bf16.mxu1 %v27625_v26  ;;  %v27633_v44 = vpack.c.bf16 %v394_v39, %v393_v38  ;;  %v85_v45 = vld [vmem:[%s35407_s4 + $0xa8] sm:$0xff]  ;;  %v87_v46 = vld [vmem:[%s35407_s4 + $0xb8] sm:$0xff]  ;;  %v395_v47 = vld [vmem:[%s35408_s5 + $0x50] sm:$0xff]  ;;  %v27603_v49 = vpack.c.bf16 %v82_v43, %v80_v42 }
   0xc   :  { %v396_v48 = vld [vmem:[%s35408_s5 + $0x58] sm:$0xff]  ;;  %v353_v50 = vld [vmem:[%s35404_s1] sm:$0xff]  ;;  %v27605_v51 = vpack.c.bf16 %v87_v46, %v85_v45  ;;  %v86_v53 = vld [vmem:[%s35407_s4 + $0xb0] sm:$0xff] }
   0xd   :  { %27596 = vmatpush1.bf16.msra.mxu0 %v27595_v31  ;;  %v84_v52 = vld [vmem:[%s35407_s4 + $0xa0] sm:$0xff]  ;;  %v27637_v54 = vpack.c.bf16 %v396_v48, %v395_v47  ;;  %v89_v55 = vld [vmem:[%s35407_s4 + $0xc8] sm:$0xff]  ;;  %v91_v56 = vld [vmem:[%s35407_s4 + $0xd8] sm:$0xff]  ;;  %25953 = vmatprep.mubr.f32.mxu1 %v353_v50 }
   0xe   :  { %27628 = vmatpush3.bf16.msra.mxu1 %v27625_v26  ;;  %27598 = vmatprep.subr.bf16.mxu0 %v27597_v32  ;;  %v397_v57 = vld [vmem:[%s35408_s5 + $0x60] sm:$0xff]  ;;  %v398_v58 = vld [vmem:[%s35408_s5 + $0x68] sm:$0xff]  ;;  %v27607_v59 = vpack.c.bf16 %v86_v53, %v84_v52  ;;  %v27609_v60 = vpack.c.bf16 %v91_v56, %v89_v55  ;;  %v90_v62 = vld [vmem:[%s35407_s4 + $0xd0] sm:$0xff] }
   0xf   :  { %27630 = vmatprep.subr.bf16.mxu1 %v27629_v35  ;;  %v88_v61 = vld [vmem:[%s35407_s4 + $0xc0] sm:$0xff]  ;;  %v27641_v63 = vpack.c.bf16 %v398_v58, %v397_v57  ;;  %v93_v0 = vld [vmem:[%s35407_s4 + $0xe8] sm:$0xff]  ;;  %v95_v1 = vld [vmem:[%s35407_s4 + $0xf8] sm:$0xff] }
  0x10   :  { %v399_v2 = vld [vmem:[%s35408_s5 + $0x70] sm:$0xff]  ;;  %v400_v3 = vld [vmem:[%s35408_s5 + $0x78] sm:$0xff]  ;;  %v27611_v4 = vpack.c.bf16 %v90_v62, %v88_v61  ;;  %v27613_v5 = vpack.c.bf16 %v95_v1, %v93_v0  ;;  %v92_v6 = vld [vmem:[%s35407_s4 + $0xe0] sm:$0xff] }
  0x11   :  { %27600 = vmatpush1.bf16.msra.mxu0 %v27599_v40  ;;  %v94_v8 = vld [vmem:[%s35407_s4 + $0xf0] sm:$0xff]  ;;  %v27645_v9 = vpack.c.bf16 %v400_v3, %v399_v2  ;;  %v32_v11 = vld [vmem:[%s35403_s0] sm:$0xff]  ;;  %v354_v12 = vld [vmem:[%s35404_s1 + $0x8] sm:$0xff] }
  0x12   :  { %27632 = vmatpush3.bf16.msra.mxu1 %v27629_v35  ;;  %27602 = vmatprep.subr.bf16.mxu0 %v27601_v41  ;;  %v27615_v10 = vpack.c.bf16 %v94_v8, %v92_v6  ;;  %v355_v13 = vld [vmem:[%s35404_s1 + $0x10] sm:$0xff]  ;;  %v33_v14 = vld [vmem:[%s35403_s0 + $0x8] sm:$0xff]  ;;  %v356_v15 = vld [vmem:[%s35404_s1 + $0x18] sm:$0xff] }
  0x13   :  { %27634 = vmatprep.subr.bf16.mxu1 %v27633_v44  ;;  %v658_v16 = vld [vmem:[%s35409_s6] sm:$0xff]  ;;  %v659_v17 = vld [vmem:[%s35409_s6 + $0x8] sm:$0xff]  ;;  %v660_v18 = vld [vmem:[%s35409_s6 + $0x10] sm:$0xff] }
  0x14   :  { %v357_v19 = vld [vmem:[%s35404_s1 + $0x20] sm:$0xff]  ;;  %v27649_v20 = vpack.c.bf16 %v659_v17, %v658_v16  ;;  %v661_v21 = vld [vmem:[%s35409_s6 + $0x18] sm:$0xff]  ;;  %v34_v23 = vld [vmem:[%s35403_s0 + $0x10] sm:$0xff] }
  0x15   :  { %27604 = vmatpush1.bf16.msra.mxu0 %v27603_v49  ;;  %v27653_v22 = vpack.c.bf16 %v661_v21, %v660_v18  ;;  %v662_v24 = vld [vmem:[%s35409_s6 + $0x20] sm:$0xff]  ;;  %v663_v25 = vld [vmem:[%s35409_s6 + $0x28] sm:$0xff]  ;;  %v359_v27 = vld [vmem:[%s35404_s1 + $0x30] sm:$0xff] }
  0x16   :  { %27636 = vmatpush3.bf16.msra.mxu1 %v27633_v44  ;;  %27606 = vmatprep.subr.bf16.mxu0 %v27605_v51  ;;  %v358_v26 = vld [vmem:[%s35404_s1 + $0x28] sm:$0xff]  ;;  %v27657_v28 = vpack.c.bf16 %v663_v25, %v662_v24  ;;  %v35_v29 = vld [vmem:[%s35403_s0 + $0x18] sm:$0xff]  ;;  %v664_v30 = vld [vmem:[%s35409_s6 + $0x30] sm:$0xff] }
  0x17   :  { %27638 = vmatprep.subr.bf16.mxu1 %v27637_v54  ;;  %v665_v31 = vld [vmem:[%s35409_s6 + $0x38] sm:$0xff]  ;;  %v361_v33 = vld [vmem:[%s35404_s1 + $0x40] sm:$0xff]  ;;  %v667_v37 = vld [vmem:[%s35409_s6 + $0x48] sm:$0xff] }
  0x18   :  { %v360_v32 = vld [vmem:[%s35404_s1 + $0x38] sm:$0xff]  ;;  %v27661_v34 = vpack.c.bf16 %v665_v31, %v664_v30  ;;  %v36_v35 = vld [vmem:[%s35403_s0 + $0x20] sm:$0xff]  ;;  %v362_v38 = vld [vmem:[%s35404_s1 + $0x48] sm:$0xff] }
  0x19   :  { %27608 = vmatpush1.bf16.msra.mxu0 %v27607_v59  ;;  %v666_v36 = vld [vmem:[%s35409_s6 + $0x40] sm:$0xff]  ;;  %v363_v39 = vld [vmem:[%s35404_s1 + $0x50] sm:$0xff]  ;;  %v37_v40 = vld [vmem:[%s35403_s0 + $0x28] sm:$0xff] }
  0x1a   :  { %27640 = vmatpush3.bf16.msra.mxu1 %v27637_v54  ;;  %27610 = vmatprep.subr.bf16.mxu0 %v27609_v60  ;;  %v27665_v41 = vpack.c.bf16 %v667_v37, %v666_v36  ;;  %v668_v42 = vld [vmem:[%s35409_s6 + $0x50] sm:$0xff]  ;;  %v669_v43 = vld [vmem:[%s35409_s6 + $0x58] sm:$0xff] }
  0x1b   :  { %27642 = vmatprep.subr.bf16.mxu1 %v27641_v63 }
  0x1d   :  { %27612 = vmatpush1.bf16.msra.mxu0 %v27611_v4 }
  0x1e   :  { %27644 = vmatpush3.bf16.msra.mxu1 %v27641_v63  ;;  %27614 = vmatprep.subr.bf16.mxu0 %v27613_v5 }
  0x1f   :  { %27646 = vmatprep.subr.bf16.mxu1 %v27645_v9 }
  0x21   :  { %27616 = vmatpush1.bf16.msra.mxu0 %v27615_v10 }
  0x22   :  { %27648 = vmatpush3.bf16.msra.mxu1 %v27645_v9  ;;  %26081 = vmatprep.subr.mxu0 %v35493_v7 }
  0x23   :  { %27650 = vmatprep.subr.bf16.mxu1 %v27649_v20 }
  0x24   :  { %161 = vmatmul.mubr.f32.vlgmr.msra.gmra.mrb[0].mxu0 %v32_v11 }
  0x25   :  { %25954 = vmatmul.mubr.f32.vlgmr.msra.gmra.mrb[0].mxu1 %v354_v12  ;;  %166 = vmatprep.mubr.f32.mxu0 %v35493_v7 }
  0x26   :  { %25956 = vmatprep.mubr.f32.mxu1 %v355_v13  ;;  %27652 = vmatpush3.bf16.msra.mxu1 %v27649_v20 }
  0x27   :  { %27654 = vmatprep.subr.bf16.mxu1 %v27653_v22 }
  0x28   :  { %167 = vmatmul.mubr.f32.gmra.mrb[2].mxu0 %v33_v14 }
  0x29   :  { %25957 = vmatmul.mubr.f32.gmra.mrb[2].mxu1 %v356_v15  ;;  %172 = vmatprep.mubr.f32.mxu0 %v35493_v7 }
  0x2a   :  { %25959 = vmatprep.mubr.f32.mxu1 %v357_v19  ;;  %27656 = vmatpush3.bf16.msra.mxu1 %v27653_v22 }
  0x2b   :  { %27658 = vmatprep.subr.bf16.mxu1 %v27657_v28 }
  0x2c   :  { %173 = vmatmul.mubr.f32.gmra.mrb[4].mxu0 %v34_v23 }
  0x2d   :  { %178 = vmatprep.mubr.f32.mxu0 %v35493_v7  ;;  %25960 = vmatmul.mubr.f32.gmra.mrb[4].mxu1 %v358_v26 }
  0x2e   :  { %25962 = vmatprep.mubr.f32.mxu1 %v359_v27  ;;  %27660 = vmatpush3.bf16.msra.mxu1 %v27657_v28 }
  0x2f   :  { %27662 = vmatprep.subr.bf16.mxu1 %v27661_v34 }
  0x30   :  { %179 = vmatmul.mubr.f32.gmra.mrb[6].mxu0 %v35_v29 }
  0x31   :  { %184 = vmatprep.mubr.f32.mxu0 %v35493_v7  ;;  %25963 = vmatmul.mubr.f32.gmra.mrb[6].mxu1 %v360_v32 }
  0x32   :  { %25965 = vmatprep.mubr.f32.mxu1 %v361_v33 }
  0x34   :  { %185 = vmatmul.mubr.f32.gmra.mrb[8].mxu0 %v36_v35 }
  0x35   :  { %190 = vmatprep.mubr.f32.mxu0 %v35493_v7  ;;  %25966 = vmatmul.mubr.f32.gmra.mrb[8].mxu1 %v362_v38 }
  0x36   :  { %15 = vsyncpa [#allocation3], 0  ;;  %25968 = vmatprep.mubr.f32.mxu1 %v363_v39  ;;  %v364_v44 = vld [vmem:[%s35404_s1 + $0x58] sm:$0xff]  ;;  %v365_v45 = vld [vmem:[%s35404_s1 + $0x60] sm:$0xff]  ;;  %27664 = vmatpush3.bf16.msra.mxu1 %v27661_v34  ;;  %v27669_v46 = vpack.c.bf16 %v669_v43, %v668_v42  ;;  %vm28339_vm0 = vmmov 0   ;;  %vm1107_vm1 = vcmask 261120  }
  0x37   :  { %27666 = vmatprep.subr.bf16.mxu1 %v27665_v41  ;;  %v38_v47 = vld [vmem:[%s35403_s0 + $0x30] sm:$0xff]  ;;  %v670_v48 = vld [vmem:[%s35409_s6 + $0x60] sm:$0xff]  ;;  %v671_v49 = vld [vmem:[%s35409_s6 + $0x68] sm:$0xff]  ;;  %vm3604_vm2 = vcmask 64512   ;;  %s28341_s5 = smov 64   ;;  %s28342_s4 = smov 32  }
  0x38   :  { %191 = vmatmul.mubr.f32.gmra.mrb[10].mxu0 %v37_v40  ;;  %v366_v50 = vld [vmem:[%s35404_s1 + $0x68] sm:$0xff]  ;;  %v367_v51 = vld [vmem:[%s35404_s1 + $0x70] sm:$0xff]  ;;  %v27673_v52 = vpack.c.bf16 %v671_v49, %v670_v48  ;;  %v39_v53 = vld [vmem:[%s35403_s0 + $0x38] sm:$0xff]  ;;  %s28344_s26 = smov 16   ;;  %vm9365_vm3 = vcmask 130112   ;;  %s28345_s19 = smov 24  }
  0x39   :  { %196 = vmatprep.mubr.f32.mxu0 %v35493_v7  ;;  %25969 = vmatmul.mubr.f32.gmra.mrb[10].mxu1 %v364_v44  ;;  %v672_v54 = vld [vmem:[%s35409_s6 + $0x70] sm:$0xff]  ;;  %v673_v55 = vld [vmem:[%s35409_s6 + $0x78] sm:$0xff]  ;;  %v369_v57 = vld [vmem:[%s35404_s1 + $0x80] sm:$0xff]  ;;  %vm14870_vm4 = vcmask 195712   ;;  %vm20343_vm5 = vcmask 261312   ;;  %s28346_s14 = smov [#allocation2]  }
  0x3a   :  { %25971 = vmatprep.mubr.f32.mxu1 %v365_v45  ;;  %27668 = vmatpush3.bf16.msra.mxu1 %v27665_v41  ;;  %v368_v56 = vld [vmem:[%s35404_s1 + $0x78] sm:$0xff]  ;;  %v27677_v58 = vpack.c.bf16 %v673_v55, %v672_v54  ;;  %v40_v59 = vld [vmem:[%s35403_s0 + $0x40] sm:$0xff]  ;;  %v370_v60 = vld [vmem:[%s35404_s1 + $0x88] sm:$0xff]  ;;  %s24578_s15 = sshll.u32 %s28346_s14, 4  ;;  %s24579_s15 = int_to_ptr.vmem [resolvable:$true] %s24578_s15 }
  0x3b   :  { %27670 = vmatprep.subr.bf16.mxu1 %v27669_v46  ;;  %v371_v61 = vld [vmem:[%s35404_s1 + $0x90] sm:$0xff]  ;;  %v41_v62 = vld [vmem:[%s35403_s0 + $0x48] sm:$0xff]  ;;  %v372_v63 = vld [vmem:[%s35404_s1 + $0x98] sm:$0xff]  ;;  %p28319_p1 = scmp.lt.s32.totalorder %s24579_s15, %s24579_s15 }
  0x3c   :  { %197 = vmatmul.mubr.f32.gmra.mrb[12].mxu0 %v38_v47  ;;  %v373_v0 = vld [vmem:[%s35404_s1 + $0xa0] sm:$0xff]  ;;  %v42_v1 = vld [vmem:[%s35403_s0 + $0x50] sm:$0xff]  ;;  %v374_v2 = vld [vmem:[%s35404_s1 + $0xa8] sm:$0xff] }
  0x3d   :  { %202 = vmatprep.mubr.f32.mxu0 %v35493_v7  ;;  %25972 = vmatmul.mubr.f32.gmra.mrb[12].mxu1 %v366_v50  ;;  %v375_v3 = vld [vmem:[%s35404_s1 + $0xb0] sm:$0xff]  ;;  %v43_v4 = vld [vmem:[%s35403_s0 + $0x58] sm:$0xff]  ;;  %v377_v6 = vld [vmem:[%s35404_s1 + $0xc0] sm:$0xff] }
  0x3e   :  { %25974 = vmatprep.mubr.f32.mxu1 %v367_v51  ;;  %27672 = vmatpush3.bf16.msra.mxu1 %v27669_v46  ;;  %v376_v5 = vld [vmem:[%s35404_s1 + $0xb8] sm:$0xff]  ;;  %v44_v8 = vld [vmem:[%s35403_s0 + $0x60] sm:$0xff]  ;;  %v378_v9 = vld [vmem:[%s35404_s1 + $0xc8] sm:$0xff] }
  0x3f   :  { %27674 = vmatprep.subr.bf16.mxu1 %v27673_v52  ;;  %v379_v10 = vld [vmem:[%s35404_s1 + $0xd0] sm:$0xff]  ;;  %v45_v11 = vld [vmem:[%s35403_s0 + $0x68] sm:$0xff]  ;;  %v380_v12 = vld [vmem:[%s35404_s1 + $0xd8] sm:$0xff] }
  0x40   :  { %203 = vmatmul.mubr.f32.gmra.mrb[14].mxu0 %v39_v53  ;;  %v381_v13 = vld [vmem:[%s35404_s1 + $0xe0] sm:$0xff]  ;;  %v46_v14 = vld [vmem:[%s35403_s0 + $0x70] sm:$0xff]  ;;  %v382_v15 = vld [vmem:[%s35404_s1 + $0xe8] sm:$0xff] }
  0x41   :  { %208 = vmatprep.mubr.f32.mxu0 %v35493_v7  ;;  %25975 = vmatmul.mubr.f32.gmra.mrb[14].mxu1 %v368_v56  ;;  %v383_v16 = vld [vmem:[%s35404_s1 + $0xf0] sm:$0xff]  ;;  %v47_v17 = vld [vmem:[%s35403_s0 + $0x78] sm:$0xff]  ;;  %v626_v19 = vld [vmem:[%s35405_s2] sm:$0xff] }
  0x42   :  { %25977 = vmatprep.mubr.f32.mxu1 %v369_v57  ;;  %27676 = vmatpush3.bf16.msra.mxu1 %v27673_v52  ;;  %v384_v18 = vld [vmem:[%s35404_s1 + $0xf8] sm:$0xff]  ;;  %v48_v20 = vld [vmem:[%s35403_s0 + $0x80] sm:$0xff]  ;;  %v627_v21 = vld [vmem:[%s35405_s2 + $0x8] sm:$0xff]  ;;  %s28314_s1 = scalar_lea.vmem %s24579_s15, 4096 }
  0x43   :  { %27678 = vmatprep.subr.bf16.mxu1 %v27677_v58  ;;  %v628_v22 = vld [vmem:[%s35405_s2 + $0x10] sm:$0xff]  ;;  %v49_v23 = vld [vmem:[%s35403_s0 + $0x88] sm:$0xff]  ;;  %v629_v24 = vld [vmem:[%s35405_s2 + $0x18] sm:$0xff]  ;;  %p28315_p0 = scmp.ne.s32.totalorder %s24579_s15, %s28314_s1  ;;  %p28320_p2 = scmp.lt.s32.totalorder %s28314_s1, %s28314_s1 }
  0x44   :  { %209 = vmatmul.mubr.f32.gmra.mrb[16].mxu0 %v40_v59  ;;  %v630_v25 = vld [vmem:[%s35405_s2 + $0x20] sm:$0xff]  ;;  %v50_v26 = vld [vmem:[%s35403_s0 + $0x90] sm:$0xff]  ;;  %v631_v27 = vld [vmem:[%s35405_s2 + $0x28] sm:$0xff] }
  0x45   :  { %214 = vmatprep.mubr.f32.mxu0 %v35493_v7  ;;  %25978 = vmatmul.mubr.f32.gmra.mrb[16].mxu1 %v370_v60  ;;  %v632_v28 = vld [vmem:[%s35405_s2 + $0x30] sm:$0xff]  ;;  %v51_v29 = vld [vmem:[%s35403_s0 + $0x98] sm:$0xff]  ;;  %v634_v31 = vld [vmem:[%s35405_s2 + $0x40] sm:$0xff]  ;;  %p28321_p3 = por %p28320_p2, %p28319_p1 }
  0x46   :  { %25980 = vmatprep.mubr.f32.mxu1 %v371_v61  ;;  %27680 = vmatpush3.bf16.msra.mxu1 %v27677_v58  ;;  %v633_v30 = vld [vmem:[%s35405_s2 + $0x38] sm:$0xff]  ;;  %v52_v32 = vld [vmem:[%s35403_s0 + $0xa0] sm:$0xff]  ;;  %v635_v33 = vld [vmem:[%s35405_s2 + $0x48] sm:$0xff] }
  0x47   :  { %26086 = vmatprep.subr.mxu1 %v35493_v7  ;;  %v636_v34 = vld [vmem:[%s35405_s2 + $0x50] sm:$0xff]  ;;  %v53_v35 = vld [vmem:[%s35403_s0 + $0xa8] sm:$0xff]  ;;  %v637_v36 = vld [vmem:[%s35405_s2 + $0x58] sm:$0xff]  ;;  %p28322_p4 = pnand %p28321_p3, %p28315_p0 }
  0x48   :  { %215 = vmatmul.mubr.f32.gmra.mrb[18].mxu0 %v41_v62  ;;  %v638_v37 = vld [vmem:[%s35405_s2 + $0x60] sm:$0xff]  ;;  %v54_v38 = vld [vmem:[%s35403_s0 + $0xb0] sm:$0xff]  ;;  %v639_v39 = vld [vmem:[%s35405_s2 + $0x68] sm:$0xff] }
  0x49   :  { %220 = vmatprep.mubr.f32.mxu0 %v35493_v7  ;;  %25981 = vmatmul.mubr.f32.gmra.mrb[18].mxu1 %v372_v63  ;;  %v640_v40 = vld [vmem:[%s35405_s2 + $0x70] sm:$0xff]  ;;  %v55_v41 = vld [vmem:[%s35403_s0 + $0xb8] sm:$0xff]  ;;  %v642_v43 = vld [vmem:[%s35405_s2 + $0x80] sm:$0xff] }
  0x4a   :  { %25983 = vmatprep.mubr.f32.mxu1 %v373_v0  ;;  %v641_v42 = vld [vmem:[%s35405_s2 + $0x78] sm:$0xff]  ;;  %v56_v44 = vld [vmem:[%s35403_s0 + $0xc0] sm:$0xff]  ;;  %v643_v45 = vld [vmem:[%s35405_s2 + $0x88] sm:$0xff] }
  0x4b   :  { %v644_v46 = vld [vmem:[%s35405_s2 + $0x90] sm:$0xff]  ;;  %v57_v47 = vld [vmem:[%s35403_s0 + $0xc8] sm:$0xff]  ;;  %v645_v48 = vld [vmem:[%s35405_s2 + $0x98] sm:$0xff] }
  0x4c   :  { %221 = vmatmul.mubr.f32.gmra.mrb[20].mxu0 %v42_v1  ;;  %v646_v49 = vld [vmem:[%s35405_s2 + $0xa0] sm:$0xff]  ;;  %v58_v50 = vld [vmem:[%s35403_s0 + $0xd0] sm:$0xff]  ;;  %v647_v51 = vld [vmem:[%s35405_s2 + $0xa8] sm:$0xff] }
  0x4d   :  { %226 = vmatprep.mubr.f32.mxu0 %v35493_v7  ;;  %25984 = vmatmul.mubr.f32.gmra.mrb[20].mxu1 %v374_v2  ;;  %v648_v52 = vld [vmem:[%s35405_s2 + $0xb0] sm:$0xff]  ;;  %v59_v53 = vld [vmem:[%s35403_s0 + $0xd8] sm:$0xff]  ;;  %v650_v55 = vld [vmem:[%s35405_s2 + $0xc0] sm:$0xff] }
  0x4e   :  { %25986 = vmatprep.mubr.f32.mxu1 %v375_v3  ;;  %v649_v54 = vld [vmem:[%s35405_s2 + $0xb8] sm:$0xff]  ;;  %v60_v56 = vld [vmem:[%s35403_s0 + $0xe0] sm:$0xff]  ;;  %v651_v57 = vld [vmem:[%s35405_s2 + $0xc8] sm:$0xff] }
  0x4f   :  { %v652_v58 = vld [vmem:[%s35405_s2 + $0xd0] sm:$0xff]  ;;  %v61_v59 = vld [vmem:[%s35403_s0 + $0xe8] sm:$0xff]  ;;  %v653_v60 = vld [vmem:[%s35405_s2 + $0xd8] sm:$0xff] }
  0x50   :  { %227 = vmatmul.mubr.f32.gmra.mrb[22].mxu0 %v43_v4  ;;  %v654_v61 = vld [vmem:[%s35405_s2 + $0xe0] sm:$0xff]  ;;  %v62_v62 = vld [vmem:[%s35403_s0 + $0xf0] sm:$0xff]  ;;  %v655_v63 = vld [vmem:[%s35405_s2 + $0xe8] sm:$0xff] }
  0x51   :  { %232 = vmatprep.mubr.f32.mxu0 %v35493_v7  ;;  %25987 = vmatmul.mubr.f32.gmra.mrb[22].mxu1 %v376_v5  ;;  %v656_v0 = vld [vmem:[%s35405_s2 + $0xf0] sm:$0xff]  ;;  %v63_v1 = vld [vmem:[%s35403_s0 + $0xf8] sm:$0xff]  ;;  %s28340_s0 = smov 96  }
  0x52   :  { %25989 = vmatprep.mubr.f32.mxu1 %v377_v6  ;;  %v657_v2 = vld [vmem:[%s35405_s2 + $0xf8] sm:$0xff]  ;;  %s28343_s2 = smov 8  }
  0x54   :  { %233 = vmatmul.mubr.f32.gmra.mrb[24].mxu0 %v44_v8 }
  0x55   :  { %238 = vmatprep.mubr.f32.mxu0 %v35493_v7  ;;  %25990 = vmatmul.mubr.f32.gmra.mrb[24].mxu1 %v378_v9 }
  0x56   :  { %25992 = vmatprep.mubr.f32.mxu1 %v379_v10 }
  0x58   :  { %239 = vmatmul.mubr.f32.gmra.mrb[26].mxu0 %v45_v11 }
  0x59   :  { %244 = vmatprep.mubr.f32.mxu0 %v35493_v7  ;;  %25993 = vmatmul.mubr.f32.gmra.mrb[26].mxu1 %v380_v12 }
  0x5a   :  { %25995 = vmatprep.mubr.f32.mxu1 %v381_v13 }
  0x5c   :  { %245 = vmatmul.mubr.f32.gmra.mrb[28].mxu0 %v46_v14 }
  0x5d   :  { %250 = vmatprep.mubr.f32.mxu0 %v35493_v7  ;;  %25996 = vmatmul.mubr.f32.gmra.mrb[28].mxu1 %v382_v15 }
  0x5e   :  { %25998 = vmatprep.mubr.f32.mxu1 %v383_v16 }
  0x60   :  { %251 = vmatmul.mubr.f32.gmra.mrb[30].mxu0 %v47_v17 }
  0x61   :  { %256 = vmatprep.mubr.f32.mxu0 %v35493_v7  ;;  %25999 = vmatmul.mubr.f32.gmra.mrb[30].mxu1 %v384_v18 }
  0x62   :  { %26033 = vmatprep.mubr.f32.mxu1 %v626_v19 }
  0x64   :  { %257 = vmatmul.mubr.f32.gmra.mrb[32].mxu0 %v48_v20 }
  0x65   :  { %262 = vmatprep.mubr.f32.mxu0 %v35493_v7  ;;  %26034 = vmatmul.mubr.f32.vlgmr.msra.gmra.mrb[32].mxu1 %v627_v21 }
  0x66   :  { %26036 = vmatprep.mubr.f32.mxu1 %v628_v22 }
  0x68   :  { %263 = vmatmul.mubr.f32.gmra.mrb[34].mxu0 %v49_v23 }
  0x69   :  { %268 = vmatprep.mubr.f32.mxu0 %v35493_v7  ;;  %26037 = vmatmul.mubr.f32.gmra.mrb[34].mxu1 %v629_v24 }
  0x6a   :  { %26039 = vmatprep.mubr.f32.mxu1 %v630_v25 }
  0x6c   :  { %269 = vmatmul.mubr.f32.gmra.mrb[36].mxu0 %v50_v26 }
  0x6d   :  { %274 = vmatprep.mubr.f32.mxu0 %v35493_v7  ;;  %26040 = vmatmul.mubr.f32.gmra.mrb[36].mxu1 %v631_v27 }
  0x6e   :  { %26042 = vmatprep.mubr.f32.mxu1 %v632_v28 }
  0x70   :  { %275 = vmatmul.mubr.f32.gmra.mrb[38].mxu0 %v51_v29 }
  0x71   :  { %280 = vmatprep.mubr.f32.mxu0 %v35493_v7  ;;  %26043 = vmatmul.mubr.f32.gmra.mrb[38].mxu1 %v633_v30 }
  0x72   :  { %26045 = vmatprep.mubr.f32.mxu1 %v634_v31 }
  0x74   :  { %281 = vmatmul.mubr.f32.gmra.mrb[40].mxu0 %v52_v32 }
  0x75   :  { %286 = vmatprep.mubr.f32.mxu0 %v35493_v7  ;;  %26046 = vmatmul.mubr.f32.gmra.mrb[40].mxu1 %v635_v33 }
  0x76   :  { %26048 = vmatprep.mubr.f32.mxu1 %v636_v34 }
  0x78   :  { %287 = vmatmul.mubr.f32.gmra.mrb[42].mxu0 %v53_v35 }
  0x79   :  { %292 = vmatprep.mubr.f32.mxu0 %v35493_v7  ;;  %26049 = vmatmul.mubr.f32.gmra.mrb[42].mxu1 %v637_v36 }
  0x7a   :  { %26051 = vmatprep.mubr.f32.mxu1 %v638_v37 }
  0x7c   :  { %293 = vmatmul.mubr.f32.gmra.mrb[44].mxu0 %v54_v38 }
  0x7d   :  { %298 = vmatprep.mubr.f32.mxu0 %v35493_v7  ;;  %26052 = vmatmul.mubr.f32.gmra.mrb[44].mxu1 %v639_v39 }
  0x7e   :  { %26054 = vmatprep.mubr.f32.mxu1 %v640_v40 }
  0x80   :  { %299 = vmatmul.mubr.f32.gmra.mrb[46].mxu0 %v55_v41 }
  0x81   :  { %304 = vmatprep.mubr.f32.mxu0 %v35493_v7  ;;  %26055 = vmatmul.mubr.f32.gmra.mrb[46].mxu1 %v641_v42 }
  0x82   :  { %26057 = vmatprep.mubr.f32.mxu1 %v642_v43 }
  0x84   :  { %305 = vmatmul.mubr.f32.gmra.mrb[48].mxu0 %v56_v44 }
  0x85   :  { %310 = vmatprep.mubr.f32.mxu0 %v35493_v7  ;;  %26058 = vmatmul.mubr.f32.gmra.mrb[48].mxu1 %v643_v45 }
  0x86   :  { %26060 = vmatprep.mubr.f32.mxu1 %v644_v46 }
  0x88   :  { %311 = vmatmul.mubr.f32.gmra.mrb[50].mxu0 %v57_v47 }
  0x89   :  { %316 = vmatprep.mubr.f32.mxu0 %v35493_v7  ;;  %26061 = vmatmul.mubr.f32.gmra.mrb[50].mxu1 %v645_v48 }
  0x8a   :  { %26063 = vmatprep.mubr.f32.mxu1 %v646_v49 }
  0x8c   :  { %317 = vmatmul.mubr.f32.gmra.mrb[52].mxu0 %v58_v50 }
  0x8d   :  { %322 = vmatprep.mubr.f32.mxu0 %v35493_v7  ;;  %26064 = vmatmul.mubr.f32.gmra.mrb[52].mxu1 %v647_v51 }
  0x8e   :  { %26066 = vmatprep.mubr.f32.mxu1 %v648_v52 }
  0x90   :  { %323 = vmatmul.mubr.f32.gmra.mrb[54].mxu0 %v59_v53 }
  0x91   :  { %328 = vmatprep.mubr.f32.mxu0 %v35493_v7  ;;  %26067 = vmatmul.mubr.f32.gmra.mrb[54].mxu1 %v649_v54 }
  0x92   :  { %26069 = vmatprep.mubr.f32.mxu1 %v650_v55 }
  0x94   :  { %329 = vmatmul.mubr.f32.gmra.mrb[56].mxu0 %v60_v56 }
  0x95   :  { %334 = vmatprep.mubr.f32.mxu0 %v35493_v7  ;;  %26070 = vmatmul.mubr.f32.gmra.mrb[56].mxu1 %v651_v57 }
  0x96   :  { %26072 = vmatprep.mubr.f32.mxu1 %v652_v58 }
  0x98   :  { %335 = vmatmul.mubr.f32.gmra.mrb[58].mxu0 %v61_v59 }
  0x99   :  { %340 = vmatprep.mubr.f32.mxu0 %v35493_v7  ;;  %26073 = vmatmul.mubr.f32.gmra.mrb[58].mxu1 %v653_v60 }
  0x9a   :  { %26075 = vmatprep.mubr.f32.mxu1 %v654_v61 }
  0x9c   :  { %341 = vmatmul.mubr.f32.gmra.mrb[60].mxu0 %v62_v62 }
  0x9d   :  { %346 = vmatprep.mubr.f32.mxu0 %v35493_v7  ;;  %26076 = vmatmul.mubr.f32.gmra.mrb[60].mxu1 %v655_v63 }
  0x9e   :  { %26078 = vmatprep.mubr.f32.mxu1 %v656_v0 }
  0xa0   :  { %347 = vmatmul.mubr.f32.gmra.mrb[62].mxu0 %v63_v1 }
  0xa1   :  { %26083 = vmatprep.mubr.msk.f32.mxu0 %vm28339_vm0, %v35493_v7  ;;  %26079 = vmatmul.mubr.f32.gmra.mrb[62].mxu1 %v657_v2 }
  0xa2   :  { %26088 = vmatprep.mubr.msk.f32.mxu1 %vm28339_vm0, %v35493_v7 }
  0xf7   :  { %v28916_v3 = vpop.f32.mrb[0].mxu0 }
  0xf8   :  { %35775 = vst [vmem:[#allocation5_spill] sm:$0xff] %v28916_v3  ;;  %v28918_v4 = vpop.f32.mrb[0].mxu1  ;;  %v28920_v5 = vpop.f32.mrb[1].mxu0 }
  0xf9   :  { %35776 = vst [vmem:[#allocation6_spill] sm:$0xff] %v28918_v4  ;;  %35777 = vst [vmem:[#allocation7_spill] sm:$0xff] %v28920_v5  ;;  %6405 = vrot.lane.b32.xlu1 %v28918_v4, %s28340_s0  ;;  %v28924_v6 = vpop.f32.mrb[1].mxu1  ;;  %26087 = vmatpush3.xpose.msk.msra.mxu1 %vm1107_vm1, %v28918_v4 }
  0xfa   :  { %35778 = vst [vmem:[#allocation8_spill] sm:$0xff] %v28924_v6  ;;  %6327 = vrot.lane.b32.xlu0 %v28924_v6, %s28340_s0  ;;  %26082 = vmatpush3.xpose.msk.msra.mxu0 %vm1107_vm1, %v28924_v6 }
  0xfb   :  { %v28932_v8 = vpop.f32.mrb[2].mxu0  ;;  %26091 = vmatprep.subr.mxu0 %v35493_v7  ;;  %26096 = vmatprep.subr.mxu1 %v35493_v7 }
  0xfc   :  { %35779 = vst [vmem:[#allocation9_spill] sm:$0xff] %v28932_v8  ;;  %v28936_v9 = vpop.f32.mrb[2].mxu1  ;;  %v28938_v10 = vpop.f32.mrb[3].mxu0 }
  0xfd   :  { %35780 = vst [vmem:[#allocation10_spill] sm:$0xff] %v28936_v9  ;;  %35781 = vst [vmem:[#allocation11_spill] sm:$0xff] %v28938_v10  ;;  %26084 = vmatmul.mubr.msk.f32.vlgmr.msra.gmra.mrb[64].mxu0 %vm1107_vm1, %v28920_v5  ;;  %v28942_v11 = vpop.f32.mrb[3].mxu1  ;;  %26089 = vmatmul.mubr.msk.f32.vlgmr.msra.gmra.mrb[64].mxu1 %vm1107_vm1, %v28938_v10 }
  0xfe   :  { %35782 = vst [vmem:[#allocation12_spill] sm:$0xff] %v28942_v11  ;;  %26092 = vmatpush3.xpose.msk.msra.mxu0 %vm1107_vm1, %v28942_v11  ;;  %26093 = vmatprep.mubr.msk.f32.mxu0 %vm28339_vm0, %v35493_v7 }
  0xff   :  { %v28950_v12 = vpop.f32.mrb[4].mxu0  ;;  %26097 = vmatpush3.xpose.msk.msra.mxu1 %vm1107_vm1, %v28936_v9  ;;  %26098 = vmatprep.mubr.msk.f32.mxu1 %vm28339_vm0, %v35493_v7 }
 0x100   :  { %35783 = vst [vmem:[#allocation13_spill] sm:$0xff] %v28950_v12  ;;  %v28956_v13 = vpop.f32.mrb[5].mxu0  ;;  %v28958_v14 = vpop.f32.mrb[4].mxu1  ;;  %26101 = vmatprep.subr.mxu0 %v35493_v7  ;;  %26106 = vmatprep.subr.mxu1 %v35493_v7 }
 0x101   :  { %35784 = vst [vmem:[#allocation14_spill] sm:$0xff] %v28956_v13  ;;  %35785 = vst [vmem:[#allocation15_spill] sm:$0xff] %v28958_v14  ;;  %26094 = vmatmul.mubr.msk.f32.vlgmr.msra.gmra.mrb[66].mxu0 %vm1107_vm1, %v28956_v13  ;;  %v28964_v15 = vpop.f32.mrb[5].mxu1  ;;  %6325 = vrot.lane.b32.xlu1 %v28920_v5, %s28340_s0 }
 0x102   :  { %35786 = vst [vmem:[#allocation16_spill] sm:$0xff] %v28964_v15  ;;  %26102 = vmatpush3.xpose.msk.msra.mxu0 %vm1107_vm1, %v28964_v15  ;;  %26103 = vmatprep.mubr.msk.f32.mxu0 %vm28339_vm0, %v35493_v7 }
 0x103   :  { %v28972_v16 = vpop.f32.mrb[6].mxu0  ;;  %26111 = vmatprep.subr.mxu0 %v35493_v7  ;;  %6483 = vrot.lane.b32.xlu0 %v28942_v11, %s28340_s0 }
 0x104   :  { %35787 = vst [vmem:[#allocation17_spill] sm:$0xff] %v28972_v16  ;;  %v28977_v17 = vpop.f32.mrb[7].mxu0  ;;  %v28979_v18 = vpop.f32.mrb[6].mxu1 }
 0x105   :  { %35788 = vst [vmem:[#allocation18_spill] sm:$0xff] %v28977_v17  ;;  %35789 = vst [vmem:[#allocation19_spill] sm:$0xff] %v28979_v18  ;;  %26099 = vmatmul.mubr.msk.f32.vlgmr.msra.gmra.mrb[66].mxu1 %vm1107_vm1, %v28977_v17  ;;  %v28983_v19 = vpop.f32.mrb[7].mxu1  ;;  %6561 = vrot.lane.b32.xlu1 %v28936_v9, %s28340_s0 }
 0x106   :  { %35790 = vst [vmem:[#allocation20_spill] sm:$0xff] %v28983_v19  ;;  %26107 = vmatpush3.xpose.msk.msra.mxu1 %vm1107_vm1, %v28958_v14  ;;  %26108 = vmatprep.mubr.msk.f32.mxu1 %vm28339_vm0, %v35493_v7 }
 0x107   :  { %v28991_v20 = vpop.f32.mrb[8].mxu0  ;;  %26116 = vmatprep.subr.mxu1 %v35493_v7  ;;  %6481 = vrot.lane.b32.xlu0 %v28956_v13, %s28340_s0 }
 0x108   :  { %35791 = vst [vmem:[#allocation21_spill] sm:$0xff] %v28991_v20  ;;  %v28996_v21 = vpop.f32.mrb[9].mxu0  ;;  %v28998_v22 = vpop.f32.mrb[8].mxu1 }
 0x109   :  { %35792 = vst [vmem:[#allocation22_spill] sm:$0xff] %v28996_v21  ;;  %35793 = vst [vmem:[#allocation23_spill] sm:$0xff] %v28998_v22  ;;  %26104 = vmatmul.mubr.msk.f32.vlgmr.msra.gmra.mrb[68].mxu0 %vm1107_vm1, %v28996_v21  ;;  %v29002_v23 = vpop.f32.mrb[9].mxu1  ;;  %6403 = vrot.lane.b32.xlu1 %v28938_v10, %s28340_s0 }
 0x10a   :  { %35794 = vst [vmem:[#allocation24_spill] sm:$0xff] %v29002_v23  ;;  %26112 = vmatpush3.xpose.msk.msra.mxu0 %vm1107_vm1, %v28983_v19  ;;  %26113 = vmatprep.mubr.msk.f32.mxu0 %vm28339_vm0, %v35493_v7 }
 0x10b   :  { %v29010_v24 = vpop.f32.mrb[10].mxu0  ;;  %26121 = vmatprep.subr.mxu0 %v35493_v7  ;;  %6639 = vrot.lane.b32.xlu0 %v28964_v15, %s28340_s0 }
 0x10c   :  { %35795 = vst [vmem:[#allocation25_spill] sm:$0xff] %v29010_v24  ;;  %v29015_v25 = vpop.f32.mrb[11].mxu0  ;;  %v29017_v26 = vpop.f32.mrb[10].mxu1 }
 0x10d   :  { %35796 = vst [vmem:[#allocation26_spill] sm:$0xff] %v29015_v25  ;;  %35797 = vst [vmem:[#allocation27_spill] sm:$0xff] %v29017_v26  ;;  %26109 = vmatmul.mubr.msk.f32.vlgmr.msra.gmra.mrb[68].mxu1 %vm1107_vm1, %v29015_v25  ;;  %v29021_v27 = vpop.f32.mrb[11].mxu1  ;;  %6717 = vrot.lane.b32.xlu1 %v28958_v14, %s28340_s0 }
 0x10e   :  { %35798 = vst [vmem:[#allocation28_spill] sm:$0xff] %v29021_v27  ;;  %26117 = vmatpush3.xpose.msk.msra.mxu1 %vm1107_vm1, %v28979_v18  ;;  %26118 = vmatprep.mubr.msk.f32.mxu1 %vm28339_vm0, %v35493_v7 }
 0x10f   :  { %v29029_v28 = vpop.f32.mrb[12].mxu0  ;;  %26126 = vmatprep.subr.mxu1 %v35493_v7  ;;  %6795 = vrot.lane.b32.xlu0 %v28983_v19, %s28340_s0 }
 0x110   :  { %35799 = vst [vmem:[#allocation29_spill] sm:$0xff] %v29029_v28  ;;  %v29034_v29 = vpop.f32.mrb[13].mxu0  ;;  %v29036_v30 = vpop.f32.mrb[12].mxu1 }
 0x111   :  { %35800 = vst [vmem:[#allocation30_spill] sm:$0xff] %v29034_v29  ;;  %35801 = vst [vmem:[#allocation31_spill] sm:$0xff] %v29036_v30  ;;  %26114 = vmatmul.mubr.msk.f32.vlgmr.msra.gmra.mrb[70].mxu0 %vm1107_vm1, %v29034_v29  ;;  %v29040_v31 = vpop.f32.mrb[13].mxu1  ;;  %6873 = vrot.lane.b32.xlu1 %v28979_v18, %s28340_s0 }
 0x112   :  { %35802 = vst [vmem:[#allocation32_spill] sm:$0xff] %v29040_v31  ;;  %26122 = vmatpush3.xpose.msk.msra.mxu0 %vm1107_vm1, %v29002_v23  ;;  %26123 = vmatprep.mubr.msk.f32.mxu0 %vm28339_vm0, %v35493_v7 }
 0x113   :  { %v29048_v32 = vpop.f32.mrb[14].mxu0  ;;  %26131 = vmatprep.subr.mxu0 %v35493_v7  ;;  %6637 = vrot.lane.b32.xlu0 %v28996_v21, %s28340_s0 }
 0x114   :  { %35803 = vst [vmem:[#allocation33_spill] sm:$0xff] %v29048_v32  ;;  %v29053_v33 = vpop.f32.mrb[15].mxu0  ;;  %v29055_v34 = vpop.f32.mrb[14].mxu1 }
 0x115   :  { %35804 = vst [vmem:[#allocation34_spill] sm:$0xff] %v29053_v33  ;;  %35805 = vst [vmem:[#allocation35_spill] sm:$0xff] %v29055_v34  ;;  %26119 = vmatmul.mubr.msk.f32.vlgmr.msra.gmra.mrb[70].mxu1 %vm1107_vm1, %v29053_v33  ;;  %v29059_v35 = vpop.f32.mrb[15].mxu1  ;;  %6559 = vrot.lane.b32.xlu1 %v28977_v17, %s28340_s0 }
 0x116   :  { %35806 = vst [vmem:[#allocation36_spill] sm:$0xff] %v29059_v35  ;;  %26127 = vmatpush3.xpose.msk.msra.mxu1 %vm1107_vm1, %v28998_v22  ;;  %26128 = vmatprep.mubr.msk.f32.mxu1 %vm28339_vm0, %v35493_v7 }
 0x117   :  { %v29067_v36 = vpop.f32.mrb[16].mxu0  ;;  %26136 = vmatprep.subr.mxu1 %v35493_v7  ;;  %6951 = vrot.lane.b32.xlu0 %v29002_v23, %s28340_s0 }
 0x118   :  { %35807 = vst [vmem:[#allocation37_spill] sm:$0xff] %v29067_v36  ;;  %v29072_v37 = vpop.f32.mrb[17].mxu0  ;;  %v29074_v38 = vpop.f32.mrb[16].mxu1 }
 0x119   :  { %35808 = vst [vmem:[#allocation38_spill] sm:$0xff] %v29072_v37  ;;  %35809 = vst [vmem:[#allocation39_spill] sm:$0xff] %v29074_v38  ;;  %26124 = vmatmul.mubr.msk.f32.vlgmr.msra.gmra.mrb[72].mxu0 %vm1107_vm1, %v29072_v37  ;;  %v29078_v39 = vpop.f32.mrb[17].mxu1  ;;  %7029 = vrot.lane.b32.xlu1 %v28998_v22, %s28340_s0 }
 0x11a   :  { %26132 = vmatpush3.xpose.msk.msra.mxu0 %vm1107_vm1, %v29021_v27  ;;  %26133 = vmatprep.mubr.msk.f32.mxu0 %vm28339_vm0, %v35493_v7 }
 0x11b   :  { %v29086_v40 = vpop.f32.mrb[18].mxu0  ;;  %26141 = vmatprep.subr.mxu0 %v35493_v7  ;;  %7107 = vrot.lane.b32.xlu0 %v29021_v27, %s28340_s0 }
 0x11c   :  { %35810 = vst [vmem:[#allocation40_spill] sm:$0xff] %v29086_v40  ;;  %v29091_v41 = vpop.f32.mrb[19].mxu0  ;;  %v29093_v42 = vpop.f32.mrb[18].mxu1 }
 0x11d   :  { %35811 = vst [vmem:[#allocation41_spill] sm:$0xff] %v29091_v41  ;;  %35812 = vst [vmem:[#allocation42_spill] sm:$0xff] %v29093_v42  ;;  %26129 = vmatmul.mubr.msk.f32.vlgmr.msra.gmra.mrb[72].mxu1 %vm1107_vm1, %v29091_v41  ;;  %v29097_v43 = vpop.f32.mrb[19].mxu1  ;;  %7185 = vrot.lane.b32.xlu1 %v29017_v26, %s28340_s0 }
 0x11e   :  { %26137 = vmatpush3.xpose.msk.msra.mxu1 %vm1107_vm1, %v29017_v26  ;;  %26138 = vmatprep.mubr.msk.f32.mxu1 %vm28339_vm0, %v35493_v7 }
 0x11f   :  { %v29105_v44 = vpop.f32.mrb[20].mxu0  ;;  %26146 = vmatprep.subr.mxu1 %v35493_v7  ;;  %6793 = vrot.lane.b32.xlu0 %v29034_v29, %s28340_s0 }
 0x120   :  { %35813 = vst [vmem:[#allocation43_spill] sm:$0xff] %v29105_v44  ;;  %v29110_v45 = vpop.f32.mrb[21].mxu0  ;;  %v29112_v46 = vpop.f32.mrb[20].mxu1 }
 0x121   :  { %35814 = vst [vmem:[#allocation44_spill] sm:$0xff] %v29110_v45  ;;  %35815 = vst [vmem:[#allocation45_spill] sm:$0xff] %v29112_v46  ;;  %26134 = vmatmul.mubr.msk.f32.vlgmr.msra.gmra.mrb[74].mxu0 %vm1107_vm1, %v29110_v45  ;;  %v29116_v47 = vpop.f32.mrb[21].mxu1  ;;  %6715 = vrot.lane.b32.xlu1 %v29015_v25, %s28340_s0 }
 0x122   :  { %26142 = vmatpush3.xpose.msk.msra.mxu0 %vm1107_vm1, %v29040_v31  ;;  %26143 = vmatprep.mubr.msk.f32.mxu0 %vm28339_vm0, %v35493_v7 }
 0x123   :  { %v29124_v48 = vpop.f32.mrb[22].mxu0  ;;  %26151 = vmatprep.subr.mxu0 %v35493_v7  ;;  %7263 = vrot.lane.b32.xlu0 %v29040_v31, %s28340_s0 }
 0x124   :  { %35816 = vst [vmem:[#allocation46_spill] sm:$0xff] %v29124_v48  ;;  %v29129_v49 = vpop.f32.mrb[23].mxu0  ;;  %v29131_v50 = vpop.f32.mrb[22].mxu1 }
 0x125   :  { %35817 = vst [vmem:[#allocation47_spill] sm:$0xff] %v29129_v49  ;;  %35818 = vst [vmem:[#allocation48_spill] sm:$0xff] %v29131_v50  ;;  %26139 = vmatmul.mubr.msk.f32.vlgmr.msra.gmra.mrb[74].mxu1 %vm1107_vm1, %v29129_v49  ;;  %v29135_v51 = vpop.f32.mrb[23].mxu1  ;;  %7341 = vrot.lane.b32.xlu1 %v29036_v30, %s28340_s0 }
 0x126   :  { %35819 = vst [vmem:[#allocation49_spill] sm:$0xff] %v29135_v51  ;;  %26147 = vmatpush3.xpose.msk.msra.mxu1 %vm1107_vm1, %v29036_v30  ;;  %26148 = vmatprep.mubr.msk.f32.mxu1 %vm28339_vm0, %v35493_v7 }
 0x127   :  { %v29143_v52 = vpop.f32.mrb[24].mxu0  ;;  %26156 = vmatprep.subr.mxu1 %v35493_v7  ;;  %6949 = vrot.lane.b32.xlu0 %v29072_v37, %s28340_s0 }
 0x128   :  { %35820 = vst [vmem:[#allocation50_spill] sm:$0xff] %v29143_v52  ;;  %v29148_v53 = vpop.f32.mrb[25].mxu0  ;;  %v29150_v54 = vpop.f32.mrb[24].mxu1 }
 0x129   :  { %35821 = vst [vmem:[#allocation51_spill] sm:$0xff] %v29148_v53  ;;  %35822 = vst [vmem:[#allocation52_spill] sm:$0xff] %v29150_v54  ;;  %26144 = vmatmul.mubr.msk.f32.vlgmr.msra.gmra.mrb[76].mxu0 %vm1107_vm1, %v29148_v53  ;;  %v29154_v55 = vpop.f32.mrb[25].mxu1  ;;  %6871 = vrot.lane.b32.xlu1 %v29053_v33, %s28340_s0 }
 0x12a   :  { %35823 = vst [vmem:[#allocation53_spill] sm:$0xff] %v29154_v55  ;;  %26152 = vmatpush3.xpose.msk.msra.mxu0 %vm1107_vm1, %v29059_v35  ;;  %26153 = vmatprep.mubr.msk.f32.mxu0 %vm28339_vm0, %v35493_v7 }
 0x12b   :  { %v29162_v56 = vpop.f32.mrb[26].mxu0  ;;  %26161 = vmatprep.subr.mxu0 %v35493_v7  ;;  %7105 = vrot.lane.b32.xlu0 %v29110_v45, %s28340_s0 }
 0x12c   :  { %35824 = vst [vmem:[#allocation54_spill] sm:$0xff] %v29162_v56  ;;  %v29167_v57 = vpop.f32.mrb[27].mxu0  ;;  %v29169_v58 = vpop.f32.mrb[26].mxu1 }
 0x12d   :  { %35825 = vst [vmem:[#allocation55_spill] sm:$0xff] %v29167_v57  ;;  %35826 = vst [vmem:[#allocation56_spill] sm:$0xff] %v29169_v58  ;;  %26149 = vmatmul.mubr.msk.f32.vlgmr.msra.gmra.mrb[76].mxu1 %vm1107_vm1, %v29167_v57  ;;  %v29173_v59 = vpop.f32.mrb[27].mxu1  ;;  %7027 = vrot.lane.b32.xlu1 %v29091_v41, %s28340_s0 }
 0x12e   :  { %35827 = vst [vmem:[#allocation57_spill] sm:$0xff] %v29173_v59  ;;  %26157 = vmatpush3.xpose.msk.msra.mxu1 %vm1107_vm1, %v29055_v34  ;;  %26158 = vmatprep.mubr.msk.f32.mxu1 %vm28339_vm0, %v35493_v7 }
 0x12f   :  { %v29181_v60 = vpop.f32.mrb[28].mxu0  ;;  %26166 = vmatprep.subr.mxu1 %v35493_v7  ;;  %7261 = vrot.lane.b32.xlu0 %v29148_v53, %s28340_s0 }
 0x130   :  { %35828 = vst [vmem:[#allocation58_spill] sm:$0xff] %v29181_v60  ;;  %v29186_v61 = vpop.f32.mrb[29].mxu0  ;;  %v29188_v62 = vpop.f32.mrb[28].mxu1 }
 0x131   :  { %35829 = vst [vmem:[#allocation59_spill] sm:$0xff] %v29188_v62  ;;  %26154 = vmatmul.mubr.msk.f32.vlgmr.msra.gmra.mrb[78].mxu0 %vm1107_vm1, %v29186_v61  ;;  %v29192_v63 = vpop.f32.mrb[29].mxu1  ;;  %7183 = vrot.lane.b32.xlu1 %v29129_v49, %s28340_s0 }
 0x132   :  { %35830 = vst [vmem:[#allocation60_spill] sm:$0xff] %v29192_v63  ;;  %26162 = vmatpush3.xpose.msk.msra.mxu0 %vm1107_vm1, %v29078_v39  ;;  %26163 = vmatprep.mubr.msk.f32.mxu0 %vm28339_vm0, %v35493_v7 }
 0x133   :  { %v29200_v0 = vpop.f32.mrb[30].mxu0  ;;  %26171 = vmatprep.subr.mxu0 %v35493_v7 }
 0x134   :  { %35831 = vst [vmem:[#allocation61_spill] sm:$0xff] %v29200_v0  ;;  %v29203_v1 = vpop.f32.mrb[31].mxu0  ;;  %v29205_v2 = vpop.f32.mrb[30].mxu1 }
 0x135   :  { %35832 = vst [vmem:[#allocation62_spill] sm:$0xff] %v29205_v2  ;;  %26159 = vmatmul.mubr.msk.f32.vlgmr.msra.gmra.mrb[78].mxu1 %vm1107_vm1, %v29203_v1  ;;  %v29209_v60 = vpop.f32.mrb[31].mxu1  ;;  %7339 = vrot.lane.b32.xlu1 %v29167_v57, %s28340_s0 }
 0x136   :  { %35833 = vst [vmem:[#allocation63_spill] sm:$0xff] %v29209_v60  ;;  %26167 = vmatpush3.xpose.msk.msra.mxu1 %vm1107_vm1, %v29074_v38  ;;  %26168 = vmatprep.mubr.msk.f32.mxu1 %vm28339_vm0, %v35493_v7 }
 0x137   :  { %v29217_v0 = vpop.f32.mrb[32].mxu0  ;;  %26176 = vmatprep.subr.mxu1 %v35493_v7 }
 0x138   :  { %35834 = vst [vmem:[#allocation64_spill] sm:$0xff] %v29217_v0  ;;  %v29220_v52 = vpop.f32.mrb[33].mxu0  ;;  %v29222_v56 = vpop.f32.mrb[32].mxu1 }
 0x139   :  { %35835 = vst [vmem:[#allocation65_spill] sm:$0xff] %v29222_v56  ;;  %26164 = vmatmul.mubr.msk.f32.vlgmr.msra.gmra.mrb[80].mxu0 %vm1107_vm1, %v29220_v52  ;;  %v29226_v44 = vpop.f32.mrb[33].mxu1 }
 0x13a   :  { %35836 = vst [vmem:[#allocation66_spill] sm:$0xff] %v29226_v44  ;;  %26172 = vmatpush3.xpose.msk.msra.mxu0 %vm1107_vm1, %v29097_v43  ;;  %26173 = vmatprep.mubr.msk.f32.mxu0 %vm28339_vm0, %v35493_v7 }
 0x13b   :  { %v29232_v48 = vpop.f32.mrb[34].mxu0  ;;  %26181 = vmatprep.subr.mxu0 %v35493_v7 }
 0x13c   :  { %35837 = vst [vmem:[#allocation67_spill] sm:$0xff] %v29232_v48  ;;  %v29235_v0 = vpop.f32.mrb[35].mxu0  ;;  %v29237_v36 = vpop.f32.mrb[34].mxu1 }
 0x13d   :  { %35838 = vst [vmem:[#allocation68_spill] sm:$0xff] %v29235_v0  ;;  %35839 = vst [vmem:[#allocation69_spill] sm:$0xff] %v29237_v36  ;;  %26169 = vmatmul.mubr.msk.f32.vlgmr.msra.gmra.mrb[80].mxu1 %vm1107_vm1, %v29235_v0  ;;  %v29241_v40 = vpop.f32.mrb[35].mxu1 }
 0x13e   :  { %35840 = vst [vmem:[#allocation70_spill] sm:$0xff] %v29241_v40  ;;  %26177 = vmatpush3.xpose.msk.msra.mxu1 %vm1107_vm1, %v29093_v42  ;;  %26178 = vmatprep.mubr.msk.f32.mxu1 %vm28339_vm0, %v35493_v7 }
 0x13f   :  { %v29247_v28 = vpop.f32.mrb[36].mxu0  ;;  %26186 = vmatprep.subr.mxu1 %v35493_v7 }
 0x140   :  { %35841 = vst [vmem:[#allocation71_spill] sm:$0xff] %v29247_v28  ;;  %v29250_v48 = vpop.f32.mrb[37].mxu0  ;;  %v29252_v32 = vpop.f32.mrb[36].mxu1 }
 0x141   :  { %35842 = vst [vmem:[#allocation72_spill] sm:$0xff] %v29252_v32  ;;  %26174 = vmatmul.mubr.msk.f32.vlgmr.msra.gmra.mrb[82].mxu0 %vm1107_vm1, %v29250_v48  ;;  %v29256_v20 = vpop.f32.mrb[37].mxu1 }
 0x142   :  { %35843 = vst [vmem:[#allocation73_spill] sm:$0xff] %v29256_v20  ;;  %26182 = vmatpush3.xpose.msk.msra.mxu0 %vm1107_vm1, %v29116_v47  ;;  %26183 = vmatprep.mubr.msk.f32.mxu0 %vm28339_vm0, %v35493_v7 }
 0x143   :  { %v29262_v24 = vpop.f32.mrb[38].mxu0  ;;  %26191 = vmatprep.subr.mxu0 %v35493_v7 }
 0x144   :  { %35844 = vst [vmem:[#allocation74_spill] sm:$0xff] %v29262_v24  ;;  %v29265_v28 = vpop.f32.mrb[39].mxu0  ;;  %v29267_v12 = vpop.f32.mrb[38].mxu1 }
 0x145   :  { %35845 = vst [vmem:[#allocation75_spill] sm:$0xff] %v29265_v28  ;;  %35846 = vst [vmem:[#allocation76_spill] sm:$0xff] %v29267_v12  ;;  %26179 = vmatmul.mubr.msk.f32.vlgmr.msra.gmra.mrb[82].mxu1 %vm1107_vm1, %v29265_v28  ;;  %v29271_v16 = vpop.f32.mrb[39].mxu1 }
 0x146   :  { %35847 = vst [vmem:[#allocation77_spill] sm:$0xff] %v29271_v16  ;;  %26187 = vmatpush3.xpose.msk.msra.mxu1 %vm1107_vm1, %v29112_v46  ;;  %26188 = vmatprep.mubr.msk.f32.mxu1 %vm28339_vm0, %v35493_v7 }
 0x147   :  { %v29277_v3 = vpop.f32.mrb[40].mxu0  ;;  %26196 = vmatprep.subr.mxu1 %v35493_v7 }
 0x148   :  { %35848 = vst [vmem:[#allocation78_spill] sm:$0xff] %v29277_v3  ;;  %v29280_v24 = vpop.f32.mrb[41].mxu0  ;;  %v29282_v8 = vpop.f32.mrb[40].mxu1 }
 0x149   :  { %35849 = vst [vmem:[#allocation79_spill] sm:$0xff] %v29280_v24  ;;  %35850 = vst [vmem:[#allocation80_spill] sm:$0xff] %v29282_v8  ;;  %26184 = vmatmul.mubr.msk.f32.vlgmr.msra.gmra.mrb[84].mxu0 %vm1107_vm1, %v29280_v24  ;;  %v29286_v57 = vpop.f32.mrb[41].mxu1 }
 0x14a   :  { %35851 = vst [vmem:[#allocation81_spill] sm:$0xff] %v29286_v57  ;;  %26192 = vmatpush3.xpose.msk.msra.mxu0 %vm1107_vm1, %v29135_v51  ;;  %26193 = vmatprep.mubr.msk.f32.mxu0 %vm28339_vm0, %v35493_v7 }
 0x14b   :  { %v29292_v30 = vpop.f32.mrb[42].mxu0  ;;  %26201 = vmatprep.subr.mxu0 %v35493_v7 }
 0x14c   :  { %35852 = vst [vmem:[#allocation82_spill] sm:$0xff] %v29292_v30  ;;  %v29295_v3 = vpop.f32.mrb[43].mxu0  ;;  %v29297_v49 = vpop.f32.mrb[42].mxu1 }
 0x14d   :  { %35853 = vst [vmem:[#allocation83_spill] sm:$0xff] %v29295_v3  ;;  %35854 = vst [vmem:[#allocation84_spill] sm:$0xff] %v29297_v49  ;;  %26189 = vmatmul.mubr.msk.f32.vlgmr.msra.gmra.mrb[84].mxu1 %vm1107_vm1, %v29295_v3  ;;  %v29301_v26 = vpop.f32.mrb[43].mxu1 }
 0x14e   :  { %35855 = vst [vmem:[#allocation85_spill] sm:$0xff] %v29301_v26  ;;  %26197 = vmatpush3.xpose.msk.msra.mxu1 %vm1107_vm1, %v29131_v50  ;;  %26198 = vmatprep.mubr.msk.f32.mxu1 %vm28339_vm0, %v35493_v7 }
 0x14f   :  { %v29307_v41 = vpop.f32.mrb[44].mxu0  ;;  %26206 = vmatprep.subr.mxu1 %v35493_v7 }
 0x150   :  { %35856 = vst [vmem:[#allocation86_spill] sm:$0xff] %v29307_v41  ;;  %v29310_v30 = vpop.f32.mrb[45].mxu0  ;;  %v29312_v22 = vpop.f32.mrb[44].mxu1 }
 0x151   :  { %35857 = vst [vmem:[#allocation87_spill] sm:$0xff] %v29310_v30  ;;  %35858 = vst [vmem:[#allocation88_spill] sm:$0xff] %v29312_v22  ;;  %26194 = vmatmul.mubr.msk.f32.vlgmr.msra.gmra.mrb[86].mxu0 %vm1107_vm1, %v29310_v30  ;;  %v29316_v33 = vpop.f32.mrb[45].mxu1 }
 0x152   :  { %35859 = vst [vmem:[#allocation89_spill] sm:$0xff] %v29316_v33  ;;  %26202 = vmatpush3.xpose.msk.msra.mxu0 %vm1107_vm1, %v29154_v55  ;;  %26203 = vmatprep.mubr.msk.f32.mxu0 %vm28339_vm0, %v35493_v7 }
 0x153   :  { %v29322_v18 = vpop.f32.mrb[46].mxu0  ;;  %26211 = vmatprep.subr.mxu0 %v35493_v7 }
 0x154   :  { %35860 = vst [vmem:[#allocation90_spill] sm:$0xff] %v29322_v18  ;;  %v29325_v41 = vpop.f32.mrb[47].mxu0  ;;  %v29327_v25 = vpop.f32.mrb[46].mxu1 }
 0x155   :  { %35861 = vst [vmem:[#allocation91_spill] sm:$0xff] %v29325_v41  ;;  %35862 = vst [vmem:[#allocation92_spill] sm:$0xff] %v29327_v25  ;;  %26199 = vmatmul.mubr.msk.f32.vlgmr.msra.gmra.mrb[86].mxu1 %vm1107_vm1, %v29325_v41  ;;  %v29331_v14 = vpop.f32.mrb[47].mxu1 }
 0x156   :  { %35863 = vst [vmem:[#allocation93_spill] sm:$0xff] %v29331_v14  ;;  %26207 = vmatpush3.xpose.msk.msra.mxu1 %vm1107_vm1, %v29150_v54  ;;  %26208 = vmatprep.mubr.msk.f32.mxu1 %vm28339_vm0, %v35493_v7 }
 0x157   :  { %v29337_v17 = vpop.f32.mrb[48].mxu0  ;;  %26216 = vmatprep.subr.mxu1 %v35493_v7 }
 0x158   :  { %35864 = vst [vmem:[#allocation94_spill] sm:$0xff] %v29337_v17  ;;  %v29340_v18 = vpop.f32.mrb[49].mxu0  ;;  %v29342_v9 = vpop.f32.mrb[48].mxu1 }
 0x159   :  { %35865 = vst [vmem:[#allocation95_spill] sm:$0xff] %v29340_v18  ;;  %35866 = vst [vmem:[#allocation96_spill] sm:$0xff] %v29342_v9  ;;  %26204 = vmatmul.mubr.msk.f32.vlgmr.msra.gmra.mrb[88].mxu0 %vm1107_vm1, %v29340_v18  ;;  %v29346_v53 = vpop.f32.mrb[49].mxu1 }
 0x15a   :  { %35867 = vst [vmem:[#allocation97_spill] sm:$0xff] %v29346_v53  ;;  %26212 = vmatpush3.xpose.msk.msra.mxu0 %vm1107_vm1, %v29173_v59  ;;  %26213 = vmatprep.mubr.msk.f32.mxu0 %vm28339_vm0, %v35493_v7 }
 0x15b   :  { %v29352_v10 = vpop.f32.mrb[50].mxu0  ;;  %26221 = vmatprep.subr.mxu0 %v35493_v7 }
 0x15c   :  { %35868 = vst [vmem:[#allocation98_spill] sm:$0xff] %v29352_v10  ;;  %v29355_v17 = vpop.f32.mrb[51].mxu0  ;;  %v29357_v31 = vpop.f32.mrb[50].mxu1 }
 0x15d   :  { %35869 = vst [vmem:[#allocation99_spill] sm:$0xff] %v29355_v17  ;;  %35870 = vst [vmem:[#allocation100_spill] sm:$0xff] %v29357_v31  ;;  %26209 = vmatmul.mubr.msk.f32.vlgmr.msra.gmra.mrb[88].mxu1 %vm1107_vm1, %v29355_v17  ;;  %v29361_v4 = vpop.f32.mrb[51].mxu1 }
 0x15e   :  { %35871 = vst [vmem:[#allocation101_spill] sm:$0xff] %v29361_v4  ;;  %26217 = vmatpush3.xpose.msk.msra.mxu1 %vm1107_vm1, %v29169_v58  ;;  %26218 = vmatprep.mubr.msk.f32.mxu1 %vm28339_vm0, %v35493_v7 }
 0x15f   :  { %v29367_v45 = vpop.f32.mrb[52].mxu0  ;;  %26226 = vmatprep.subr.mxu1 %v35493_v7 }
 0x160   :  { %35872 = vst [vmem:[#allocation102_spill] sm:$0xff] %v29367_v45  ;;  %v29370_v10 = vpop.f32.mrb[53].mxu0  ;;  %v29372_v27 = vpop.f32.mrb[52].mxu1 }
 0x161   :  { %35873 = vst [vmem:[#allocation103_spill] sm:$0xff] %v29370_v10  ;;  %35874 = vst [vmem:[#allocation104_spill] sm:$0xff] %v29372_v27  ;;  %26214 = vmatmul.mubr.msk.f32.vlgmr.msra.gmra.mrb[90].mxu0 %vm1107_vm1, %v29370_v10  ;;  %v29376_v37 = vpop.f32.mrb[53].mxu1 }
 0x162   :  { %35875 = vst [vmem:[#allocation105_spill] sm:$0xff] %v29376_v37  ;;  %26222 = vmatpush3.xpose.msk.msra.mxu0 %vm1107_vm1, %v29192_v63  ;;  %26223 = vmatprep.mubr.msk.f32.mxu0 %vm28339_vm0, %v35493_v7 }
 0x163   :  { %v29382_v23 = vpop.f32.mrb[54].mxu0  ;;  %26231 = vmatprep.subr.mxu0 %v35493_v7 }
 0x164   :  { %35876 = vst [vmem:[#allocation106_spill] sm:$0xff] %v29382_v23  ;;  %v29385_v45 = vpop.f32.mrb[55].mxu0  ;;  %v29387_v29 = vpop.f32.mrb[54].mxu1 }
 0x165   :  { %35877 = vst [vmem:[#allocation107_spill] sm:$0xff] %v29385_v45  ;;  %35878 = vst [vmem:[#allocation108_spill] sm:$0xff] %v29387_v29  ;;  %26219 = vmatmul.mubr.msk.f32.vlgmr.msra.gmra.mrb[90].mxu1 %vm1107_vm1, %v29385_v45  ;;  %v29391_v19 = vpop.f32.mrb[55].mxu1 }
 0x166   :  { %35879 = vst [vmem:[#allocation109_spill] sm:$0xff] %v29391_v19  ;;  %26227 = vmatpush3.xpose.msk.msra.mxu1 %vm1107_vm1, %v29188_v62  ;;  %26228 = vmatprep.mubr.msk.f32.mxu1 %vm28339_vm0, %v35493_v7 }
 0x167   :  { %v29397_v21 = vpop.f32.mrb[56].mxu0  ;;  %26236 = vmatprep.subr.mxu1 %v35493_v7 }
 0x168   :  { %35880 = vst [vmem:[#allocation110_spill] sm:$0xff] %v29397_v21  ;;  %v29400_v23 = vpop.f32.mrb[57].mxu0  ;;  %v29402_v15 = vpop.f32.mrb[56].mxu1 }
 0x169   :  { %35881 = vst [vmem:[#allocation111_spill] sm:$0xff] %v29400_v23  ;;  %35882 = vst [vmem:[#allocation112_spill] sm:$0xff] %v29402_v15  ;;  %26224 = vmatmul.mubr.msk.f32.vlgmr.msra.gmra.mrb[92].mxu0 %vm1107_vm1, %v29400_v23  ;;  %v29406_v13 = vpop.f32.mrb[57].mxu1 }
 0x16a   :  { %35883 = vst [vmem:[#allocation113_spill] sm:$0xff] %v29406_v13  ;;  %26232 = vmatpush3.xpose.msk.msra.mxu0 %vm1107_vm1, %v29209_v60  ;;  %26233 = vmatprep.mubr.msk.f32.mxu0 %vm28339_vm0, %v35493_v7 }
 0x16b   :  { %v29412_v11 = vpop.f32.mrb[58].mxu0  ;;  %26241 = vmatprep.subr.mxu0 %v35493_v7  ;;  %v29641_v42 = vpop.permute.xlu1 %6405 }
 0x16c   :  { %35884 = vst [vmem:[#allocation114_spill] sm:$0xff] %v29412_v11  ;;  %v29415_v21 = vpop.f32.mrb[59].mxu0  ;;  %v29419_v5 = vpop.f32.mrb[58].mxu1  ;;  %35931 = vst [vmem:[#allocation161_spill] sm:$0xff] %v29641_v42 }
 0x16d   :  { %35885 = vst [vmem:[#allocation115_spill] sm:$0xff] %v29415_v21  ;;  %26229 = vmatmul.mubr.msk.f32.vlgmr.msra.gmra.mrb[92].mxu1 %vm1107_vm1, %v29415_v21  ;;  %35886 = vst [vmem:[#allocation116_spill] sm:$0xff] %v29419_v5  ;;  %v29425_v6 = vpop.f32.mrb[59].mxu1 }
 0x16e   :  { %26237 = vmatpush3.xpose.msk.msra.mxu1 %vm1107_vm1, %v29205_v2  ;;  %26238 = vmatprep.mubr.msk.f32.mxu1 %vm28339_vm0, %v35493_v7  ;;  %35887 = vst [vmem:[#allocation117_spill] sm:$0xff] %v29425_v6 }
 0x16f   :  { %v29427_v15 = vpop.f32.mrb[60].mxu0  ;;  %26246 = vmatprep.subr.mxu1 %v35493_v7 }
 0x170   :  { %35888 = vst [vmem:[#allocation118_spill] sm:$0xff] %v29427_v15  ;;  %v29430_v11 = vpop.f32.mrb[61].mxu0  ;;  %v29432_v13 = vpop.f32.mrb[60].mxu1 }
 0x171   :  { %35889 = vst [vmem:[#allocation119_spill] sm:$0xff] %v29430_v11  ;;  %35890 = vst [vmem:[#allocation120_spill] sm:$0xff] %v29432_v13  ;;  %26234 = vmatmul.mubr.msk.f32.vlgmr.msra.gmra.mrb[94].mxu0 %vm1107_vm1, %v29430_v11  ;;  %v29436_v5 = vpop.f32.mrb[61].mxu1 }
 0x172   :  { %35891 = vst [vmem:[#allocation121_spill] sm:$0xff] %v29436_v5  ;;  %26242 = vmatpush3.msra.mxu0 %v29226_v44  ;;  %26243 = vmatprep.mubr.msk.f32.mxu0 %vm28339_vm0, %v35493_v7 }
 0x173   :  { %v29441_v2 = vpop.f32.mrb[62].mxu0  ;;  %26251 = vmatprep.subr.mxu0 %v35493_v7 }
 0x174   :  { %35892 = vst [vmem:[#allocation122_spill] sm:$0xff] %v29441_v2  ;;  %v29444_v15 = vpop.f32.mrb[63].mxu0  ;;  %v29446_v6 = vpop.f32.mrb[62].mxu1  ;;  %v25106_v2 = vld [vmem:[%s35406_s3] sm:$0xff]  }
 0x175   :  { %35893 = vst [vmem:[#allocation123_spill] sm:$0xff] %v29444_v15  ;;  %35894 = vst [vmem:[#allocation124_spill] sm:$0xff] %v29446_v6  ;;  %26239 = vmatmul.mubr.msk.f32.vlgmr.msra.gmra.mrb[94].mxu1 %vm1107_vm1, %v29444_v15  ;;  %v29450_v13 = vpop.f32.mrb[63].mxu1  ;;  %v25107_v5 = vunpack.c.0.s8 %v25106_v2  ;;  %v25108_v29 = vunpack.c.1.s8 %v25106_v2  ;;  %v25111_v19 = vunpack.c.2.s8 %v25106_v2  ;;  %v25112_v62 = vunpack.c.3.s8 %v25106_v2 }
 0x176   :  { %35895 = vst [vmem:[#allocation125_spill] sm:$0xff] %v29450_v13  ;;  %26247 = vmatpush3.msra.mxu1 %v29222_v56  ;;  %26248 = vmatprep.mubr.msk.f32.mxu1 %vm28339_vm0, %v35493_v7  ;;  %v27714_v56 = vld [vmem:[%s35406_s3 + $0x8] sm:$0xff]  }
 0x177   :  { %26256 = vmatprep.subr.mxu1 %v35493_v7  ;;  %v979_v21 = vcvt.s32.f32 %v25107_v5  ;;  %v980_v6 = vcvt.s32.f32 %v25108_v29  ;;  %v981_v13 = vcvt.s32.f32 %v25111_v19  ;;  %v982_v45 = vcvt.s32.f32 %v25112_v62 }
 0x178   :  { %v25115_v37 = vunpack.c.0.s8 %v27714_v56  ;;  %v25116_v54 = vunpack.c.1.s8 %v27714_v56 }
 0x179   :  { %v1011_v15 = vsub.f32 1.0, %v979_v21  ;;  %v1012_v27 = vsub.f32 1.0, %v980_v6  ;;  %v1013_v31 = vsub.f32 1.0, %v981_v13  ;;  %v29466_v17 = vmul.f32 -1e+09, %v979_v21 }
 0x17a   :  { %v1014_v4 = vsub.f32 1.0, %v982_v45  ;;  %v983_v2 = vcvt.s32.f32 %v25115_v37  ;;  %v29477_v21 = vmul.f32 -1e+09, %v981_v13  ;;  %v984_v25 = vcvt.s32.f32 %v25116_v54 }
 0x17b   :  { %v29462_v7 = vmul.f32 0.17677669, %v1011_v15  ;;  %v29464_v58 = vmul.f32 0.17677669, %v1012_v27  ;;  %35898 = vst [vmem:[#allocation128_spill] sm:$0xff] %v29466_v17 }
 0x17c   :  { %v29470_v53 = vmul.f32 0.17677669, %v1013_v31  ;;  %v29472_v15 = vmul.f32 -1e+09, %v980_v6  ;;  %35901 = vst [vmem:[#allocation131_spill] sm:$0xff] %v29477_v21  ;;  %v1015_v37 = vsub.f32 1.0, %v983_v2 }
 0x17d   :  { %35896 = vst [vmem:[#allocation126_spill] sm:$0xff] %v29462_v7  ;;  %35897 = vst [vmem:[#allocation127_spill] sm:$0xff] %v29464_v58  ;;  %v29479_v50 = vmul.f32 0.17677669, %v1014_v4  ;;  %v29490_v13 = vmul.f32 -1e+09, %v982_v45 }
 0x17e   :  { %35899 = vst [vmem:[#allocation129_spill] sm:$0xff] %v29470_v53  ;;  %35900 = vst [vmem:[#allocation130_spill] sm:$0xff] %v29472_v15  ;;  %v1016_v54 = vsub.f32 1.0, %v984_v25  ;;  %v27716_v45 = vld [vmem:[%s35406_s3 + $0x10] sm:$0xff]  }
 0x17f   :  { %35902 = vst [vmem:[#allocation132_spill] sm:$0xff] %v29479_v50  ;;  %35903 = vst [vmem:[#allocation133_spill] sm:$0xff] %v29490_v13  ;;  %v25127_v11 = vunpack.c.2.s8 %v27716_v45 }
 0x1d0   :  { %v1180_v5 = vpop.f32.mrb[64].mxu0  ;;  %v1256_v29 = vpop.f32.mrb[64].mxu1 }
 0x1d1   :  { %v3540_v19 = vmul.f32 %v1180_v5, %v29462_v7  ;;  %v26085_v9 = vpop.f32.mrb[65].mxu0  ;;  %v3541_v41 = vmul.f32 %v1256_v29, %v29464_v58  ;;  %v26090_v62 = vpop.f32.mrb[65].mxu1  ;;  %v25119_v29 = vunpack.c.2.s8 %v27714_v56  ;;  %v25120_v58 = vunpack.c.3.s8 %v27714_v56 }
 0x1d2   :  { %v29492_v62 = vmul.f32 0.17677669, %v1015_v37  ;;  %v29505_v56 = vmul.f32 -1e+09, %v983_v2  ;;  %v25124_v7 = vunpack.c.1.s8 %v27716_v45 }
 0x1d3   :  { %v29475_v27 = vadd.f32 %v3540_v19, %v29466_v17  ;;  %v29485_v5 = vadd.f32 %v3541_v41, %v29472_v15 }
 0x1d4   :  { %v1332_v44 = vpop.f32.mrb[66].mxu0  ;;  %35904 = vst [vmem:[#allocation134_spill] sm:$0xff] %v29492_v62  ;;  %35905 = vst [vmem:[#allocation135_spill] sm:$0xff] %v29505_v56 }
 0x1d5   :  { %v3542_v9 = vmul.f32 %v1332_v44, %v29470_v53  ;;  %v3605_v31 = vsel %vm3604_vm2, %v29475_v27, -inf  ;;  %v26095_v6 = vpop.f32.mrb[67].mxu0  ;;  %v3608_v53 = vsel %vm3604_vm2, %v29485_v5, -inf }
 0x1d6   :  { %3606 = vmax.xlane.f32.xlu0 %v3605_v31  ;;  %v985_v31 = vcvt.s32.f32 %v25119_v29  ;;  %v29510_v29 = vmul.f32 0.17677669, %v1016_v54 }
 0x1d7   :  { %v29488_v19 = vadd.f32 %v3542_v9, %v29477_v21 }
 0x1d8   :  { %v1408_v4 = vpop.f32.mrb[66].mxu1  ;;  %35906 = vst [vmem:[#allocation136_spill] sm:$0xff] %v29510_v29  ;;  %v1017_v17 = vsub.f32 1.0, %v985_v31 }
 0x1d9   :  { %v3543_v44 = vmul.f32 %v1408_v4, %v29479_v50  ;;  %v3611_v41 = vsel %vm3604_vm2, %v29488_v19, -inf  ;;  %v26100_v6 = vpop.f32.mrb[67].mxu1  ;;  %v986_v4 = vcvt.s32.f32 %v25120_v58  ;;  %v25123_v50 = vunpack.c.0.s8 %v27716_v45 }
 0x1da   :  { %3609 = vmax.xlane.f32.xlu0 %v3608_v53  ;;  %3612 = vmax.xlane.f32.xlu1 %v3611_v41 }
 0x1db   :  { %v29503_v37 = vadd.f32 %v3543_v44, %v29490_v13  ;;  %v29515_v44 = vmul.f32 -1e+09, %v984_v25  ;;  %v1018_v41 = vsub.f32 1.0, %v986_v4  ;;  %v987_v13 = vcvt.s32.f32 %v25123_v50 }
 0x1dc   :  { %v1484_v9 = vpop.f32.mrb[68].mxu0 }
 0x1dd   :  { %v3544_v15 = vmul.f32 %v1484_v9, %v29492_v62  ;;  %v3614_v6 = vsel %vm3604_vm2, %v29503_v37, -inf  ;;  %v26105_v21 = vpop.f32.mrb[69].mxu0  ;;  %35907 = vst [vmem:[#allocation137_spill] sm:$0xff] %v29515_v44  ;;  %v29520_v62 = vmul.f32 0.17677669, %v1017_v17  ;;  %v988_v17 = vcvt.s32.f32 %v25124_v7  ;;  %v27718_v7 = vld [vmem:[%s35406_s3 + $0x18] sm:$0xff]  }
 0x1de   :  { %3615 = vmax.xlane.f32.xlu1 %v3614_v6  ;;  %v29527_v6 = vmul.f32 0.17677669, %v1018_v41  ;;  %v25128_v41 = vunpack.c.3.s8 %v27716_v45  ;;  %v25132_v60 = vunpack.c.1.s8 %v27718_v7  ;;  %v25135_v46 = vunpack.c.2.s8 %v27718_v7 }
 0x1df   :  { %v29513_v53 = vadd.f32 %v3544_v15, %v29505_v56  ;;  %35908 = vst [vmem:[#allocation138_spill] sm:$0xff] %v29520_v62  ;;  %v29525_v15 = vmul.f32 -1e+09, %v985_v31  ;;  %v1019_v56 = vsub.f32 1.0, %v987_v13  ;;  %v1020_v3 = vsub.f32 1.0, %v988_v17 }
 0x1e0   :  { %v1560_v2 = vpop.f32.mrb[68].mxu1  ;;  %35910 = vst [vmem:[#allocation140_spill] sm:$0xff] %v29527_v6  ;;  %v990_v45 = vcvt.s32.f32 %v25128_v41 }
 0x1e1   :  { %v3545_v58 = vmul.f32 %v1560_v2, %v29510_v29  ;;  %v3617_v9 = vsel %vm3604_vm2, %v29513_v53, -inf  ;;  %v26110_v54 = vpop.f32.mrb[69].mxu1  ;;  %35909 = vst [vmem:[#allocation139_spill] sm:$0xff] %v29525_v15 }
 0x1e2   :  { %3618 = vmax.xlane.f32.xlu0 %v3617_v9  ;;  %v29537_v54 = vmul.f32 0.17677669, %v1019_v56 }
 0x1e3   :  { %v29523_v21 = vadd.f32 %v3545_v58, %v29515_v44  ;;  %v29535_v58 = vmul.f32 -1e+09, %v986_v4 }
 0x1e4   :  { %v1636_v25 = vpop.f32.mrb[70].mxu0  ;;  %35912 = vst [vmem:[#allocation142_spill] sm:$0xff] %v29537_v54 }
 0x1e5   :  { %v3546_v50 = vmul.f32 %v1636_v25, %v29520_v62  ;;  %v3620_v2 = vsel %vm3604_vm2, %v29523_v21, -inf  ;;  %v26115_v29 = vpop.f32.mrb[71].mxu0  ;;  %35911 = vst [vmem:[#allocation141_spill] sm:$0xff] %v29535_v58 }
 0x1e6   :  { %3621 = vmax.xlane.f32.xlu1 %v3620_v2  ;;  %v989_v29 = vcvt.s32.f32 %v25127_v11  ;;  %v25131_v2 = vunpack.c.0.s8 %v27718_v7 }
 0x1e7   :  { %v29533_v9 = vadd.f32 %v3546_v50, %v29525_v15  ;;  %v29548_v50 = vmul.f32 -1e+09, %v987_v13 }
 0x1e8   :  { %v1712_v31 = vpop.f32.mrb[70].mxu1  ;;  %v1021_v15 = vsub.f32 1.0, %v989_v29  ;;  %v991_v14 = vcvt.s32.f32 %v25131_v2 }
 0x1e9   :  { %v3547_v44 = vmul.f32 %v1712_v31, %v29527_v6  ;;  %v3623_v25 = vsel %vm3604_vm2, %v29533_v9, -inf  ;;  %v26120_v62 = vpop.f32.mrb[71].mxu1  ;;  %35913 = vst [vmem:[#allocation143_spill] sm:$0xff] %v29548_v50  ;;  %v29553_v6 = vmul.f32 0.17677669, %v1020_v3 }
 0x1ea   :  { %3624 = vmax.xlane.f32.xlu0 %v3623_v25 }
 0x1eb   :  { %v29546_v4 = vadd.f32 %v3547_v44, %v29535_v58  ;;  %35914 = vst [vmem:[#allocation144_spill] sm:$0xff] %v29553_v6  ;;  %v29558_v44 = vmul.f32 -1e+09, %v988_v17  ;;  %v1022_v58 = vsub.f32 1.0, %v990_v45 }
 0x1ec   :  { %v1788_v56 = vpop.f32.mrb[72].mxu0 }
 0x1ed   :  { %v3548_v31 = vmul.f32 %v1788_v56, %v29537_v54  ;;  %v3626_v62 = vsel %vm3604_vm2, %v29546_v4, -inf  ;;  %v26125_v11 = vpop.f32.mrb[73].mxu0  ;;  %35915 = vst [vmem:[#allocation145_spill] sm:$0xff] %v29558_v44  ;;  %v29563_v54 = vmul.f32 0.17677669, %v1021_v15  ;;  %v992_v15 = vcvt.s32.f32 %v25132_v60  ;;  %v27720_v60 = vld [vmem:[%s35406_s3 + $0x20] sm:$0xff]  }
 0x1ee   :  { %3627 = vmax.xlane.f32.xlu1 %v3626_v62  ;;  %v29570_v11 = vmul.f32 0.17677669, %v1022_v58  ;;  %v25136_v58 = vunpack.c.3.s8 %v27718_v7  ;;  %v25140_v28 = vunpack.c.1.s8 %v27720_v60  ;;  %v25143_v33 = vunpack.c.2.s8 %v27720_v60 }
 0x1ef   :  { %v29556_v25 = vadd.f32 %v3548_v31, %v29548_v50  ;;  %35916 = vst [vmem:[#allocation146_spill] sm:$0xff] %v29563_v54  ;;  %v29568_v31 = vmul.f32 -1e+09, %v989_v29  ;;  %v1023_v50 = vsub.f32 1.0, %v991_v14  ;;  %v1024_v22 = vsub.f32 1.0, %v992_v15 }
 0x1f0   :  { %v1864_v13 = vpop.f32.mrb[72].mxu1  ;;  %35918 = vst [vmem:[#allocation148_spill] sm:$0xff] %v29570_v11  ;;  %v994_v7 = vcvt.s32.f32 %v25136_v58 }
 0x1f1   :  { %v3549_v41 = vmul.f32 %v1864_v13, %v29553_v6  ;;  %v3629_v56 = vsel %vm3604_vm2, %v29556_v25, -inf  ;;  %v26130_v3 = vpop.f32.mrb[73].mxu1  ;;  %35917 = vst [vmem:[#allocation147_spill] sm:$0xff] %v29568_v31 }
 0x1f2   :  { %3630 = vmax.xlane.f32.xlu0 %v3629_v56  ;;  %v29580_v3 = vmul.f32 0.17677669, %v1023_v50 }
 0x1f3   :  { %v29566_v62 = vadd.f32 %v3549_v41, %v29558_v44  ;;  %v29578_v41 = vmul.f32 -1e+09, %v990_v45 }
 0x1f4   :  { %v1940_v17 = vpop.f32.mrb[74].mxu0  ;;  %35920 = vst [vmem:[#allocation150_spill] sm:$0xff] %v29580_v3 }
 0x1f5   :  { %v3550_v2 = vmul.f32 %v1940_v17, %v29563_v54  ;;  %v3632_v13 = vsel %vm3604_vm2, %v29566_v62, -inf  ;;  %v26135_v6 = vpop.f32.mrb[75].mxu0  ;;  %35919 = vst [vmem:[#allocation149_spill] sm:$0xff] %v29578_v41 }
 0x1f6   :  { %3633 = vmax.xlane.f32.xlu1 %v3632_v13  ;;  %v993_v6 = vcvt.s32.f32 %v25135_v46  ;;  %v25139_v13 = vunpack.c.0.s8 %v27720_v60 }
 0x1f7   :  { %v29576_v56 = vadd.f32 %v3550_v2, %v29568_v31  ;;  %v29591_v2 = vmul.f32 -1e+09, %v991_v14 }
 0x1f8   :  { %v2016_v29 = vpop.f32.mrb[74].mxu1  ;;  %v1025_v31 = vsub.f32 1.0, %v993_v6  ;;  %v995_v23 = vcvt.s32.f32 %v25139_v13 }
 0x1f9   :  { %v3551_v44 = vmul.f32 %v2016_v29, %v29570_v11  ;;  %v3635_v17 = vsel %vm3604_vm2, %v29576_v56, -inf  ;;  %v26140_v54 = vpop.f32.mrb[75].mxu1  ;;  %35921 = vst [vmem:[#allocation151_spill] sm:$0xff] %v29591_v2  ;;  %v29596_v11 = vmul.f32 0.17677669, %v1024_v22 }
 0x1fa   :  { %3636 = vmax.xlane.f32.xlu0 %v3635_v17 }
 0x1fb   :  { %v29589_v45 = vadd.f32 %v3551_v44, %v29578_v41  ;;  %35922 = vst [vmem:[#allocation152_spill] sm:$0xff] %v29596_v11  ;;  %v29601_v44 = vmul.f32 -1e+09, %v992_v15  ;;  %v1026_v41 = vsub.f32 1.0, %v994_v7 }
 0x1fc   :  { %v2092_v50 = vpop.f32.mrb[76].mxu0 }
 0x1fd   :  { %v3552_v29 = vmul.f32 %v2092_v50, %v29580_v3  ;;  %v3638_v54 = vsel %vm3604_vm2, %v29589_v45, -inf  ;;  %v26145_v46 = vpop.f32.mrb[77].mxu0  ;;  %35923 = vst [vmem:[#allocation153_spill] sm:$0xff] %v29601_v44  ;;  %v29606_v3 = vmul.f32 0.17677669, %v1025_v31  ;;  %v996_v31 = vcvt.s32.f32 %v25140_v28  ;;  %v27722_v28 = vld [vmem:[%s35406_s3 + $0x28] sm:$0xff]  }
 0x1fe   :  { %3639 = vmax.xlane.f32.xlu1 %v3638_v54  ;;  %v29613_v46 = vmul.f32 0.17677669, %v1026_v41  ;;  %v25144_v41 = vunpack.c.3.s8 %v27720_v60  ;;  %v25148_v49 = vunpack.c.1.s8 %v27722_v28  ;;  %v25151_v10 = vunpack.c.2.s8 %v27722_v28 }
 0x1ff   :  { %v29599_v17 = vadd.f32 %v3552_v29, %v29591_v2  ;;  %35924 = vst [vmem:[#allocation154_spill] sm:$0xff] %v29606_v3  ;;  %v29611_v29 = vmul.f32 -1e+09, %v993_v6  ;;  %v1027_v2 = vsub.f32 1.0, %v995_v23  ;;  %v1028_v63 = vsub.f32 1.0, %v996_v31 }
 0x200   :  { %v2168_v14 = vpop.f32.mrb[76].mxu1  ;;  %35926 = vst [vmem:[#allocation156_spill] sm:$0xff] %v29613_v46  ;;  %v998_v60 = vcvt.s32.f32 %v25144_v41  ;;  %v1001_v0 = vcvt.s32.f32 %v25151_v10 }
 0x201   :  { %v3553_v58 = vmul.f32 %v2168_v14, %v29596_v11  ;;  %v3641_v50 = vsel %vm3604_vm2, %v29599_v17, -inf  ;;  %v26150_v22 = vpop.f32.mrb[77].mxu1  ;;  %35925 = vst [vmem:[#allocation155_spill] sm:$0xff] %v29611_v29 }
 0x202   :  { %3642 = vmax.xlane.f32.xlu0 %v3641_v50  ;;  %v29623_v22 = vmul.f32 0.17677669, %v1027_v2  ;;  %v1030_v41 = vsub.f32 1.0, %v998_v60  ;;  %v1033_v26 = vsub.f32 1.0, %v1001_v0 }
 0x203   :  { %v29609_v54 = vadd.f32 %v3553_v58, %v29601_v44  ;;  %v29621_v58 = vmul.f32 -1e+09, %v994_v7 }
 0x204   :  { %v2244_v15 = vpop.f32.mrb[78].mxu0  ;;  %35928 = vst [vmem:[#allocation158_spill] sm:$0xff] %v29623_v22 }
 0x205   :  { %v3554_v13 = vmul.f32 %v2244_v15, %v29606_v3  ;;  %v3644_v14 = vsel %vm3604_vm2, %v29609_v54, -inf  ;;  %v26155_v11 = vpop.f32.mrb[79].mxu0  ;;  %35927 = vst [vmem:[#allocation157_spill] sm:$0xff] %v29621_v58 }
 0x206   :  { %3645 = vmax.xlane.f32.xlu1 %v3644_v14  ;;  %v997_v11 = vcvt.s32.f32 %v25143_v33  ;;  %v25147_v14 = vunpack.c.0.s8 %v27722_v28 }
 0x207   :  { %v29619_v50 = vadd.f32 %v3554_v13, %v29611_v29  ;;  %v29634_v13 = vmul.f32 -1e+09, %v995_v23  ;;  %v29646_v23 = vmul.f32 -1e+09, %v996_v31 }
 0x208   :  { %v2320_v6 = vpop.f32.mrb[78].mxu1  ;;  %v1029_v29 = vsub.f32 1.0, %v997_v11 }
 0x209   :  { %v3555_v44 = vmul.f32 %v2320_v6, %v29613_v46  ;;  %v3647_v15 = vsel %vm3604_vm2, %v29619_v50, -inf  ;;  %v26160_v3 = vpop.f32.mrb[79].mxu1  ;;  %35929 = vst [vmem:[#allocation159_spill] sm:$0xff] %v29634_v13  ;;  %v29639_v46 = vmul.f32 0.17677669, %v1028_v63  ;;  %35932 = vst [vmem:[#allocation162_spill] sm:$0xff] %v29646_v23 }
 0x20a   :  { %3648 = vmax.xlane.f32.xlu0 %v3647_v15  ;;  %v29651_v63 = vmul.f32 0.17677669, %v1029_v29 }
 0x20b   :  { %v29632_v7 = vadd.f32 %v3555_v44, %v29621_v58  ;;  %35930 = vst [vmem:[#allocation160_spill] sm:$0xff] %v29639_v46  ;;  %v999_v58 = vcvt.s32.f32 %v25147_v14  ;;  %v29660_v14 = vpop.permute.xlu1 %6325 }
 0x20c   :  { %v2396_v2 = vpop.f32.mrb[80].mxu0  ;;  %35933 = vst [vmem:[#allocation163_spill] sm:$0xff] %v29651_v63  ;;  %35936 = vst [vmem:[#allocation166_spill] sm:$0xff] %v29660_v14  ;;  %v25152_v14 = vunpack.c.3.s8 %v27722_v28 }
 0x20d   :  { %v3556_v6 = vmul.f32 %v2396_v2, %v29623_v22  ;;  %v3650_v3 = vsel %vm3604_vm2, %v29632_v7, -inf  ;;  %v26165_v33 = vpop.f32.mrb[81].mxu0  ;;  %v1031_v42 = vsub.f32 1.0, %v999_v58 }
 0x20e   :  { %3651 = vmax.xlane.f32.xlu1 %v3650_v3 }
 0x20f   :  { %v29644_v44 = vadd.f32 %v3556_v6, %v29634_v13  ;;  %v29656_v6 = vmul.f32 -1e+09, %v997_v11  ;;  %v29658_v13 = vmul.f32 0.17677669, %v1030_v41 }
 0x210   :  { %v2472_v15 = vpop.f32.mrb[80].mxu1 }
 0x211   :  { %v3557_v2 = vmul.f32 %v2472_v15, %v29639_v46  ;;  %v3653_v22 = vsel %vm3604_vm2, %v29644_v44, -inf  ;;  %v26170_v33 = vpop.f32.mrb[81].mxu1  ;;  %35934 = vst [vmem:[#allocation164_spill] sm:$0xff] %v29656_v6  ;;  %35935 = vst [vmem:[#allocation165_spill] sm:$0xff] %v29658_v13 }
 0x212   :  { %3654 = vmax.xlane.f32.xlu0 %v3653_v22  ;;  %v1000_v33 = vcvt.s32.f32 %v25148_v49  ;;  %v29665_v22 = vpop.permute.xlu0 %6327 }
 0x213   :  { %v29654_v3 = vadd.f32 %v3557_v2, %v29646_v23  ;;  %35937 = vst [vmem:[#allocation167_spill] sm:$0xff] %v29665_v22  ;;  %v29670_v2 = vmul.f32 -1e+09, %v998_v60  ;;  %v29672_v23 = vmul.f32 0.17677669, %v1031_v42 }
 0x214   :  { %v2548_v31 = vpop.f32.mrb[82].mxu0  ;;  %v1032_v49 = vsub.f32 1.0, %v1000_v33  ;;  %v29685_v42 = vmul.f32 -1e+09, %v999_v58  ;;  %v29697_v58 = vmul.f32 -1e+09, %v1000_v33 }
 0x215   :  { %v3558_v15 = vmul.f32 %v2548_v31, %v29651_v63  ;;  %v3656_v29 = vsel %vm3604_vm2, %v29654_v3, -inf  ;;  %v26175_v46 = vpop.f32.mrb[83].mxu0  ;;  %35938 = vst [vmem:[#allocation168_spill] sm:$0xff] %v29670_v2  ;;  %35939 = vst [vmem:[#allocation169_spill] sm:$0xff] %v29672_v23 }
 0x216   :  { %3657 = vmax.xlane.f32.xlu1 %v3656_v29  ;;  %v27724_v29 = vld [vmem:[%s35406_s3 + $0x30] sm:$0xff]   ;;  %35941 = vst [vmem:[#allocation171_spill] sm:$0xff] %v29685_v42  ;;  %v29692_v22 = vmul.f32 0.17677669, %v1032_v49  ;;  %35944 = vst [vmem:[#allocation174_spill] sm:$0xff] %v29697_v58 }
 0x217   :  { %v29668_v11 = vadd.f32 %v3558_v15, %v29656_v6  ;;  %v29680_v15 = vpop.permute.xlu1 %6561  ;;  %v29687_v6 = vpop.permute.xlu0 %6483  ;;  %v29704_v49 = vmul.f32 0.17677669, %v1033_v26  ;;  %v25159_v38 = vunpack.c.2.s8 %v27724_v29 }
 0x218   :  { %v2624_v41 = vpop.f32.mrb[82].mxu1  ;;  %35940 = vst [vmem:[#allocation170_spill] sm:$0xff] %v29680_v15  ;;  %35942 = vst [vmem:[#allocation172_spill] sm:$0xff] %v29687_v6  ;;  %v25156_v6 = vunpack.c.1.s8 %v27724_v29 }
 0x219   :  { %v3559_v31 = vmul.f32 %v2624_v41, %v29658_v13  ;;  %v3659_v63 = vsel %vm3604_vm2, %v29668_v11, -inf  ;;  %v26180_v46 = vpop.f32.mrb[83].mxu1  ;;  %v1002_v41 = vcvt.s32.f32 %v25152_v14  ;;  %v25155_v13 = vunpack.c.0.s8 %v27724_v29  ;;  %35943 = vst [vmem:[#allocation173_spill] sm:$0xff] %v29692_v22  ;;  %35946 = vst [vmem:[#allocation176_spill] sm:$0xff] %v29704_v49 }
 0x21a   :  { %3660 = vmax.xlane.f32.xlu0 %v3659_v63 }
 0x21b   :  { %v29683_v60 = vadd.f32 %v3559_v31, %v29670_v2  ;;  %v1034_v14 = vsub.f32 1.0, %v1002_v41  ;;  %v1003_v15 = vcvt.s32.f32 %v25155_v13  ;;  %v29699_v59 = vpop.permute.xlu1 %6403 }
 0x21c   :  { %v2700_v28 = vpop.f32.mrb[84].mxu0  ;;  %35945 = vst [vmem:[#allocation175_spill] sm:$0xff] %v29699_v59 }
 0x21d   :  { %v3560_v46 = vmul.f32 %v2700_v28, %v29672_v23  ;;  %v3662_v10 = vsel %vm3604_vm2, %v29683_v60, -inf  ;;  %v26185_v63 = vpop.f32.mrb[85].mxu0  ;;  %v1035_v59 = vsub.f32 1.0, %v1003_v15 }
 0x21e   :  { %3663 = vmax.xlane.f32.xlu1 %v3662_v10  ;;  %v29706_v10 = vpop.permute.xlu0 %6481 }
 0x21f   :  { %v29695_v31 = vadd.f32 %v3560_v46, %v29685_v42  ;;  %35947 = vst [vmem:[#allocation177_spill] sm:$0xff] %v29706_v10  ;;  %v29711_v46 = vmul.f32 -1e+09, %v1001_v0  ;;  %v29713_v42 = vmul.f32 0.17677669, %v1034_v14  ;;  %v25160_v10 = vunpack.c.3.s8 %v27724_v29 }
 0x220   :  { %v2776_v2 = vpop.f32.mrb[84].mxu1  ;;  %v29723_v0 = vmul.f32 -1e+09, %v1002_v41  ;;  %v29725_v14 = vmul.f32 0.17677669, %v1035_v59 }
 0x221   :  { %v3561_v28 = vmul.f32 %v2776_v2, %v29692_v22  ;;  %v3665_v23 = vsel %vm3604_vm2, %v29695_v31, -inf  ;;  %v26190_v63 = vpop.f32.mrb[85].mxu1  ;;  %35948 = vst [vmem:[#allocation178_spill] sm:$0xff] %v29711_v46  ;;  %35949 = vst [vmem:[#allocation179_spill] sm:$0xff] %v29713_v42  ;;  %v29740_v29 = vmul.f32 -1e+09, %v1003_v15 }
 0x222   :  { %3666 = vmax.xlane.f32.xlu0 %v3665_v23  ;;  %v1004_v63 = vcvt.s32.f32 %v25156_v6  ;;  %v29718_v23 = vpop.permute.xlu1 %6717  ;;  %35951 = vst [vmem:[#allocation181_spill] sm:$0xff] %v29723_v0  ;;  %35952 = vst [vmem:[#allocation182_spill] sm:$0xff] %v29725_v14  ;;  %v29727_v8 = vpop.permute.xlu0 %6639 }
 0x223   :  { %v29709_v33 = vadd.f32 %v3561_v28, %v29697_v58  ;;  %35950 = vst [vmem:[#allocation180_spill] sm:$0xff] %v29718_v23  ;;  %35953 = vst [vmem:[#allocation183_spill] sm:$0xff] %v29727_v8 }
 0x224   :  { %v2852_v13 = vpop.f32.mrb[86].mxu0  ;;  %35954 = vst [vmem:[#allocation184_spill] sm:$0xff] %v29740_v29 }
 0x225   :  { %v3562_v2 = vmul.f32 %v2852_v13, %v29704_v49  ;;  %v3668_v26 = vsel %vm3604_vm2, %v29709_v33, -inf  ;;  %v26195_v22 = vpop.f32.mrb[87].mxu0  ;;  %v1005_v49 = vcvt.s32.f32 %v25159_v38 }
 0x226   :  { %3669 = vmax.xlane.f32.xlu1 %v3668_v26  ;;  %v1036_v26 = vsub.f32 1.0, %v1004_v63 }
 0x227   :  { %v29721_v28 = vadd.f32 %v3562_v2, %v29711_v46  ;;  %v29735_v2 = vld [vmem:[%s35406_s3 + $0x38] sm:$0xff]   ;;  %v1006_v46 = vcvt.s32.f32 %v25160_v10  ;;  %v29755_v10 = vmul.f32 -1e+09, %v1004_v63  ;;  %v29768_v63 = vmul.f32 -1e+09, %v1005_v49 }
 0x228   :  { %v2928_v58 = vpop.f32.mrb[86].mxu1  ;;  %v29748_v23 = vmul.f32 0.17677669, %v1036_v26 }
 0x229   :  { %v3563_v13 = vmul.f32 %v2928_v58, %v29713_v42  ;;  %v3671_v6 = vsel %vm3604_vm2, %v29721_v28, -inf  ;;  %v26200_v22 = vpop.f32.mrb[87].mxu1  ;;  %v25163_v58 = vunpack.c.0.s8 %v29735_v2  ;;  %v29743_v42 = vpop.permute.xlu1 %6873  ;;  %35958 = vst [vmem:[#allocation188_spill] sm:$0xff] %v29755_v10  ;;  %v1038_v57 = vsub.f32 1.0, %v1006_v46  ;;  %35961 = vst [vmem:[#allocation191_spill] sm:$0xff] %v29768_v63 }
 0x22a   :  { %3672 = vmax.xlane.f32.xlu0 %v3671_v6  ;;  %35955 = vst [vmem:[#allocation185_spill] sm:$0xff] %v29743_v42  ;;  %35956 = vst [vmem:[#allocation186_spill] sm:$0xff] %v29748_v23  ;;  %v1037_v6 = vsub.f32 1.0, %v1005_v49  ;;  %v29781_v49 = vmul.f32 -1e+09, %v1006_v46 }
 0x22b   :  { %v29738_v59 = vadd.f32 %v3563_v13, %v29723_v0  ;;  %v29750_v13 = vpop.permute.xlu0 %6795  ;;  %v1007_v42 = vcvt.s32.f32 %v25163_v58  ;;  %v29770_v58 = vmul.f32 0.17677669, %v1038_v57 }
 0x22c   :  { %v3004_v41 = vpop.f32.mrb[88].mxu0  ;;  %35957 = vst [vmem:[#allocation187_spill] sm:$0xff] %v29750_v13  ;;  %v29760_v26 = vmul.f32 0.17677669, %v1037_v6  ;;  %35964 = vst [vmem:[#allocation194_spill] sm:$0xff] %v29781_v49 }
 0x22d   :  { %v3564_v22 = vmul.f32 %v3004_v41, %v29725_v14  ;;  %v3674_v38 = vsel %vm3604_vm2, %v29738_v59, -inf  ;;  %v26205_v8 = vpop.f32.mrb[89].mxu0  ;;  %v29763_v13 = vpop.permute.xlu1 %6559  ;;  %35962 = vst [vmem:[#allocation192_spill] sm:$0xff] %v29770_v58  ;;  %v29795_v46 = vmul.f32 -1e+09, %v1007_v42 }
 0x22e   :  { %3675 = vmax.xlane.f32.xlu1 %v3674_v38  ;;  %35959 = vst [vmem:[#allocation189_spill] sm:$0xff] %v29760_v26  ;;  %v25164_v38 = vunpack.c.1.s8 %v29735_v2  ;;  %35960 = vst [vmem:[#allocation190_spill] sm:$0xff] %v29763_v13  ;;  %v25167_v13 = vunpack.c.2.s8 %v29735_v2 }
 0x22f   :  { %v29753_v15 = vadd.f32 %v3564_v22, %v29740_v29  ;;  %35968 = vst [vmem:[#allocation198_spill] sm:$0xff] %v29795_v46 }
 0x230   :  { %v3080_v0 = vpop.f32.mrb[88].mxu1 }
 0x231   :  { %v3565_v41 = vmul.f32 %v3080_v0, %v29748_v23  ;;  %v3677_v14 = vsel %vm3604_vm2, %v29753_v15, -inf  ;;  %v26210_v8 = vpop.f32.mrb[89].mxu1  ;;  %v1039_v0 = vsub.f32 1.0, %v1007_v42  ;;  %v29772_v23 = vpop.permute.xlu0 %6637 }
 0x232   :  { %3678 = vmax.xlane.f32.xlu0 %v3677_v14  ;;  %35963 = vst [vmem:[#allocation193_spill] sm:$0xff] %v29772_v23  ;;  %v1008_v14 = vcvt.s32.f32 %v25164_v38  ;;  %v29785_v16 = vpop.permute.xlu1 %7029  ;;  %v1009_v23 = vcvt.s32.f32 %v25167_v13 }
 0x233   :  { %v29766_v22 = vadd.f32 %v3565_v41, %v29755_v10  ;;  %v29783_v10 = vmul.f32 0.17677669, %v1039_v0  ;;  %35966 = vst [vmem:[#allocation196_spill] sm:$0xff] %v29785_v16 }
 0x234   :  { %v3156_v29 = vpop.f32.mrb[90].mxu0  ;;  %v1040_v38 = vsub.f32 1.0, %v1008_v14 }
 0x235   :  { %v3566_v6 = vmul.f32 %v3156_v29, %v29760_v26  ;;  %v3680_v8 = vsel %vm3604_vm2, %v29766_v22, -inf  ;;  %v26215_v18 = vpop.f32.mrb[91].mxu0  ;;  %35965 = vst [vmem:[#allocation195_spill] sm:$0xff] %v29783_v10 }
 0x236   :  { %3681 = vmax.xlane.f32.xlu1 %v3680_v8  ;;  %v29790_v8 = vpop.permute.xlu0 %6951  ;;  %v29802_v13 = vpop.permute.xlu1 %7185 }
 0x237   :  { %v29779_v41 = vadd.f32 %v3566_v6, %v29768_v63  ;;  %35967 = vst [vmem:[#allocation197_spill] sm:$0xff] %v29790_v8  ;;  %35970 = vst [vmem:[#allocation200_spill] sm:$0xff] %v29802_v13  ;;  %v29819_v13 = vmul.f32 -1e+09, %v1009_v23 }
 0x238   :  { %v3232_v57 = vpop.f32.mrb[90].mxu1 }
 0x239   :  { %v3567_v29 = vmul.f32 %v3232_v57, %v29770_v58  ;;  %v3683_v26 = vsel %vm3604_vm2, %v29779_v41, -inf  ;;  %v26220_v18 = vpop.f32.mrb[91].mxu1  ;;  %v29800_v58 = vmul.f32 0.17677669, %v1040_v38  ;;  %35974 = vst [vmem:[#allocation204_spill] sm:$0xff] %v29819_v13 }
 0x23a   :  { %3684 = vmax.xlane.f32.xlu0 %v3683_v26  ;;  %v1041_v18 = vsub.f32 1.0, %v1009_v23 }
 0x23b   :  { %v29793_v6 = vadd.f32 %v3567_v29, %v29781_v49  ;;  %35969 = vst [vmem:[#allocation199_spill] sm:$0xff] %v29800_v58  ;;  %v29807_v29 = vmul.f32 -1e+09, %v1008_v14  ;;  %v29809_v49 = vpop.permute.xlu0 %7107  ;;  %v29821_v14 = vpop.permute.xlu1 %6715 }
 0x23c   :  { %v3308_v0 = vpop.f32.mrb[92].mxu0  ;;  %35972 = vst [vmem:[#allocation202_spill] sm:$0xff] %v29809_v49  ;;  %v29814_v38 = vmul.f32 0.17677669, %v1041_v18  ;;  %35975 = vst [vmem:[#allocation205_spill] sm:$0xff] %v29821_v14 }
 0x23d   :  { %v3568_v63 = vmul.f32 %v3308_v0, %v29783_v10  ;;  %v3686_v57 = vsel %vm3604_vm2, %v29793_v6, -inf  ;;  %v26225_v16 = vpop.f32.mrb[93].mxu0  ;;  %35971 = vst [vmem:[#allocation201_spill] sm:$0xff] %v29807_v29 }
 0x23e   :  { %3687 = vmax.xlane.f32.xlu1 %v3686_v57  ;;  %35973 = vst [vmem:[#allocation203_spill] sm:$0xff] %v29814_v38 }
 0x23f   :  { %v29805_v26 = vadd.f32 %v3568_v63, %v29795_v46  ;;  %v29826_v49 = vpop.permute.xlu0 %6793 }
 0x240   :  { %v3384_v42 = vpop.f32.mrb[92].mxu1  ;;  %35976 = vst [vmem:[#allocation206_spill] sm:$0xff] %v29826_v49 }
 0x241   :  { %v3569_v0 = vmul.f32 %v3384_v42, %v29800_v58  ;;  %v3689_v10 = vsel %vm3604_vm2, %v29805_v26, -inf  ;;  %v26230_v16 = vpop.f32.mrb[93].mxu1 }
 0x242   :  { %3690 = vmax.xlane.f32.xlu0 %v3689_v10  ;;  %v29833_v16 = vpop.permute.xlu1 %7341 }
 0x243   :  { %v29817_v57 = vadd.f32 %v3569_v0, %v29807_v29  ;;  %35977 = vst [vmem:[#allocation207_spill] sm:$0xff] %v29833_v16  ;;  %v29835_v29 = vpop.permute.xlu0 %7263 }
 0x244   :  { %v3460_v63 = vpop.f32.mrb[94].mxu0  ;;  %35978 = vst [vmem:[#allocation208_spill] sm:$0xff] %v29835_v29 }
 0x245   :  { %v3570_v46 = vmul.f32 %v3460_v63, %v29814_v38  ;;  %v3692_v42 = vsel %vm3604_vm2, %v29817_v57, -inf  ;;  %v26235_v58 = vpop.f32.mrb[95].mxu0 }
 0x246   :  { %3693 = vmax.xlane.f32.xlu1 %v3692_v42  ;;  %v29837_v63 = vpop.permute.xlu1 %6871 }
 0x247   :  { %v29829_v18 = vadd.f32 %v3570_v46, %v29819_v13  ;;  %35979 = vst [vmem:[#allocation209_spill] sm:$0xff] %v29837_v63  ;;  %v29839_v38 = vpop.permute.xlu0 %6949 }
 0x248   :  { %v3536_v10 = vpop.f32.mrb[94].mxu1  ;;  %35980 = vst [vmem:[#allocation210_spill] sm:$0xff] %v29839_v38 }
 0x249   :  { %v3695_v23 = vsel %vm3604_vm2, %v29829_v18, -inf  ;;  %v26240_v0 = vpop.f32.mrb[95].mxu1 }
 0x24a   :  { %3696 = vmax.xlane.f32.xlu0 %v3695_v23  ;;  %v29841_v58 = vpop.permute.xlu1 %7027  ;;  %v25168_v23 = vunpack.c.3.s8 %v29735_v2 }
 0x24b   :  { %35981 = vst [vmem:[#allocation211_spill] sm:$0xff] %v29841_v58  ;;  %v29845_v46 = vpop.permute.xlu0 %7105 }
 0x24c   :  { %35982 = vst [vmem:[#allocation212_spill] sm:$0xff] %v29845_v46  ;;  %v1010_v63 = vcvt.s32.f32 %v25168_v23 }
 0x24e   :  { %v29847_v42 = vpop.permute.xlu1 %7183 }
 0x24f   :  { %35983 = vst [vmem:[#allocation213_spill] sm:$0xff] %v29847_v42  ;;  %v29849_v13 = vpop.permute.xlu0 %7261 }
 0x250   :  { %35984 = vst [vmem:[#allocation214_spill] sm:$0xff] %v29849_v13 }
 0x252   :  { %v29854_v0 = vpop.permute.xlu1 %7339 }
 0x253   :  { %35985 = vst [vmem:[#allocation215_spill] sm:$0xff] %v29854_v0  ;;  %v29862_v0 = vmul.f32 -1e+09, %v1010_v63 }
 0x255   :  { %35987 = vst [vmem:[#allocation217_spill] sm:$0xff] %v29862_v0 }
 0x257   :  { %7497 = vrot.lane.b32.xlu1 %v29055_v34, %s28340_s0  ;;  %v1042_v34 = vsub.f32 1.0, %v1010_v63 }
 0x259   :  { %v29859_v8 = vmul.f32 0.17677669, %v1042_v34 }
 0x25b   :  { %35986 = vst [vmem:[#allocation216_spill] sm:$0xff] %v29859_v8 }
 0x260   :  { %7419 = vrot.lane.b32.xlu0 %v29059_v35, %s28340_s0 }
 0x263   :  { %v3607_v16 = vpop.xlane.xlu0 %3606 }
 0x264   :  { %v3701_v29 = vsub.f32 %v29475_v27, %v3607_v16  ;;  %v3571_v27 = vmul.f32 %v3536_v10, %v29859_v8 }
 0x266   :  { %v3733_v42 = vmul.f32 1.442695, %v3701_v29 }
 0x267   :  { %v3610_v14 = vpop.xlane.xlu0 %3609  ;;  %v3613_v58 = vpop.xlane.xlu1 %3612 }
 0x268   :  { %v3702_v46 = vsub.f32 %v29485_v5, %v3610_v14  ;;  %v3703_v13 = vsub.f32 %v29488_v19, %v3613_v58  ;;  %27738 = vpow2.f32 %v3733_v42  ;;  %v29868_v19 = vadd.f32 %v3571_v27, %v29862_v0 }
 0x26a   :  { %v3735_v35 = vmul.f32 1.442695, %v3702_v46  ;;  %v3737_v23 = vmul.f32 1.442695, %v3703_v13 }
 0x26b   :  { %v3616_v38 = vpop.xlane.xlu1 %3615 }
 0x26c   :  { %v3704_v2 = vsub.f32 %v29503_v37, %v3616_v38  ;;  %27740 = vpow2.f32 %v3735_v35 }
 0x26d   :  { %27742 = vpow2.f32 %v3737_v23 }
 0x26e   :  { %v3739_v5 = vmul.f32 1.442695, %v3704_v2 }
 0x26f   :  { %v3619_v49 = vpop.xlane.xlu0 %3618 }
 0x270   :  { %v3705_v12 = vsub.f32 %v29513_v53, %v3619_v49  ;;  %27744 = vpow2.f32 %v3739_v5  ;;  %v3698_v53 = vsel %vm3604_vm2, %v29868_v19, -inf }
 0x272   :  { %v3741_v29 = vmul.f32 1.442695, %v3705_v12  ;;  %v29873_v35 = vpop.eup %27738 }
 0x273   :  { %v3622_v14 = vpop.xlane.xlu1 %3621  ;;  %v3797_v58 = vsel %vm3604_vm2, %v29873_v35, 0.0 }
 0x274   :  { %v3706_v34 = vsub.f32 %v29523_v21, %v3622_v14  ;;  %27746 = vpow2.f32 %v3741_v29 }
 0x276   :  { %v3743_v37 = vmul.f32 1.442695, %v3706_v34  ;;  %v29875_v10 = vpop.eup %27740 }
 0x277   :  { %v3625_v38 = vpop.xlane.xlu0 %3624  ;;  %v29878_v16 = vpop.eup %27742 }
 0x278   :  { %v3707_v13 = vsub.f32 %v29533_v9, %v3625_v38  ;;  %27748 = vpow2.f32 %v3743_v37  ;;  %v3800_v9 = vsel %vm3604_vm2, %v29875_v10, 0.0  ;;  %v3803_v5 = vsel %vm3604_vm2, %v29878_v16, 0.0 }
 0x27a   :  { %v3745_v49 = vmul.f32 1.442695, %v3707_v13  ;;  %v29884_v46 = vpop.eup %27744 }
 0x27b   :  { %3699 = vmax.xlane.f32.xlu1 %v3698_v53  ;;  %v3628_v12 = vpop.xlane.xlu1 %3627  ;;  %v3806_v27 = vsel %vm3604_vm2, %v29884_v46, 0.0 }
 0x27c   :  { %v3708_v21 = vsub.f32 %v29546_v4, %v3628_v12  ;;  %27750 = vpow2.f32 %v3745_v49 }
 0x27e   :  { %v3747_v63 = vmul.f32 1.442695, %v3708_v21  ;;  %v29887_v23 = vpop.eup %27746 }
 0x27f   :  { %3801 = vadd.xlane.f32.xlu1 %v3800_v9  ;;  %v3631_v42 = vpop.xlane.xlu0 %3630  ;;  %3798 = vadd.xlane.f32.xlu0 %v3797_v58  ;;  %v3809_v38 = vsel %vm3604_vm2, %v29887_v23, 0.0 }
 0x280   :  { %27752 = vpow2.f32 %v3747_v63  ;;  %v3709_v2 = vsub.f32 %v29556_v25, %v3631_v42 }
 0x282   :  { %v3749_v4 = vmul.f32 1.442695, %v3709_v2  ;;  %v29893_v14 = vpop.eup %27748 }
 0x283   :  { %3807 = vadd.xlane.f32.xlu1 %v3806_v27  ;;  %v3634_v29 = vpop.xlane.xlu1 %3633  ;;  %3804 = vadd.xlane.f32.xlu0 %v3803_v5  ;;  %v3812_v25 = vsel %vm3604_vm2, %v29893_v14, 0.0 }
 0x284   :  { %27754 = vpow2.f32 %v3749_v4  ;;  %v3710_v34 = vsub.f32 %v29566_v62, %v3634_v29 }
 0x286   :  { %v3751_v37 = vmul.f32 1.442695, %v3710_v34  ;;  %v29900_v13 = vpop.eup %27750 }
 0x287   :  { %3813 = vadd.xlane.f32.xlu1 %v3812_v25  ;;  %v3637_v53 = vpop.xlane.xlu0 %3636  ;;  %3810 = vadd.xlane.f32.xlu0 %v3809_v38  ;;  %v3815_v62 = vsel %vm3604_vm2, %v29900_v13, 0.0 }
 0x288   :  { %27756 = vpow2.f32 %v3751_v37  ;;  %v3711_v49 = vsub.f32 %v29576_v56, %v3637_v53 }
 0x28a   :  { %v29903_v12 = vpop.eup %27752  ;;  %v3753_v21 = vmul.f32 1.442695, %v3711_v49 }
 0x28b   :  { %v3640_v63 = vpop.xlane.xlu1 %3639  ;;  %3816 = vadd.xlane.f32.xlu0 %v3815_v62  ;;  %v3818_v9 = vsel %vm3604_vm2, %v29903_v12, 0.0 }
 0x28c   :  { %27758 = vpow2.f32 %v3753_v21  ;;  %v3712_v58 = vsub.f32 %v29589_v45, %v3640_v63  ;;  %3819 = vadd.xlane.f32.xlu1 %v3818_v9 }
 0x28e   :  { %v29910_v42 = vpop.eup %27754  ;;  %v3755_v2 = vmul.f32 1.442695, %v3712_v58 }
 0x28f   :  { %v3643_v4 = vpop.xlane.xlu0 %3642  ;;  %v3821_v56 = vsel %vm3604_vm2, %v29910_v42, 0.0 }
 0x290   :  { %27760 = vpow2.f32 %v3755_v2  ;;  %v3713_v27 = vsub.f32 %v29599_v17, %v3643_v4  ;;  %3822 = vadd.xlane.f32.xlu0 %v3821_v56 }
 0x292   :  { %v29915_v5 = vpop.eup %27756  ;;  %v3757_v29 = vmul.f32 1.442695, %v3713_v27 }
 0x293   :  { %v3646_v34 = vpop.xlane.xlu1 %3645  ;;  %v3824_v37 = vsel %vm3604_vm2, %v29915_v5, 0.0 }
 0x294   :  { %27762 = vpow2.f32 %v3757_v29  ;;  %v3714_v45 = vsub.f32 %v29609_v54, %v3646_v34  ;;  %3825 = vadd.xlane.f32.xlu1 %v3824_v37 }
 0x296   :  { %v29920_v25 = vpop.eup %27758  ;;  %v3759_v38 = vmul.f32 1.442695, %v3714_v45 }
 0x297   :  { %v3649_v53 = vpop.xlane.xlu0 %3648  ;;  %v3827_v49 = vsel %vm3604_vm2, %v29920_v25, 0.0 }
 0x298   :  { %27764 = vpow2.f32 %v3759_v38  ;;  %v3715_v17 = vsub.f32 %v29619_v50, %v3649_v53  ;;  %3828 = vadd.xlane.f32.xlu0 %v3827_v49 }
 0x29a   :  { %v29925_v21 = vpop.eup %27760  ;;  %v3761_v62 = vmul.f32 1.442695, %v3715_v17 }
 0x29b   :  { %v3652_v63 = vpop.xlane.xlu1 %3651  ;;  %v3830_v9 = vsel %vm3604_vm2, %v29925_v21, 0.0 }
 0x29c   :  { %27766 = vpow2.f32 %v3761_v62  ;;  %v3716_v54 = vsub.f32 %v29632_v7, %v3652_v63  ;;  %3831 = vadd.xlane.f32.xlu1 %v3830_v9 }
 0x29e   :  { %v29930_v58 = vpop.eup %27762  ;;  %v3763_v2 = vmul.f32 1.442695, %v3716_v54 }
 0x29f   :  { %v3655_v4 = vpop.xlane.xlu0 %3654  ;;  %v3833_v56 = vsel %vm3604_vm2, %v29930_v58, 0.0 }
 0x2a0   :  { %27768 = vpow2.f32 %v3763_v2  ;;  %v3717_v50 = vsub.f32 %v29644_v44, %v3655_v4  ;;  %3834 = vadd.xlane.f32.xlu0 %v3833_v56 }
 0x2a2   :  { %v29935_v27 = vpop.eup %27764  ;;  %v3765_v29 = vmul.f32 1.442695, %v3717_v50 }
 0x2a3   :  { %v3658_v34 = vpop.xlane.xlu1 %3657  ;;  %v3836_v37 = vsel %vm3604_vm2, %v29935_v27, 0.0 }
 0x2a4   :  { %27770 = vpow2.f32 %v3765_v29  ;;  %v3718_v7 = vsub.f32 %v29654_v3, %v3658_v34  ;;  %3837 = vadd.xlane.f32.xlu1 %v3836_v37 }
 0x2a6   :  { %v29940_v45 = vpop.eup %27766  ;;  %v3767_v38 = vmul.f32 1.442695, %v3718_v7 }
 0x2a7   :  { %v3661_v53 = vpop.xlane.xlu0 %3660  ;;  %v3839_v49 = vsel %vm3604_vm2, %v29940_v45, 0.0 }
 0x2a8   :  { %27772 = vpow2.f32 %v3767_v38  ;;  %v3719_v44 = vsub.f32 %v29668_v11, %v3661_v53  ;;  %3840 = vadd.xlane.f32.xlu0 %v3839_v49 }
 0x2aa   :  { %v29945_v17 = vpop.eup %27768  ;;  %v3769_v62 = vmul.f32 1.442695, %v3719_v44 }
 0x2ab   :  { %v3664_v63 = vpop.xlane.xlu1 %3663  ;;  %v3842_v9 = vsel %vm3604_vm2, %v29945_v17, 0.0 }
 0x2ac   :  { %27774 = vpow2.f32 %v3769_v62  ;;  %v3720_v3 = vsub.f32 %v29683_v60, %v3664_v63  ;;  %3843 = vadd.xlane.f32.xlu1 %v3842_v9 }
 0x2ae   :  { %v29950_v54 = vpop.eup %27770  ;;  %v3771_v2 = vmul.f32 1.442695, %v3720_v3 }
 0x2af   :  { %v3667_v4 = vpop.xlane.xlu0 %3666  ;;  %v3845_v56 = vsel %vm3604_vm2, %v29950_v54, 0.0 }
 0x2b0   :  { %27776 = vpow2.f32 %v3771_v2  ;;  %v3721_v11 = vsub.f32 %v29695_v31, %v3667_v4  ;;  %3846 = vadd.xlane.f32.xlu0 %v3845_v56 }
 0x2b2   :  { %v29955_v50 = vpop.eup %27772  ;;  %v3773_v29 = vmul.f32 1.442695, %v3721_v11 }
 0x2b3   :  { %v3670_v34 = vpop.xlane.xlu1 %3669  ;;  %v3848_v37 = vsel %vm3604_vm2, %v29955_v50, 0.0 }
 0x2b4   :  { %27778 = vpow2.f32 %v3773_v29  ;;  %v3722_v60 = vsub.f32 %v29709_v33, %v3670_v34  ;;  %3849 = vadd.xlane.f32.xlu1 %v3848_v37 }
 0x2b6   :  { %v29960_v7 = vpop.eup %27774  ;;  %v3775_v38 = vmul.f32 1.442695, %v3722_v60 }
 0x2b7   :  { %v3673_v53 = vpop.xlane.xlu0 %3672  ;;  %v3851_v49 = vsel %vm3604_vm2, %v29960_v7, 0.0 }
 0x2b8   :  { %27780 = vpow2.f32 %v3775_v38  ;;  %v3723_v31 = vsub.f32 %v29721_v28, %v3673_v53  ;;  %3852 = vadd.xlane.f32.xlu0 %v3851_v49 }
 0x2ba   :  { %v29965_v44 = vpop.eup %27776  ;;  %v3777_v62 = vmul.f32 1.442695, %v3723_v31 }
 0x2bb   :  { %v3676_v63 = vpop.xlane.xlu1 %3675  ;;  %v3854_v9 = vsel %vm3604_vm2, %v29965_v44, 0.0 }
 0x2bc   :  { %27782 = vpow2.f32 %v3777_v62  ;;  %v3724_v33 = vsub.f32 %v29738_v59, %v3676_v63  ;;  %3855 = vadd.xlane.f32.xlu1 %v3854_v9 }
 0x2be   :  { %v29970_v3 = vpop.eup %27778  ;;  %v3779_v2 = vmul.f32 1.442695, %v3724_v33 }
 0x2bf   :  { %v3679_v4 = vpop.xlane.xlu0 %3678  ;;  %v3857_v56 = vsel %vm3604_vm2, %v29970_v3, 0.0 }
 0x2c0   :  { %27784 = vpow2.f32 %v3779_v2  ;;  %v3725_v28 = vsub.f32 %v29753_v15, %v3679_v4  ;;  %3858 = vadd.xlane.f32.xlu0 %v3857_v56 }
 0x2c2   :  { %v29975_v11 = vpop.eup %27780  ;;  %v3781_v29 = vmul.f32 1.442695, %v3725_v28 }
 0x2c3   :  { %v3682_v34 = vpop.xlane.xlu1 %3681  ;;  %v3860_v37 = vsel %vm3604_vm2, %v29975_v11, 0.0 }
 0x2c4   :  { %27786 = vpow2.f32 %v3781_v29  ;;  %v3726_v59 = vsub.f32 %v29766_v22, %v3682_v34  ;;  %3861 = vadd.xlane.f32.xlu1 %v3860_v37 }
 0x2c6   :  { %v29980_v60 = vpop.eup %27782  ;;  %v3783_v38 = vmul.f32 1.442695, %v3726_v59 }
 0x2c7   :  { %v3685_v53 = vpop.xlane.xlu0 %3684  ;;  %v3863_v49 = vsel %vm3604_vm2, %v29980_v60, 0.0 }
 0x2c8   :  { %27788 = vpow2.f32 %v3783_v38  ;;  %v3727_v15 = vsub.f32 %v29779_v41, %v3685_v53  ;;  %3864 = vadd.xlane.f32.xlu0 %v3863_v49 }
 0x2ca   :  { %v29985_v31 = vpop.eup %27784  ;;  %v3785_v62 = vmul.f32 1.442695, %v3727_v15 }
 0x2cb   :  { %v3688_v63 = vpop.xlane.xlu1 %3687  ;;  %v3866_v9 = vsel %vm3604_vm2, %v29985_v31, 0.0 }
 0x2cc   :  { %27790 = vpow2.f32 %v3785_v62  ;;  %v3728_v22 = vsub.f32 %v29793_v6, %v3688_v63  ;;  %3867 = vadd.xlane.f32.xlu1 %v3866_v9 }
 0x2ce   :  { %v29990_v33 = vpop.eup %27786  ;;  %v3787_v2 = vmul.f32 1.442695, %v3728_v22 }
 0x2cf   :  { %v3691_v4 = vpop.xlane.xlu0 %3690  ;;  %v3869_v56 = vsel %vm3604_vm2, %v29990_v33, 0.0 }
 0x2d0   :  { %27792 = vpow2.f32 %v3787_v2  ;;  %v3729_v41 = vsub.f32 %v29805_v26, %v3691_v4  ;;  %3870 = vadd.xlane.f32.xlu0 %v3869_v56 }
 0x2d2   :  { %v29995_v28 = vpop.eup %27788  ;;  %v3789_v29 = vmul.f32 1.442695, %v3729_v41 }
 0x2d3   :  { %v3694_v34 = vpop.xlane.xlu1 %3693  ;;  %v3872_v37 = vsel %vm3604_vm2, %v29995_v28, 0.0 }
 0x2d4   :  { %27794 = vpow2.f32 %v3789_v29  ;;  %v3730_v6 = vsub.f32 %v29817_v57, %v3694_v34  ;;  %3873 = vadd.xlane.f32.xlu1 %v3872_v37 }
 0x2d6   :  { %v30000_v59 = vpop.eup %27790  ;;  %v3791_v38 = vmul.f32 1.442695, %v3730_v6 }
 0x2d7   :  { %v3697_v53 = vpop.xlane.xlu0 %3696  ;;  %v3875_v49 = vsel %vm3604_vm2, %v30000_v59, 0.0  ;;  %v30027_v56 = vpop.permute.xlu1 %7497 }
 0x2d8   :  { %27796 = vpow2.f32 %v3791_v38  ;;  %v3731_v26 = vsub.f32 %v29829_v18, %v3697_v53  ;;  %3876 = vadd.xlane.f32.xlu0 %v3875_v49 }
 0x2da   :  { %v30005_v15 = vpop.eup %27792  ;;  %v3793_v62 = vmul.f32 1.442695, %v3731_v26 }
 0x2db   :  { %v3878_v63 = vsel %vm3604_vm2, %v30005_v15, 0.0  ;;  %v30031_v41 = vpop.permute.xlu0 %7419 }
 0x2dc   :  { %27798 = vpow2.f32 %v3793_v62  ;;  %3879 = vadd.xlane.f32.xlu1 %v3878_v63 }
 0x2de   :  { %v30009_v57 = vpop.eup %27794 }
 0x2df   :  { %v3881_v9 = vsel %vm3604_vm2, %v30009_v57, 0.0 }
 0x2e0   :  { %3882 = vadd.xlane.f32.xlu0 %v3881_v9 }
 0x2e2   :  { %v30013_v22 = vpop.eup %27796 }
 0x2e3   :  { %v3884_v18 = vsel %vm3604_vm2, %v30013_v22, 0.0 }
 0x2e4   :  { %3885 = vadd.xlane.f32.xlu1 %v3884_v18 }
 0x2e6   :  { %v30017_v2 = vpop.eup %27798 }
 0x2e7   :  { %v3887_v4 = vsel %vm3604_vm2, %v30017_v2, 0.0 }
 0x2e8   :  { %3888 = vadd.xlane.f32.xlu0 %v3887_v4 }
 0x2f5   :  { %7495 = vrot.lane.b32.xlu1 %v29203_v1, %s28340_s0 }
 0x2fe   :  { %7417 = vrot.lane.b32.xlu0 %v29186_v61, %s28340_s0 }
 0x302   :  { %7575 = vrot.lane.b32.xlu0 %v29078_v39, %s28340_s0 }
 0x306   :  { %7573 = vrot.lane.b32.xlu0 %v29220_v52, %s28340_s0 }
 0x308   :  { %v3700_v29 = vpop.xlane.xlu1 %3699 }
 0x309   :  { %v3732_v34 = vsub.f32 %v29868_v19, %v3700_v29 }
 0x30a   :  { %7731 = vrot.lane.b32.xlu0 %v29097_v43, %s28340_s0 }
 0x30b   :  { %v3795_v37 = vmul.f32 1.442695, %v3732_v34 }
 0x30c   :  { %v3802_v6 = vpop.xlane.xlu1 %3801  ;;  %v3799_v38 = vpop.xlane.xlu0 %3798 }
 0x30d   :  { %27800 = vpow2.f32 %v3795_v37 }
 0x30e   :  { %27802 = vrcp.f32 %v3802_v6  ;;  %7729 = vrot.lane.b32.xlu0 %v29250_v48, %s28340_s0 }
 0x30f   :  { %27804 = vrcp.f32 %v3799_v38 }
 0x310   :  { %v3808_v53 = vpop.xlane.xlu1 %3807  ;;  %v3805_v49 = vpop.xlane.xlu0 %3804 }
 0x311   :  { %27806 = vrcp.f32 %v3808_v53 }
 0x312   :  { %27808 = vrcp.f32 %v3805_v49  ;;  %7887 = vrot.lane.b32.xlu0 %v29116_v47, %s28340_s0 }
 0x314   :  { %v3814_v19 = vpop.xlane.xlu1 %3813  ;;  %v3811_v26 = vpop.xlane.xlu0 %3810 }
 0x315   :  { %27810 = vrcp.f32 %v3814_v19 }
 0x316   :  { %27812 = vrcp.f32 %v3811_v26  ;;  %7885 = vrot.lane.b32.xlu0 %v29280_v24, %s28340_s0 }
 0x317   :  { %v30042_v62 = vpop.eup %27800 }
 0x318   :  { %v27803_v63 = vpop.eup %27802  ;;  %v3817_v9 = vpop.xlane.xlu0 %3816  ;;  %v3890_v18 = vsel %vm3604_vm2, %v30042_v62, 0.0 }
 0x319   :  { %v27805_v4 = vpop.eup %27804  ;;  %27814 = vrcp.f32 %v3817_v9  ;;  %3891 = vadd.xlane.f32.xlu1 %v3890_v18  ;;  %v3820_v29 = vpop.xlane.xlu1 %3819  ;;  %v3896_v34 = vmul.f32 %v27803_v63, %v29875_v10  ;;  %v35988_v10 = vmov 0.0   ;;  %v35989_v18 = vld [vmem:[#allocation76_spill] sm:$0xff] }
 0x31a   :  { %27816 = vrcp.f32 %v3820_v29  ;;  %8043 = vrot.lane.b32.xlu0 %v29135_v51, %s28340_s0  ;;  %v3894_v37 = vmul.f32 %v27805_v4, %v29873_v35 }
 0x31b   :  { %v27807_v6 = vpop.eup %27806  ;;  %26249 = vmatmul.mubr.msk.f32.vlgmr.msra.gmra.mrb[96].mxu1 %vm3604_vm2, %v3896_v34  ;;  %3958 = vst.msk [vmem:[%s35412_s9 + $0x8] sm:$0xff] %vm3604_vm2, %v3896_v34  ;;  %v35990_v34 = vld [vmem:[#allocation77_spill] sm:$0xff] }
 0x31c   :  { %v27809_v38 = vpop.eup %27808  ;;  %26257 = vmatpush3.msra.mxu1 %v29237_v36  ;;  %26244 = vmatmul.mubr.msk.f32.vlgmr.msra.gmra.mrb[96].mxu0 %vm3604_vm2, %v3894_v37  ;;  %3957 = vst.msk [vmem:[%s35412_s9] sm:$0xff] %vm3604_vm2, %v3894_v37  ;;  %v3900_v35 = vmul.f32 %v27807_v6, %v29884_v46 }
 0x31d   :  { %26252 = vmatpush3.msra.mxu0 %v29241_v40  ;;  %26253 = vmatprep.mubr.msk.f32.mxu0 %vm28339_vm0, %v35988_v10  ;;  %v3823_v53 = vpop.xlane.xlu0 %3822  ;;  %v3898_v49 = vmul.f32 %v27809_v38, %v29878_v16  ;;  %v35992_v38 = vld [vmem:[#allocation81_spill] sm:$0xff] }
 0x31e   :  { %26258 = vmatprep.mubr.msk.f32.mxu1 %vm28339_vm0, %v35988_v10  ;;  %26261 = vmatprep.subr.mxu0 %v35988_v10  ;;  %27818 = vrcp.f32 %v3823_v53  ;;  %3960 = vst.msk [vmem:[%s35412_s9 + $0x18] sm:$0xff] %vm3604_vm2, %v3900_v35  ;;  %v35994_v53 = vld [vmem:[#allocation39_spill] sm:$0xff] }
 0x31f   :  { %v27811_v46 = vpop.eup %27810  ;;  %26266 = vmatprep.subr.mxu1 %v35988_v10  ;;  %26259 = vmatmul.mubr.msk.f32.vlgmr.msra.gmra.mrb[98].mxu1 %vm3604_vm2, %v3900_v35  ;;  %3959 = vst.msk [vmem:[%s35412_s9 + $0x10] sm:$0xff] %vm3604_vm2, %v3898_v49  ;;  %v35993_v35 = vld [vmem:[#allocation80_spill] sm:$0xff] }
 0x320   :  { %v27813_v16 = vpop.eup %27812  ;;  %26267 = vmatpush3.msra.mxu1 %v29252_v32  ;;  %8041 = vrot.lane.b32.xlu0 %v29310_v30, %s28340_s0  ;;  %v3904_v19 = vmul.f32 %v27811_v46, %v29893_v14  ;;  %v35995_v46 = vld [vmem:[#allocation57_spill] sm:$0xff] }
 0x321   :  { %26254 = vmatmul.mubr.msk.f32.vlgmr.msra.gmra.mrb[98].mxu0 %vm3604_vm2, %v3898_v49  ;;  %26268 = vmatprep.mubr.msk.f32.mxu1 %vm28339_vm0, %v35988_v10  ;;  %v3826_v26 = vpop.xlane.xlu1 %3825  ;;  %v3902_v63 = vmul.f32 %v27813_v16, %v29887_v23 }
 0x322   :  { %26262 = vmatpush3.msra.mxu0 %v29256_v20  ;;  %26276 = vmatprep.subr.mxu1 %v35988_v10  ;;  %27820 = vrcp.f32 %v3826_v26  ;;  %3962 = vst.msk [vmem:[%s35412_s9 + $0x28] sm:$0xff] %vm3604_vm2, %v3904_v19  ;;  %v35997_v26 = vld [vmem:[#allocation68_spill] sm:$0xff] }
 0x323   :  { %v27815_v9 = vpop.eup %27814  ;;  %26263 = vmatprep.mubr.msk.f32.mxu0 %vm28339_vm0, %v35988_v10  ;;  %26271 = vmatprep.subr.mxu0 %v35988_v10  ;;  %3961 = vst.msk [vmem:[%s35412_s9 + $0x20] sm:$0xff] %vm3604_vm2, %v3902_v63 }
 0x324   :  { %v27817_v23 = vpop.eup %27816  ;;  %26269 = vmatmul.mubr.msk.f32.vlgmr.msra.gmra.mrb[100].mxu1 %vm3604_vm2, %v3904_v19  ;;  %8199 = vrot.lane.b32.xlu0 %v29154_v55, %s28340_s0  ;;  %v3906_v14 = vmul.f32 %v27815_v9, %v29900_v13  ;;  %v35996_v19 = vld [vmem:[#allocation85_spill] sm:$0xff]  ;;  %v35998_v9 = vld [vmem:[#allocation103_spill] sm:$0xff] }
 0x325   :  { %26277 = vmatpush3.msra.mxu1 %v35989_v18  ;;  %26264 = vmatmul.mubr.msk.f32.vlgmr.msra.gmra.mrb[100].mxu0 %vm3604_vm2, %v3902_v63  ;;  %v3829_v4 = vpop.xlane.xlu0 %3828  ;;  %v3908_v29 = vmul.f32 %v27817_v23, %v29903_v12  ;;  %v35991_v12 = vld [vmem:[#allocation95_spill] sm:$0xff] }
 0x326   :  { %26272 = vmatpush3.msra.mxu0 %v35990_v34  ;;  %26273 = vmatprep.mubr.msk.f32.mxu0 %vm28339_vm0, %v35988_v10  ;;  %27822 = vrcp.f32 %v3829_v4  ;;  %3963 = vst.msk [vmem:[%s35412_s9 + $0x30] sm:$0xff] %vm3604_vm2, %v3906_v14  ;;  %v36000_v4 = vld [vmem:[#allocation42_spill] sm:$0xff] }
 0x327   :  { %26281 = vmatprep.subr.mxu0 %v35988_v10  ;;  %26278 = vmatprep.mubr.msk.f32.mxu1 %vm28339_vm0, %v35988_v10  ;;  %3964 = vst.msk [vmem:[%s35412_s9 + $0x38] sm:$0xff] %vm3604_vm2, %v3908_v29 }
 0x328   :  { %v27819_v13 = vpop.eup %27818  ;;  %26286 = vmatprep.subr.mxu1 %v35988_v10  ;;  %8197 = vrot.lane.b32.xlu0 %v35991_v12, %s28340_s0 }
 0x329   :  { %26274 = vmatmul.mubr.msk.f32.vlgmr.msra.gmra.mrb[102].mxu0 %vm3604_vm2, %v3906_v14  ;;  %26279 = vmatmul.mubr.msk.f32.vlgmr.msra.gmra.mrb[102].mxu1 %vm3604_vm2, %v3908_v29  ;;  %v3832_v37 = vpop.xlane.xlu1 %3831  ;;  %v3910_v6 = vmul.f32 %v27819_v13, %v29910_v42  ;;  %v36001_v13 = vld [vmem:[#allocation60_spill] sm:$0xff] }
 0x32a   :  { %26282 = vmatpush3.msra.mxu0 %v35992_v38  ;;  %26287 = vmatpush3.msra.mxu1 %v35993_v35  ;;  %27824 = vrcp.f32 %v3832_v37 }
 0x32b   :  { %7653 = vrot.lane.b32.xlu1 %v35994_v53, %s28340_s0  ;;  %26283 = vmatprep.mubr.msk.f32.mxu0 %vm28339_vm0, %v35988_v10  ;;  %3965 = vst.msk [vmem:[%s35412_s9 + $0x40] sm:$0xff] %vm3604_vm2, %v3910_v6 }
 0x32c   :  { %v27821_v49 = vpop.eup %27820  ;;  %8355 = vrot.lane.b32.xlu0 %v35995_v46, %s28340_s0  ;;  %26291 = vmatprep.subr.mxu0 %v35988_v10 }
 0x32d   :  { %26284 = vmatmul.mubr.msk.f32.vlgmr.msra.gmra.mrb[104].mxu0 %vm3604_vm2, %v3910_v6  ;;  %v3835_v42 = vpop.xlane.xlu0 %3834  ;;  %26288 = vmatprep.mubr.msk.f32.mxu1 %vm28339_vm0, %v35988_v10  ;;  %v3912_v16 = vmul.f32 %v27821_v49, %v29915_v5  ;;  %v35999_v5 = vld [vmem:[#allocation84_spill] sm:$0xff]  ;;  %v36003_v49 = vld [vmem:[#allocation75_spill] sm:$0xff] }
 0x32e   :  { %26292 = vmatpush3.msra.mxu0 %v35996_v19  ;;  %27826 = vrcp.f32 %v3835_v42  ;;  %26296 = vmatprep.subr.mxu1 %v35988_v10 }
 0x32f   :  { %7651 = vrot.lane.b32.xlu1 %v35997_v26, %s28340_s0  ;;  %26289 = vmatmul.mubr.msk.f32.vlgmr.msra.gmra.mrb[104].mxu1 %vm3604_vm2, %v3912_v16  ;;  %3966 = vst.msk [vmem:[%s35412_s9 + $0x48] sm:$0xff] %vm3604_vm2, %v3912_v16  ;;  %v36004_v16 = vld [vmem:[#allocation111_spill] sm:$0xff] }
 0x330   :  { %v27823_v63 = vpop.eup %27822  ;;  %8353 = vrot.lane.b32.xlu0 %v35998_v9, %s28340_s0  ;;  %26297 = vmatpush3.msra.mxu1 %v35999_v5  ;;  %v36164_v9 = vld [vmem:[#allocation140_spill] sm:$0xff] }
 0x331   :  { %v3838_v23 = vpop.xlane.xlu1 %3837  ;;  %26293 = vmatprep.mubr.msk.f32.mxu0 %vm28339_vm0, %v35988_v10  ;;  %26301 = vmatprep.subr.mxu0 %v35988_v10  ;;  %v3914_v14 = vmul.f32 %v27823_v63, %v29920_v25  ;;  %v36002_v25 = vld [vmem:[#allocation89_spill] sm:$0xff] }
 0x332   :  { %27828 = vrcp.f32 %v3838_v23  ;;  %26298 = vmatprep.mubr.msk.f32.mxu1 %vm28339_vm0, %v35988_v10  ;;  %26306 = vmatprep.subr.mxu1 %v35988_v10 }
 0x333   :  { %7809 = vrot.lane.b32.xlu1 %v36000_v4, %s28340_s0  ;;  %26294 = vmatmul.mubr.msk.f32.vlgmr.msra.gmra.mrb[106].mxu0 %vm3604_vm2, %v3914_v14  ;;  %3967 = vst.msk [vmem:[%s35412_s9 + $0x50] sm:$0xff] %vm3604_vm2, %v3914_v14  ;;  %v36006_v14 = vld [vmem:[#allocation45_spill] sm:$0xff] }
 0x334   :  { %v27825_v29 = vpop.eup %27824  ;;  %8511 = vrot.lane.b32.xlu0 %v36001_v13, %s28340_s0  ;;  %26302 = vmatpush3.msra.mxu0 %v36002_v25 }
 0x335   :  { %v3841_v37 = vpop.xlane.xlu0 %3840  ;;  %v3916_v6 = vmul.f32 %v27825_v29, %v29925_v21  ;;  %26303 = vmatprep.mubr.msk.f32.mxu0 %vm28339_vm0, %v35988_v10  ;;  %26311 = vmatprep.subr.mxu0 %v35988_v10  ;;  %v36005_v21 = vld [vmem:[#allocation88_spill] sm:$0xff] }
 0x336   :  { %27830 = vrcp.f32 %v3841_v37  ;;  %v36007_v37 = vld [vmem:[#allocation63_spill] sm:$0xff] }
 0x337   :  { %7807 = vrot.lane.b32.xlu1 %v36003_v49, %s28340_s0  ;;  %26299 = vmatmul.mubr.msk.f32.vlgmr.msra.gmra.mrb[106].mxu1 %vm3604_vm2, %v3916_v6  ;;  %3968 = vst.msk [vmem:[%s35412_s9 + $0x58] sm:$0xff] %vm3604_vm2, %v3916_v6 }
 0x338   :  { %v27827_v42 = vpop.eup %27826  ;;  %8509 = vrot.lane.b32.xlu0 %v36004_v16, %s28340_s0  ;;  %26307 = vmatpush3.msra.mxu1 %v36005_v21 }
 0x339   :  { %v3844_v63 = vpop.xlane.xlu1 %3843  ;;  %v3918_v23 = vmul.f32 %v27827_v42, %v29930_v58  ;;  %26308 = vmatprep.mubr.msk.f32.mxu1 %vm28339_vm0, %v35988_v10  ;;  %26316 = vmatprep.subr.mxu1 %v35988_v10  ;;  %v36008_v58 = vld [vmem:[#allocation93_spill] sm:$0xff] }
 0x33a   :  { %27832 = vrcp.f32 %v3844_v63  ;;  %v36009_v63 = vld [vmem:[#allocation83_spill] sm:$0xff] }
 0x33b   :  { %7965 = vrot.lane.b32.xlu1 %v36006_v14, %s28340_s0  ;;  %26304 = vmatmul.mubr.msk.f32.vlgmr.msra.gmra.mrb[108].mxu0 %vm3604_vm2, %v3918_v23  ;;  %3969 = vst.msk [vmem:[%s35412_s9 + $0x60] sm:$0xff] %vm3604_vm2, %v3918_v23 }
 0x33c   :  { %v27829_v29 = vpop.eup %27828  ;;  %8667 = vrot.lane.b32.xlu0 %v36007_v37, %s28340_s0  ;;  %26312 = vmatpush3.msra.mxu0 %v36008_v58  ;;  %v36010_v37 = vld [vmem:[#allocation119_spill] sm:$0xff] }
 0x33d   :  { %v3847_v6 = vpop.xlane.xlu0 %3846  ;;  %v3920_v42 = vmul.f32 %v27829_v29, %v29935_v27  ;;  %26313 = vmatprep.mubr.msk.f32.mxu0 %vm28339_vm0, %v35988_v10  ;;  %26321 = vmatprep.subr.mxu0 %v35988_v10  ;;  %v36011_v27 = vld [vmem:[#allocation92_spill] sm:$0xff] }
 0x33e   :  { %27834 = vrcp.f32 %v3847_v6  ;;  %v36012_v6 = vld [vmem:[#allocation48_spill] sm:$0xff] }
 0x33f   :  { %7963 = vrot.lane.b32.xlu1 %v36009_v63, %s28340_s0  ;;  %26309 = vmatmul.mubr.msk.f32.vlgmr.msra.gmra.mrb[108].mxu1 %vm3604_vm2, %v3920_v42  ;;  %3970 = vst.msk [vmem:[%s35412_s9 + $0x68] sm:$0xff] %vm3604_vm2, %v3920_v42 }
 0x340   :  { %v27831_v23 = vpop.eup %27830  ;;  %8665 = vrot.lane.b32.xlu0 %v36010_v37, %s28340_s0  ;;  %26317 = vmatpush3.msra.mxu1 %v36011_v27  ;;  %v36013_v37 = vld [vmem:[#allocation66_spill] sm:$0xff] }
 0x341   :  { %v3850_v29 = vpop.xlane.xlu1 %3849  ;;  %v3922_v16 = vmul.f32 %v27831_v23, %v29940_v45  ;;  %26318 = vmatprep.mubr.msk.f32.mxu1 %vm28339_vm0, %v35988_v10  ;;  %26326 = vmatprep.subr.mxu1 %v35988_v10  ;;  %v36014_v45 = vld [vmem:[#allocation97_spill] sm:$0xff] }
 0x342   :  { %27836 = vrcp.f32 %v3850_v29  ;;  %v36015_v29 = vld [vmem:[#allocation91_spill] sm:$0xff] }
 0x343   :  { %8121 = vrot.lane.b32.xlu1 %v36012_v6, %s28340_s0  ;;  %26314 = vmatmul.mubr.msk.f32.vlgmr.msra.gmra.mrb[110].mxu0 %vm3604_vm2, %v3922_v16  ;;  %3971 = vst.msk [vmem:[%s35412_s9 + $0x70] sm:$0xff] %vm3604_vm2, %v3922_v16 }
 0x344   :  { %v27833_v42 = vpop.eup %27832  ;;  %9399 = vrot.lane.b32.xlu0 %v36013_v37, %s28340_s0  ;;  %26322 = vmatpush3.msra.mxu0 %v36014_v45 }
 0x345   :  { %v3853_v23 = vpop.xlane.xlu0 %3852  ;;  %v3924_v13 = vmul.f32 %v27833_v42, %v29945_v17  ;;  %26323 = vmatprep.mubr.msk.f32.mxu0 %vm28339_vm0, %v35988_v10  ;;  %26331 = vmatprep.subr.mxu0 %v35988_v10  ;;  %v36016_v17 = vld [vmem:[#allocation96_spill] sm:$0xff] }
 0x346   :  { %27838 = vrcp.f32 %v3853_v23  ;;  %v36017_v23 = vld [vmem:[#allocation52_spill] sm:$0xff] }
 0x347   :  { %8119 = vrot.lane.b32.xlu1 %v36015_v29, %s28340_s0  ;;  %26319 = vmatmul.mubr.msk.f32.vlgmr.msra.gmra.mrb[110].mxu1 %vm3604_vm2, %v3924_v13  ;;  %3972 = vst.msk [vmem:[%s35412_s9 + $0x78] sm:$0xff] %vm3604_vm2, %v3924_v13 }
 0x348   :  { %v27835_v16 = vpop.eup %27834  ;;  %9551 = vrot.lane.b32.xlu0 %v29241_v40, %s28340_s0  ;;  %26327 = vmatpush3.msra.mxu1 %v36016_v17 }
 0x349   :  { %v3856_v42 = vpop.xlane.xlu1 %3855  ;;  %v3926_v37 = vmul.f32 %v27835_v16, %v29950_v54  ;;  %26328 = vmatprep.mubr.msk.f32.mxu1 %vm28339_vm0, %v35988_v10  ;;  %26336 = vmatprep.subr.mxu1 %v35988_v10  ;;  %v36018_v54 = vld [vmem:[#allocation101_spill] sm:$0xff] }
 0x34a   :  { %27840 = vrcp.f32 %v3856_v42  ;;  %v36019_v42 = vld [vmem:[#allocation99_spill] sm:$0xff] }
 0x34b   :  { %8277 = vrot.lane.b32.xlu1 %v36017_v23, %s28340_s0  ;;  %26324 = vmatmul.mubr.msk.f32.vlgmr.msra.gmra.mrb[112].mxu0 %vm3604_vm2, %v3926_v37  ;;  %3973 = vst.msk [vmem:[%s35412_s9 + $0x80] sm:$0xff] %vm3604_vm2, %v3926_v37 }
 0x34c   :  { %v27837_v13 = vpop.eup %27836  ;;  %9703 = vrot.lane.b32.xlu0 %v29256_v20, %s28340_s0  ;;  %26332 = vmatpush3.msra.mxu0 %v36018_v54 }
 0x34d   :  { %v3859_v16 = vpop.xlane.xlu0 %3858  ;;  %v3928_v40 = vmul.f32 %v27837_v13, %v29955_v50  ;;  %26333 = vmatprep.mubr.msk.f32.mxu0 %vm28339_vm0, %v35988_v10  ;;  %26341 = vmatprep.subr.mxu0 %v35988_v10  ;;  %v36020_v50 = vld [vmem:[#allocation100_spill] sm:$0xff] }
 0x34e   :  { %27842 = vrcp.f32 %v3859_v16  ;;  %v36021_v16 = vld [vmem:[#allocation56_spill] sm:$0xff] }
 0x34f   :  { %8275 = vrot.lane.b32.xlu1 %v36019_v42, %s28340_s0  ;;  %26329 = vmatmul.mubr.msk.f32.vlgmr.msra.gmra.mrb[112].mxu1 %vm3604_vm2, %v3928_v40  ;;  %3974 = vst.msk [vmem:[%s35412_s9 + $0x88] sm:$0xff] %vm3604_vm2, %v3928_v40 }
 0x350   :  { %v27839_v37 = vpop.eup %27838  ;;  %9855 = vrot.lane.b32.xlu0 %v35990_v34, %s28340_s0  ;;  %26337 = vmatpush3.msra.mxu1 %v36020_v50 }
 0x351   :  { %v3862_v13 = vpop.xlane.xlu1 %3861  ;;  %v3930_v20 = vmul.f32 %v27839_v37, %v29960_v7  ;;  %26338 = vmatprep.mubr.msk.f32.mxu1 %vm28339_vm0, %v35988_v10  ;;  %26346 = vmatprep.subr.mxu1 %v35988_v10  ;;  %v36022_v7 = vld [vmem:[#allocation105_spill] sm:$0xff] }
 0x352   :  { %27844 = vrcp.f32 %v3862_v13  ;;  %v36023_v13 = vld [vmem:[#allocation107_spill] sm:$0xff] }
 0x353   :  { %8433 = vrot.lane.b32.xlu1 %v36021_v16, %s28340_s0  ;;  %26334 = vmatmul.mubr.msk.f32.vlgmr.msra.gmra.mrb[114].mxu0 %vm3604_vm2, %v3930_v20  ;;  %3975 = vst.msk [vmem:[%s35412_s9 + $0x90] sm:$0xff] %vm3604_vm2, %v3930_v20 }
 0x354   :  { %v27841_v40 = vpop.eup %27840  ;;  %10007 = vrot.lane.b32.xlu0 %v35992_v38, %s28340_s0  ;;  %26342 = vmatpush3.msra.mxu0 %v36022_v7 }
 0x355   :  { %v3865_v37 = vpop.xlane.xlu0 %3864  ;;  %v3932_v34 = vmul.f32 %v27841_v40, %v29965_v44  ;;  %26343 = vmatprep.mubr.msk.f32.mxu0 %vm28339_vm0, %v35988_v10  ;;  %26351 = vmatprep.subr.mxu0 %v35988_v10  ;;  %v36024_v44 = vld [vmem:[#allocation104_spill] sm:$0xff] }
 0x356   :  { %27846 = vrcp.f32 %v3865_v37  ;;  %v36025_v37 = vld [vmem:[#allocation59_spill] sm:$0xff] }
 0x357   :  { %8431 = vrot.lane.b32.xlu1 %v36023_v13, %s28340_s0  ;;  %26339 = vmatmul.mubr.msk.f32.vlgmr.msra.gmra.mrb[114].mxu1 %vm3604_vm2, %v3932_v34  ;;  %3976 = vst.msk [vmem:[%s35412_s9 + $0x98] sm:$0xff] %vm3604_vm2, %v3932_v34 }
 0x358   :  { %v27843_v20 = vpop.eup %27842  ;;  %10159 = vrot.lane.b32.xlu0 %v35996_v19, %s28340_s0  ;;  %26347 = vmatpush3.msra.mxu1 %v36024_v44 }
 0x359   :  { %v3868_v40 = vpop.xlane.xlu1 %3867  ;;  %v3934_v38 = vmul.f32 %v27843_v20, %v29970_v3  ;;  %26348 = vmatprep.mubr.msk.f32.mxu1 %vm28339_vm0, %v35988_v10  ;;  %26356 = vmatprep.subr.mxu1 %v35988_v10  ;;  %v36026_v3 = vld [vmem:[#allocation109_spill] sm:$0xff] }
 0x35a   :  { %27848 = vrcp.f32 %v3868_v40  ;;  %v36027_v40 = vld [vmem:[#allocation115_spill] sm:$0xff] }
 0x35b   :  { %8589 = vrot.lane.b32.xlu1 %v36025_v37, %s28340_s0  ;;  %26344 = vmatmul.mubr.msk.f32.vlgmr.msra.gmra.mrb[116].mxu0 %vm3604_vm2, %v3934_v38  ;;  %3977 = vst.msk [vmem:[%s35412_s9 + $0xa0] sm:$0xff] %vm3604_vm2, %v3934_v38 }
 0x35c   :  { %v27845_v34 = vpop.eup %27844  ;;  %10311 = vrot.lane.b32.xlu0 %v36002_v25, %s28340_s0  ;;  %26352 = vmatpush3.msra.mxu0 %v36026_v3 }
 0x35d   :  { %v3871_v20 = vpop.xlane.xlu0 %3870  ;;  %v3936_v19 = vmul.f32 %v27845_v34, %v29975_v11  ;;  %26353 = vmatprep.mubr.msk.f32.mxu0 %vm28339_vm0, %v35988_v10  ;;  %26361 = vmatprep.subr.mxu0 %v35988_v10  ;;  %v36028_v11 = vld [vmem:[#allocation108_spill] sm:$0xff] }
 0x35e   :  { %27850 = vrcp.f32 %v3871_v20  ;;  %v36029_v20 = vld [vmem:[#allocation62_spill] sm:$0xff] }
 0x35f   :  { %8587 = vrot.lane.b32.xlu1 %v36027_v40, %s28340_s0  ;;  %26349 = vmatmul.mubr.msk.f32.vlgmr.msra.gmra.mrb[116].mxu1 %vm3604_vm2, %v3936_v19  ;;  %3978 = vst.msk [vmem:[%s35412_s9 + $0xa8] sm:$0xff] %vm3604_vm2, %v3936_v19 }
 0x360   :  { %v27847_v38 = vpop.eup %27846  ;;  %10463 = vrot.lane.b32.xlu0 %v36008_v58, %s28340_s0  ;;  %26357 = vmatpush3.msra.mxu1 %v36028_v11 }
 0x361   :  { %v3874_v34 = vpop.xlane.xlu1 %3873  ;;  %v3938_v25 = vmul.f32 %v27847_v38, %v29980_v60  ;;  %26358 = vmatprep.mubr.msk.f32.mxu1 %vm28339_vm0, %v35988_v10  ;;  %26366 = vmatprep.subr.mxu1 %v35988_v10  ;;  %v36030_v60 = vld [vmem:[#allocation113_spill] sm:$0xff] }
 0x362   :  { %27852 = vrcp.f32 %v3874_v34  ;;  %v36031_v34 = vld [vmem:[#allocation123_spill] sm:$0xff] }
 0x363   :  { %8745 = vrot.lane.b32.xlu1 %v36029_v20, %s28340_s0  ;;  %26354 = vmatmul.mubr.msk.f32.vlgmr.msra.gmra.mrb[118].mxu0 %vm3604_vm2, %v3938_v25  ;;  %3979 = vst.msk [vmem:[%s35412_s9 + $0xb0] sm:$0xff] %vm3604_vm2, %v3938_v25  ;;  %v36162_v20 = vld [vmem:[#allocation139_spill] sm:$0xff] }
 0x364   :  { %v27849_v19 = vpop.eup %27848  ;;  %10615 = vrot.lane.b32.xlu0 %v36014_v45, %s28340_s0  ;;  %26362 = vmatpush3.msra.mxu0 %v36030_v60 }
 0x365   :  { %v3877_v38 = vpop.xlane.xlu0 %3876  ;;  %v3940_v58 = vmul.f32 %v27849_v19, %v29985_v31  ;;  %26363 = vmatprep.mubr.msk.f32.mxu0 %vm28339_vm0, %v35988_v10  ;;  %26371 = vmatprep.subr.mxu0 %v35988_v10  ;;  %v36032_v31 = vld [vmem:[#allocation112_spill] sm:$0xff] }
 0x366   :  { %27854 = vrcp.f32 %v3877_v38  ;;  %v36033_v38 = vld [vmem:[#allocation65_spill] sm:$0xff] }
 0x367   :  { %8743 = vrot.lane.b32.xlu1 %v36031_v34, %s28340_s0  ;;  %26359 = vmatmul.mubr.msk.f32.vlgmr.msra.gmra.mrb[118].mxu1 %vm3604_vm2, %v3940_v58  ;;  %3980 = vst.msk [vmem:[%s35412_s9 + $0xb8] sm:$0xff] %vm3604_vm2, %v3940_v58 }
 0x368   :  { %v27851_v25 = vpop.eup %27850  ;;  %10767 = vrot.lane.b32.xlu0 %v36018_v54, %s28340_s0  ;;  %26367 = vmatpush3.msra.mxu1 %v36032_v31 }
 0x369   :  { %v3880_v19 = vpop.xlane.xlu1 %3879  ;;  %v3942_v45 = vmul.f32 %v27851_v25, %v29990_v33  ;;  %26368 = vmatprep.mubr.msk.f32.mxu1 %vm28339_vm0, %v35988_v10  ;;  %26376 = vmatprep.subr.mxu1 %v35988_v10  ;;  %v36034_v33 = vld [vmem:[#allocation117_spill] sm:$0xff] }
 0x36a   :  { %27856 = vrcp.f32 %v3880_v19 }
 0x36b   :  { %9475 = vrot.lane.b32.xlu1 %v36033_v38, %s28340_s0  ;;  %26364 = vmatmul.mubr.msk.f32.vlgmr.msra.gmra.mrb[120].mxu0 %vm3604_vm2, %v3942_v45  ;;  %3981 = vst.msk [vmem:[%s35412_s9 + $0xc0] sm:$0xff] %vm3604_vm2, %v3942_v45 }
 0x36c   :  { %v27853_v58 = vpop.eup %27852  ;;  %10919 = vrot.lane.b32.xlu0 %v36022_v7, %s28340_s0  ;;  %26372 = vmatpush3.msra.mxu0 %v36034_v33  ;;  %v36051_v7 = vld [vmem:[#allocation187_spill] sm:$0xff] }
 0x36d   :  { %v3883_v25 = vpop.xlane.xlu0 %3882  ;;  %v3944_v54 = vmul.f32 %v27853_v58, %v29995_v28  ;;  %26373 = vmatprep.mubr.msk.f32.mxu0 %vm28339_vm0, %v35988_v10  ;;  %26381 = vmatprep.subr.mxu0 %v35988_v10  ;;  %v36035_v28 = vld [vmem:[#allocation116_spill] sm:$0xff] }
 0x36e   :  { %27858 = vrcp.f32 %v3883_v25 }
 0x36f   :  { %9627 = vrot.lane.b32.xlu1 %v29237_v36, %s28340_s0  ;;  %26369 = vmatmul.mubr.msk.f32.vlgmr.msra.gmra.mrb[120].mxu1 %vm3604_vm2, %v3944_v54  ;;  %3982 = vst.msk [vmem:[%s35412_s9 + $0xc8] sm:$0xff] %vm3604_vm2, %v3944_v54 }
 0x370   :  { %v27855_v45 = vpop.eup %27854  ;;  %11223 = vrot.lane.b32.xlu0 %v36030_v60, %s28340_s0  ;;  %26377 = vmatpush3.msra.mxu1 %v36035_v28  ;;  %v36049_v60 = vld [vmem:[#allocation193_spill] sm:$0xff] }
 0x371   :  { %v3886_v19 = vpop.xlane.xlu1 %3885  ;;  %v3946_v58 = vmul.f32 %v27855_v45, %v30000_v59  ;;  %26378 = vmatprep.mubr.msk.f32.mxu1 %vm28339_vm0, %v35988_v10  ;;  %26386 = vmatprep.subr.mxu1 %v35988_v10  ;;  %v36036_v59 = vld [vmem:[#allocation121_spill] sm:$0xff] }
 0x372   :  { %27860 = vrcp.f32 %v3886_v19 }
 0x373   :  { %9779 = vrot.lane.b32.xlu1 %v29252_v32, %s28340_s0  ;;  %26374 = vmatmul.mubr.msk.f32.vlgmr.msra.gmra.mrb[122].mxu0 %vm3604_vm2, %v3946_v58  ;;  %3983 = vst.msk [vmem:[%s35412_s9 + $0xd0] sm:$0xff] %vm3604_vm2, %v3946_v58  ;;  %v36153_v32 = vld [vmem:[#allocation134_spill] sm:$0xff] }
 0x374   :  { %v27857_v54 = vpop.eup %27856  ;;  %11375 = vrot.lane.b32.xlu0 %v36034_v33, %s28340_s0  ;;  %26382 = vmatpush3.msra.mxu0 %v36036_v59  ;;  %v36046_v33 = vld [vmem:[#allocation177_spill] sm:$0xff] }
 0x375   :  { %v3889_v25 = vpop.xlane.xlu0 %3888  ;;  %v3948_v45 = vmul.f32 %v27857_v54, %v30005_v15  ;;  %26383 = vmatprep.mubr.msk.f32.mxu0 %vm28339_vm0, %v35988_v10  ;;  %26391 = vmatprep.subr.mxu0 %v35988_v10  ;;  %v36037_v15 = vld [vmem:[#allocation120_spill] sm:$0xff] }
 0x376   :  { %27862 = vrcp.f32 %v3889_v25 }
 0x377   :  { %9931 = vrot.lane.b32.xlu1 %v35989_v18, %s28340_s0  ;;  %26379 = vmatmul.mubr.msk.f32.vlgmr.msra.gmra.mrb[122].mxu1 %vm3604_vm2, %v3948_v45  ;;  %3984 = vst.msk [vmem:[%s35412_s9 + $0xd8] sm:$0xff] %vm3604_vm2, %v3948_v45  ;;  %v36038_v45 = vld [vmem:[#allocation125_spill] sm:$0xff] }
 0x378   :  { %v27859_v19 = vpop.eup %27858  ;;  %11527 = vrot.lane.b32.xlu0 %v36036_v59, %s28340_s0  ;;  %26387 = vmatpush3.msra.mxu1 %v36037_v15 }
 0x379   :  { %v30411_v58 = vpop.permute.xlu0 %7417  ;;  %v3950_v54 = vmul.f32 %v27859_v19, %v30009_v57  ;;  %26388 = vmatprep.mubr.msk.f32.mxu1 %vm28339_vm0, %v35988_v10  ;;  %26396 = vmatprep.subr.mxu1 %v35988_v10 }
 0x37b   :  { %10083 = vrot.lane.b32.xlu1 %v35993_v35, %s28340_s0  ;;  %26384 = vmatmul.mubr.msk.f32.vlgmr.msra.gmra.mrb[124].mxu0 %vm3604_vm2, %v3950_v54  ;;  %3985 = vst.msk [vmem:[%s35412_s9 + $0xe0] sm:$0xff] %vm3604_vm2, %v3950_v54 }
 0x37c   :  { %v27861_v25 = vpop.eup %27860  ;;  %11679 = vrot.lane.b32.xlu0 %v36038_v45, %s28340_s0  ;;  %26392 = vmatpush3.msra.mxu0 %v36038_v45  ;;  %v36039_v45 = vld [vmem:[#allocation8_spill] sm:$0xff] }
 0x37d   :  { %v30427_v57 = vpop.permute.xlu0 %7575  ;;  %v3952_v19 = vmul.f32 %v27861_v25, %v30013_v22  ;;  %26393 = vmatprep.mubr.msk.f32.mxu0 %vm28339_vm0, %v35988_v10  ;;  %26401 = vmatprep.subr.mxu0 %v35988_v10  ;;  %v36040_v22 = vld [vmem:[#allocation124_spill] sm:$0xff] }
 0x37f   :  { %10235 = vrot.lane.b32.xlu1 %v35999_v5, %s28340_s0  ;;  %26389 = vmatmul.mubr.msk.f32.vlgmr.msra.gmra.mrb[124].mxu1 %vm3604_vm2, %v3952_v19  ;;  %3986 = vst.msk [vmem:[%s35412_s9 + $0xe8] sm:$0xff] %vm3604_vm2, %v3952_v19  ;;  %v36041_v19 = vld [vmem:[#allocation7_spill] sm:$0xff] }
 0x380   :  { %v27863_v54 = vpop.eup %27862  ;;  %11832 = vrot.lane.b32.xlu0 %v36039_v45, %s28341_s5  ;;  %26397 = vmatpush3.msra.mxu1 %v36040_v22  ;;  %v36042_v45 = vld [vmem:[#allocation167_spill] sm:$0xff] }
 0x381   :  { %v30443_v25 = vpop.permute.xlu0 %7573  ;;  %v3954_v59 = vmul.f32 %v27863_v54, %v30017_v2  ;;  %26398 = vmatprep.mubr.msk.f32.mxu1 %vm28339_vm0, %v35988_v10  ;;  %26406 = vmatprep.subr.mxu1 %v35988_v10  ;;  %v36043_v54 = vld [vmem:[#allocation166_spill] sm:$0xff] }
 0x383   :  { %10387 = vrot.lane.b32.xlu1 %v36005_v21, %s28340_s0  ;;  %26394 = vmatmul.mubr.msk.f32.vlgmr.msra.gmra.mrb[126].mxu0 %vm3604_vm2, %v3954_v59  ;;  %3987 = vst.msk [vmem:[%s35412_s9 + $0xf0] sm:$0xff] %vm3604_vm2, %v3954_v59  ;;  %v36044_v59 = vld [vmem:[#allocation12_spill] sm:$0xff] }
 0x384   :  { %11830 = vrot.lane.b32.xlu0 %v36041_v19, %s28341_s5  ;;  %26402 = vmatpush3.xpose.msk.msra.mxu0 %vm1107_vm1, %v36042_v45  ;;  %v36045_v19 = vld [vmem:[#allocation172_spill] sm:$0xff] }
 0x385   :  { %v30460_v2 = vpop.permute.xlu0 %7731  ;;  %26403 = vmatprep.mubr.msk.f32.mxu0 %vm28339_vm0, %v35988_v10  ;;  %26411 = vmatprep.subr.mxu0 %v35988_v10 }
 0x387   :  { %10539 = vrot.lane.b32.xlu1 %v36011_v27, %s28340_s0  ;;  %26404 = vmatmul.mubr.msk.f32.vlgmr.msra.gmra.mrb[128].mxu0 %vm1107_vm1, %v36043_v54  ;;  %v36047_v54 = vld [vmem:[#allocation14_spill] sm:$0xff] }
 0x388   :  { %11988 = vrot.lane.b32.xlu0 %v36044_v59, %s28341_s5  ;;  %26412 = vmatpush3.xpose.msk.msra.mxu0 %vm1107_vm1, %v36045_v19  ;;  %v36048_v59 = vld [vmem:[#allocation183_spill] sm:$0xff] }
 0x389   :  { %v30473_v45 = vpop.permute.xlu0 %7729  ;;  %26413 = vmatprep.mubr.msk.f32.mxu0 %vm28339_vm0, %v35988_v10  ;;  %26421 = vmatprep.subr.mxu0 %v35988_v10 }
 0x38b   :  { %10691 = vrot.lane.b32.xlu1 %v36016_v17, %s28340_s0  ;;  %26414 = vmatmul.mubr.msk.f32.vlgmr.msra.gmra.mrb[130].mxu0 %vm1107_vm1, %v36046_v33  ;;  %v36050_v33 = vld [vmem:[#allocation16_spill] sm:$0xff] }
 0x38c   :  { %11986 = vrot.lane.b32.xlu0 %v36047_v54, %s28341_s5  ;;  %26422 = vmatpush3.xpose.msk.msra.mxu0 %vm1107_vm1, %v36048_v59  ;;  %v36052_v59 = vld [vmem:[#allocation206_spill] sm:$0xff] }
 0x38d   :  { %v7888_v19 = vpop.permute.xlu0 %7887  ;;  %26423 = vmatprep.mubr.msk.f32.mxu0 %vm28339_vm0, %v35988_v10  ;;  %26431 = vmatprep.subr.mxu0 %v35988_v10 }
 0x38f   :  { %10843 = vrot.lane.b32.xlu1 %v36020_v50, %s28340_s0  ;;  %26424 = vmatmul.mubr.msk.f32.vlgmr.msra.gmra.mrb[132].mxu0 %vm1107_vm1, %v36049_v60  ;;  %v36053_v60 = vld [vmem:[#allocation22_spill] sm:$0xff]  ;;  %v36054_v50 = vld [vmem:[#allocation197_spill] sm:$0xff] }
 0x390   :  { %12144 = vrot.lane.b32.xlu0 %v36050_v33, %s28341_s5  ;;  %26432 = vmatpush3.xpose.msk.msra.mxu0 %vm1107_vm1, %v36051_v7  ;;  %v36055_v7 = vld [vmem:[#allocation210_spill] sm:$0xff] }
 0x391   :  { %v7886_v54 = vpop.permute.xlu0 %7885  ;;  %26433 = vmatprep.mubr.msk.f32.mxu0 %vm28339_vm0, %v35988_v10  ;;  %26441 = vmatprep.subr.mxu0 %v35988_v10 }
 0x393   :  { %10995 = vrot.lane.b32.xlu1 %v36024_v44, %s28340_s0  ;;  %26434 = vmatmul.mubr.msk.f32.vlgmr.msra.gmra.mrb[134].mxu0 %vm1107_vm1, %v36052_v59  ;;  %v36056_v59 = vld [vmem:[#allocation20_spill] sm:$0xff]  ;;  %v36057_v44 = vld [vmem:[#allocation202_spill] sm:$0xff] }
 0x394   :  { %12142 = vrot.lane.b32.xlu0 %v36053_v60, %s28341_s5  ;;  %26442 = vmatpush3.xpose.msk.msra.mxu0 %vm1107_vm1, %v36054_v50  ;;  %v36058_v50 = vld [vmem:[#allocation212_spill] sm:$0xff] }
 0x395   :  { %v8044_v33 = vpop.permute.xlu0 %8043  ;;  %26443 = vmatprep.mubr.msk.f32.mxu0 %vm28339_vm0, %v35988_v10  ;;  %26451 = vmatprep.subr.mxu0 %v35988_v10 }
 0x397   :  { %11071 = vrot.lane.b32.xlu1 %v36026_v3, %s28340_s0  ;;  %26444 = vmatmul.mubr.msk.f32.vlgmr.msra.gmra.mrb[136].mxu0 %vm1107_vm1, %v36055_v7  ;;  %v36059_v7 = vld [vmem:[#allocation30_spill] sm:$0xff]  ;;  %v36060_v3 = vld [vmem:[#allocation208_spill] sm:$0xff] }
 0x398   :  { %12300 = vrot.lane.b32.xlu0 %v36056_v59, %s28341_s5  ;;  %26452 = vmatpush3.xpose.msk.msra.mxu0 %vm1107_vm1, %v36057_v44  ;;  %v36061_v44 = vld [vmem:[#allocation214_spill] sm:$0xff] }
 0x399   :  { %v8042_v60 = vpop.permute.xlu0 %8041  ;;  %26453 = vmatprep.mubr.msk.f32.mxu0 %vm28339_vm0, %v35988_v10  ;;  %26461 = vmatprep.subr.mxu0 %v35988_v10 }
 0x39b   :  { %11147 = vrot.lane.b32.xlu1 %v36028_v11, %s28340_s0  ;;  %26454 = vmatmul.mubr.msk.f32.vlgmr.msra.gmra.mrb[138].mxu0 %vm1107_vm1, %v36058_v50  ;;  %v36062_v50 = vld [vmem:[#allocation24_spill] sm:$0xff] }
 0x39c   :  { %12298 = vrot.lane.b32.xlu0 %v36059_v7, %s28341_s5  ;;  %26462 = vmatpush3.xpose.msk.msra.mxu0 %vm1107_vm1, %v36060_v3  ;;  %v30544_v3 = vpop.permute.xlu1 %7495 }
 0x39d   :  { %v8200_v59 = vpop.permute.xlu0 %8199  ;;  %26463 = vmatprep.mubr.msk.f32.mxu0 %vm28339_vm0, %v35988_v10  ;;  %26471 = vmatprep.subr.mxu0 %v35988_v10 }
 0x39f   :  { %11299 = vrot.lane.b32.xlu1 %v36032_v31, %s28340_s0  ;;  %26464 = vmatmul.mubr.msk.f32.vlgmr.msra.gmra.mrb[140].mxu0 %vm1107_vm1, %v36061_v44  ;;  %v36063_v44 = vld [vmem:[#allocation38_spill] sm:$0xff] }
 0x3a0   :  { %12456 = vrot.lane.b32.xlu0 %v36062_v50, %s28341_s5  ;;  %26472 = vmatpush3.xpose.msk.msra.mxu0 %vm1107_vm1, %v30031_v41 }
 0x3a1   :  { %v8198_v7 = vpop.permute.xlu0 %8197  ;;  %26473 = vmatprep.mubr.msk.f32.mxu0 %vm28339_vm0, %v35988_v10  ;;  %26481 = vmatprep.subr.mxu0 %v35988_v10 }
 0x3a3   :  { %11451 = vrot.lane.b32.xlu1 %v36035_v28, %s28340_s0  ;;  %26474 = vmatmul.mubr.msk.f32.vlgmr.msra.gmra.mrb[142].mxu0 %vm1107_vm1, %v30411_v58  ;;  %v36064_v58 = vld [vmem:[#allocation28_spill] sm:$0xff] }
 0x3a4   :  { %12454 = vrot.lane.b32.xlu0 %v36063_v44, %s28341_s5  ;;  %26482 = vmatpush3.xpose.msk.msra.mxu0 %vm1107_vm1, %v30427_v57 }
 0x3a5   :  { %v8356_v41 = vpop.permute.xlu0 %8355  ;;  %26483 = vmatprep.mubr.msk.f32.mxu0 %vm28339_vm0, %v35988_v10  ;;  %26491 = vmatprep.subr.mxu0 %v35988_v10 }
 0x3a6   :  { %v3892_v50 = vpop.xlane.xlu1 %3891 }
 0x3a7   :  { %11603 = vrot.lane.b32.xlu1 %v36037_v15, %s28340_s0  ;;  %27864 = vrcp.f32 %v3892_v50  ;;  %26484 = vmatmul.mubr.msk.f32.vlgmr.msra.gmra.mrb[144].mxu0 %vm1107_vm1, %v30443_v25  ;;  %v36065_v25 = vld [vmem:[#allocation44_spill] sm:$0xff]  ;;  %v36068_v15 = vld [vmem:[#allocation11_spill] sm:$0xff] }
 0x3a8   :  { %12612 = vrot.lane.b32.xlu0 %v36064_v58, %s28341_s5  ;;  %26492 = vmatpush3.xpose.msk.msra.mxu0 %vm1107_vm1, %v30460_v2  ;;  %v36066_v58 = vld [vmem:[#allocation6_spill] sm:$0xff] }
 0x3a9   :  { %v8354_v57 = vpop.permute.xlu0 %8353  ;;  %26493 = vmatprep.mubr.msk.f32.mxu0 %vm28339_vm0, %v35988_v10  ;;  %26501 = vmatprep.subr.mxu0 %v35988_v10 }
 0x3aa   :  { %v30568_v44 = vpop.permute.xlu1 %7653 }
 0x3ab   :  { %11755 = vrot.lane.b32.xlu1 %v36040_v22, %s28340_s0  ;;  %26494 = vmatmul.mubr.msk.f32.vlgmr.msra.gmra.mrb[146].mxu0 %vm1107_vm1, %v30473_v45  ;;  %v36067_v45 = vld [vmem:[#allocation32_spill] sm:$0xff] }
 0x3ac   :  { %12610 = vrot.lane.b32.xlu0 %v36065_v25, %s28341_s5  ;;  %26502 = vmatpush3.xpose.msk.msra.mxu0 %vm1107_vm1, %v7888_v19 }
 0x3ad   :  { %26503 = vmatprep.mubr.msk.f32.mxu0 %vm28339_vm0, %v35988_v10  ;;  %26511 = vmatprep.subr.mxu0 %v35988_v10  ;;  %v8512_v2 = vpop.permute.xlu0 %8511 }
 0x3ae   :  { %v30580_v50 = vpop.permute.xlu1 %7651 }
 0x3af   :  { %11910 = vrot.lane.b32.xlu1 %v36066_v58, %s28341_s5  ;;  %26504 = vmatmul.mubr.msk.f32.vlgmr.msra.gmra.mrb[148].mxu0 %vm1107_vm1, %v7886_v54 }
 0x3b0   :  { %12768 = vrot.lane.b32.xlu0 %v36067_v45, %s28341_s5  ;;  %26512 = vmatpush3.xpose.msk.msra.mxu0 %vm1107_vm1, %v8044_v33  ;;  %v36069_v45 = vld [vmem:[#allocation51_spill] sm:$0xff] }
 0x3b1   :  { %v27865_v25 = vpop.eup %27864  ;;  %26513 = vmatprep.mubr.msk.f32.mxu0 %vm28339_vm0, %v35988_v10  ;;  %26521 = vmatprep.subr.mxu0 %v35988_v10  ;;  %v8510_v54 = vpop.permute.xlu0 %8509 }
 0x3b2   :  { %v30591_v19 = vpop.permute.xlu1 %7809  ;;  %v3956_v22 = vmul.f32 %v27865_v25, %v30042_v62  ;;  %v36070_v62 = vld [vmem:[#allocation161_spill] sm:$0xff]  ;;  %v36073_v25 = vld [vmem:[#allocation170_spill] sm:$0xff] }
 0x3b3   :  { %11908 = vrot.lane.b32.xlu1 %v36068_v15, %s28341_s5  ;;  %26514 = vmatmul.mubr.msk.f32.vlgmr.msra.gmra.mrb[150].mxu0 %vm1107_vm1, %v8042_v60  ;;  %v36071_v60 = vld [vmem:[#allocation10_spill] sm:$0xff] }
 0x3b4   :  { %12766 = vrot.lane.b32.xlu0 %v36069_v45, %s28341_s5  ;;  %26522 = vmatpush3.xpose.msk.msra.mxu0 %vm1107_vm1, %v8200_v59  ;;  %3988 = vst.msk [vmem:[%s35412_s9 + $0xf8] sm:$0xff] %vm3604_vm2, %v3956_v22  ;;  %v36074_v45 = vld [vmem:[#allocation18_spill] sm:$0xff] }
 0x3b5   :  { %26399 = vmatmul.mubr.msk.f32.vlgmr.msra.gmra.mrb[126].mxu1 %vm3604_vm2, %v3956_v22  ;;  %26523 = vmatprep.mubr.msk.f32.mxu0 %vm28339_vm0, %v35988_v10  ;;  %v36072_v22 = vld [vmem:[#allocation175_spill] sm:$0xff]  ;;  %v8668_v59 = vpop.permute.xlu0 %8667 }
 0x3b6   :  { %26407 = vmatpush3.xpose.msk.msra.mxu1 %vm1107_vm1, %v36070_v62  ;;  %v30609_v33 = vpop.permute.xlu1 %7807  ;;  %26531 = vmatprep.subr.mxu0 %v35988_v10 }
 0x3b7   :  { %12066 = vrot.lane.b32.xlu1 %v36071_v60, %s28341_s5  ;;  %26408 = vmatprep.mubr.msk.f32.mxu1 %vm28339_vm0, %v35988_v10  ;;  %v36088_v60 = vld [vmem:[#allocation207_spill] sm:$0xff] }
 0x3b8   :  { %26416 = vmatprep.subr.mxu1 %v35988_v10  ;;  %26524 = vmatmul.mubr.msk.f32.vlgmr.msra.gmra.mrb[152].mxu0 %vm1107_vm1, %v8198_v7  ;;  %v36075_v7 = vld [vmem:[#allocation190_spill] sm:$0xff] }
 0x3b9   :  { %26532 = vmatpush3.xpose.msk.msra.mxu0 %vm1107_vm1, %v8356_v41  ;;  %26409 = vmatmul.mubr.msk.f32.vlgmr.msra.gmra.mrb[128].mxu1 %vm1107_vm1, %v36072_v22  ;;  %v36076_v41 = vld [vmem:[#allocation180_spill] sm:$0xff] }
 0x3ba   :  { %26417 = vmatpush3.xpose.msk.msra.mxu1 %vm1107_vm1, %v36073_v25  ;;  %v30623_v62 = vpop.permute.xlu1 %7965  ;;  %26533 = vmatprep.mubr.msk.f32.mxu0 %vm28339_vm0, %v35988_v10  ;;  %v36077_v25 = vld [vmem:[#allocation15_spill] sm:$0xff] }
 0x3bb   :  { %12064 = vrot.lane.b32.xlu1 %v36074_v45, %s28341_s5  ;;  %26541 = vmatprep.subr.mxu0 %v35988_v10  ;;  %v8666_v45 = vpop.permute.xlu0 %8665 }
 0x3bc   :  { %26418 = vmatprep.mubr.msk.f32.mxu1 %vm28339_vm0, %v35988_v10  ;;  %26426 = vmatprep.subr.mxu1 %v35988_v10 }
 0x3bd   :  { %26534 = vmatmul.mubr.msk.f32.vlgmr.msra.gmra.mrb[154].mxu0 %vm1107_vm1, %v8354_v57  ;;  %26419 = vmatmul.mubr.msk.f32.vlgmr.msra.gmra.mrb[130].mxu1 %vm1107_vm1, %v36075_v7  ;;  %v36078_v57 = vld [vmem:[#allocation205_spill] sm:$0xff] }
 0x3be   :  { %26542 = vmatpush3.xpose.msk.msra.mxu0 %vm1107_vm1, %v8512_v2  ;;  %26427 = vmatpush3.xpose.msk.msra.mxu1 %vm1107_vm1, %v36076_v41  ;;  %v30639_v22 = vpop.permute.xlu1 %7963  ;;  %v36079_v7 = vld [vmem:[#allocation185_spill] sm:$0xff]  ;;  %v36080_v41 = vld [vmem:[#allocation26_spill] sm:$0xff] }
 0x3bf   :  { %12222 = vrot.lane.b32.xlu1 %v36077_v25, %s28341_s5  ;;  %26543 = vmatprep.mubr.msk.f32.mxu0 %vm28339_vm0, %v35988_v10 }
 0x3c0   :  { %26551 = vmatprep.subr.mxu0 %v35988_v10  ;;  %26428 = vmatprep.mubr.msk.f32.mxu1 %vm28339_vm0, %v35988_v10 }
 0x3c1   :  { %26436 = vmatprep.subr.mxu1 %v35988_v10  ;;  %26544 = vmatmul.mubr.msk.f32.vlgmr.msra.gmra.mrb[156].mxu0 %vm1107_vm1, %v8510_v54  ;;  %v9400_v54 = vpop.permute.xlu0 %9399 }
 0x3c2   :  { %26552 = vmatpush3.xpose.msk.msra.mxu0 %vm1107_vm1, %v8668_v59  ;;  %26429 = vmatmul.mubr.msk.f32.vlgmr.msra.gmra.mrb[132].mxu1 %vm1107_vm1, %v36078_v57  ;;  %v8122_v2 = vpop.permute.xlu1 %8121  ;;  %v36081_v59 = vld [vmem:[#allocation209_spill] sm:$0xff] }
 0x3c3   :  { %26437 = vmatpush3.xpose.msk.msra.mxu1 %vm1107_vm1, %v36079_v7  ;;  %12220 = vrot.lane.b32.xlu1 %v36080_v41, %s28341_s5  ;;  %v36082_v7 = vld [vmem:[#allocation196_spill] sm:$0xff]  ;;  %v36083_v41 = vld [vmem:[#allocation19_spill] sm:$0xff] }
 0x3c4   :  { %26553 = vmatprep.mubr.msk.f32.mxu0 %vm28339_vm0, %v35988_v10  ;;  %26561 = vmatprep.subr.mxu0 %v35988_v10 }
 0x3c5   :  { %26438 = vmatprep.mubr.msk.f32.mxu1 %vm28339_vm0, %v35988_v10  ;;  %26446 = vmatprep.subr.mxu1 %v35988_v10 }
 0x3c6   :  { %26554 = vmatmul.mubr.msk.f32.vlgmr.msra.gmra.mrb[158].mxu0 %vm1107_vm1, %v8666_v45  ;;  %26439 = vmatmul.mubr.msk.f32.vlgmr.msra.gmra.mrb[134].mxu1 %vm1107_vm1, %v36081_v59  ;;  %v8120_v57 = vpop.permute.xlu1 %8119  ;;  %v36084_v45 = vld [vmem:[#allocation211_spill] sm:$0xff] }
 0x3c7   :  { %26562 = vmatpush3.msra.mxu0 %v9400_v54  ;;  %26447 = vmatpush3.xpose.msk.msra.mxu1 %vm1107_vm1, %v36082_v7  ;;  %v36085_v54 = vld [vmem:[#allocation200_spill] sm:$0xff]  ;;  %v36086_v7 = vld [vmem:[#allocation34_spill] sm:$0xff] }
 0x3c8   :  { %12378 = vrot.lane.b32.xlu1 %v36083_v41, %s28341_s5  ;;  %26448 = vmatprep.mubr.msk.f32.mxu1 %vm28339_vm0, %v35988_v10  ;;  %v36087_v41 = vld [vmem:[#allocation213_spill] sm:$0xff] }
 0x3c9   :  { %26456 = vmatprep.subr.mxu1 %v35988_v10  ;;  %26563 = vmatprep.mubr.msk.f32.mxu0 %vm28339_vm0, %v35988_v10 }
 0x3ca   :  { %26449 = vmatmul.mubr.msk.f32.vlgmr.msra.gmra.mrb[136].mxu1 %vm1107_vm1, %v36084_v45  ;;  %v8278_v59 = vpop.permute.xlu1 %8277  ;;  %26571 = vmatprep.subr.mxu0 %v35988_v10  ;;  %v36089_v45 = vld [vmem:[#allocation23_spill] sm:$0xff] }
 0x3cb   :  { %26457 = vmatpush3.xpose.msk.msra.mxu1 %vm1107_vm1, %v36085_v54  ;;  %26458 = vmatprep.mubr.msk.f32.mxu1 %vm28339_vm0, %v35988_v10  ;;  %v36090_v54 = vld [vmem:[#allocation215_spill] sm:$0xff] }
 0x3cc   :  { %12376 = vrot.lane.b32.xlu1 %v36086_v7, %s28341_s5  ;;  %26466 = vmatprep.subr.mxu1 %v35988_v10 }
 0x3ce   :  { %26459 = vmatmul.mubr.msk.f32.vlgmr.msra.gmra.mrb[138].mxu1 %vm1107_vm1, %v36087_v41  ;;  %v8276_v25 = vpop.permute.xlu1 %8275  ;;  %v36092_v41 = vld [vmem:[#allocation27_spill] sm:$0xff] }
 0x3cf   :  { %26467 = vmatpush3.xpose.msk.msra.mxu1 %vm1107_vm1, %v36088_v60  ;;  %26468 = vmatprep.mubr.msk.f32.mxu1 %vm28339_vm0, %v35988_v10  ;;  %v36091_v60 = vld [vmem:[#allocation41_spill] sm:$0xff] }
 0x3d0   :  { %12534 = vrot.lane.b32.xlu1 %v36089_v45, %s28341_s5  ;;  %26476 = vmatprep.subr.mxu1 %v35988_v10 }
 0x3d2   :  { %26469 = vmatmul.mubr.msk.f32.vlgmr.msra.gmra.mrb[140].mxu1 %vm1107_vm1, %v36090_v54  ;;  %v8434_v7 = vpop.permute.xlu1 %8433 }
 0x3d3   :  { %26477 = vmatpush3.xpose.msk.msra.mxu1 %vm1107_vm1, %v30027_v56  ;;  %26478 = vmatprep.mubr.msk.f32.mxu1 %vm28339_vm0, %v35988_v10 }
 0x3d4   :  { %12532 = vrot.lane.b32.xlu1 %v36091_v60, %s28341_s5  ;;  %26486 = vmatprep.subr.mxu1 %v35988_v10 }
 0x3d6   :  { %26479 = vmatmul.mubr.msk.f32.vlgmr.msra.gmra.mrb[142].mxu1 %vm1107_vm1, %v30544_v3  ;;  %v8432_v56 = vpop.permute.xlu1 %8431  ;;  %v36093_v3 = vld [vmem:[#allocation47_spill] sm:$0xff] }
 0x3d7   :  { %26487 = vmatpush3.xpose.msk.msra.mxu1 %vm1107_vm1, %v30568_v44  ;;  %26488 = vmatprep.mubr.msk.f32.mxu1 %vm28339_vm0, %v35988_v10 }
 0x3d8   :  { %12690 = vrot.lane.b32.xlu1 %v36092_v41, %s28341_s5  ;;  %26496 = vmatprep.subr.mxu1 %v35988_v10 }
 0x3da   :  { %26489 = vmatmul.mubr.msk.f32.vlgmr.msra.gmra.mrb[144].mxu1 %vm1107_vm1, %v30580_v50  ;;  %v8590_v44 = vpop.permute.xlu1 %8589  ;;  %v36094_v50 = vld [vmem:[#allocation31_spill] sm:$0xff] }
 0x3db   :  { %26497 = vmatpush3.xpose.msk.msra.mxu1 %vm1107_vm1, %v30591_v19  ;;  %26498 = vmatprep.mubr.msk.f32.mxu1 %vm28339_vm0, %v35988_v10 }
 0x3dc   :  { %12688 = vrot.lane.b32.xlu1 %v36093_v3, %s28341_s5  ;;  %26506 = vmatprep.subr.mxu1 %v35988_v10 }
 0x3de   :  { %26499 = vmatmul.mubr.msk.f32.vlgmr.msra.gmra.mrb[146].mxu1 %vm1107_vm1, %v30609_v33  ;;  %v8588_v19 = vpop.permute.xlu1 %8587  ;;  %v36095_v33 = vld [vmem:[#allocation55_spill] sm:$0xff] }
 0x3df   :  { %26507 = vmatpush3.xpose.msk.msra.mxu1 %vm1107_vm1, %v30623_v62  ;;  %26508 = vmatprep.mubr.msk.f32.mxu1 %vm28339_vm0, %v35988_v10 }
 0x3e0   :  { %12846 = vrot.lane.b32.xlu1 %v36094_v50, %s28341_s5  ;;  %26516 = vmatprep.subr.mxu1 %v35988_v10 }
 0x3e2   :  { %26509 = vmatmul.mubr.msk.f32.vlgmr.msra.gmra.mrb[148].mxu1 %vm1107_vm1, %v30639_v22  ;;  %v8746_v62 = vpop.permute.xlu1 %8745 }
 0x3e3   :  { %26517 = vmatpush3.xpose.msk.msra.mxu1 %vm1107_vm1, %v8122_v2  ;;  %26518 = vmatprep.mubr.msk.f32.mxu1 %vm28339_vm0, %v35988_v10 }
 0x3e4   :  { %12844 = vrot.lane.b32.xlu1 %v36095_v33, %s28341_s5  ;;  %26526 = vmatprep.subr.mxu1 %v35988_v10 }
 0x3e6   :  { %26519 = vmatmul.mubr.msk.f32.vlgmr.msra.gmra.mrb[150].mxu1 %vm1107_vm1, %v8120_v57 }
 0x3e7   :  { %26527 = vmatpush3.xpose.msk.msra.mxu1 %vm1107_vm1, %v8278_v59  ;;  %26528 = vmatprep.mubr.msk.f32.mxu1 %vm28339_vm0, %v35988_v10 }
 0x3e8   :  { %26536 = vmatprep.subr.mxu1 %v35988_v10 }
 0x3ea   :  { %26529 = vmatmul.mubr.msk.f32.vlgmr.msra.gmra.mrb[152].mxu1 %vm1107_vm1, %v8276_v25  ;;  %v8744_v25 = vpop.permute.xlu1 %8743 }
 0x3eb   :  { %26537 = vmatpush3.xpose.msk.msra.mxu1 %vm1107_vm1, %v8434_v7  ;;  %26538 = vmatprep.mubr.msk.f32.mxu1 %vm28339_vm0, %v35988_v10 }
 0x3ec   :  { %26546 = vmatprep.subr.mxu1 %v35988_v10 }
 0x3ee   :  { %26539 = vmatmul.mubr.msk.f32.vlgmr.msra.gmra.mrb[154].mxu1 %vm1107_vm1, %v8432_v56  ;;  %v30749_v22 = vpop.f32.mrb[96].mxu1 }
 0x3ef   :  { %36096 = vst [vmem:[#allocation39_spill] sm:$0xff] %v30749_v22  ;;  %26547 = vmatpush3.xpose.msk.msra.mxu1 %vm1107_vm1, %v8590_v44  ;;  %v30752_v2 = vpop.f32.mrb[96].mxu0  ;;  %v26250_v57 = vpop.f32.mrb[97].mxu1  ;;  %26548 = vmatprep.mubr.msk.f32.mxu1 %vm28339_vm0, %v35988_v10 }
 0x3f0   :  { %36097 = vst [vmem:[#allocation68_spill] sm:$0xff] %v30752_v2  ;;  %v26245_v59 = vpop.f32.mrb[97].mxu0  ;;  %26556 = vmatprep.subr.mxu1 %v35988_v10  ;;  %v9476_v57 = vpop.permute.xlu1 %9475 }
 0x3f2   :  { %26549 = vmatmul.mubr.msk.f32.vlgmr.msra.gmra.mrb[156].mxu1 %vm1107_vm1, %v8588_v19  ;;  %v30758_v7 = vpop.f32.mrb[98].mxu1 }
 0x3f3   :  { %36098 = vst [vmem:[#allocation42_spill] sm:$0xff] %v30758_v7  ;;  %26557 = vmatpush3.xpose.msk.msra.mxu1 %vm1107_vm1, %v8746_v62  ;;  %v26260_v54 = vpop.f32.mrb[99].mxu1  ;;  %26558 = vmatprep.mubr.msk.f32.mxu1 %vm28339_vm0, %v35988_v10 }
 0x3f4   :  { %v30763_v56 = vpop.f32.mrb[98].mxu0  ;;  %26566 = vmatprep.subr.mxu1 %v35988_v10 }
 0x3f5   :  { %36099 = vst [vmem:[#allocation75_spill] sm:$0xff] %v30763_v56  ;;  %v26255_v44 = vpop.f32.mrb[99].mxu0 }
 0x3f6   :  { %26559 = vmatmul.mubr.msk.f32.vlgmr.msra.gmra.mrb[158].mxu1 %vm1107_vm1, %v8744_v25 }
 0x3f7   :  { %26567 = vmatpush3.msra.mxu1 %v9476_v57  ;;  %v30767_v59 = vpop.f32.mrb[100].mxu1  ;;  %26568 = vmatprep.mubr.msk.f32.mxu1 %vm28339_vm0, %v35988_v10 }
 0x3f8   :  { %36100 = vst [vmem:[#allocation45_spill] sm:$0xff] %v30767_v59  ;;  %v30771_v19 = vpop.f32.mrb[100].mxu0  ;;  %v26270_v62 = vpop.f32.mrb[101].mxu1  ;;  %26576 = vmatprep.subr.mxu1 %v35988_v10 }
 0x3f9   :  { %36101 = vst [vmem:[#allocation83_spill] sm:$0xff] %v30771_v19  ;;  %v26265_v54 = vpop.f32.mrb[101].mxu0 }
 0x3fc   :  { %v30774_v7 = vpop.f32.mrb[102].mxu0  ;;  %v30776_v56 = vpop.f32.mrb[102].mxu1 }
 0x3fd   :  { %36102 = vst [vmem:[#allocation167_spill] sm:$0xff] %v30774_v7  ;;  %36103 = vst [vmem:[#allocation166_spill] sm:$0xff] %v30776_v56  ;;  %v26275_v44 = vpop.f32.mrb[103].mxu0  ;;  %v26280_v22 = vpop.f32.mrb[103].mxu1 }
 0x400   :  { %v30778_v2 = vpop.f32.mrb[104].mxu0 }
 0x401   :  { %36104 = vst [vmem:[#allocation172_spill] sm:$0xff] %v30778_v2  ;;  %v26285_v25 = vpop.f32.mrb[105].mxu0 }
 0x402   :  { %v30780_v57 = vpop.f32.mrb[104].mxu1 }
 0x403   :  { %36105 = vst [vmem:[#allocation177_spill] sm:$0xff] %v30780_v57  ;;  %v26290_v59 = vpop.f32.mrb[105].mxu1 }
 0x406   :  { %v30782_v33 = vpop.f32.mrb[106].mxu0 }
 0x407   :  { %36106 = vst [vmem:[#allocation183_spill] sm:$0xff] %v30782_v33  ;;  %v26295_v50 = vpop.f32.mrb[107].mxu0 }
 0x40a   :  { %v30784_v19 = vpop.f32.mrb[106].mxu1 }
 0x40b   :  { %36107 = vst [vmem:[#allocation193_spill] sm:$0xff] %v30784_v19  ;;  %v26300_v62 = vpop.f32.mrb[107].mxu1 }
 0x40e   :  { %v30786_v3 = vpop.f32.mrb[108].mxu0 }
 0x40f   :  { %36108 = vst [vmem:[#allocation187_spill] sm:$0xff] %v30786_v3  ;;  %v26305_v54 = vpop.f32.mrb[109].mxu0 }
 0x412   :  { %v30788_v7 = vpop.f32.mrb[108].mxu1 }
 0x413   :  { %36109 = vst [vmem:[#allocation206_spill] sm:$0xff] %v30788_v7  ;;  %v26310_v56 = vpop.f32.mrb[109].mxu1 }
 0x416   :  { %v30790_v44 = vpop.f32.mrb[110].mxu0 }
 0x417   :  { %36110 = vst [vmem:[#allocation197_spill] sm:$0xff] %v30790_v44  ;;  %v26315_v22 = vpop.f32.mrb[111].mxu0 }
 0x41a   :  { %v30792_v2 = vpop.f32.mrb[110].mxu1 }
 0x41b   :  { %36111 = vst [vmem:[#allocation210_spill] sm:$0xff] %v30792_v2  ;;  %v26320_v25 = vpop.f32.mrb[111].mxu1 }
 0x41e   :  { %v30794_v57 = vpop.f32.mrb[112].mxu0 }
 0x41f   :  { %36112 = vst [vmem:[#allocation202_spill] sm:$0xff] %v30794_v57  ;;  %v26325_v59 = vpop.f32.mrb[113].mxu0 }
 0x422   :  { %v30796_v33 = vpop.f32.mrb[112].mxu1 }
 0x423   :  { %36113 = vst [vmem:[#allocation212_spill] sm:$0xff] %v30796_v33  ;;  %v26330_v50 = vpop.f32.mrb[113].mxu1 }
 0x426   :  { %v30798_v19 = vpop.f32.mrb[114].mxu0 }
 0x427   :  { %36114 = vst [vmem:[#allocation208_spill] sm:$0xff] %v30798_v19  ;;  %v26335_v62 = vpop.f32.mrb[115].mxu0 }
 0x42a   :  { %v30800_v3 = vpop.f32.mrb[114].mxu1 }
 0x42b   :  { %36115 = vst [vmem:[#allocation214_spill] sm:$0xff] %v30800_v3  ;;  %v26340_v54 = vpop.f32.mrb[115].mxu1  ;;  %v30814_v3 = vpop.permute.xlu0 %9551 }
 0x42e   :  { %v30802_v7 = vpop.f32.mrb[116].mxu0 }
 0x42f   :  { %36116 = vst [vmem:[#allocation161_spill] sm:$0xff] %v30802_v7  ;;  %v26345_v56 = vpop.f32.mrb[117].mxu0 }
 0x432   :  { %v30804_v44 = vpop.f32.mrb[116].mxu1 }
 0x433   :  { %36117 = vst [vmem:[#allocation175_spill] sm:$0xff] %v30804_v44  ;;  %v26350_v22 = vpop.f32.mrb[117].mxu1  ;;  %v30820_v44 = vpop.permute.xlu0 %9703 }
 0x434   :  { %36124 = vst [vmem:[#allocation196_spill] sm:$0xff] %v30820_v44 }
 0x436   :  { %v30806_v2 = vpop.f32.mrb[118].mxu0 }
 0x437   :  { %36118 = vst [vmem:[#allocation170_spill] sm:$0xff] %v30806_v2  ;;  %v26355_v25 = vpop.f32.mrb[119].mxu0 }
 0x43a   :  { %v30808_v57 = vpop.f32.mrb[118].mxu1 }
 0x43b   :  { %36119 = vst [vmem:[#allocation190_spill] sm:$0xff] %v30808_v57  ;;  %v26360_v59 = vpop.f32.mrb[119].mxu1 }
 0x43c   :  { %v30824_v59 = vpop.permute.xlu0 %9855 }
 0x43d   :  { %36126 = vst [vmem:[#allocation200_spill] sm:$0xff] %v30824_v59 }
 0x43e   :  { %v30810_v33 = vpop.f32.mrb[120].mxu0 }
 0x43f   :  { %36120 = vst [vmem:[#allocation180_spill] sm:$0xff] %v30810_v33  ;;  %v26365_v50 = vpop.f32.mrb[121].mxu0 }
 0x440   :  { %v30830_v2 = vpop.permute.xlu0 %10007 }
 0x441   :  { %36129 = vst [vmem:[#allocation215_spill] sm:$0xff] %v30830_v2 }
 0x442   :  { %v30812_v19 = vpop.f32.mrb[120].mxu1 }
 0x443   :  { %36121 = vst [vmem:[#allocation205_spill] sm:$0xff] %v30812_v19  ;;  %v26370_v62 = vpop.f32.mrb[121].mxu1 }
 0x444   :  { %v30836_v45 = vpop.permute.xlu0 %10159 }
 0x445   :  { %36132 = vst [vmem:[#allocation218_spill] sm:$0xff] %v30836_v45 }
 0x446   :  { %v30816_v54 = vpop.f32.mrb[122].mxu0 }
 0x447   :  { %36122 = vst [vmem:[#allocation185_spill] sm:$0xff] %v30816_v54  ;;  %v26375_v56 = vpop.f32.mrb[123].mxu0 }
 0x448   :  { %v36130_v56 = vld [vmem:[#allocation126_spill] sm:$0xff] }
 0x44a   :  { %v30818_v7 = vpop.f32.mrb[122].mxu1 }
 0x44b   :  { %36123 = vst [vmem:[#allocation209_spill] sm:$0xff] %v30818_v7  ;;  %v26380_v22 = vpop.f32.mrb[123].mxu1 }
 0x44c   :  { %v36131_v22 = vld [vmem:[#allocation128_spill] sm:$0xff] }
 0x44e   :  { %v30822_v25 = vpop.f32.mrb[124].mxu0 }
 0x44f   :  { %36125 = vst [vmem:[#allocation211_spill] sm:$0xff] %v30822_v25  ;;  %v26385_v57 = vpop.f32.mrb[125].mxu0  ;;  %v36133_v25 = vld [vmem:[#allocation129_spill] sm:$0xff] }
 0x452   :  { %v30826_v33 = vpop.f32.mrb[124].mxu1 }
 0x453   :  { %36127 = vst [vmem:[#allocation213_spill] sm:$0xff] %v30826_v33  ;;  %v26390_v50 = vpop.f32.mrb[125].mxu1 }
 0x456   :  { %v30828_v19 = vpop.f32.mrb[126].mxu0 }
 0x457   :  { %36128 = vst [vmem:[#allocation207_spill] sm:$0xff] %v30828_v19  ;;  %v26395_v62 = vpop.f32.mrb[127].mxu0 }
 0x458   :  { %v36134_v62 = vld [vmem:[#allocation131_spill] sm:$0xff] }
 0x45a   :  { %v6399_v54 = vpop.f32.mrb[128].mxu0 }
 0x45b   :  { %v8821_v41 = vmul.f32 %v6399_v54, %v36130_v56  ;;  %v26405_v7 = vpop.f32.mrb[129].mxu0 }
 0x45d   :  { %v30834_v60 = vadd.f32 %v8821_v41, %v36131_v22  ;;  %v30846_v41 = vpop.permute.xlu0 %10311 }
 0x45e   :  { %v6555_v57 = vpop.f32.mrb[130].mxu0  ;;  %36135 = vst [vmem:[#allocation219_spill] sm:$0xff] %v30846_v41 }
 0x45f   :  { %v8823_v15 = vmul.f32 %v6555_v57, %v36133_v25  ;;  %v26415_v58 = vpop.f32.mrb[131].mxu0  ;;  %v8885_v50 = vsel %vm3604_vm2, %v30834_v60, -inf  ;;  %v30850_v57 = vpop.permute.xlu1 %9627 }
 0x460   :  { %8886 = vmax.xlane.f32.xlu0 %v8885_v50  ;;  %36137 = vst [vmem:[#allocation221_spill] sm:$0xff] %v30850_v57 }
 0x461   :  { %v30842_v19 = vadd.f32 %v8823_v15, %v36134_v62  ;;  %v30848_v56 = vpop.permute.xlu0 %10463 }
 0x462   :  { %v6711_v33 = vpop.f32.mrb[132].mxu0  ;;  %36136 = vst [vmem:[#allocation220_spill] sm:$0xff] %v30848_v56 }
 0x463   :  { %v26425_v28 = vpop.f32.mrb[133].mxu0  ;;  %v8891_v7 = vsel %vm3604_vm2, %v30842_v19, -inf }
 0x464   :  { %8892 = vmax.xlane.f32.xlu0 %v8891_v7  ;;  %v30856_v28 = vpop.permute.xlu1 %9779 }
 0x465   :  { %v30854_v62 = vpop.permute.xlu0 %10615  ;;  %36139 = vst [vmem:[#allocation223_spill] sm:$0xff] %v30856_v28 }
 0x466   :  { %v6867_v54 = vpop.f32.mrb[134].mxu0  ;;  %36138 = vst [vmem:[#allocation222_spill] sm:$0xff] %v30854_v62 }
 0x467   :  { %v26435_v22 = vpop.f32.mrb[135].mxu0 }
 0x468   :  { %v30864_v22 = vpop.permute.xlu1 %9931 }
 0x469   :  { %v30860_v17 = vpop.permute.xlu0 %10767  ;;  %36141 = vst [vmem:[#allocation225_spill] sm:$0xff] %v30864_v22 }
 0x46a   :  { %v7023_v58 = vpop.f32.mrb[136].mxu0  ;;  %36140 = vst [vmem:[#allocation224_spill] sm:$0xff] %v30860_v17 }
 0x46b   :  { %v26445_v25 = vpop.f32.mrb[137].mxu0 }
 0x46d   :  { %v30868_v27 = vpop.permute.xlu0 %10919 }
 0x46e   :  { %v30852_v50 = vpop.f32.mrb[138].mxu0  ;;  %36142 = vst [vmem:[#allocation226_spill] sm:$0xff] %v30868_v27 }
 0x46f   :  { %v26455_v15 = vpop.f32.mrb[139].mxu0 }
 0x470   :  { %v30870_v15 = vpop.permute.xlu1 %10083 }
 0x471   :  { %36143 = vst [vmem:[#allocation227_spill] sm:$0xff] %v30870_v15  ;;  %v30874_v21 = vpop.permute.xlu0 %11223 }
 0x472   :  { %v30858_v31 = vpop.f32.mrb[140].mxu0  ;;  %36144 = vst [vmem:[#allocation228_spill] sm:$0xff] %v30874_v21  ;;  %v36149_v21 = vld [vmem:[#allocation127_spill] sm:$0xff] }
 0x473   :  { %v26465_v11 = vpop.f32.mrb[141].mxu0 }
 0x474   :  { %v30878_v17 = vpop.permute.xlu1 %10235 }
 0x475   :  { %36145 = vst [vmem:[#allocation229_spill] sm:$0xff] %v30878_v17  ;;  %v30882_v22 = vpop.permute.xlu0 %11375  ;;  %v36152_v17 = vld [vmem:[#allocation130_spill] sm:$0xff] }
 0x476   :  { %v30862_v7 = vpop.f32.mrb[142].mxu0  ;;  %36146 = vst [vmem:[#allocation230_spill] sm:$0xff] %v30882_v22 }
 0x477   :  { %v26475_v56 = vpop.f32.mrb[143].mxu0 }
 0x478   :  { %v30886_v27 = vpop.permute.xlu1 %10387 }
 0x479   :  { %36148 = vst [vmem:[#allocation232_spill] sm:$0xff] %v30886_v27  ;;  %v30891_v57 = vpop.permute.xlu0 %11527  ;;  %v8825_v27 = vmul.f32 %v6711_v33, %v36153_v32 }
 0x47a   :  { %v30866_v41 = vpop.f32.mrb[144].mxu0  ;;  %36150 = vst [vmem:[#allocation233_spill] sm:$0xff] %v30891_v57 }
 0x47b   :  { %v26485_v25 = vpop.f32.mrb[145].mxu0 }
 0x47e   :  { %v30872_v62 = vpop.f32.mrb[146].mxu0 }
 0x47f   :  { %v26495_v45 = vpop.f32.mrb[147].mxu0 }
 0x482   :  { %v30876_v11 = vpop.f32.mrb[148].mxu0 }
 0x483   :  { %v26505_v2 = vpop.f32.mrb[149].mxu0 }
 0x484   :  { %v30893_v2 = vpop.permute.xlu1 %10539 }
 0x485   :  { %36151 = vst [vmem:[#allocation234_spill] sm:$0xff] %v30893_v2  ;;  %v36158_v2 = vld [vmem:[#allocation138_spill] sm:$0xff] }
 0x486   :  { %v30880_v5 = vpop.f32.mrb[150].mxu0  ;;  %v8827_v33 = vmul.f32 %v6867_v54, %v36158_v2 }
 0x487   :  { %v26515_v56 = vpop.f32.mrb[151].mxu0 }
 0x488   :  { %v30884_v25 = vpop.f32.mrb[126].mxu1  ;;  %v30924_v40 = vadd.f32 %v8827_v33, %v36162_v20  ;;  %v36166_v33 = vld [vmem:[#allocation141_spill] sm:$0xff] }
 0x489   :  { %36147 = vst [vmem:[#allocation231_spill] sm:$0xff] %v30884_v25  ;;  %v26400_v15 = vpop.f32.mrb[127].mxu1 }
 0x48a   :  { %v36154_v15 = vld [vmem:[#allocation132_spill] sm:$0xff] }
 0x48b   :  { %v30888_v59 = vpop.f32.mrb[152].mxu0 }
 0x48c   :  { %v6477_v45 = vpop.f32.mrb[128].mxu1  ;;  %v26525_v35 = vpop.f32.mrb[153].mxu0 }
 0x48d   :  { %v8822_v28 = vmul.f32 %v6477_v45, %v36149_v21  ;;  %v26410_v18 = vpop.f32.mrb[129].mxu1  ;;  %v30907_v21 = vpop.permute.xlu0 %11679 }
 0x48e   :  { %v36155_v18 = vld [vmem:[#allocation133_spill] sm:$0xff]  ;;  %36156 = vst [vmem:[#allocation235_spill] sm:$0xff] %v30907_v21 }
 0x48f   :  { %v30896_v56 = vadd.f32 %v8822_v28, %v36152_v17  ;;  %v36157_v17 = vld [vmem:[#allocation135_spill] sm:$0xff] }
 0x490   :  { %v30898_v22 = vpop.f32.mrb[154].mxu0  ;;  %v6633_v25 = vpop.f32.mrb[130].mxu1  ;;  %v30912_v57 = vadd.f32 %v8825_v27, %v36157_v17  ;;  %v36163_v27 = vld [vmem:[#allocation142_spill] sm:$0xff] }
 0x491   :  { %v8824_v36 = vmul.f32 %v6633_v25, %v36154_v15  ;;  %v26535_v38 = vpop.f32.mrb[155].mxu0  ;;  %v26420_v34 = vpop.f32.mrb[131].mxu1  ;;  %v8888_v35 = vsel %vm3604_vm2, %v30896_v56, -inf  ;;  %v8829_v17 = vmul.f32 %v7023_v58, %v36163_v27  ;;  %v36168_v27 = vld [vmem:[#allocation143_spill] sm:$0xff] }
 0x492   :  { %8889 = vmax.xlane.f32.xlu1 %v8888_v35  ;;  %v36159_v38 = vld [vmem:[#allocation136_spill] sm:$0xff]  ;;  %v8897_v2 = vsel %vm3604_vm2, %v30912_v57, -inf }
 0x493   :  { %v30905_v45 = vadd.f32 %v8824_v36, %v36155_v18  ;;  %v30918_v36 = vpop.permute.xlu1 %10691  ;;  %v36161_v18 = vld [vmem:[#allocation137_spill] sm:$0xff] }
 0x494   :  { %v30909_v28 = vpop.f32.mrb[156].mxu0  ;;  %36160 = vst [vmem:[#allocation236_spill] sm:$0xff] %v30918_v36  ;;  %v36169_v36 = vld [vmem:[#allocation146_spill] sm:$0xff] }
 0x495   :  { %v6789_v32 = vpop.f32.mrb[132].mxu1  ;;  %v26545_v25 = vpop.f32.mrb[157].mxu0  ;;  %v8894_v34 = vsel %vm3604_vm2, %v30905_v45, -inf }
 0x496   :  { %v8826_v15 = vmul.f32 %v6789_v32, %v36159_v38  ;;  %v26430_v35 = vpop.f32.mrb[133].mxu1  ;;  %8895 = vmax.xlane.f32.xlu0 %v8894_v34 }
 0x497   :  { %v30939_v58 = vpop.permute.xlu1 %10843 }
 0x498   :  { %v30921_v21 = vadd.f32 %v8826_v15, %v36161_v18  ;;  %v30934_v15 = vpop.permute.xlu0 %11832  ;;  %36167 = vst [vmem:[#allocation238_spill] sm:$0xff] %v30939_v58  ;;  %v30942_v18 = vadd.f32 %v8829_v17, %v36168_v27  ;;  %v36173_v27 = vld [vmem:[#allocation147_spill] sm:$0xff] }
 0x499   :  { %v30927_v54 = vpop.f32.mrb[158].mxu0  ;;  %v6945_v25 = vpop.f32.mrb[134].mxu1  ;;  %36165 = vst [vmem:[#allocation237_spill] sm:$0xff] %v30934_v15 }
 0x49a   :  { %v8828_v32 = vmul.f32 %v6945_v25, %v36164_v9  ;;  %v26555_v35 = vpop.f32.mrb[159].mxu0  ;;  %v26440_v34 = vpop.f32.mrb[135].mxu1  ;;  %v8900_v38 = vsel %vm3604_vm2, %v30921_v21, -inf  ;;  %8898 = vmax.xlane.f32.xlu0 %v8897_v2  ;;  %v8831_v25 = vmul.f32 %v30852_v50, %v36169_v36  ;;  %v36170_v9 = vld [vmem:[#allocation144_spill] sm:$0xff]  ;;  %v36174_v50 = vld [vmem:[#allocation150_spill] sm:$0xff] }
 0x49b   :  { %8901 = vmax.xlane.f32.xlu1 %v8900_v38  ;;  %v8903_v34 = vsel %vm3604_vm2, %v30924_v40, -inf  ;;  %v8833_v36 = vmul.f32 %v30858_v31, %v36174_v50  ;;  %v36179_v31 = vld [vmem:[#allocation154_spill] sm:$0xff] }
 0x49c   :  { %v30937_v20 = vadd.f32 %v8828_v32, %v36166_v33  ;;  %v36171_v32 = vld [vmem:[#allocation145_spill] sm:$0xff]  ;;  %v30954_v17 = vpop.permute.xlu0 %11830  ;;  %v30957_v15 = vadd.f32 %v8831_v25, %v36173_v27  ;;  %v36178_v27 = vld [vmem:[#allocation151_spill] sm:$0xff]  ;;  %v8835_v50 = vmul.f32 %v30862_v7, %v36179_v31 }
 0x49d   :  { %v7101_v35 = vpop.f32.mrb[136].mxu1  ;;  %36172 = vst [vmem:[#allocation239_spill] sm:$0xff] %v30954_v17  ;;  %v36184_v7 = vld [vmem:[#allocation155_spill] sm:$0xff] }
 0x49e   :  { %v8830_v2 = vmul.f32 %v7101_v35, %v36170_v9  ;;  %v26450_v37 = vpop.f32.mrb[137].mxu1  ;;  %v8906_v38 = vsel %vm3604_vm2, %v30937_v20, -inf  ;;  %8904 = vmax.xlane.f32.xlu0 %v8903_v34  ;;  %v36175_v35 = vld [vmem:[#allocation148_spill] sm:$0xff]  ;;  %v30989_v31 = vadd.f32 %v8835_v50, %v36184_v7  ;;  %v36189_v7 = vld [vmem:[#allocation159_spill] sm:$0xff] }
 0x49f   :  { %8907 = vmax.xlane.f32.xlu1 %v8906_v38  ;;  %v8909_v37 = vsel %vm3604_vm2, %v30942_v18, -inf  ;;  %v36177_v38 = vld [vmem:[#allocation149_spill] sm:$0xff] }
 0x4a0   :  { %v30952_v33 = vadd.f32 %v8830_v2, %v36171_v32  ;;  %v30966_v2 = vpop.permute.xlu1 %10995  ;;  %v30972_v32 = vadd.f32 %v8833_v36, %v36178_v27 }
 0x4a1   :  { %v7257_v58 = vpop.f32.mrb[138].mxu1  ;;  %36176 = vst [vmem:[#allocation240_spill] sm:$0xff] %v30966_v2 }
 0x4a2   :  { %v8832_v9 = vmul.f32 %v7257_v58, %v36175_v35  ;;  %v26460_v46 = vpop.f32.mrb[139].mxu1  ;;  %v8912_v34 = vsel %vm3604_vm2, %v30952_v33, -inf  ;;  %8910 = vmax.xlane.f32.xlu0 %v8909_v37  ;;  %v36180_v58 = vld [vmem:[#allocation152_spill] sm:$0xff] }
 0x4a3   :  { %8913 = vmax.xlane.f32.xlu1 %v8912_v34  ;;  %v8915_v46 = vsel %vm3604_vm2, %v30957_v15, -inf  ;;  %v30981_v34 = vpop.permute.xlu0 %11988 }
 0x4a4   :  { %v30969_v25 = vadd.f32 %v8832_v9, %v36177_v38  ;;  %36181 = vst [vmem:[#allocation241_spill] sm:$0xff] %v30981_v34  ;;  %v36182_v9 = vld [vmem:[#allocation153_spill] sm:$0xff]  ;;  %v30986_v27 = vpop.permute.xlu1 %11071  ;;  %v36185_v38 = vld [vmem:[#allocation158_spill] sm:$0xff] }
 0x4a5   :  { %v7413_v17 = vpop.f32.mrb[140].mxu1  ;;  %36183 = vst [vmem:[#allocation242_spill] sm:$0xff] %v30986_v27  ;;  %v8837_v2 = vmul.f32 %v30866_v41, %v36185_v38  ;;  %v36190_v41 = vld [vmem:[#allocation163_spill] sm:$0xff] }
 0x4a6   :  { %v8834_v35 = vmul.f32 %v7413_v17, %v36180_v58  ;;  %v26470_v13 = vpop.f32.mrb[141].mxu1  ;;  %v8918_v37 = vsel %vm3604_vm2, %v30969_v25, -inf  ;;  %8916 = vmax.xlane.f32.xlu0 %v8915_v46  ;;  %v36186_v58 = vld [vmem:[#allocation156_spill] sm:$0xff]  ;;  %v8839_v38 = vmul.f32 %v30872_v62, %v36190_v41  ;;  %v36195_v62 = vld [vmem:[#allocation169_spill] sm:$0xff] }
 0x4a7   :  { %8919 = vmax.xlane.f32.xlu1 %v8918_v37  ;;  %v8921_v13 = vsel %vm3604_vm2, %v30972_v32, -inf  ;;  %v31001_v50 = vpop.permute.xlu0 %11986  ;;  %v31004_v34 = vadd.f32 %v8837_v2, %v36189_v7  ;;  %v36194_v7 = vld [vmem:[#allocation164_spill] sm:$0xff]  ;;  %v8841_v41 = vmul.f32 %v30876_v11, %v36195_v62  ;;  %v36200_v11 = vld [vmem:[#allocation171_spill] sm:$0xff] }
 0x4a8   :  { %v30984_v36 = vadd.f32 %v8834_v35, %v36182_v9  ;;  %v36187_v35 = vld [vmem:[#allocation157_spill] sm:$0xff]  ;;  %36188 = vst [vmem:[#allocation243_spill] sm:$0xff] %v31001_v50 }
 0x4a9   :  { %v7569_v17 = vpop.f32.mrb[142].mxu1  ;;  %v31036_v62 = vadd.f32 %v8841_v41, %v36200_v11  ;;  %v36205_v11 = vld [vmem:[#allocation178_spill] sm:$0xff] }
 0x4aa   :  { %v8836_v46 = vmul.f32 %v7569_v17, %v36186_v58  ;;  %v26480_v12 = vpop.f32.mrb[143].mxu1  ;;  %v8924_v37 = vsel %vm3604_vm2, %v30984_v36, -inf  ;;  %8922 = vmax.xlane.f32.xlu0 %v8921_v13  ;;  %v36191_v17 = vld [vmem:[#allocation160_spill] sm:$0xff] }
 0x4ab   :  { %8925 = vmax.xlane.f32.xlu1 %v8924_v37  ;;  %v8927_v12 = vsel %vm3604_vm2, %v30989_v31, -inf  ;;  %v36193_v37 = vld [vmem:[#allocation162_spill] sm:$0xff] }
 0x4ac   :  { %v30999_v9 = vadd.f32 %v8836_v46, %v36187_v35  ;;  %v31013_v46 = vpop.permute.xlu1 %11147  ;;  %v31019_v35 = vadd.f32 %v8839_v38, %v36194_v7 }
 0x4ad   :  { %v7725_v27 = vpop.f32.mrb[144].mxu1  ;;  %36192 = vst [vmem:[#allocation244_spill] sm:$0xff] %v31013_v46 }
 0x4ae   :  { %v8838_v58 = vmul.f32 %v7725_v27, %v36191_v17  ;;  %v26490_v16 = vpop.f32.mrb[145].mxu1  ;;  %v8930_v13 = vsel %vm3604_vm2, %v30999_v9, -inf  ;;  %8928 = vmax.xlane.f32.xlu0 %v8927_v12  ;;  %v36196_v27 = vld [vmem:[#allocation165_spill] sm:$0xff] }
 0x4af   :  { %8931 = vmax.xlane.f32.xlu1 %v8930_v13  ;;  %v8933_v16 = vsel %vm3604_vm2, %v31004_v34, -inf  ;;  %v31028_v13 = vpop.permute.xlu0 %12144 }
 0x4b0   :  { %v31016_v2 = vadd.f32 %v8838_v58, %v36193_v37  ;;  %36197 = vst [vmem:[#allocation245_spill] sm:$0xff] %v31028_v13  ;;  %v36198_v58 = vld [vmem:[#allocation168_spill] sm:$0xff]  ;;  %v31033_v7 = vpop.permute.xlu1 %11299 }
 0x4b1   :  { %v7881_v50 = vpop.f32.mrb[146].mxu1  ;;  %36199 = vst [vmem:[#allocation246_spill] sm:$0xff] %v31033_v7  ;;  %v36201_v37 = vld [vmem:[#allocation176_spill] sm:$0xff] }
 0x4b2   :  { %v8840_v17 = vmul.f32 %v7881_v50, %v36196_v27  ;;  %v26500_v55 = vpop.f32.mrb[147].mxu1  ;;  %v8936_v12 = vsel %vm3604_vm2, %v31016_v2, -inf  ;;  %8934 = vmax.xlane.f32.xlu0 %v8933_v16  ;;  %v8843_v46 = vmul.f32 %v30880_v5, %v36201_v37  ;;  %v36202_v27 = vld [vmem:[#allocation173_spill] sm:$0xff]  ;;  %v36206_v5 = vld [vmem:[#allocation182_spill] sm:$0xff] }
 0x4b3   :  { %8937 = vmax.xlane.f32.xlu1 %v8936_v12  ;;  %v8939_v55 = vsel %vm3604_vm2, %v31019_v35, -inf  ;;  %v31048_v41 = vpop.permute.xlu0 %12142  ;;  %v8845_v37 = vmul.f32 %v30888_v59, %v36206_v5  ;;  %v36211_v59 = vld [vmem:[#allocation189_spill] sm:$0xff] }
 0x4b4   :  { %v31031_v38 = vadd.f32 %v8840_v17, %v36198_v58  ;;  %v36203_v17 = vld [vmem:[#allocation174_spill] sm:$0xff]  ;;  %36204 = vst [vmem:[#allocation247_spill] sm:$0xff] %v31048_v41  ;;  %v31051_v13 = vadd.f32 %v8843_v46, %v36205_v11  ;;  %v36210_v11 = vld [vmem:[#allocation184_spill] sm:$0xff]  ;;  %v8847_v5 = vmul.f32 %v30898_v22, %v36211_v59  ;;  %v36216_v22 = vld [vmem:[#allocation191_spill] sm:$0xff] }
 0x4b5   :  { %v8037_v50 = vpop.f32.mrb[148].mxu1 }
 0x4b6   :  { %v8842_v16 = vmul.f32 %v8037_v50, %v36202_v27  ;;  %v26510_v42 = vpop.f32.mrb[149].mxu1  ;;  %v8942_v12 = vsel %vm3604_vm2, %v31031_v38, -inf  ;;  %8940 = vmax.xlane.f32.xlu0 %v8939_v55  ;;  %v36207_v50 = vld [vmem:[#allocation179_spill] sm:$0xff]  ;;  %v31083_v59 = vadd.f32 %v8847_v5, %v36216_v22  ;;  %v36221_v22 = vld [vmem:[#allocation198_spill] sm:$0xff] }
 0x4b7   :  { %8943 = vmax.xlane.f32.xlu1 %v8942_v12  ;;  %v8945_v42 = vsel %vm3604_vm2, %v31036_v62, -inf  ;;  %v36209_v12 = vld [vmem:[#allocation181_spill] sm:$0xff] }
 0x4b8   :  { %v31046_v58 = vadd.f32 %v8842_v16, %v36203_v17  ;;  %v31060_v16 = vpop.permute.xlu1 %11451  ;;  %v31066_v17 = vadd.f32 %v8845_v37, %v36210_v11 }
 0x4b9   :  { %v8193_v7 = vpop.f32.mrb[150].mxu1  ;;  %36208 = vst [vmem:[#allocation248_spill] sm:$0xff] %v31060_v16 }
 0x4ba   :  { %v8844_v27 = vmul.f32 %v8193_v7, %v36207_v50  ;;  %v26520_v44 = vpop.f32.mrb[151].mxu1  ;;  %v8948_v55 = vsel %vm3604_vm2, %v31046_v58, -inf  ;;  %8946 = vmax.xlane.f32.xlu0 %v8945_v42  ;;  %v36212_v7 = vld [vmem:[#allocation186_spill] sm:$0xff] }
 0x4bb   :  { %8949 = vmax.xlane.f32.xlu1 %v8948_v55  ;;  %v8951_v44 = vsel %vm3604_vm2, %v31051_v13, -inf  ;;  %v31075_v55 = vpop.permute.xlu0 %12300 }
 0x4bc   :  { %v31063_v46 = vadd.f32 %v8844_v27, %v36209_v12  ;;  %36213 = vst [vmem:[#allocation249_spill] sm:$0xff] %v31075_v55  ;;  %v36214_v27 = vld [vmem:[#allocation188_spill] sm:$0xff]  ;;  %v31080_v11 = vpop.permute.xlu1 %11603  ;;  %v36217_v12 = vld [vmem:[#allocation195_spill] sm:$0xff] }
 0x4bd   :  { %v8349_v41 = vpop.f32.mrb[152].mxu1  ;;  %36215 = vst [vmem:[#allocation250_spill] sm:$0xff] %v31080_v11  ;;  %v8849_v16 = vmul.f32 %v30909_v28, %v36217_v12  ;;  %v36222_v28 = vld [vmem:[#allocation203_spill] sm:$0xff] }
 0x4be   :  { %v8846_v50 = vmul.f32 %v8349_v41, %v36212_v7  ;;  %v26530_v30 = vpop.f32.mrb[153].mxu1  ;;  %v8954_v42 = vsel %vm3604_vm2, %v31063_v46, -inf  ;;  %8952 = vmax.xlane.f32.xlu0 %v8951_v44  ;;  %v36218_v7 = vld [vmem:[#allocation192_spill] sm:$0xff]  ;;  %v8851_v12 = vmul.f32 %v30927_v54, %v36222_v28 }
 0x4bf   :  { %8955 = vmax.xlane.f32.xlu1 %v8954_v42  ;;  %v8957_v30 = vsel %vm3604_vm2, %v31066_v17, -inf  ;;  %v31095_v5 = vpop.permute.xlu0 %12298  ;;  %v31098_v55 = vadd.f32 %v8849_v16, %v36221_v22  ;;  %v36226_v22 = vld [vmem:[#allocation204_spill] sm:$0xff] }
 0x4c0   :  { %v31078_v37 = vadd.f32 %v8846_v50, %v36214_v27  ;;  %v36219_v50 = vld [vmem:[#allocation194_spill] sm:$0xff]  ;;  %36220 = vst [vmem:[#allocation251_spill] sm:$0xff] %v31095_v5 }
 0x4c1   :  { %v8505_v41 = vpop.f32.mrb[154].mxu1  ;;  %v8969_v28 = vsel %vm3604_vm2, %v31098_v55, -inf }
 0x4c2   :  { %v8848_v44 = vmul.f32 %v8505_v41, %v36218_v7  ;;  %v26540_v23 = vpop.f32.mrb[155].mxu1  ;;  %v8960_v42 = vsel %vm3604_vm2, %v31078_v37, -inf  ;;  %8958 = vmax.xlane.f32.xlu0 %v8957_v30  ;;  %v36223_v41 = vld [vmem:[#allocation199_spill] sm:$0xff] }
 0x4c3   :  { %8961 = vmax.xlane.f32.xlu1 %v8960_v42  ;;  %v8963_v23 = vsel %vm3604_vm2, %v31083_v59, -inf  ;;  %v36225_v42 = vld [vmem:[#allocation201_spill] sm:$0xff] }
 0x4c4   :  { %v31093_v27 = vadd.f32 %v8848_v44, %v36219_v50  ;;  %v31107_v44 = vpop.permute.xlu1 %11755  ;;  %v31113_v50 = vadd.f32 %v8851_v12, %v36226_v22 }
 0x4c5   :  { %v8661_v11 = vpop.f32.mrb[156].mxu1  ;;  %36224 = vst [vmem:[#allocation252_spill] sm:$0xff] %v31107_v44 }
 0x4c6   :  { %v8850_v7 = vmul.f32 %v8661_v11, %v36223_v41  ;;  %v26550_v10 = vpop.f32.mrb[157].mxu1  ;;  %v8966_v30 = vsel %vm3604_vm2, %v31093_v27, -inf  ;;  %8964 = vmax.xlane.f32.xlu0 %v8963_v23  ;;  %v31120_v23 = vpop.permute.xlu0 %12456  ;;  %v8975_v12 = vsel %vm3604_vm2, %v31113_v50, -inf }
 0x4c7   :  { %8967 = vmax.xlane.f32.xlu1 %v8966_v30  ;;  %36227 = vst [vmem:[#allocation253_spill] sm:$0xff] %v31120_v23 }
 0x4c8   :  { %v31110_v16 = vadd.f32 %v8850_v7, %v36225_v42  ;;  %v31125_v30 = vpop.permute.xlu1 %11910 }
 0x4c9   :  { %v8817_v54 = vpop.f32.mrb[158].mxu1  ;;  %36228 = vst [vmem:[#allocation254_spill] sm:$0xff] %v31125_v30 }
 0x4ca   :  { %v8852_v11 = vmul.f32 %v8817_v54, %v29859_v8  ;;  %v26560_v10 = vpop.f32.mrb[159].mxu1  ;;  %v8972_v41 = vsel %vm3604_vm2, %v31110_v16, -inf  ;;  %8970 = vmax.xlane.f32.xlu0 %v8969_v28  ;;  %v31131_v54 = vpop.permute.xlu0 %12454  ;;  %v36235_v8 = vld [vmem:[#allocation35_spill] sm:$0xff] }
 0x4cb   :  { %8973 = vmax.xlane.f32.xlu1 %v8972_v41  ;;  %36229 = vst [vmem:[#allocation255_spill] sm:$0xff] %v31131_v54 }
 0x4cc   :  { %v31123_v7 = vadd.f32 %v8852_v11, %v29862_v0  ;;  %v31133_v10 = vpop.permute.xlu1 %11908 }
 0x4cd   :  { %36230 = vst [vmem:[#allocation256_spill] sm:$0xff] %v31133_v10 }
 0x4ce   :  { %v8978_v22 = vsel %vm3604_vm2, %v31123_v7, -inf  ;;  %8976 = vmax.xlane.f32.xlu0 %v8975_v12  ;;  %v31135_v28 = vpop.permute.xlu0 %12612  ;;  %v36237_v12 = vld [vmem:[#allocation36_spill] sm:$0xff] }
 0x4cf   :  { %8979 = vmax.xlane.f32.xlu1 %v8978_v22  ;;  %36231 = vst [vmem:[#allocation257_spill] sm:$0xff] %v31135_v28 }
 0x4d0   :  { %v31137_v41 = vpop.permute.xlu1 %12066 }
 0x4d1   :  { %36232 = vst [vmem:[#allocation258_spill] sm:$0xff] %v31137_v41 }
 0x4d2   :  { %v31139_v11 = vpop.permute.xlu0 %12610 }
 0x4d3   :  { %36233 = vst [vmem:[#allocation259_spill] sm:$0xff] %v31139_v11 }
 0x4d4   :  { %v31141_v0 = vpop.permute.xlu1 %12064 }
 0x4d5   :  { %36234 = vst [vmem:[#allocation260_spill] sm:$0xff] %v31141_v0 }
 0x4d6   :  { %v31145_v42 = vpop.permute.xlu0 %12768 }
 0x4d7   :  { %36236 = vst [vmem:[#allocation261_spill] sm:$0xff] %v31145_v42 }
 0x4d8   :  { %v31149_v22 = vpop.permute.xlu1 %12222 }
 0x4d9   :  { %36238 = vst [vmem:[#allocation262_spill] sm:$0xff] %v31149_v22 }
 0x4da   :  { %v31151_v54 = vpop.permute.xlu0 %12766 }
 0x4db   :  { %36239 = vst [vmem:[#allocation263_spill] sm:$0xff] %v31151_v54 }
 0x4dc   :  { %v31153_v23 = vpop.permute.xlu1 %12220 }
 0x4dd   :  { %36240 = vst [vmem:[#allocation264_spill] sm:$0xff] %v31153_v23 }
 0x4e0   :  { %13002 = vrot.lane.b32.xlu1 %v36235_v8, %s28341_s5  ;;  %v31156_v11 = vpop.permute.xlu1 %12378 }
 0x4e1   :  { %36241 = vst [vmem:[#allocation265_spill] sm:$0xff] %v31156_v11 }
 0x4e4   :  { %12924 = vrot.lane.b32.xlu0 %v36237_v12, %s28341_s5  ;;  %v31159_v10 = vpop.permute.xlu1 %12376 }
 0x4e5   :  { %36242 = vst [vmem:[#allocation266_spill] sm:$0xff] %v31159_v10 }
 0x4e8   :  { %v31161_v12 = vpop.permute.xlu1 %12534 }
 0x4e9   :  { %36243 = vst [vmem:[#allocation267_spill] sm:$0xff] %v31161_v12 }
 0x4ed   :  { %v8887_v28 = vpop.xlane.xlu0 %8886 }
 0x4ee   :  { %v8981_v5 = vsub.f32 %v30834_v60, %v8887_v28  ;;  %v31169_v60 = vpop.permute.xlu1 %12532 }
 0x4ef   :  { %36244 = vst [vmem:[#allocation268_spill] sm:$0xff] %v31169_v60 }
 0x4f0   :  { %v9013_v0 = vmul.f32 1.442695, %v8981_v5 }
 0x4f1   :  { %v8893_v41 = vpop.xlane.xlu0 %8892 }
 0x4f2   :  { %v8983_v8 = vsub.f32 %v30842_v19, %v8893_v41  ;;  %27866 = vpow2.f32 %v9013_v0 }
 0x4f4   :  { %v9017_v42 = vmul.f32 1.442695, %v8983_v8  ;;  %v31173_v8 = vpop.permute.xlu1 %12690 }
 0x4f5   :  { %36245 = vst [vmem:[#allocation269_spill] sm:$0xff] %v31173_v8 }
 0x4f6   :  { %27868 = vpow2.f32 %v9017_v42 }
 0x4f8   :  { %v31175_v0 = vpop.permute.xlu1 %12688 }
 0x4f9   :  { %36246 = vst [vmem:[#allocation270_spill] sm:$0xff] %v31175_v0 }
 0x4fc   :  { %v31163_v22 = vpop.eup %27866  ;;  %v31177_v5 = vpop.permute.xlu1 %12846 }
 0x4fd   :  { %v9077_v54 = vsel %vm3604_vm2, %v31163_v22, 0.0  ;;  %36247 = vst [vmem:[#allocation271_spill] sm:$0xff] %v31177_v5 }
 0x500   :  { %v31167_v23 = vpop.eup %27868  ;;  %v31179_v42 = vpop.permute.xlu1 %12844 }
 0x501   :  { %v9083_v19 = vsel %vm3604_vm2, %v31167_v23, 0.0  ;;  %36248 = vst [vmem:[#allocation272_spill] sm:$0xff] %v31179_v42 }
 0x503   :  { %9078 = vadd.xlane.f32.xlu0 %v9077_v54 }
 0x507   :  { %9084 = vadd.xlane.f32.xlu0 %v9083_v19 }
 0x51f   :  { %v8890_v28 = vpop.xlane.xlu1 %8889 }
 0x520   :  { %v8982_v41 = vsub.f32 %v30896_v56, %v8890_v28 }
 0x522   :  { %v9015_v12 = vmul.f32 1.442695, %v8982_v41 }
 0x523   :  { %v8896_v10 = vpop.xlane.xlu0 %8895 }
 0x524   :  { %27870 = vpow2.f32 %v9015_v12  ;;  %v8984_v54 = vsub.f32 %v30905_v45, %v8896_v10 }
 0x526   :  { %v9019_v60 = vmul.f32 1.442695, %v8984_v54 }
 0x527   :  { %v8899_v11 = vpop.xlane.xlu0 %8898 }
 0x528   :  { %27872 = vpow2.f32 %v9019_v60  ;;  %v8902_v19 = vpop.xlane.xlu1 %8901  ;;  %v8985_v8 = vsub.f32 %v30912_v57, %v8899_v11 }
 0x529   :  { %v8986_v0 = vsub.f32 %v30921_v21, %v8902_v19 }
 0x52a   :  { %v9021_v30 = vmul.f32 1.442695, %v8985_v8 }
 0x52b   :  { %v9023_v5 = vmul.f32 1.442695, %v8986_v0  ;;  %v8905_v44 = vpop.xlane.xlu0 %8904 }
 0x52c   :  { %27874 = vpow2.f32 %v9021_v30  ;;  %v8908_v42 = vpop.xlane.xlu1 %8907  ;;  %v8987_v56 = vsub.f32 %v30924_v40, %v8905_v44 }
 0x52d   :  { %27876 = vpow2.f32 %v9023_v5  ;;  %v8988_v12 = vsub.f32 %v30937_v20, %v8908_v42 }
 0x52e   :  { %v31187_v28 = vpop.eup %27870  ;;  %v9025_v45 = vmul.f32 1.442695, %v8987_v56 }
 0x52f   :  { %v9027_v10 = vmul.f32 1.442695, %v8988_v12  ;;  %v8911_v60 = vpop.xlane.xlu0 %8910  ;;  %v9080_v57 = vsel %vm3604_vm2, %v31187_v28, 0.0 }
 0x530   :  { %27878 = vpow2.f32 %v9025_v45  ;;  %v8914_v21 = vpop.xlane.xlu1 %8913  ;;  %v8989_v11 = vsub.f32 %v30942_v18, %v8911_v60  ;;  %9081 = vadd.xlane.f32.xlu1 %v9080_v57 }
 0x531   :  { %27880 = vpow2.f32 %v9027_v10  ;;  %v8990_v30 = vsub.f32 %v30952_v33, %v8914_v21 }
 0x532   :  { %v31193_v40 = vpop.eup %27872  ;;  %v9029_v44 = vmul.f32 1.442695, %v8989_v11 }
 0x533   :  { %v9031_v20 = vmul.f32 1.442695, %v8990_v30  ;;  %v8917_v8 = vpop.xlane.xlu0 %8916  ;;  %v9086_v0 = vsel %vm3604_vm2, %v31193_v40, 0.0 }
 0x534   :  { %27882 = vpow2.f32 %v9029_v44  ;;  %v8920_v5 = vpop.xlane.xlu1 %8919  ;;  %v8991_v42 = vsub.f32 %v30957_v15, %v8917_v8  ;;  %9087 = vadd.xlane.f32.xlu1 %v9086_v0 }
 0x535   :  { %27884 = vpow2.f32 %v9031_v20  ;;  %v8992_v18 = vsub.f32 %v30969_v25, %v8920_v5 }
 0x536   :  { %v31199_v41 = vpop.eup %27874  ;;  %v9033_v54 = vmul.f32 1.442695, %v8991_v42 }
 0x537   :  { %v31201_v33 = vpop.eup %27876  ;;  %v9035_v19 = vmul.f32 1.442695, %v8992_v18  ;;  %v8923_v56 = vpop.xlane.xlu0 %8922  ;;  %v9089_v12 = vsel %vm3604_vm2, %v31199_v41, 0.0 }
 0x538   :  { %27886 = vpow2.f32 %v9033_v54  ;;  %v8926_v45 = vpop.xlane.xlu1 %8925  ;;  %v8993_v10 = vsub.f32 %v30972_v32, %v8923_v56  ;;  %v9092_v15 = vsel %vm3604_vm2, %v31201_v33, 0.0  ;;  %9090 = vadd.xlane.f32.xlu0 %v9089_v12 }
 0x539   :  { %27888 = vpow2.f32 %v9035_v19  ;;  %v8994_v25 = vsub.f32 %v30984_v36, %v8926_v45  ;;  %9093 = vadd.xlane.f32.xlu1 %v9092_v15 }
 0x53a   :  { %v31209_v60 = vpop.eup %27878  ;;  %v9037_v57 = vmul.f32 1.442695, %v8993_v10 }
 0x53b   :  { %v31211_v21 = vpop.eup %27880  ;;  %v9039_v11 = vmul.f32 1.442695, %v8994_v25  ;;  %v8929_v30 = vpop.xlane.xlu0 %8928  ;;  %v9095_v44 = vsel %vm3604_vm2, %v31209_v60, 0.0 }
 0x53c   :  { %27890 = vpow2.f32 %v9037_v57  ;;  %v8932_v32 = vpop.xlane.xlu1 %8931  ;;  %v8995_v20 = vsub.f32 %v30989_v31, %v8929_v30  ;;  %v9098_v8 = vsel %vm3604_vm2, %v31211_v21, 0.0  ;;  %9096 = vadd.xlane.f32.xlu0 %v9095_v44 }
 0x53d   :  { %27892 = vpow2.f32 %v9039_v11  ;;  %v8996_v36 = vsub.f32 %v30999_v9, %v8932_v32  ;;  %9099 = vadd.xlane.f32.xlu1 %v9098_v8 }
 0x53e   :  { %v31219_v0 = vpop.eup %27882  ;;  %v9041_v5 = vmul.f32 1.442695, %v8995_v20 }
 0x53f   :  { %v31221_v42 = vpop.eup %27884  ;;  %v9043_v18 = vmul.f32 1.442695, %v8996_v36  ;;  %v8935_v54 = vpop.xlane.xlu0 %8934  ;;  %v9101_v19 = vsel %vm3604_vm2, %v31219_v0, 0.0 }
 0x540   :  { %27894 = vpow2.f32 %v9041_v5  ;;  %v8938_v31 = vpop.xlane.xlu1 %8937  ;;  %v8997_v56 = vsub.f32 %v31004_v34, %v8935_v54  ;;  %v9104_v12 = vsel %vm3604_vm2, %v31221_v42, 0.0  ;;  %9102 = vadd.xlane.f32.xlu0 %v9101_v19 }
 0x541   :  { %27896 = vpow2.f32 %v9043_v18  ;;  %v8998_v9 = vsub.f32 %v31016_v2, %v8938_v31  ;;  %9105 = vadd.xlane.f32.xlu1 %v9104_v12 }
 0x542   :  { %v31229_v45 = vpop.eup %27886  ;;  %v9045_v10 = vmul.f32 1.442695, %v8997_v56 }
 0x543   :  { %v31231_v15 = vpop.eup %27888  ;;  %v9047_v25 = vmul.f32 1.442695, %v8998_v9  ;;  %v8941_v57 = vpop.xlane.xlu0 %8940  ;;  %v9107_v11 = vsel %vm3604_vm2, %v31229_v45, 0.0 }
 0x544   :  { %27898 = vpow2.f32 %v9045_v10  ;;  %v8944_v34 = vpop.xlane.xlu1 %8943  ;;  %v8999_v30 = vsub.f32 %v31019_v35, %v8941_v57  ;;  %v9110_v44 = vsel %vm3604_vm2, %v31231_v15, 0.0  ;;  %9108 = vadd.xlane.f32.xlu0 %v9107_v11 }
 0x545   :  { %27900 = vpow2.f32 %v9047_v25  ;;  %v9000_v2 = vsub.f32 %v31031_v38, %v8944_v34  ;;  %9111 = vadd.xlane.f32.xlu1 %v9110_v44 }
 0x546   :  { %v31239_v32 = vpop.eup %27890  ;;  %v9049_v20 = vmul.f32 1.442695, %v8999_v30 }
 0x547   :  { %v31241_v8 = vpop.eup %27892  ;;  %v9051_v36 = vmul.f32 1.442695, %v9000_v2  ;;  %v8947_v5 = vpop.xlane.xlu0 %8946  ;;  %v9113_v18 = vsel %vm3604_vm2, %v31239_v32, 0.0 }
 0x548   :  { %27902 = vpow2.f32 %v9049_v20  ;;  %v8950_v35 = vpop.xlane.xlu1 %8949  ;;  %v9001_v54 = vsub.f32 %v31036_v62, %v8947_v5  ;;  %v9116_v19 = vsel %vm3604_vm2, %v31241_v8, 0.0  ;;  %9114 = vadd.xlane.f32.xlu0 %v9113_v18 }
 0x549   :  { %27904 = vpow2.f32 %v9051_v36  ;;  %v9002_v38 = vsub.f32 %v31046_v58, %v8950_v35  ;;  %9117 = vadd.xlane.f32.xlu1 %v9116_v19 }
 0x54a   :  { %v31249_v31 = vpop.eup %27894  ;;  %v9053_v56 = vmul.f32 1.442695, %v9001_v54 }
 0x54b   :  { %v31251_v12 = vpop.eup %27896  ;;  %v9055_v9 = vmul.f32 1.442695, %v9002_v38  ;;  %v8953_v10 = vpop.xlane.xlu0 %8952  ;;  %v9119_v25 = vsel %vm3604_vm2, %v31249_v31, 0.0 }
 0x54c   :  { %27906 = vpow2.f32 %v9053_v56  ;;  %v8956_v62 = vpop.xlane.xlu1 %8955  ;;  %v9003_v57 = vsub.f32 %v31051_v13, %v8953_v10  ;;  %v9122_v11 = vsel %vm3604_vm2, %v31251_v12, 0.0 }
 0x54d   :  { %27908 = vpow2.f32 %v9055_v9  ;;  %v9004_v58 = vsub.f32 %v31063_v46, %v8956_v62  ;;  %9120 = vadd.xlane.f32.xlu1 %v9119_v25  ;;  %9123 = vadd.xlane.f32.xlu0 %v9122_v11 }
 0x54e   :  { %v31259_v34 = vpop.eup %27898  ;;  %v9057_v30 = vmul.f32 1.442695, %v9003_v57 }
 0x54f   :  { %v31261_v44 = vpop.eup %27900  ;;  %v9059_v2 = vmul.f32 1.442695, %v9004_v58  ;;  %v8959_v20 = vpop.xlane.xlu0 %8958  ;;  %v9125_v36 = vsel %vm3604_vm2, %v31259_v34, 0.0 }
 0x550   :  { %27910 = vpow2.f32 %v9057_v30  ;;  %v8962_v13 = vpop.xlane.xlu1 %8961  ;;  %v9005_v5 = vsub.f32 %v31066_v17, %v8959_v20  ;;  %v9128_v18 = vsel %vm3604_vm2, %v31261_v44, 0.0 }
 0x551   :  { %27912 = vpow2.f32 %v9059_v2  ;;  %v9006_v46 = vsub.f32 %v31078_v37, %v8962_v13  ;;  %9126 = vadd.xlane.f32.xlu1 %v9125_v36  ;;  %9129 = vadd.xlane.f32.xlu0 %v9128_v18 }
 0x552   :  { %v31269_v35 = vpop.eup %27902  ;;  %v9061_v54 = vmul.f32 1.442695, %v9005_v5 }
 0x553   :  { %v31271_v19 = vpop.eup %27904  ;;  %v9063_v38 = vmul.f32 1.442695, %v9006_v46  ;;  %v8965_v56 = vpop.xlane.xlu0 %8964  ;;  %v9131_v9 = vsel %vm3604_vm2, %v31269_v35, 0.0 }
 0x554   :  { %27914 = vpow2.f32 %v9061_v54  ;;  %v8968_v17 = vpop.xlane.xlu1 %8967  ;;  %v9007_v10 = vsub.f32 %v31083_v59, %v8965_v56  ;;  %v9134_v25 = vsel %vm3604_vm2, %v31271_v19, 0.0 }
 0x555   :  { %27916 = vpow2.f32 %v9063_v38  ;;  %v9008_v37 = vsub.f32 %v31093_v27, %v8968_v17  ;;  %9132 = vadd.xlane.f32.xlu1 %v9131_v9  ;;  %9135 = vadd.xlane.f32.xlu0 %v9134_v25 }
 0x556   :  { %v31279_v62 = vpop.eup %27906  ;;  %v9065_v57 = vmul.f32 1.442695, %v9007_v10 }
 0x557   :  { %v31281_v11 = vpop.eup %27908  ;;  %v9067_v58 = vmul.f32 1.442695, %v9008_v37  ;;  %v8971_v30 = vpop.xlane.xlu0 %8970  ;;  %v9137_v2 = vsel %vm3604_vm2, %v31279_v62, 0.0 }
 0x558   :  { %27918 = vpow2.f32 %v9065_v57  ;;  %v8974_v59 = vpop.xlane.xlu1 %8973  ;;  %v9009_v20 = vsub.f32 %v31098_v55, %v8971_v30  ;;  %v9140_v36 = vsel %vm3604_vm2, %v31281_v11, 0.0 }
 0x559   :  { %27920 = vpow2.f32 %v9067_v58  ;;  %v9010_v27 = vsub.f32 %v31110_v16, %v8974_v59  ;;  %9138 = vadd.xlane.f32.xlu1 %v9137_v2  ;;  %9141 = vadd.xlane.f32.xlu0 %v9140_v36 }
 0x55a   :  { %v31289_v13 = vpop.eup %27910  ;;  %v9069_v5 = vmul.f32 1.442695, %v9009_v20 }
 0x55b   :  { %v31291_v18 = vpop.eup %27912  ;;  %v9071_v46 = vmul.f32 1.442695, %v9010_v27  ;;  %v8977_v54 = vpop.xlane.xlu0 %8976  ;;  %v9143_v38 = vsel %vm3604_vm2, %v31289_v13, 0.0 }
 0x55c   :  { %27922 = vpow2.f32 %v9069_v5  ;;  %v8980_v55 = vpop.xlane.xlu1 %8979  ;;  %v9011_v56 = vsub.f32 %v31113_v50, %v8977_v54  ;;  %v9146_v9 = vsel %vm3604_vm2, %v31291_v18, 0.0 }
 0x55d   :  { %27924 = vpow2.f32 %v9071_v46  ;;  %v9012_v16 = vsub.f32 %v31123_v7, %v8980_v55  ;;  %9144 = vadd.xlane.f32.xlu1 %v9143_v38  ;;  %9147 = vadd.xlane.f32.xlu0 %v9146_v9 }
 0x55e   :  { %v31299_v17 = vpop.eup %27914  ;;  %v9073_v10 = vmul.f32 1.442695, %v9011_v56 }
 0x55f   :  { %v31301_v25 = vpop.eup %27916  ;;  %v9075_v37 = vmul.f32 1.442695, %v9012_v16  ;;  %v9149_v57 = vsel %vm3604_vm2, %v31299_v17, 0.0  ;;  %v31345_v55 = vpop.permute.xlu0 %12924 }
 0x560   :  { %27926 = vpow2.f32 %v9073_v10  ;;  %v9152_v50 = vsel %vm3604_vm2, %v31301_v25, 0.0 }
 0x561   :  { %27928 = vpow2.f32 %v9075_v37  ;;  %9150 = vadd.xlane.f32.xlu1 %v9149_v57  ;;  %9153 = vadd.xlane.f32.xlu0 %v9152_v50  ;;  %v36250_v57 = vmov 0.0   ;;  %v36252_v50 = vld [vmem:[#allocation52_spill] sm:$0xff] }
 0x562   :  { %v31307_v58 = vpop.eup %27918 }
 0x563   :  { %v31309_v7 = vpop.eup %27920  ;;  %v9155_v30 = vsel %vm3604_vm2, %v31307_v58, 0.0 }
 0x564   :  { %v9158_v2 = vsel %vm3604_vm2, %v31309_v7, 0.0 }
 0x565   :  { %9156 = vadd.xlane.f32.xlu1 %v9155_v30  ;;  %9159 = vadd.xlane.f32.xlu0 %v9158_v2  ;;  %v36253_v30 = vld [vmem:[#allocation87_spill] sm:$0xff]  ;;  %v36254_v2 = vld [vmem:[#allocation196_spill] sm:$0xff] }
 0x566   :  { %v31315_v59 = vpop.eup %27922 }
 0x567   :  { %v31317_v20 = vpop.eup %27924  ;;  %v9161_v36 = vsel %vm3604_vm2, %v31315_v59, 0.0 }
 0x568   :  { %v9164_v27 = vsel %vm3604_vm2, %v31317_v20, 0.0 }
 0x569   :  { %9162 = vadd.xlane.f32.xlu1 %v9161_v36  ;;  %9165 = vadd.xlane.f32.xlu0 %v9164_v27  ;;  %v36257_v36 = vld [vmem:[#allocation56_spill] sm:$0xff]  ;;  %v36258_v27 = vld [vmem:[#allocation95_spill] sm:$0xff] }
 0x56a   :  { %v31323_v5 = vpop.eup %27926 }
 0x56b   :  { %v31325_v46 = vpop.eup %27928  ;;  %v9167_v54 = vsel %vm3604_vm2, %v31323_v5, 0.0 }
 0x56c   :  { %v9170_v38 = vsel %vm3604_vm2, %v31325_v46, 0.0 }
 0x56d   :  { %9171 = vadd.xlane.f32.xlu0 %v9170_v38  ;;  %9168 = vadd.xlane.f32.xlu1 %v9167_v54  ;;  %v36259_v54 = vld [vmem:[#allocation107_spill] sm:$0xff]  ;;  %v36260_v38 = vld [vmem:[#allocation57_spill] sm:$0xff] }
 0x57e   :  { %13000 = vrot.lane.b32.xlu1 %v29203_v1, %s28341_s5 }
 0x582   :  { %13158 = vrot.lane.b32.xlu1 %v35994_v53, %s28341_s5 }
 0x583   :  { %12922 = vrot.lane.b32.xlu0 %v29186_v61, %s28341_s5 }
 0x586   :  { %13156 = vrot.lane.b32.xlu1 %v35997_v26, %s28341_s5 }
 0x587   :  { %13080 = vrot.lane.b32.xlu0 %v29078_v39, %s28341_s5 }
 0x58a   :  { %13314 = vrot.lane.b32.xlu1 %v36000_v4, %s28341_s5 }
 0x58b   :  { %13078 = vrot.lane.b32.xlu0 %v29220_v52, %s28341_s5 }
 0x58e   :  { %13312 = vrot.lane.b32.xlu1 %v36003_v49, %s28341_s5 }
 0x58f   :  { %13236 = vrot.lane.b32.xlu0 %v29097_v43, %s28341_s5 }
 0x590   :  { %v9079_v56 = vpop.xlane.xlu0 %9078 }
 0x591   :  { %27930 = vrcp.f32 %v9079_v56  ;;  %v36261_v56 = vld [vmem:[#allocation59_spill] sm:$0xff] }
 0x592   :  { %13470 = vrot.lane.b32.xlu1 %v36006_v14, %s28341_s5 }
 0x593   :  { %13234 = vrot.lane.b32.xlu0 %v29250_v48, %s28341_s5 }
 0x594   :  { %v9085_v9 = vpop.xlane.xlu0 %9084 }
 0x595   :  { %27932 = vrcp.f32 %v9085_v9  ;;  %v36262_v9 = vld [vmem:[#allocation103_spill] sm:$0xff] }
 0x596   :  { %13468 = vrot.lane.b32.xlu1 %v36009_v63, %s28341_s5 }
 0x597   :  { %13392 = vrot.lane.b32.xlu0 %v29116_v47, %s28341_s5 }
 0x59a   :  { %13626 = vrot.lane.b32.xlu1 %v36012_v6, %s28341_s5 }
 0x59b   :  { %v27931_v16 = vpop.eup %27930  ;;  %13390 = vrot.lane.b32.xlu0 %v29280_v24, %s28341_s5 }
 0x59c   :  { %v31364_v10 = vmul.f32 %v27931_v16, %v31163_v22  ;;  %v36263_v16 = vld [vmem:[#allocation115_spill] sm:$0xff] }
 0x59e   :  { %36249 = vst [vmem:[#allocation273_spill] sm:$0xff] %v31364_v10  ;;  %13624 = vrot.lane.b32.xlu1 %v36015_v29, %s28341_s5  ;;  %26564 = vmatmul.mubr.msk.f32.vlgmr.msra.gmra.mrb[160].mxu0 %vm3604_vm2, %v31364_v10  ;;  %v36265_v10 = vld [vmem:[#allocation62_spill] sm:$0xff] }
 0x59f   :  { %v27933_v37 = vpop.eup %27932  ;;  %13548 = vrot.lane.b32.xlu0 %v29135_v51, %s28341_s5  ;;  %26572 = vmatpush3.msra.mxu0 %v30814_v3  ;;  %v36255_v3 = vld [vmem:[#allocation99_spill] sm:$0xff] }
 0x5a0   :  { %26573 = vmatprep.mubr.msk.f32.mxu0 %vm28339_vm0, %v36250_v57  ;;  %26581 = vmatprep.subr.mxu0 %v36250_v57  ;;  %v31377_v22 = vmul.f32 %v27933_v37, %v31167_v23  ;;  %v36256_v23 = vld [vmem:[#allocation53_spill] sm:$0xff]  ;;  %v36264_v37 = vld [vmem:[#allocation60_spill] sm:$0xff]  ;;  %v36537_v51 = vld [vmem:[#allocation195_spill] sm:$0xff] }
 0x5a2   :  { %36251 = vst [vmem:[#allocation274_spill] sm:$0xff] %v31377_v22  ;;  %13782 = vrot.lane.b32.xlu1 %v36252_v50, %s28341_s5  ;;  %26574 = vmatmul.mubr.msk.f32.vlgmr.msra.gmra.mrb[162].mxu0 %vm3604_vm2, %v31377_v22  ;;  %v36266_v22 = vld [vmem:[#allocation111_spill] sm:$0xff] }
 0x5a3   :  { %13546 = vrot.lane.b32.xlu0 %v36253_v30, %s28341_s5  ;;  %26582 = vmatpush3.msra.mxu0 %v36254_v2  ;;  %v31409_v2 = vpop.permute.xlu1 %13002 }
 0x5a4   :  { %26583 = vmatprep.mubr.msk.f32.mxu0 %vm28339_vm0, %v36250_v57  ;;  %26591 = vmatprep.subr.mxu0 %v36250_v57 }
 0x5a6   :  { %13780 = vrot.lane.b32.xlu1 %v36255_v3, %s28341_s5 }
 0x5a7   :  { %13704 = vrot.lane.b32.xlu0 %v36256_v23, %s28341_s5 }
 0x5aa   :  { %13938 = vrot.lane.b32.xlu1 %v36257_v36, %s28341_s5 }
 0x5ab   :  { %13702 = vrot.lane.b32.xlu0 %v36258_v27, %s28341_s5 }
 0x5ae   :  { %13936 = vrot.lane.b32.xlu1 %v36259_v54, %s28341_s5  ;;  %v36270_v54 = vld [vmem:[#allocation119_spill] sm:$0xff] }
 0x5af   :  { %13860 = vrot.lane.b32.xlu0 %v36260_v38, %s28341_s5 }
 0x5b2   :  { %14094 = vrot.lane.b32.xlu1 %v36261_v56, %s28341_s5  ;;  %v36267_v56 = vld [vmem:[#allocation123_spill] sm:$0xff] }
 0x5b3   :  { %13858 = vrot.lane.b32.xlu0 %v36262_v9, %s28341_s5  ;;  %v36268_v9 = vld [vmem:[#allocation63_spill] sm:$0xff] }
 0x5b6   :  { %14092 = vrot.lane.b32.xlu1 %v36263_v16, %s28341_s5 }
 0x5b7   :  { %14016 = vrot.lane.b32.xlu0 %v36264_v37, %s28341_s5  ;;  %v36269_v37 = vld [vmem:[#allocation65_spill] sm:$0xff] }
 0x5ba   :  { %14250 = vrot.lane.b32.xlu1 %v36265_v10, %s28341_s5 }
 0x5bb   :  { %14014 = vrot.lane.b32.xlu0 %v36266_v22, %s28341_s5  ;;  %v36271_v22 = vld [vmem:[#allocation69_spill] sm:$0xff] }
 0x5bd   :  { %v9082_v38 = vpop.xlane.xlu1 %9081 }
 0x5be   :  { %27934 = vrcp.f32 %v9082_v38  ;;  %14248 = vrot.lane.b32.xlu1 %v36267_v56, %s28341_s5  ;;  %v36272_v38 = vld [vmem:[#allocation66_spill] sm:$0xff] }
 0x5bf   :  { %14172 = vrot.lane.b32.xlu0 %v36268_v9, %s28341_s5 }
 0x5c1   :  { %v9088_v16 = vpop.xlane.xlu1 %9087 }
 0x5c2   :  { %27936 = vrcp.f32 %v9088_v16  ;;  %14978 = vrot.lane.b32.xlu1 %v36269_v37, %s28341_s5  ;;  %v36274_v37 = vld [vmem:[#allocation72_spill] sm:$0xff] }
 0x5c3   :  { %14170 = vrot.lane.b32.xlu0 %v36270_v54, %s28341_s5  ;;  %v36275_v54 = vld [vmem:[#allocation70_spill] sm:$0xff] }
 0x5c5   :  { %v9091_v10 = vpop.xlane.xlu0 %9090 }
 0x5c6   :  { %v9094_v27 = vpop.xlane.xlu1 %9093  ;;  %15128 = vrot.lane.b32.xlu1 %v36271_v22, %s28341_s5  ;;  %27938 = vrcp.f32 %v9091_v10 }
 0x5c7   :  { %27940 = vrcp.f32 %v9094_v27  ;;  %14903 = vrot.lane.b32.xlu0 %v36272_v38, %s28341_s5  ;;  %v36276_v27 = vld [vmem:[#allocation221_spill] sm:$0xff] }
 0x5c8   :  { %v27935_v56 = vpop.eup %27934 }
 0x5c9   :  { %v9097_v9 = vpop.xlane.xlu0 %9096  ;;  %v31428_v16 = vmul.f32 %v27935_v56, %v31187_v28 }
 0x5ca   :  { %v9100_v36 = vpop.xlane.xlu1 %9099  ;;  %15278 = vrot.lane.b32.xlu1 %v36274_v37, %s28341_s5  ;;  %27942 = vrcp.f32 %v9097_v9  ;;  %v36286_v37 = vld [vmem:[#allocation225_spill] sm:$0xff] }
 0x5cb   :  { %36273 = vst [vmem:[#allocation196_spill] sm:$0xff] %v31428_v16  ;;  %27944 = vrcp.f32 %v9100_v36  ;;  %15053 = vrot.lane.b32.xlu0 %v36275_v54, %s28341_s5  ;;  %26569 = vmatmul.mubr.msk.f32.vlgmr.msra.gmra.mrb[160].mxu1 %vm3604_vm2, %v31428_v16  ;;  %v36278_v36 = vld [vmem:[#allocation76_spill] sm:$0xff]  ;;  %v36279_v16 = vld [vmem:[#allocation73_spill] sm:$0xff]  ;;  %v36280_v54 = vld [vmem:[#allocation223_spill] sm:$0xff] }
 0x5cc   :  { %v27937_v10 = vpop.eup %27936  ;;  %26577 = vmatpush3.msra.mxu1 %v36276_v27  ;;  %26578 = vmatprep.mubr.msk.f32.mxu1 %vm28339_vm0, %v36250_v57 }
 0x5cd   :  { %v9103_v28 = vpop.xlane.xlu0 %9102  ;;  %26586 = vmatprep.subr.mxu1 %v36250_v57  ;;  %v31441_v56 = vmul.f32 %v27937_v10, %v31193_v40 }
 0x5ce   :  { %v9106_v9 = vpop.xlane.xlu1 %9105  ;;  %15428 = vrot.lane.b32.xlu1 %v36278_v36, %s28341_s5  ;;  %27946 = vrcp.f32 %v9103_v28 }
 0x5cf   :  { %36277 = vst [vmem:[#allocation221_spill] sm:$0xff] %v31441_v56  ;;  %27948 = vrcp.f32 %v9106_v9  ;;  %15203 = vrot.lane.b32.xlu0 %v36279_v16, %s28341_s5  ;;  %26579 = vmatmul.mubr.msk.f32.vlgmr.msra.gmra.mrb[162].mxu1 %vm3604_vm2, %v31441_v56  ;;  %v36282_v9 = vld [vmem:[#allocation80_spill] sm:$0xff] }
 0x5d0   :  { %v27939_v27 = vpop.eup %27938  ;;  %26587 = vmatpush3.msra.mxu1 %v36280_v54  ;;  %26588 = vmatprep.mubr.msk.f32.mxu1 %vm28339_vm0, %v36250_v57  ;;  %v36284_v54 = vld [vmem:[#allocation77_spill] sm:$0xff] }
 0x5d1   :  { %v27941_v40 = vpop.eup %27940  ;;  %v9109_v10 = vpop.xlane.xlu0 %9108  ;;  %26596 = vmatprep.subr.mxu1 %v36250_v57  ;;  %v31454_v36 = vmul.f32 %v27939_v27, %v31199_v41  ;;  %v36285_v41 = vld [vmem:[#allocation200_spill] sm:$0xff] }
 0x5d2   :  { %v9112_v28 = vpop.xlane.xlu1 %9111  ;;  %15578 = vrot.lane.b32.xlu1 %v36282_v9, %s28341_s5  ;;  %27950 = vrcp.f32 %v9109_v10  ;;  %v31459_v56 = vmul.f32 %v27941_v40, %v31201_v33 }
 0x5d3   :  { %36281 = vst [vmem:[#allocation223_spill] sm:$0xff] %v31454_v36  ;;  %27952 = vrcp.f32 %v9112_v28  ;;  %15353 = vrot.lane.b32.xlu0 %v36284_v54, %s28341_s5  ;;  %26584 = vmatmul.mubr.msk.f32.vlgmr.msra.gmra.mrb[164].mxu0 %vm3604_vm2, %v31454_v36  ;;  %v36288_v28 = vld [vmem:[#allocation84_spill] sm:$0xff] }
 0x5d4   :  { %36283 = vst [vmem:[#allocation275_spill] sm:$0xff] %v31459_v56  ;;  %v27943_v16 = vpop.eup %27942  ;;  %26589 = vmatmul.mubr.msk.f32.vlgmr.msra.gmra.mrb[164].mxu1 %vm3604_vm2, %v31459_v56  ;;  %26592 = vmatpush3.msra.mxu0 %v36285_v41 }
 0x5d5   :  { %v27945_v27 = vpop.eup %27944  ;;  %26597 = vmatpush3.msra.mxu1 %v36286_v37  ;;  %v9115_v10 = vpop.xlane.xlu0 %9114  ;;  %26598 = vmatprep.mubr.msk.f32.mxu1 %vm28339_vm0, %v36250_v57  ;;  %v31472_v33 = vmul.f32 %v27943_v16, %v31209_v60  ;;  %v36290_v37 = vld [vmem:[#allocation81_spill] sm:$0xff]  ;;  %v36291_v16 = vld [vmem:[#allocation215_spill] sm:$0xff] }
 0x5d6   :  { %v9118_v40 = vpop.xlane.xlu1 %9117  ;;  %15728 = vrot.lane.b32.xlu1 %v36288_v28, %s28341_s5  ;;  %27954 = vrcp.f32 %v9115_v10  ;;  %26606 = vmatprep.subr.mxu1 %v36250_v57  ;;  %v31478_v56 = vmul.f32 %v27945_v27, %v31211_v21  ;;  %v36293_v27 = vld [vmem:[#allocation227_spill] sm:$0xff] }
 0x5d7   :  { %36287 = vst [vmem:[#allocation200_spill] sm:$0xff] %v31472_v33  ;;  %27956 = vrcp.f32 %v9118_v40  ;;  %15503 = vrot.lane.b32.xlu0 %v36290_v37, %s28341_s5  ;;  %26593 = vmatprep.mubr.msk.f32.mxu0 %vm28339_vm0, %v36250_v57  ;;  %v36294_v40 = vld [vmem:[#allocation88_spill] sm:$0xff] }
 0x5d8   :  { %36289 = vst [vmem:[#allocation225_spill] sm:$0xff] %v31478_v56  ;;  %v27947_v41 = vpop.eup %27946  ;;  %26601 = vmatprep.subr.mxu0 %v36250_v57  ;;  %26594 = vmatmul.mubr.msk.f32.vlgmr.msra.gmra.mrb[166].mxu0 %vm3604_vm2, %v31472_v33 }
 0x5d9   :  { %v27949_v60 = vpop.eup %27948  ;;  %26599 = vmatmul.mubr.msk.f32.vlgmr.msra.gmra.mrb[166].mxu1 %vm3604_vm2, %v31478_v56  ;;  %26602 = vmatpush3.msra.mxu0 %v36291_v16  ;;  %v31491_v21 = vmul.f32 %v27947_v41, %v31219_v0  ;;  %v36296_v0 = vld [vmem:[#allocation85_spill] sm:$0xff]  ;;  %v36300_v56 = vld [vmem:[#allocation92_spill] sm:$0xff] }
 0x5da   :  { %26607 = vmatpush3.msra.mxu1 %v36293_v27  ;;  %v9121_v10 = vpop.xlane.xlu1 %9120  ;;  %15878 = vrot.lane.b32.xlu1 %v36294_v40, %s28341_s5  ;;  %v9124_v36 = vpop.xlane.xlu0 %9123  ;;  %v31497_v37 = vmul.f32 %v27949_v60, %v31221_v42  ;;  %v36297_v42 = vld [vmem:[#allocation218_spill] sm:$0xff] }
 0x5db   :  { %36292 = vst [vmem:[#allocation215_spill] sm:$0xff] %v31491_v21  ;;  %27958 = vrcp.f32 %v9121_v10  ;;  %26608 = vmatprep.mubr.msk.f32.mxu1 %vm28339_vm0, %v36250_v57  ;;  %26616 = vmatprep.subr.mxu1 %v36250_v57  ;;  %v36299_v10 = vld [vmem:[#allocation229_spill] sm:$0xff] }
 0x5dc   :  { %36295 = vst [vmem:[#allocation227_spill] sm:$0xff] %v31497_v37  ;;  %v27951_v16 = vpop.eup %27950  ;;  %27960 = vrcp.f32 %v9124_v36  ;;  %15653 = vrot.lane.b32.xlu0 %v36296_v0, %s28341_s5  ;;  %26603 = vmatprep.mubr.msk.f32.mxu0 %vm28339_vm0, %v36250_v57 }
 0x5dd   :  { %v27953_v41 = vpop.eup %27952  ;;  %26611 = vmatprep.subr.mxu0 %v36250_v57  ;;  %26604 = vmatmul.mubr.msk.f32.vlgmr.msra.gmra.mrb[168].mxu0 %vm3604_vm2, %v31491_v21  ;;  %v31513_v36 = vmul.f32 %v27951_v16, %v31229_v45  ;;  %v36302_v45 = vld [vmem:[#allocation89_spill] sm:$0xff] }
 0x5de   :  { %26609 = vmatmul.mubr.msk.f32.vlgmr.msra.gmra.mrb[168].mxu1 %vm3604_vm2, %v31497_v37  ;;  %26612 = vmatpush3.msra.mxu0 %v36297_v42  ;;  %v9127_v60 = vpop.xlane.xlu1 %9126  ;;  %v9130_v27 = vpop.xlane.xlu0 %9129  ;;  %v31519_v33 = vmul.f32 %v27953_v41, %v31231_v15  ;;  %v36303_v41 = vld [vmem:[#allocation219_spill] sm:$0xff] }
 0x5df   :  { %36298 = vst [vmem:[#allocation218_spill] sm:$0xff] %v31513_v36  ;;  %26617 = vmatpush3.msra.mxu1 %v36299_v10  ;;  %16028 = vrot.lane.b32.xlu1 %v36300_v56, %s28341_s5  ;;  %27962 = vrcp.f32 %v9127_v60  ;;  %v36306_v10 = vld [vmem:[#allocation96_spill] sm:$0xff] }
 0x5e0   :  { %36301 = vst [vmem:[#allocation229_spill] sm:$0xff] %v31519_v33  ;;  %v27955_v0 = vpop.eup %27954  ;;  %26618 = vmatprep.mubr.msk.f32.mxu1 %vm28339_vm0, %v36250_v57  ;;  %26626 = vmatprep.subr.mxu1 %v36250_v57  ;;  %27964 = vrcp.f32 %v9130_v27  ;;  %v36305_v27 = vld [vmem:[#allocation232_spill] sm:$0xff] }
 0x5e1   :  { %v27957_v42 = vpop.eup %27956  ;;  %15803 = vrot.lane.b32.xlu0 %v36302_v45, %s28341_s5  ;;  %26613 = vmatprep.mubr.msk.f32.mxu0 %vm28339_vm0, %v36250_v57  ;;  %v31535_v60 = vmul.f32 %v27955_v0, %v31239_v32  ;;  %v36308_v32 = vld [vmem:[#allocation93_spill] sm:$0xff] }
 0x5e2   :  { %26621 = vmatprep.subr.mxu0 %v36250_v57  ;;  %26614 = vmatmul.mubr.msk.f32.vlgmr.msra.gmra.mrb[170].mxu0 %vm3604_vm2, %v31513_v36  ;;  %v9133_v15 = vpop.xlane.xlu1 %9132  ;;  %v9136_v16 = vpop.xlane.xlu0 %9135  ;;  %v31541_v37 = vmul.f32 %v27957_v42, %v31241_v8  ;;  %v36309_v8 = vld [vmem:[#allocation220_spill] sm:$0xff] }
 0x5e3   :  { %26619 = vmatmul.mubr.msk.f32.vlgmr.msra.gmra.mrb[170].mxu1 %vm3604_vm2, %v31519_v33  ;;  %26622 = vmatpush3.msra.mxu0 %v36303_v41  ;;  %36304 = vst [vmem:[#allocation219_spill] sm:$0xff] %v31535_v60  ;;  %27966 = vrcp.f32 %v9133_v15  ;;  %v36311_v15 = vld [vmem:[#allocation234_spill] sm:$0xff] }
 0x5e4   :  { %26627 = vmatpush3.msra.mxu1 %v36305_v27  ;;  %16178 = vrot.lane.b32.xlu1 %v36306_v10, %s28341_s5  ;;  %36307 = vst [vmem:[#allocation232_spill] sm:$0xff] %v31541_v37  ;;  %27968 = vrcp.f32 %v9136_v16  ;;  %v36312_v16 = vld [vmem:[#allocation100_spill] sm:$0xff] }
 0x5e5   :  { %v27959_v21 = vpop.eup %27958  ;;  %26628 = vmatprep.mubr.msk.f32.mxu1 %vm28339_vm0, %v36250_v57  ;;  %26636 = vmatprep.subr.mxu1 %v36250_v57 }
 0x5e6   :  { %v27961_v33 = vpop.eup %27960  ;;  %15953 = vrot.lane.b32.xlu0 %v36308_v32, %s28341_s5  ;;  %26623 = vmatprep.mubr.msk.f32.mxu0 %vm28339_vm0, %v36250_v57  ;;  %v9139_v0 = vpop.xlane.xlu1 %9138  ;;  %v31557_v42 = vmul.f32 %v27959_v21, %v31249_v31  ;;  %v36314_v31 = vld [vmem:[#allocation97_spill] sm:$0xff]  ;;  %v36317_v21 = vld [vmem:[#allocation236_spill] sm:$0xff] }
 0x5e7   :  { %v9142_v41 = vpop.xlane.xlu0 %9141  ;;  %26631 = vmatprep.subr.mxu0 %v36250_v57  ;;  %26624 = vmatmul.mubr.msk.f32.vlgmr.msra.gmra.mrb[172].mxu0 %vm3604_vm2, %v31535_v60  ;;  %v31563_v27 = vmul.f32 %v27961_v33, %v31251_v12  ;;  %27970 = vrcp.f32 %v9139_v0  ;;  %v36315_v12 = vld [vmem:[#allocation222_spill] sm:$0xff]  ;;  %v36318_v0 = vld [vmem:[#allocation104_spill] sm:$0xff] }
 0x5e8   :  { %26629 = vmatmul.mubr.msk.f32.vlgmr.msra.gmra.mrb[172].mxu1 %vm3604_vm2, %v31541_v37  ;;  %26632 = vmatpush3.msra.mxu0 %v36309_v8  ;;  %36310 = vst [vmem:[#allocation220_spill] sm:$0xff] %v31557_v42  ;;  %27972 = vrcp.f32 %v9142_v41  ;;  %v36472_v32 = vld [vmem:[#allocation136_spill] sm:$0xff] }
 0x5e9   :  { %26637 = vmatpush3.msra.mxu1 %v36311_v15  ;;  %16328 = vrot.lane.b32.xlu1 %v36312_v16, %s28341_s5  ;;  %36313 = vst [vmem:[#allocation234_spill] sm:$0xff] %v31563_v27  ;;  %v27963_v36 = vpop.eup %27962 }
 0x5ea   :  { %26638 = vmatprep.mubr.msk.f32.mxu1 %vm28339_vm0, %v36250_v57  ;;  %26646 = vmatprep.subr.mxu1 %v36250_v57  ;;  %v9145_v37 = vpop.xlane.xlu1 %9144  ;;  %v27965_v60 = vpop.eup %27964  ;;  %v31579_v33 = vmul.f32 %v27963_v36, %v31259_v34 }
 0x5eb   :  { %v9148_v8 = vpop.xlane.xlu0 %9147  ;;  %16103 = vrot.lane.b32.xlu0 %v36314_v31, %s28341_s5  ;;  %26633 = vmatprep.mubr.msk.f32.mxu0 %vm28339_vm0, %v36250_v57  ;;  %v31585_v41 = vmul.f32 %v27965_v60, %v31261_v44  ;;  %27974 = vrcp.f32 %v9145_v37  ;;  %v36321_v44 = vld [vmem:[#allocation224_spill] sm:$0xff] }
 0x5ec   :  { %26641 = vmatprep.subr.mxu0 %v36250_v57  ;;  %26634 = vmatmul.mubr.msk.f32.vlgmr.msra.gmra.mrb[174].mxu0 %vm3604_vm2, %v31557_v42  ;;  %36316 = vst [vmem:[#allocation222_spill] sm:$0xff] %v31579_v33  ;;  %v36320_v42 = vld [vmem:[#allocation101_spill] sm:$0xff]  ;;  %27976 = vrcp.f32 %v9148_v8  ;;  %v36323_v8 = vld [vmem:[#allocation238_spill] sm:$0xff] }
 0x5ed   :  { %26639 = vmatmul.mubr.msk.f32.vlgmr.msra.gmra.mrb[174].mxu1 %vm3604_vm2, %v31563_v27  ;;  %26642 = vmatpush3.msra.mxu0 %v36315_v12  ;;  %36319 = vst [vmem:[#allocation236_spill] sm:$0xff] %v31585_v41  ;;  %v27967_v16 = vpop.eup %27966  ;;  %v36324_v12 = vld [vmem:[#allocation109_spill] sm:$0xff] }
 0x5ee   :  { %26647 = vmatpush3.msra.mxu1 %v36317_v21  ;;  %16478 = vrot.lane.b32.xlu1 %v36318_v0, %s28341_s5  ;;  %v9151_v15 = vpop.xlane.xlu1 %9150  ;;  %v27969_v34 = vpop.eup %27968  ;;  %v31601_v37 = vmul.f32 %v27967_v16, %v31269_v35 }
 0x5ef   :  { %v9154_v31 = vpop.xlane.xlu0 %9153  ;;  %16253 = vrot.lane.b32.xlu0 %v36320_v42, %s28341_s5  ;;  %26643 = vmatprep.mubr.msk.f32.mxu0 %vm28339_vm0, %v36250_v57  ;;  %v31607_v21 = vmul.f32 %v27969_v34, %v31271_v19  ;;  %27978 = vrcp.f32 %v9151_v15  ;;  %v36327_v15 = vld [vmem:[#allocation226_spill] sm:$0xff] }
 0x5f0   :  { %26648 = vmatprep.mubr.msk.f32.mxu1 %vm28339_vm0, %v36250_v57  ;;  %26651 = vmatprep.subr.mxu0 %v36250_v57  ;;  %36322 = vst [vmem:[#allocation224_spill] sm:$0xff] %v31601_v37  ;;  %27980 = vrcp.f32 %v9154_v31  ;;  %v36329_v31 = vld [vmem:[#allocation240_spill] sm:$0xff] }
 0x5f1   :  { %26656 = vmatprep.subr.mxu1 %v36250_v57  ;;  %26644 = vmatmul.mubr.msk.f32.vlgmr.msra.gmra.mrb[176].mxu0 %vm3604_vm2, %v31579_v33  ;;  %36325 = vst [vmem:[#allocation238_spill] sm:$0xff] %v31607_v21  ;;  %v27971_v27 = vpop.eup %27970  ;;  %v36326_v33 = vld [vmem:[#allocation105_spill] sm:$0xff] }
 0x5f2   :  { %26649 = vmatmul.mubr.msk.f32.vlgmr.msra.gmra.mrb[176].mxu1 %vm3604_vm2, %v31585_v41  ;;  %26652 = vmatpush3.msra.mxu0 %v36321_v44  ;;  %v9157_v36 = vpop.xlane.xlu1 %9156  ;;  %v27973_v35 = vpop.eup %27972  ;;  %v31623_v34 = vmul.f32 %v27971_v27, %v31279_v62  ;;  %v36330_v44 = vld [vmem:[#allocation108_spill] sm:$0xff] }
 0x5f3   :  { %v9160_v60 = vpop.xlane.xlu0 %9159  ;;  %26657 = vmatpush3.msra.mxu1 %v36323_v8  ;;  %16553 = vrot.lane.b32.xlu1 %v36324_v12, %s28341_s5  ;;  %v31629_v8 = vmul.f32 %v27973_v35, %v31281_v11  ;;  %27982 = vrcp.f32 %v9157_v36  ;;  %v36333_v11 = vld [vmem:[#allocation242_spill] sm:$0xff]  ;;  %v36336_v35 = vld [vmem:[#allocation112_spill] sm:$0xff] }
 0x5f4   :  { %16403 = vrot.lane.b32.xlu0 %v36326_v33, %s28341_s5  ;;  %26653 = vmatprep.mubr.msk.f32.mxu0 %vm28339_vm0, %v36250_v57  ;;  %36328 = vst [vmem:[#allocation226_spill] sm:$0xff] %v31623_v34  ;;  %27984 = vrcp.f32 %v9160_v60  ;;  %v36335_v60 = vld [vmem:[#allocation244_spill] sm:$0xff] }
 0x5f5   :  { %26658 = vmatprep.mubr.msk.f32.mxu1 %vm28339_vm0, %v36250_v57  ;;  %26661 = vmatprep.subr.mxu0 %v36250_v57  ;;  %36331 = vst [vmem:[#allocation240_spill] sm:$0xff] %v31629_v8  ;;  %v27975_v41 = vpop.eup %27974 }
 0x5f6   :  { %26666 = vmatprep.subr.mxu1 %v36250_v57  ;;  %26654 = vmatmul.mubr.msk.f32.vlgmr.msra.gmra.mrb[178].mxu0 %vm3604_vm2, %v31601_v37  ;;  %v9163_v19 = vpop.xlane.xlu1 %9162  ;;  %v36332_v37 = vld [vmem:[#allocation113_spill] sm:$0xff]  ;;  %v31645_v36 = vmul.f32 %v27975_v41, %v31289_v13 }
 0x5f7   :  { %v9166_v16 = vpop.xlane.xlu0 %9165  ;;  %26659 = vmatmul.mubr.msk.f32.vlgmr.msra.gmra.mrb[178].mxu1 %vm3604_vm2, %v31607_v21  ;;  %26662 = vmatpush3.msra.mxu0 %v36327_v15  ;;  %v27977_v15 = vpop.eup %27976  ;;  %27986 = vrcp.f32 %v9163_v19 }
 0x5f8   :  { %26667 = vmatpush3.msra.mxu1 %v36329_v31  ;;  %16628 = vrot.lane.b32.xlu1 %v36330_v44, %s28341_s5  ;;  %36334 = vst [vmem:[#allocation242_spill] sm:$0xff] %v31645_v36  ;;  %v31651_v31 = vmul.f32 %v27977_v15, %v31291_v18  ;;  %27988 = vrcp.f32 %v9166_v16  ;;  %v36339_v18 = vld [vmem:[#allocation228_spill] sm:$0xff]  ;;  %v36341_v15 = vld [vmem:[#allocation246_spill] sm:$0xff] }
 0x5f9   :  { %16703 = vrot.lane.b32.xlu0 %v36332_v37, %s28341_s5  ;;  %26663 = vmatprep.mubr.msk.f32.mxu0 %vm28339_vm0, %v36250_v57  ;;  %v27979_v21 = vpop.eup %27978  ;;  %v36342_v16 = vld [vmem:[#allocation116_spill] sm:$0xff]  ;;  %v36406_v44 = vld [vmem:[#allocation38_spill] sm:$0xff] }
 0x5fa   :  { %26668 = vmatprep.mubr.msk.f32.mxu1 %vm28339_vm0, %v36250_v57  ;;  %26671 = vmatprep.subr.mxu0 %v36250_v57  ;;  %v9169_v62 = vpop.xlane.xlu1 %9168  ;;  %36337 = vst [vmem:[#allocation244_spill] sm:$0xff] %v31651_v31  ;;  %v27981_v41 = vpop.eup %27980  ;;  %v31671_v19 = vmul.f32 %v27979_v21, %v31299_v17  ;;  %v36401_v37 = vld [vmem:[#allocation24_spill] sm:$0xff] }
 0x5fb   :  { %v9172_v27 = vpop.xlane.xlu0 %9171  ;;  %26676 = vmatprep.subr.mxu1 %v36250_v57  ;;  %26664 = vmatmul.mubr.msk.f32.vlgmr.msra.gmra.mrb[180].mxu0 %vm3604_vm2, %v31623_v34  ;;  %v36338_v34 = vld [vmem:[#allocation117_spill] sm:$0xff]  ;;  %27990 = vrcp.f32 %v9169_v62  ;;  %v36347_v62 = vld [vmem:[#allocation248_spill] sm:$0xff] }
 0x5fc   :  { %26669 = vmatmul.mubr.msk.f32.vlgmr.msra.gmra.mrb[180].mxu1 %vm3604_vm2, %v31629_v8  ;;  %26672 = vmatpush3.msra.mxu0 %v36333_v11  ;;  %36340 = vst [vmem:[#allocation228_spill] sm:$0xff] %v31671_v19  ;;  %27992 = vrcp.f32 %v9172_v27  ;;  %v36348_v27 = vld [vmem:[#allocation120_spill] sm:$0xff] }
 0x5fd   :  { %26677 = vmatpush3.msra.mxu1 %v36335_v60  ;;  %16778 = vrot.lane.b32.xlu1 %v36336_v35, %s28341_s5  ;;  %v31677_v60 = vmul.f32 %v27981_v41, %v31301_v25  ;;  %v36345_v25 = vld [vmem:[#allocation230_spill] sm:$0xff]  ;;  %v36398_v35 = vld [vmem:[#allocation259_spill] sm:$0xff] }
 0x5fe   :  { %16853 = vrot.lane.b32.xlu0 %v36338_v34, %s28341_s5  ;;  %26673 = vmatprep.mubr.msk.f32.mxu0 %vm28339_vm0, %v36250_v57  ;;  %v31657_v11 = vpop.permute.xlu1 %13000  ;;  %v27983_v34 = vpop.eup %27982 }
 0x5ff   :  { %v31659_v13 = vpop.permute.xlu0 %12922  ;;  %26678 = vmatprep.mubr.msk.f32.mxu1 %vm28339_vm0, %v36250_v57  ;;  %26681 = vmatprep.subr.mxu0 %v36250_v57  ;;  %36343 = vst [vmem:[#allocation246_spill] sm:$0xff] %v31677_v60  ;;  %v27985_v17 = vpop.eup %27984  ;;  %v31697_v21 = vmul.f32 %v27983_v34, %v31307_v58 }
 0x600   :  { %26686 = vmatprep.subr.mxu1 %v36250_v57  ;;  %26674 = vmatmul.mubr.msk.f32.vlgmr.msra.gmra.mrb[182].mxu0 %vm3604_vm2, %v31645_v36  ;;  %v31703_v41 = vmul.f32 %v27985_v17, %v31309_v7  ;;  %v36351_v7 = vld [vmem:[#allocation233_spill] sm:$0xff] }
 0x601   :  { %26679 = vmatmul.mubr.msk.f32.vlgmr.msra.gmra.mrb[182].mxu1 %vm3604_vm2, %v31651_v31  ;;  %26682 = vmatpush3.msra.mxu0 %v36339_v18  ;;  %v36344_v18 = vld [vmem:[#allocation121_spill] sm:$0xff]  ;;  %36346 = vst [vmem:[#allocation230_spill] sm:$0xff] %v31697_v21 }
 0x602   :  { %26687 = vmatpush3.msra.mxu1 %v36341_v15  ;;  %16928 = vrot.lane.b32.xlu1 %v36342_v16, %s28341_s5  ;;  %v31679_v8 = vpop.permute.xlu1 %13158  ;;  %36349 = vst [vmem:[#allocation248_spill] sm:$0xff] %v31703_v41  ;;  %v27987_v15 = vpop.eup %27986  ;;  %v36350_v31 = vld [vmem:[#allocation125_spill] sm:$0xff]  ;;  %v36395_v16 = vld [vmem:[#allocation30_spill] sm:$0xff] }
 0x603   :  { %v31681_v36 = vpop.permute.xlu0 %13080  ;;  %17003 = vrot.lane.b32.xlu0 %v36344_v18, %s28341_s5  ;;  %26683 = vmatprep.mubr.msk.f32.mxu0 %vm28339_vm0, %v36250_v57  ;;  %v27989_v58 = vpop.eup %27988  ;;  %v31723_v34 = vmul.f32 %v27987_v15, %v31315_v59 }
 0x604   :  { %26688 = vmatprep.mubr.msk.f32.mxu1 %vm28339_vm0, %v36250_v57  ;;  %26691 = vmatprep.subr.mxu0 %v36250_v57 }
 0x605   :  { %26696 = vmatprep.subr.mxu1 %v36250_v57  ;;  %26684 = vmatmul.mubr.msk.f32.vlgmr.msra.gmra.mrb[184].mxu0 %vm3604_vm2, %v31671_v19  ;;  %36352 = vst [vmem:[#allocation233_spill] sm:$0xff] %v31723_v34  ;;  %v27991_v17 = vpop.eup %27990  ;;  %v36354_v19 = vld [vmem:[#allocation124_spill] sm:$0xff] }
 0x606   :  { %26689 = vmatmul.mubr.msk.f32.vlgmr.msra.gmra.mrb[184].mxu1 %vm3604_vm2, %v31677_v60  ;;  %26692 = vmatpush3.msra.mxu0 %v36345_v25  ;;  %v31709_v60 = vpop.permute.xlu1 %13156  ;;  %v27993_v18 = vpop.eup %27992 }
 0x607   :  { %26697 = vmatpush3.msra.mxu1 %v36347_v62  ;;  %17078 = vrot.lane.b32.xlu1 %v36348_v27, %s28341_s5  ;;  %v31711_v25 = vpop.permute.xlu0 %13078  ;;  %v36353_v62 = vld [vmem:[#allocation250_spill] sm:$0xff]  ;;  %v36390_v27 = vld [vmem:[#allocation267_spill] sm:$0xff] }
 0x608   :  { %17153 = vrot.lane.b32.xlu0 %v36350_v31, %s28341_s5  ;;  %26693 = vmatprep.mubr.msk.f32.mxu0 %vm28339_vm0, %v36250_v57  ;;  %v31729_v31 = vmul.f32 %v27989_v58, %v31317_v20  ;;  %v31746_v20 = vmul.f32 %v27991_v17, %v31323_v5  ;;  %v31752_v58 = vmul.f32 %v27993_v18, %v31325_v46  ;;  %v36363_v18 = vld [vmem:[#allocation11_spill] sm:$0xff]  ;;  %v36365_v17 = vld [vmem:[#allocation237_spill] sm:$0xff] }
 0x609   :  { %26698 = vmatprep.mubr.msk.f32.mxu1 %vm28339_vm0, %v36250_v57  ;;  %26701 = vmatprep.subr.mxu0 %v36250_v57 }
 0x60a   :  { %26706 = vmatprep.subr.mxu1 %v36250_v57  ;;  %26694 = vmatmul.mubr.msk.f32.vlgmr.msra.gmra.mrb[186].mxu0 %vm3604_vm2, %v31697_v21  ;;  %36355 = vst [vmem:[#allocation250_spill] sm:$0xff] %v31729_v31  ;;  %v36356_v21 = vld [vmem:[#allocation8_spill] sm:$0xff]  ;;  %v31738_v59 = vpop.permute.xlu1 %13314 }
 0x60b   :  { %26699 = vmatmul.mubr.msk.f32.vlgmr.msra.gmra.mrb[186].mxu1 %vm3604_vm2, %v31703_v41  ;;  %26702 = vmatpush3.msra.mxu0 %v36351_v7  ;;  %v31740_v15 = vpop.permute.xlu0 %13236  ;;  %36357 = vst [vmem:[#allocation8_spill] sm:$0xff] %v31746_v20  ;;  %v36360_v7 = vld [vmem:[#allocation252_spill] sm:$0xff]  ;;  %v36362_v41 = vld [vmem:[#allocation7_spill] sm:$0xff] }
 0x60c   :  { %26707 = vmatpush3.msra.mxu1 %v36353_v62  ;;  %17228 = vrot.lane.b32.xlu1 %v36354_v19, %s28341_s5  ;;  %v36361_v62 = vld [vmem:[#allocation6_spill] sm:$0xff]  ;;  %v36389_v19 = vld [vmem:[#allocation253_spill] sm:$0xff] }
 0x60d   :  { %17305 = vrot.lane.b32.xlu0 %v36356_v21, %s28342_s4  ;;  %26703 = vmatprep.mubr.msk.f32.mxu0 %vm28339_vm0, %v36250_v57  ;;  %v36358_v21 = vld [vmem:[#allocation235_spill] sm:$0xff] }
 0x60e   :  { %26708 = vmatprep.mubr.msk.f32.mxu1 %vm28339_vm0, %v36250_v57  ;;  %26711 = vmatprep.subr.mxu0 %v36250_v57  ;;  %36359 = vst [vmem:[#allocation235_spill] sm:$0xff] %v31752_v58  ;;  %v31768_v5 = vpop.permute.xlu1 %13312 }
 0x60f   :  { %26716 = vmatprep.subr.mxu1 %v36250_v57  ;;  %26704 = vmatmul.mubr.msk.f32.vlgmr.msra.gmra.mrb[188].mxu0 %vm3604_vm2, %v31723_v34  ;;  %v31770_v46 = vpop.permute.xlu0 %13234  ;;  %v36384_v34 = vld [vmem:[#allocation265_spill] sm:$0xff] }
 0x610   :  { %26709 = vmatmul.mubr.msk.f32.vlgmr.msra.gmra.mrb[188].mxu1 %vm3604_vm2, %v31729_v31  ;;  %26712 = vmatpush3.msra.mxu0 %v36358_v21  ;;  %v36366_v21 = vld [vmem:[#allocation254_spill] sm:$0xff] }
 0x611   :  { %26717 = vmatpush3.msra.mxu1 %v36360_v7  ;;  %17383 = vrot.lane.b32.xlu1 %v36361_v62, %s28342_s4  ;;  %v36367_v7 = vld [vmem:[#allocation10_spill] sm:$0xff]  ;;  %v36368_v62 = vld [vmem:[#allocation239_spill] sm:$0xff] }
 0x612   :  { %17303 = vrot.lane.b32.xlu0 %v36362_v41, %s28342_s4  ;;  %26713 = vmatprep.mubr.msk.f32.mxu0 %vm28339_vm0, %v36250_v57  ;;  %v36364_v41 = vld [vmem:[#allocation12_spill] sm:$0xff] }
 0x613   :  { %26718 = vmatprep.mubr.msk.f32.mxu1 %vm28339_vm0, %v36250_v57  ;;  %26714 = vmatmul.mubr.msk.f32.vlgmr.msra.gmra.mrb[190].mxu0 %vm3604_vm2, %v31746_v20  ;;  %v36372_v20 = vld [vmem:[#allocation258_spill] sm:$0xff] }
 0x614   :  { %26719 = vmatmul.mubr.msk.f32.vlgmr.msra.gmra.mrb[190].mxu1 %vm3604_vm2, %v31752_v58  ;;  %26721 = vmatprep.subr.mxu0 %v36250_v57  ;;  %v36370_v58 = vld [vmem:[#allocation256_spill] sm:$0xff] }
 0x615   :  { %17381 = vrot.lane.b32.xlu1 %v36363_v18, %s28342_s4  ;;  %26726 = vmatprep.subr.mxu1 %v36250_v57  ;;  %v36369_v18 = vld [vmem:[#allocation14_spill] sm:$0xff] }
 0x616   :  { %17461 = vrot.lane.b32.xlu0 %v36364_v41, %s28342_s4  ;;  %26723 = vmatprep.mubr.msk.f32.mxu0 %vm28339_vm0, %v36250_v57  ;;  %v31793_v41 = vpop.permute.xlu1 %13470 }
 0x617   :  { %26722 = vmatpush3.xpose.msk.msra.mxu0 %vm1107_vm1, %v36365_v17  ;;  %26728 = vmatprep.mubr.msk.f32.mxu1 %vm28339_vm0, %v36250_v57  ;;  %v31795_v17 = vpop.permute.xlu0 %13392 }
 0x618   :  { %26727 = vmatpush3.xpose.msk.msra.mxu1 %vm1107_vm1, %v36366_v21  ;;  %26731 = vmatprep.subr.mxu0 %v36250_v57  ;;  %v36371_v21 = vld [vmem:[#allocation241_spill] sm:$0xff] }
 0x619   :  { %17539 = vrot.lane.b32.xlu1 %v36367_v7, %s28342_s4  ;;  %26736 = vmatprep.subr.mxu1 %v36250_v57  ;;  %v36373_v7 = vld [vmem:[#allocation18_spill] sm:$0xff] }
 0x61a   :  { %26724 = vmatmul.mubr.msk.f32.vlgmr.msra.gmra.mrb[192].mxu0 %vm1107_vm1, %v36368_v62  ;;  %17459 = vrot.lane.b32.xlu0 %v36369_v18, %s28342_s4  ;;  %v36374_v62 = vld [vmem:[#allocation243_spill] sm:$0xff]  ;;  %v36377_v18 = vld [vmem:[#allocation245_spill] sm:$0xff] }
 0x61b   :  { %26729 = vmatmul.mubr.msk.f32.vlgmr.msra.gmra.mrb[192].mxu1 %vm1107_vm1, %v36370_v58  ;;  %26732 = vmatpush3.xpose.msk.msra.mxu0 %vm1107_vm1, %v36371_v21  ;;  %v36375_v58 = vld [vmem:[#allocation260_spill] sm:$0xff]  ;;  %v31819_v21 = vpop.permute.xlu1 %13468  ;;  %v31821_v31 = vpop.permute.xlu0 %13390 }
 0x61c   :  { %26737 = vmatpush3.xpose.msk.msra.mxu1 %vm1107_vm1, %v36372_v20  ;;  %26733 = vmatprep.mubr.msk.f32.mxu0 %vm28339_vm0, %v36250_v57  ;;  %v36376_v20 = vld [vmem:[#allocation16_spill] sm:$0xff] }
 0x61d   :  { %26738 = vmatprep.mubr.msk.f32.mxu1 %vm28339_vm0, %v36250_v57  ;;  %17537 = vrot.lane.b32.xlu1 %v36373_v7, %s28342_s4  ;;  %v36378_v7 = vld [vmem:[#allocation262_spill] sm:$0xff] }
 0x61e   :  { %26734 = vmatmul.mubr.msk.f32.vlgmr.msra.gmra.mrb[194].mxu0 %vm1107_vm1, %v36374_v62  ;;  %26741 = vmatprep.subr.mxu0 %v36250_v57  ;;  %v36379_v62 = vld [vmem:[#allocation15_spill] sm:$0xff] }
 0x61f   :  { %26739 = vmatmul.mubr.msk.f32.vlgmr.msra.gmra.mrb[194].mxu1 %vm1107_vm1, %v36375_v58  ;;  %26746 = vmatprep.subr.mxu1 %v36250_v57  ;;  %v36380_v58 = vld [vmem:[#allocation247_spill] sm:$0xff] }
 0x620   :  { %17617 = vrot.lane.b32.xlu0 %v36376_v20, %s28342_s4  ;;  %26742 = vmatpush3.xpose.msk.msra.mxu0 %vm1107_vm1, %v36377_v18  ;;  %v36381_v20 = vld [vmem:[#allocation264_spill] sm:$0xff]  ;;  %v36382_v18 = vld [vmem:[#allocation22_spill] sm:$0xff] }
 0x621   :  { %26747 = vmatpush3.xpose.msk.msra.mxu1 %vm1107_vm1, %v36378_v7  ;;  %26743 = vmatprep.mubr.msk.f32.mxu0 %vm28339_vm0, %v36250_v57  ;;  %v36383_v7 = vld [vmem:[#allocation249_spill] sm:$0xff] }
 0x622   :  { %26748 = vmatprep.mubr.msk.f32.mxu1 %vm28339_vm0, %v36250_v57  ;;  %17695 = vrot.lane.b32.xlu1 %v36379_v62, %s28342_s4  ;;  %v31845_v62 = vpop.permute.xlu1 %13626 }
 0x623   :  { %26744 = vmatmul.mubr.msk.f32.vlgmr.msra.gmra.mrb[196].mxu0 %vm1107_vm1, %v36380_v58  ;;  %26751 = vmatprep.subr.mxu0 %v36250_v57  ;;  %v31847_v58 = vpop.permute.xlu0 %13548 }
 0x624   :  { %26749 = vmatmul.mubr.msk.f32.vlgmr.msra.gmra.mrb[196].mxu1 %vm1107_vm1, %v36381_v20  ;;  %26756 = vmatprep.subr.mxu1 %v36250_v57  ;;  %v36385_v20 = vld [vmem:[#allocation26_spill] sm:$0xff] }
 0x625   :  { %17615 = vrot.lane.b32.xlu0 %v36382_v18, %s28342_s4  ;;  %26752 = vmatpush3.xpose.msk.msra.mxu0 %vm1107_vm1, %v36383_v7  ;;  %v36386_v18 = vld [vmem:[#allocation251_spill] sm:$0xff]  ;;  %v36387_v7 = vld [vmem:[#allocation266_spill] sm:$0xff] }
 0x626   :  { %26757 = vmatpush3.xpose.msk.msra.mxu1 %vm1107_vm1, %v36384_v34  ;;  %26753 = vmatprep.mubr.msk.f32.mxu0 %vm28339_vm0, %v36250_v57  ;;  %v36388_v34 = vld [vmem:[#allocation20_spill] sm:$0xff] }
 0x627   :  { %26758 = vmatprep.mubr.msk.f32.mxu1 %vm28339_vm0, %v36250_v57  ;;  %17693 = vrot.lane.b32.xlu1 %v36385_v20, %s28342_s4  ;;  %v36391_v20 = vld [vmem:[#allocation19_spill] sm:$0xff] }
 0x628   :  { %26754 = vmatmul.mubr.msk.f32.vlgmr.msra.gmra.mrb[198].mxu0 %vm1107_vm1, %v36386_v18  ;;  %26761 = vmatprep.subr.mxu0 %v36250_v57  ;;  %v31871_v18 = vpop.permute.xlu1 %13624 }
 0x629   :  { %26759 = vmatmul.mubr.msk.f32.vlgmr.msra.gmra.mrb[198].mxu1 %vm1107_vm1, %v36387_v7  ;;  %26766 = vmatprep.subr.mxu1 %v36250_v57  ;;  %v31873_v7 = vpop.permute.xlu0 %13546 }
 0x62a   :  { %17773 = vrot.lane.b32.xlu0 %v36388_v34, %s28342_s4  ;;  %26762 = vmatpush3.xpose.msk.msra.mxu0 %vm1107_vm1, %v36389_v19  ;;  %v36392_v34 = vld [vmem:[#allocation255_spill] sm:$0xff]  ;;  %v36393_v19 = vld [vmem:[#allocation268_spill] sm:$0xff] }
 0x62b   :  { %26767 = vmatpush3.xpose.msk.msra.mxu1 %vm1107_vm1, %v36390_v27  ;;  %26763 = vmatprep.mubr.msk.f32.mxu0 %vm28339_vm0, %v36250_v57  ;;  %v36394_v27 = vld [vmem:[#allocation257_spill] sm:$0xff] }
 0x62c   :  { %26768 = vmatprep.mubr.msk.f32.mxu1 %vm28339_vm0, %v36250_v57  ;;  %17851 = vrot.lane.b32.xlu1 %v36391_v20, %s28342_s4  ;;  %v36396_v20 = vld [vmem:[#allocation269_spill] sm:$0xff] }
 0x62d   :  { %26764 = vmatmul.mubr.msk.f32.vlgmr.msra.gmra.mrb[200].mxu0 %vm1107_vm1, %v36392_v34  ;;  %26771 = vmatprep.subr.mxu0 %v36250_v57  ;;  %v36397_v34 = vld [vmem:[#allocation34_spill] sm:$0xff] }
 0x62e   :  { %26769 = vmatmul.mubr.msk.f32.vlgmr.msra.gmra.mrb[200].mxu1 %vm1107_vm1, %v36393_v19  ;;  %26776 = vmatprep.subr.mxu1 %v36250_v57  ;;  %v31893_v19 = vpop.permute.xlu1 %13782 }
 0x62f   :  { %26772 = vmatpush3.xpose.msk.msra.mxu0 %vm1107_vm1, %v36394_v27  ;;  %17771 = vrot.lane.b32.xlu0 %v36395_v16, %s28342_s4  ;;  %v31898_v16 = vpop.permute.xlu0 %13704  ;;  %v36399_v27 = vld [vmem:[#allocation270_spill] sm:$0xff] }
 0x630   :  { %26777 = vmatpush3.xpose.msk.msra.mxu1 %vm1107_vm1, %v36396_v20  ;;  %26773 = vmatprep.mubr.msk.f32.mxu0 %vm28339_vm0, %v36250_v57  ;;  %v36400_v20 = vld [vmem:[#allocation261_spill] sm:$0xff] }
 0x631   :  { %26778 = vmatprep.mubr.msk.f32.mxu1 %vm28339_vm0, %v36250_v57  ;;  %17849 = vrot.lane.b32.xlu1 %v36397_v34, %s28342_s4  ;;  %v36402_v34 = vld [vmem:[#allocation271_spill] sm:$0xff] }
 0x632   :  { %26774 = vmatmul.mubr.msk.f32.vlgmr.msra.gmra.mrb[202].mxu0 %vm1107_vm1, %v36398_v35  ;;  %26781 = vmatprep.subr.mxu0 %v36250_v57  ;;  %v36403_v35 = vld [vmem:[#allocation23_spill] sm:$0xff] }
 0x633   :  { %26779 = vmatmul.mubr.msk.f32.vlgmr.msra.gmra.mrb[202].mxu1 %vm1107_vm1, %v36399_v27  ;;  %26786 = vmatprep.subr.mxu1 %v36250_v57  ;;  %v36404_v27 = vld [vmem:[#allocation263_spill] sm:$0xff] }
 0x634   :  { %26782 = vmatpush3.xpose.msk.msra.mxu0 %vm1107_vm1, %v36400_v20  ;;  %17929 = vrot.lane.b32.xlu0 %v36401_v37, %s28342_s4  ;;  %v31918_v20 = vpop.permute.xlu1 %13780  ;;  %v36405_v37 = vld [vmem:[#allocation272_spill] sm:$0xff] }
 0x635   :  { %26787 = vmatpush3.xpose.msk.msra.mxu1 %vm1107_vm1, %v36402_v34  ;;  %26783 = vmatprep.mubr.msk.f32.mxu0 %vm28339_vm0, %v36250_v57  ;;  %v31923_v34 = vpop.permute.xlu0 %13702 }
 0x636   :  { %26788 = vmatprep.mubr.msk.f32.mxu1 %vm28339_vm0, %v36250_v57  ;;  %18007 = vrot.lane.b32.xlu1 %v36403_v35, %s28342_s4  ;;  %v36407_v35 = vld [vmem:[#allocation41_spill] sm:$0xff] }
 0x637   :  { %26784 = vmatmul.mubr.msk.f32.vlgmr.msra.gmra.mrb[204].mxu0 %vm1107_vm1, %v36404_v27  ;;  %26791 = vmatprep.subr.mxu0 %v36250_v57 }
 0x638   :  { %26789 = vmatmul.mubr.msk.f32.vlgmr.msra.gmra.mrb[204].mxu1 %vm1107_vm1, %v36405_v37  ;;  %26796 = vmatprep.subr.mxu1 %v36250_v57 }
 0x639   :  { %26792 = vmatpush3.xpose.msk.msra.mxu0 %vm1107_vm1, %v31345_v55  ;;  %17927 = vrot.lane.b32.xlu0 %v36406_v44, %s28342_s4  ;;  %v13939_v55 = vpop.permute.xlu1 %13938  ;;  %v36408_v44 = vld [vmem:[#allocation28_spill] sm:$0xff] }
 0x63a   :  { %26797 = vmatpush3.xpose.msk.msra.mxu1 %vm1107_vm1, %v31409_v2  ;;  %26793 = vmatprep.mubr.msk.f32.mxu0 %vm28339_vm0, %v36250_v57  ;;  %v13861_v2 = vpop.permute.xlu0 %13860 }
 0x63b   :  { %26798 = vmatprep.mubr.msk.f32.mxu1 %vm28339_vm0, %v36250_v57  ;;  %18005 = vrot.lane.b32.xlu1 %v36407_v35, %s28342_s4 }
 0x63c   :  { %26794 = vmatmul.mubr.msk.f32.vlgmr.msra.gmra.mrb[206].mxu0 %vm1107_vm1, %v31659_v13  ;;  %26801 = vmatprep.subr.mxu0 %v36250_v57 }
 0x63d   :  { %26799 = vmatmul.mubr.msk.f32.vlgmr.msra.gmra.mrb[206].mxu1 %vm1107_vm1, %v31657_v11  ;;  %26806 = vmatprep.subr.mxu1 %v36250_v57  ;;  %v36409_v11 = vld [vmem:[#allocation27_spill] sm:$0xff] }
 0x63e   :  { %18085 = vrot.lane.b32.xlu0 %v36408_v44, %s28342_s4  ;;  %26802 = vmatpush3.xpose.msk.msra.mxu0 %vm1107_vm1, %v31681_v36  ;;  %v13937_v36 = vpop.permute.xlu1 %13936  ;;  %v13859_v13 = vpop.permute.xlu0 %13858 }
 0x63f   :  { %26807 = vmatpush3.xpose.msk.msra.mxu1 %vm1107_vm1, %v31679_v8  ;;  %26803 = vmatprep.mubr.msk.f32.mxu0 %vm28339_vm0, %v36250_v57  ;;  %v36410_v8 = vld [vmem:[#allocation44_spill] sm:$0xff] }
 0x640   :  { %26808 = vmatprep.mubr.msk.f32.mxu1 %vm28339_vm0, %v36250_v57  ;;  %18163 = vrot.lane.b32.xlu1 %v36409_v11, %s28342_s4 }
 0x641   :  { %26804 = vmatmul.mubr.msk.f32.vlgmr.msra.gmra.mrb[208].mxu0 %vm1107_vm1, %v31711_v25  ;;  %26811 = vmatprep.subr.mxu0 %v36250_v57  ;;  %v36412_v25 = vld [vmem:[#allocation32_spill] sm:$0xff] }
 0x642   :  { %26809 = vmatmul.mubr.msk.f32.vlgmr.msra.gmra.mrb[208].mxu1 %vm1107_vm1, %v31709_v60  ;;  %26816 = vmatprep.subr.mxu1 %v36250_v57  ;;  %v36411_v60 = vld [vmem:[#allocation47_spill] sm:$0xff] }
 0x643   :  { %18083 = vrot.lane.b32.xlu0 %v36410_v8, %s28342_s4  ;;  %26812 = vmatpush3.xpose.msk.msra.mxu0 %vm1107_vm1, %v31740_v15  ;;  %v14017_v15 = vpop.permute.xlu0 %14016 }
 0x644   :  { %26817 = vmatpush3.xpose.msk.msra.mxu1 %vm1107_vm1, %v31738_v59  ;;  %26813 = vmatprep.mubr.msk.f32.mxu0 %vm28339_vm0, %v36250_v57  ;;  %v14095_v59 = vpop.permute.xlu1 %14094 }
 0x645   :  { %26818 = vmatprep.mubr.msk.f32.mxu1 %vm28339_vm0, %v36250_v57  ;;  %18161 = vrot.lane.b32.xlu1 %v36411_v60, %s28342_s4 }
 0x646   :  { %26814 = vmatmul.mubr.msk.f32.vlgmr.msra.gmra.mrb[210].mxu0 %vm1107_vm1, %v31770_v46  ;;  %26821 = vmatprep.subr.mxu0 %v36250_v57  ;;  %v36414_v46 = vld [vmem:[#allocation51_spill] sm:$0xff] }
 0x647   :  { %26819 = vmatmul.mubr.msk.f32.vlgmr.msra.gmra.mrb[210].mxu1 %vm1107_vm1, %v31768_v5  ;;  %26826 = vmatprep.subr.mxu1 %v36250_v57  ;;  %v36413_v5 = vld [vmem:[#allocation31_spill] sm:$0xff] }
 0x648   :  { %18241 = vrot.lane.b32.xlu0 %v36412_v25, %s28342_s4  ;;  %26822 = vmatpush3.xpose.msk.msra.mxu0 %vm1107_vm1, %v31795_v17  ;;  %v14015_v17 = vpop.permute.xlu0 %14014 }
 0x649   :  { %26827 = vmatpush3.xpose.msk.msra.mxu1 %vm1107_vm1, %v31793_v41  ;;  %26823 = vmatprep.mubr.msk.f32.mxu0 %vm28339_vm0, %v36250_v57  ;;  %v14093_v41 = vpop.permute.xlu1 %14092 }
 0x64a   :  { %26828 = vmatprep.mubr.msk.f32.mxu1 %vm28339_vm0, %v36250_v57  ;;  %18319 = vrot.lane.b32.xlu1 %v36413_v5, %s28342_s4 }
 0x64b   :  { %26824 = vmatmul.mubr.msk.f32.vlgmr.msra.gmra.mrb[212].mxu0 %vm1107_vm1, %v31821_v31  ;;  %26831 = vmatprep.subr.mxu0 %v36250_v57  ;;  %v36415_v31 = vld [vmem:[#allocation55_spill] sm:$0xff] }
 0x64c   :  { %26829 = vmatmul.mubr.msk.f32.vlgmr.msra.gmra.mrb[212].mxu1 %vm1107_vm1, %v31819_v21  ;;  %26836 = vmatprep.subr.mxu1 %v36250_v57  ;;  %v36416_v21 = vld [vmem:[#allocation36_spill] sm:$0xff] }
 0x64d   :  { %18239 = vrot.lane.b32.xlu0 %v36414_v46, %s28342_s4  ;;  %26832 = vmatpush3.xpose.msk.msra.mxu0 %vm1107_vm1, %v31847_v58  ;;  %v14251_v58 = vpop.permute.xlu1 %14250 }
 0x64e   :  { %26837 = vmatpush3.xpose.msk.msra.mxu1 %vm1107_vm1, %v31845_v62  ;;  %26833 = vmatprep.mubr.msk.f32.mxu0 %vm28339_vm0, %v36250_v57  ;;  %v36417_v62 = vld [vmem:[#allocation35_spill] sm:$0xff] }
 0x64f   :  { %26838 = vmatprep.mubr.msk.f32.mxu1 %vm28339_vm0, %v36250_v57  ;;  %18317 = vrot.lane.b32.xlu1 %v36415_v31, %s28342_s4 }
 0x650   :  { %26834 = vmatmul.mubr.msk.f32.vlgmr.msra.gmra.mrb[214].mxu0 %vm1107_vm1, %v31873_v7  ;;  %26841 = vmatprep.subr.mxu0 %v36250_v57 }
 0x651   :  { %26839 = vmatmul.mubr.msk.f32.vlgmr.msra.gmra.mrb[214].mxu1 %vm1107_vm1, %v31871_v18  ;;  %26846 = vmatprep.subr.mxu1 %v36250_v57  ;;  %v14173_v18 = vpop.permute.xlu0 %14172  ;;  %v14249_v7 = vpop.permute.xlu1 %14248 }
 0x652   :  { %18397 = vrot.lane.b32.xlu0 %v36416_v21, %s28342_s4  ;;  %26842 = vmatpush3.xpose.msk.msra.mxu0 %vm1107_vm1, %v31898_v16 }
 0x653   :  { %26847 = vmatpush3.xpose.msk.msra.mxu1 %vm1107_vm1, %v31893_v19  ;;  %26843 = vmatprep.mubr.msk.f32.mxu0 %vm28339_vm0, %v36250_v57 }
 0x654   :  { %26848 = vmatprep.mubr.msk.f32.mxu1 %vm28339_vm0, %v36250_v57  ;;  %18475 = vrot.lane.b32.xlu1 %v36417_v62, %s28342_s4 }
 0x655   :  { %26844 = vmatmul.mubr.msk.f32.vlgmr.msra.gmra.mrb[216].mxu0 %vm1107_vm1, %v31923_v34  ;;  %26851 = vmatprep.subr.mxu0 %v36250_v57  ;;  %v14171_v19 = vpop.permute.xlu0 %14170  ;;  %v14979_v16 = vpop.permute.xlu1 %14978 }
 0x656   :  { %26849 = vmatmul.mubr.msk.f32.vlgmr.msra.gmra.mrb[216].mxu1 %vm1107_vm1, %v31918_v20  ;;  %26856 = vmatprep.subr.mxu1 %v36250_v57 }
 0x657   :  { %26852 = vmatpush3.xpose.msk.msra.mxu0 %vm1107_vm1, %v13861_v2  ;;  %26857 = vmatpush3.xpose.msk.msra.mxu1 %vm1107_vm1, %v13939_v55 }
 0x658   :  { %26853 = vmatprep.mubr.msk.f32.mxu0 %vm28339_vm0, %v36250_v57  ;;  %26858 = vmatprep.mubr.msk.f32.mxu1 %vm28339_vm0, %v36250_v57 }
 0x659   :  { %26861 = vmatprep.subr.mxu0 %v36250_v57  ;;  %26866 = vmatprep.subr.mxu1 %v36250_v57  ;;  %v14904_v27 = vpop.permute.xlu0 %14903 }
 0x65a   :  { %26854 = vmatmul.mubr.msk.f32.vlgmr.msra.gmra.mrb[218].mxu0 %vm1107_vm1, %v13859_v13  ;;  %26859 = vmatmul.mubr.msk.f32.vlgmr.msra.gmra.mrb[218].mxu1 %vm1107_vm1, %v13937_v36 }
 0x65b   :  { %26862 = vmatpush3.xpose.msk.msra.mxu0 %vm1107_vm1, %v14017_v15  ;;  %26867 = vmatpush3.xpose.msk.msra.mxu1 %vm1107_vm1, %v14095_v59 }
 0x65c   :  { %26863 = vmatprep.mubr.msk.f32.mxu0 %vm28339_vm0, %v36250_v57  ;;  %26868 = vmatprep.mubr.msk.f32.mxu1 %vm28339_vm0, %v36250_v57 }
 0x65d   :  { %26871 = vmatprep.subr.mxu0 %v36250_v57  ;;  %26876 = vmatprep.subr.mxu1 %v36250_v57 }
 0x65e   :  { %26864 = vmatmul.mubr.msk.f32.vlgmr.msra.gmra.mrb[220].mxu0 %vm1107_vm1, %v14015_v17  ;;  %26869 = vmatmul.mubr.msk.f32.vlgmr.msra.gmra.mrb[220].mxu1 %vm1107_vm1, %v14093_v41 }
 0x65f   :  { %26872 = vmatpush3.xpose.msk.msra.mxu0 %vm1107_vm1, %v14173_v18  ;;  %26877 = vmatpush3.xpose.msk.msra.mxu1 %vm1107_vm1, %v14251_v58 }
 0x660   :  { %26873 = vmatprep.mubr.msk.f32.mxu0 %vm28339_vm0, %v36250_v57  ;;  %26878 = vmatprep.mubr.msk.f32.mxu1 %vm28339_vm0, %v36250_v57 }
 0x661   :  { %26881 = vmatprep.subr.mxu0 %v36250_v57  ;;  %26886 = vmatprep.subr.mxu1 %v36250_v57 }
 0x662   :  { %26874 = vmatmul.mubr.msk.f32.vlgmr.msra.gmra.mrb[222].mxu0 %vm1107_vm1, %v14171_v19  ;;  %26879 = vmatmul.mubr.msk.f32.vlgmr.msra.gmra.mrb[222].mxu1 %vm1107_vm1, %v14249_v7 }
 0x663   :  { %26882 = vmatpush3.msra.mxu0 %v14904_v27  ;;  %26887 = vmatpush3.msra.mxu1 %v14979_v16 }
 0x664   :  { %26883 = vmatprep.mubr.msk.f32.mxu0 %vm28339_vm0, %v36250_v57  ;;  %26888 = vmatprep.mubr.msk.f32.mxu1 %vm28339_vm0, %v36250_v57 }
 0x665   :  { %26891 = vmatprep.subr.mxu0 %v36250_v57  ;;  %26896 = vmatprep.subr.mxu1 %v36250_v57 }
 0x671   :  { %v32069_v20 = vpop.f32.mrb[160].mxu0 }
 0x672   :  { %36418 = vst [vmem:[#allocation252_spill] sm:$0xff] %v32069_v20  ;;  %v26565_v37 = vpop.f32.mrb[161].mxu0 }
 0x675   :  { %v32071_v34 = vpop.f32.mrb[162].mxu0 }
 0x676   :  { %36419 = vst [vmem:[#allocation6_spill] sm:$0xff] %v32071_v34  ;;  %v26575_v35 = vpop.f32.mrb[163].mxu0 }
 0x69e   :  { %v32073_v55 = vpop.f32.mrb[160].mxu1 }
 0x69f   :  { %36420 = vst [vmem:[#allocation7_spill] sm:$0xff] %v32073_v55  ;;  %v26570_v2 = vpop.f32.mrb[161].mxu1  ;;  %v36463_v55 = vld [vmem:[#allocation128_spill] sm:$0xff] }
 0x6a2   :  { %v32075_v44 = vpop.f32.mrb[162].mxu1 }
 0x6a3   :  { %36421 = vst [vmem:[#allocation11_spill] sm:$0xff] %v32075_v44  ;;  %v26580_v11 = vpop.f32.mrb[163].mxu1 }
 0x6a4   :  { %v32101_v11 = vpop.permute.xlu1 %15128 }
 0x6a6   :  { %v32077_v8 = vpop.f32.mrb[164].mxu0 }
 0x6a7   :  { %36422 = vst [vmem:[#allocation12_spill] sm:$0xff] %v32077_v8  ;;  %v32079_v36 = vpop.f32.mrb[164].mxu1  ;;  %v26585_v13 = vpop.f32.mrb[165].mxu0 }
 0x6a8   :  { %36423 = vst [vmem:[#allocation237_spill] sm:$0xff] %v32079_v36  ;;  %v26590_v60 = vpop.f32.mrb[165].mxu1 }
 0x6ab   :  { %v32081_v25 = vpop.f32.mrb[166].mxu0 }
 0x6ac   :  { %36424 = vst [vmem:[#allocation254_spill] sm:$0xff] %v32081_v25  ;;  %v32083_v59 = vpop.f32.mrb[166].mxu1  ;;  %v26595_v15 = vpop.f32.mrb[167].mxu0 }
 0x6ad   :  { %36425 = vst [vmem:[#allocation10_spill] sm:$0xff] %v32083_v59  ;;  %v26600_v5 = vpop.f32.mrb[167].mxu1 }
 0x6b0   :  { %v32085_v46 = vpop.f32.mrb[168].mxu0 }
 0x6b1   :  { %36426 = vst [vmem:[#allocation239_spill] sm:$0xff] %v32085_v46  ;;  %v32087_v31 = vpop.f32.mrb[168].mxu1  ;;  %v26605_v41 = vpop.f32.mrb[169].mxu0 }
 0x6b2   :  { %36427 = vst [vmem:[#allocation14_spill] sm:$0xff] %v32087_v31  ;;  %v26610_v17 = vpop.f32.mrb[169].mxu1 }
 0x6b3   :  { %v32107_v17 = vpop.permute.xlu1 %15278 }
 0x6b4   :  { %36436 = vst [vmem:[#allocation262_spill] sm:$0xff] %v32107_v17 }
 0x6b5   :  { %v32089_v21 = vpop.f32.mrb[170].mxu0 }
 0x6b6   :  { %36428 = vst [vmem:[#allocation256_spill] sm:$0xff] %v32089_v21  ;;  %v32091_v62 = vpop.f32.mrb[170].mxu1  ;;  %v26615_v58 = vpop.f32.mrb[171].mxu0 }
 0x6b7   :  { %36429 = vst [vmem:[#allocation241_spill] sm:$0xff] %v32091_v62  ;;  %v26620_v18 = vpop.f32.mrb[171].mxu1 }
 0x6ba   :  { %v32093_v7 = vpop.f32.mrb[172].mxu0 }
 0x6bb   :  { %36430 = vst [vmem:[#allocation258_spill] sm:$0xff] %v32093_v7  ;;  %v32095_v19 = vpop.f32.mrb[172].mxu1  ;;  %v26625_v16 = vpop.f32.mrb[173].mxu0 }
 0x6bc   :  { %36431 = vst [vmem:[#allocation18_spill] sm:$0xff] %v32095_v19  ;;  %v26630_v27 = vpop.f32.mrb[173].mxu1 }
 0x6bf   :  { %v32097_v37 = vpop.f32.mrb[174].mxu0 }
 0x6c0   :  { %36432 = vst [vmem:[#allocation243_spill] sm:$0xff] %v32097_v37  ;;  %v32099_v35 = vpop.f32.mrb[174].mxu1  ;;  %v26635_v2 = vpop.f32.mrb[175].mxu0 }
 0x6c1   :  { %36433 = vst [vmem:[#allocation260_spill] sm:$0xff] %v32099_v35  ;;  %v26640_v13 = vpop.f32.mrb[175].mxu1  ;;  %v32113_v37 = vpop.permute.xlu0 %15053 }
 0x6c2   :  { %v32115_v2 = vpop.permute.xlu1 %15428 }
 0x6c3   :  { %36439 = vst [vmem:[#allocation264_spill] sm:$0xff] %v32115_v2 }
 0x6c4   :  { %v32103_v60 = vpop.f32.mrb[176].mxu0 }
 0x6c5   :  { %36434 = vst [vmem:[#allocation16_spill] sm:$0xff] %v32103_v60  ;;  %v32105_v15 = vpop.f32.mrb[176].mxu1  ;;  %v26645_v5 = vpop.f32.mrb[177].mxu0 }
 0x6c6   :  { %36435 = vst [vmem:[#allocation245_spill] sm:$0xff] %v32105_v15  ;;  %v26650_v41 = vpop.f32.mrb[177].mxu1  ;;  %v32121_v5 = vpop.permute.xlu0 %15203 }
 0x6c7   :  { %v32123_v41 = vpop.permute.xlu1 %15578 }
 0x6c8   :  { %36442 = vst [vmem:[#allocation265_spill] sm:$0xff] %v32123_v41 }
 0x6c9   :  { %v32109_v58 = vpop.f32.mrb[178].mxu0 }
 0x6ca   :  { %36437 = vst [vmem:[#allocation15_spill] sm:$0xff] %v32109_v58  ;;  %v32111_v18 = vpop.f32.mrb[178].mxu1  ;;  %v26655_v16 = vpop.f32.mrb[179].mxu0 }
 0x6cb   :  { %36438 = vst [vmem:[#allocation247_spill] sm:$0xff] %v32111_v18  ;;  %v26660_v27 = vpop.f32.mrb[179].mxu1  ;;  %v32129_v18 = vpop.permute.xlu0 %15353 }
 0x6cc   :  { %36445 = vst [vmem:[#allocation266_spill] sm:$0xff] %v32129_v18 }
 0x6ce   :  { %v32117_v35 = vpop.f32.mrb[180].mxu0 }
 0x6cf   :  { %36440 = vst [vmem:[#allocation22_spill] sm:$0xff] %v32117_v35  ;;  %v32119_v13 = vpop.f32.mrb[180].mxu1  ;;  %v26665_v60 = vpop.f32.mrb[181].mxu0 }
 0x6d0   :  { %36441 = vst [vmem:[#allocation249_spill] sm:$0xff] %v32119_v13  ;;  %v26670_v15 = vpop.f32.mrb[181].mxu1  ;;  %v32135_v13 = vpop.permute.xlu1 %15728 }
 0x6d1   :  { %36448 = vst [vmem:[#allocation267_spill] sm:$0xff] %v32135_v13 }
 0x6d3   :  { %v32125_v19 = vpop.f32.mrb[182].mxu0 }
 0x6d4   :  { %36443 = vst [vmem:[#allocation26_spill] sm:$0xff] %v32125_v19  ;;  %v32127_v58 = vpop.f32.mrb[182].mxu1  ;;  %v26675_v16 = vpop.f32.mrb[183].mxu0 }
 0x6d5   :  { %36444 = vst [vmem:[#allocation251_spill] sm:$0xff] %v32127_v58  ;;  %v26680_v27 = vpop.f32.mrb[183].mxu1  ;;  %v32141_v19 = vpop.permute.xlu0 %15503 }
 0x6d6   :  { %36451 = vst [vmem:[#allocation268_spill] sm:$0xff] %v32141_v19  ;;  %v32143_v16 = vpop.permute.xlu1 %15878 }
 0x6d7   :  { %36452 = vst [vmem:[#allocation257_spill] sm:$0xff] %v32143_v16 }
 0x6d8   :  { %v32131_v7 = vpop.f32.mrb[184].mxu0 }
 0x6d9   :  { %36446 = vst [vmem:[#allocation20_spill] sm:$0xff] %v32131_v7  ;;  %v32133_v62 = vpop.f32.mrb[184].mxu1  ;;  %v26685_v35 = vpop.f32.mrb[185].mxu0 }
 0x6da   :  { %36447 = vst [vmem:[#allocation253_spill] sm:$0xff] %v32133_v62  ;;  %v26690_v60 = vpop.f32.mrb[185].mxu1  ;;  %v32149_v35 = vpop.permute.xlu0 %15653 }
 0x6db   :  { %36455 = vst [vmem:[#allocation34_spill] sm:$0xff] %v32149_v35  ;;  %v32151_v59 = vpop.permute.xlu1 %16028 }
 0x6dc   :  { %36456 = vst [vmem:[#allocation259_spill] sm:$0xff] %v32151_v59 }
 0x6dd   :  { %v32137_v15 = vpop.f32.mrb[186].mxu0 }
 0x6de   :  { %36449 = vst [vmem:[#allocation19_spill] sm:$0xff] %v32137_v15  ;;  %v32139_v21 = vpop.f32.mrb[186].mxu1  ;;  %v26695_v31 = vpop.f32.mrb[187].mxu0 }
 0x6df   :  { %36450 = vst [vmem:[#allocation255_spill] sm:$0xff] %v32139_v21  ;;  %v26700_v58 = vpop.f32.mrb[187].mxu1  ;;  %v32157_v25 = vpop.permute.xlu0 %15803 }
 0x6e0   :  { %36459 = vst [vmem:[#allocation24_spill] sm:$0xff] %v32157_v25  ;;  %v32159_v58 = vpop.permute.xlu1 %16178 }
 0x6e1   :  { %36460 = vst [vmem:[#allocation271_spill] sm:$0xff] %v32159_v58 }
 0x6e2   :  { %v32145_v27 = vpop.f32.mrb[188].mxu0 }
 0x6e3   :  { %36453 = vst [vmem:[#allocation30_spill] sm:$0xff] %v32145_v27  ;;  %v32147_v46 = vpop.f32.mrb[188].mxu1  ;;  %v26705_v7 = vpop.f32.mrb[189].mxu0  ;;  %v36461_v27 = vld [vmem:[#allocation126_spill] sm:$0xff] }
 0x6e4   :  { %36454 = vst [vmem:[#allocation269_spill] sm:$0xff] %v32147_v46  ;;  %v26710_v62 = vpop.f32.mrb[189].mxu1 }
 0x6e5   :  { %v36462_v62 = vld [vmem:[#allocation127_spill] sm:$0xff] }
 0x6e6   :  { %v32153_v60 = vpop.f32.mrb[190].mxu0 }
 0x6e7   :  { %36457 = vst [vmem:[#allocation270_spill] sm:$0xff] %v32153_v60  ;;  %v32155_v15 = vpop.f32.mrb[190].mxu1  ;;  %v26715_v31 = vpop.f32.mrb[191].mxu0  ;;  %v36464_v60 = vld [vmem:[#allocation130_spill] sm:$0xff] }
 0x6e8   :  { %36458 = vst [vmem:[#allocation261_spill] sm:$0xff] %v32155_v15  ;;  %v26720_v21 = vpop.f32.mrb[191].mxu1 }
 0x6e9   :  { %v36465_v21 = vld [vmem:[#allocation129_spill] sm:$0xff] }
 0x6ed   :  { %v11904_v36 = vpop.f32.mrb[192].mxu0 }
 0x6ee   :  { %v14326_v8 = vmul.f32 %v11904_v36, %v36461_v27  ;;  %v11982_v46 = vpop.f32.mrb[192].mxu1  ;;  %v26725_v7 = vpop.f32.mrb[193].mxu0 }
 0x6ef   :  { %v14327_v44 = vmul.f32 %v11982_v46, %v36462_v62  ;;  %v26730_v34 = vpop.f32.mrb[193].mxu1  ;;  %v32172_v36 = vpop.permute.xlu0 %15953  ;;  %v36467_v7 = vld [vmem:[#allocation132_spill] sm:$0xff]  ;;  %v36471_v62 = vld [vmem:[#allocation134_spill] sm:$0xff] }
 0x6f0   :  { %v32164_v20 = vadd.f32 %v14326_v8, %v36463_v55  ;;  %36466 = vst [vmem:[#allocation23_spill] sm:$0xff] %v32172_v36  ;;  %v32177_v8 = vpop.permute.xlu1 %16328 }
 0x6f1   :  { %v32167_v12 = vadd.f32 %v14327_v44, %v36464_v60  ;;  %v12060_v31 = vpop.f32.mrb[194].mxu0  ;;  %36468 = vst [vmem:[#allocation263_spill] sm:$0xff] %v32177_v8  ;;  %v36469_v44 = vld [vmem:[#allocation131_spill] sm:$0xff] }
 0x6f2   :  { %v14328_v15 = vmul.f32 %v12060_v31, %v36465_v21  ;;  %v12138_v0 = vpop.f32.mrb[194].mxu1  ;;  %v26735_v42 = vpop.f32.mrb[195].mxu0  ;;  %v14390_v33 = vsel %vm3604_vm2, %v32164_v20, -inf  ;;  %v36470_v31 = vld [vmem:[#allocation133_spill] sm:$0xff] }
 0x6f3   :  { %v14329_v27 = vmul.f32 %v12138_v0, %v36467_v7  ;;  %v26740_v46 = vpop.f32.mrb[195].mxu1  ;;  %v14393_v34 = vsel %vm3604_vm2, %v32167_v12, -inf  ;;  %14391 = vmax.xlane.f32.xlu0 %v14390_v33  ;;  %v32189_v45 = vpop.permute.xlu0 %16103 }
 0x6f4   :  { %v32180_v55 = vadd.f32 %v14328_v15, %v36469_v44  ;;  %14394 = vmax.xlane.f32.xlu1 %v14393_v34  ;;  %36473 = vst [vmem:[#allocation272_spill] sm:$0xff] %v32189_v45  ;;  %v32191_v15 = vpop.permute.xlu1 %16478  ;;  %v36475_v34 = vld [vmem:[#allocation135_spill] sm:$0xff] }
 0x6f5   :  { %v32183_v42 = vadd.f32 %v14329_v27, %v36470_v31  ;;  %36474 = vst [vmem:[#allocation38_spill] sm:$0xff] %v32191_v15  ;;  %v36476_v27 = vld [vmem:[#allocation137_spill] sm:$0xff] }
 0x6f6   :  { %v12216_v21 = vpop.f32.mrb[196].mxu0  ;;  %v14396_v60 = vsel %vm3604_vm2, %v32180_v55, -inf }
 0x6f7   :  { %v14330_v0 = vmul.f32 %v12216_v21, %v36471_v62  ;;  %v12294_v46 = vpop.f32.mrb[196].mxu1  ;;  %v26745_v7 = vpop.f32.mrb[197].mxu0  ;;  %14397 = vmax.xlane.f32.xlu0 %v14396_v60  ;;  %v14399_v56 = vsel %vm3604_vm2, %v32183_v42, -inf }
 0x6f8   :  { %v14331_v33 = vmul.f32 %v12294_v46, %v36472_v32  ;;  %v26750_v10 = vpop.f32.mrb[197].mxu1  ;;  %v36477_v7 = vld [vmem:[#allocation138_spill] sm:$0xff]  ;;  %v36478_v32 = vld [vmem:[#allocation140_spill] sm:$0xff] }
 0x6f9   :  { %v32194_v44 = vadd.f32 %v14330_v0, %v36475_v34  ;;  %v36479_v0 = vld [vmem:[#allocation139_spill] sm:$0xff] }
 0x6fa   :  { %v32197_v31 = vadd.f32 %v14331_v33, %v36476_v27  ;;  %v32210_v27 = vpop.permute.xlu0 %16253 }
 0x6fb   :  { %v12372_v21 = vpop.f32.mrb[198].mxu0  ;;  %14400 = vmax.xlane.f32.xlu0 %v14399_v56  ;;  %v14402_v33 = vsel %vm3604_vm2, %v32194_v44, -inf  ;;  %36480 = vst [vmem:[#allocation41_spill] sm:$0xff] %v32210_v27  ;;  %v36481_v56 = vld [vmem:[#allocation141_spill] sm:$0xff] }
 0x6fc   :  { %v14332_v60 = vmul.f32 %v12372_v21, %v36477_v7  ;;  %v12450_v62 = vpop.f32.mrb[198].mxu1  ;;  %v26755_v46 = vpop.f32.mrb[199].mxu0  ;;  %v14405_v10 = vsel %vm3604_vm2, %v32197_v31, -inf  ;;  %v36483_v7 = vld [vmem:[#allocation142_spill] sm:$0xff] }
 0x6fd   :  { %v14333_v40 = vmul.f32 %v12450_v62, %v36478_v32  ;;  %v26760_v28 = vpop.f32.mrb[199].mxu1  ;;  %14406 = vmax.xlane.f32.xlu1 %v14405_v10  ;;  %v32215_v21 = vpop.permute.xlu1 %16553  ;;  %v36484_v10 = vld [vmem:[#allocation144_spill] sm:$0xff] }
 0x6fe   :  { %v32206_v34 = vadd.f32 %v14332_v60, %v36479_v0  ;;  %36482 = vst [vmem:[#allocation28_spill] sm:$0xff] %v32215_v21 }
 0x6ff   :  { %v32213_v54 = vadd.f32 %v14333_v40, %v36481_v56  ;;  %14403 = vmax.xlane.f32.xlu0 %v14402_v33  ;;  %v36485_v40 = vld [vmem:[#allocation143_spill] sm:$0xff]  ;;  %v36486_v33 = vld [vmem:[#allocation145_spill] sm:$0xff] }
 0x700   :  { %v12528_v46 = vpop.f32.mrb[200].mxu0  ;;  %v14408_v38 = vsel %vm3604_vm2, %v32206_v34, -inf }
 0x701   :  { %v14334_v9 = vmul.f32 %v12528_v46, %v36483_v7  ;;  %v12606_v62 = vpop.f32.mrb[200].mxu1  ;;  %v26765_v28 = vpop.f32.mrb[201].mxu0  ;;  %v14411_v60 = vsel %vm3604_vm2, %v32213_v54, -inf  ;;  %v36488_v7 = vld [vmem:[#allocation146_spill] sm:$0xff] }
 0x702   :  { %v14335_v0 = vmul.f32 %v12606_v62, %v36484_v10  ;;  %v26770_v32 = vpop.f32.mrb[201].mxu1  ;;  %14412 = vmax.xlane.f32.xlu1 %v14411_v60  ;;  %v32229_v46 = vpop.permute.xlu0 %16403  ;;  %v36492_v10 = vld [vmem:[#allocation149_spill] sm:$0xff] }
 0x703   :  { %v32224_v56 = vadd.f32 %v14334_v9, %v36485_v40  ;;  %14409 = vmax.xlane.f32.xlu0 %v14408_v38  ;;  %36487 = vst [vmem:[#allocation27_spill] sm:$0xff] %v32229_v46  ;;  %v32236_v60 = vpop.permute.xlu1 %16628  ;;  %v36490_v9 = vld [vmem:[#allocation148_spill] sm:$0xff]  ;;  %v36493_v46 = vld [vmem:[#allocation150_spill] sm:$0xff] }
 0x704   :  { %v32227_v21 = vadd.f32 %v14335_v0, %v36486_v33  ;;  %36489 = vst [vmem:[#allocation44_spill] sm:$0xff] %v32236_v60  ;;  %v36491_v0 = vld [vmem:[#allocation147_spill] sm:$0xff] }
 0x705   :  { %v12684_v28 = vpop.f32.mrb[202].mxu0  ;;  %v14414_v62 = vsel %vm3604_vm2, %v32224_v56, -inf }
 0x706   :  { %v14336_v22 = vmul.f32 %v12684_v28, %v36488_v7  ;;  %v12762_v15 = vpop.f32.mrb[202].mxu1  ;;  %v26775_v8 = vpop.f32.mrb[203].mxu0  ;;  %v14417_v32 = vsel %vm3604_vm2, %v32227_v21, -inf }
 0x707   :  { %v14337_v38 = vmul.f32 %v12762_v15, %v36490_v9  ;;  %v26780_v40 = vpop.f32.mrb[203].mxu1  ;;  %14418 = vmax.xlane.f32.xlu1 %v14417_v32  ;;  %14415 = vmax.xlane.f32.xlu0 %v14414_v62  ;;  %v36495_v32 = vld [vmem:[#allocation152_spill] sm:$0xff]  ;;  %v36498_v9 = vld [vmem:[#allocation153_spill] sm:$0xff] }
 0x708   :  { %v32240_v33 = vadd.f32 %v14336_v22, %v36491_v0  ;;  %v32250_v40 = vpop.permute.xlu0 %16703  ;;  %v36497_v0 = vld [vmem:[#allocation151_spill] sm:$0xff] }
 0x709   :  { %v32243_v28 = vadd.f32 %v14337_v38, %v36492_v10  ;;  %36494 = vst [vmem:[#allocation47_spill] sm:$0xff] %v32250_v40  ;;  %v32253_v38 = vpop.permute.xlu1 %16778 }
 0x70a   :  { %v12840_v8 = vpop.f32.mrb[204].mxu0  ;;  %v14420_v7 = vsel %vm3604_vm2, %v32240_v33, -inf  ;;  %36496 = vst [vmem:[#allocation32_spill] sm:$0xff] %v32253_v38  ;;  %v36504_v38 = vld [vmem:[#allocation157_spill] sm:$0xff] }
 0x70b   :  { %v14338_v27 = vmul.f32 %v12840_v8, %v36493_v46  ;;  %v12918_v58 = vpop.f32.mrb[204].mxu1  ;;  %v26785_v45 = vpop.f32.mrb[205].mxu0  ;;  %v14423_v15 = vsel %vm3604_vm2, %v32243_v28, -inf  ;;  %14421 = vmax.xlane.f32.xlu0 %v14420_v7  ;;  %v36499_v46 = vld [vmem:[#allocation154_spill] sm:$0xff] }
 0x70c   :  { %v14339_v22 = vmul.f32 %v12918_v58, %v36495_v32  ;;  %v26790_v62 = vpop.f32.mrb[205].mxu1  ;;  %14424 = vmax.xlane.f32.xlu1 %v14423_v15  ;;  %v36500_v15 = vld [vmem:[#allocation156_spill] sm:$0xff] }
 0x70d   :  { %v32256_v10 = vadd.f32 %v14338_v27, %v36497_v0  ;;  %v32267_v27 = vpop.permute.xlu0 %16853 }
 0x70e   :  { %v32259_v60 = vadd.f32 %v14339_v22, %v36498_v9  ;;  %36501 = vst [vmem:[#allocation31_spill] sm:$0xff] %v32267_v27  ;;  %v36502_v22 = vld [vmem:[#allocation155_spill] sm:$0xff]  ;;  %v32272_v9 = vpop.permute.xlu1 %16928 }
 0x70f   :  { %v12996_v8 = vpop.f32.mrb[206].mxu0  ;;  %v14426_v45 = vsel %vm3604_vm2, %v32256_v10, -inf  ;;  %36503 = vst [vmem:[#allocation51_spill] sm:$0xff] %v32272_v9 }
 0x710   :  { %v14340_v7 = vmul.f32 %v12996_v8, %v36499_v46  ;;  %v13074_v36 = vpop.f32.mrb[206].mxu1  ;;  %v26795_v40 = vpop.f32.mrb[207].mxu0  ;;  %v14429_v58 = vsel %vm3604_vm2, %v32259_v60, -inf  ;;  %14427 = vmax.xlane.f32.xlu0 %v14426_v45  ;;  %v36505_v46 = vld [vmem:[#allocation158_spill] sm:$0xff] }
 0x711   :  { %v14341_v62 = vmul.f32 %v13074_v36, %v36500_v15  ;;  %v26800_v32 = vpop.f32.mrb[207].mxu1  ;;  %14430 = vmax.xlane.f32.xlu1 %v14429_v58  ;;  %v36506_v58 = vld [vmem:[#allocation160_spill] sm:$0xff]  ;;  %v36507_v15 = vld [vmem:[#allocation159_spill] sm:$0xff] }
 0x712   :  { %v32270_v0 = vadd.f32 %v14340_v7, %v36502_v22  ;;  %v32291_v16 = vpop.permute.xlu1 %17078 }
 0x713   :  { %v32275_v59 = vadd.f32 %v14341_v62, %v36504_v38  ;;  %v32286_v62 = vpop.permute.xlu0 %17003  ;;  %v36509_v38 = vld [vmem:[#allocation162_spill] sm:$0xff]  ;;  %36510 = vst [vmem:[#allocation36_spill] sm:$0xff] %v32291_v16 }
 0x714   :  { %v13152_v8 = vpop.f32.mrb[208].mxu0  ;;  %v14432_v40 = vsel %vm3604_vm2, %v32270_v0, -inf  ;;  %36508 = vst [vmem:[#allocation55_spill] sm:$0xff] %v32286_v62 }
 0x715   :  { %v14342_v45 = vmul.f32 %v13152_v8, %v36505_v46  ;;  %v13230_v25 = vpop.f32.mrb[208].mxu1  ;;  %v26805_v36 = vpop.f32.mrb[209].mxu0  ;;  %v14435_v32 = vsel %vm3604_vm2, %v32275_v59, -inf  ;;  %14433 = vmax.xlane.f32.xlu0 %v14432_v40  ;;  %v36511_v46 = vld [vmem:[#allocation163_spill] sm:$0xff] }
 0x716   :  { %v14343_v7 = vmul.f32 %v13230_v25, %v36506_v58  ;;  %v26810_v22 = vpop.f32.mrb[209].mxu1  ;;  %14436 = vmax.xlane.f32.xlu1 %v14435_v32  ;;  %v36514_v58 = vld [vmem:[#allocation168_spill] sm:$0xff] }
 0x717   :  { %v32284_v9 = vadd.f32 %v14342_v45, %v36507_v15  ;;  %v36512_v45 = vld [vmem:[#allocation165_spill] sm:$0xff]  ;;  %v32305_v62 = vpop.permute.xlu0 %17153 }
 0x718   :  { %v32289_v27 = vadd.f32 %v14343_v7, %v36509_v38  ;;  %v36513_v7 = vld [vmem:[#allocation164_spill] sm:$0xff]  ;;  %36515 = vst [vmem:[#allocation35_spill] sm:$0xff] %v32305_v62 }
 0x719   :  { %v13308_v8 = vpop.f32.mrb[210].mxu0  ;;  %v14438_v36 = vsel %vm3604_vm2, %v32284_v9, -inf }
 0x71a   :  { %v14344_v40 = vmul.f32 %v13308_v8, %v36511_v46  ;;  %v13386_v35 = vpop.f32.mrb[210].mxu1  ;;  %v26815_v25 = vpop.f32.mrb[211].mxu0  ;;  %v14441_v22 = vsel %vm3604_vm2, %v32289_v27, -inf  ;;  %14439 = vmax.xlane.f32.xlu0 %v14438_v36 }
 0x71b   :  { %v14345_v32 = vmul.f32 %v13386_v35, %v36512_v45  ;;  %v26820_v15 = vpop.f32.mrb[211].mxu1  ;;  %14442 = vmax.xlane.f32.xlu1 %v14441_v22  ;;  %v36516_v25 = vld [vmem:[#allocation169_spill] sm:$0xff]  ;;  %v36520_v45 = vld [vmem:[#allocation174_spill] sm:$0xff] }
 0x71c   :  { %v32300_v38 = vadd.f32 %v14344_v40, %v36513_v7  ;;  %v32312_v15 = vpop.permute.xlu1 %17228  ;;  %v36518_v40 = vld [vmem:[#allocation173_spill] sm:$0xff]  ;;  %v36519_v7 = vld [vmem:[#allocation171_spill] sm:$0xff] }
 0x71d   :  { %v32303_v16 = vadd.f32 %v14345_v32, %v36514_v58  ;;  %36517 = vst [vmem:[#allocation276_spill] sm:$0xff] %v32312_v15 }
 0x71e   :  { %v13464_v13 = vpop.f32.mrb[212].mxu0  ;;  %v14444_v8 = vsel %vm3604_vm2, %v32300_v38, -inf }
 0x71f   :  { %v14346_v46 = vmul.f32 %v13464_v13, %v36516_v25  ;;  %v13542_v23 = vpop.f32.mrb[212].mxu1  ;;  %v26825_v36 = vpop.f32.mrb[213].mxu0  ;;  %v14447_v35 = vsel %vm3604_vm2, %v32303_v16, -inf  ;;  %14445 = vmax.xlane.f32.xlu0 %v14444_v8 }
 0x720   :  { %v14347_v22 = vmul.f32 %v13542_v23, %v36518_v40  ;;  %v26830_v32 = vpop.f32.mrb[213].mxu1  ;;  %14448 = vmax.xlane.f32.xlu1 %v14447_v35  ;;  %v36521_v36 = vld [vmem:[#allocation176_spill] sm:$0xff]  ;;  %v36522_v23 = vld [vmem:[#allocation179_spill] sm:$0xff]  ;;  %v36526_v40 = vld [vmem:[#allocation181_spill] sm:$0xff] }
 0x721   :  { %v32316_v58 = vadd.f32 %v14346_v46, %v36519_v7  ;;  %v32327_v46 = vpop.permute.xlu0 %17305  ;;  %v36525_v7 = vld [vmem:[#allocation178_spill] sm:$0xff] }
 0x722   :  { %v32319_v62 = vadd.f32 %v14347_v22, %v36520_v45  ;;  %36523 = vst [vmem:[#allocation277_spill] sm:$0xff] %v32327_v46  ;;  %v32329_v22 = vpop.permute.xlu1 %17383 }
 0x723   :  { %v13620_v3 = vpop.f32.mrb[214].mxu0  ;;  %v14450_v13 = vsel %vm3604_vm2, %v32316_v58, -inf  ;;  %36524 = vst [vmem:[#allocation278_spill] sm:$0xff] %v32329_v22  ;;  %v36532_v22 = vld [vmem:[#allocation188_spill] sm:$0xff] }
 0x724   :  { %v14348_v25 = vmul.f32 %v13620_v3, %v36521_v36  ;;  %v13698_v19 = vpop.f32.mrb[214].mxu1  ;;  %v26835_v8 = vpop.f32.mrb[215].mxu0  ;;  %v14453_v15 = vsel %vm3604_vm2, %v32319_v62, -inf  ;;  %14451 = vmax.xlane.f32.xlu0 %v14450_v13  ;;  %v36527_v36 = vld [vmem:[#allocation182_spill] sm:$0xff] }
 0x725   :  { %v14349_v35 = vmul.f32 %v13698_v19, %v36522_v23  ;;  %v26840_v32 = vpop.f32.mrb[215].mxu1  ;;  %14454 = vmax.xlane.f32.xlu1 %v14453_v15 }
 0x726   :  { %v32332_v45 = vadd.f32 %v14348_v25, %v36525_v7  ;;  %v36528_v32 = vld [vmem:[#allocation186_spill] sm:$0xff]  ;;  %v36529_v25 = vld [vmem:[#allocation184_spill] sm:$0xff] }
 0x727   :  { %v32335_v41 = vadd.f32 %v14349_v35, %v36526_v40  ;;  %v32346_v35 = vpop.permute.xlu0 %17303  ;;  %v32348_v40 = vpop.permute.xlu1 %17381 }
 0x728   :  { %v13776_v3 = vpop.f32.mrb[216].mxu0  ;;  %v14456_v8 = vsel %vm3604_vm2, %v32332_v45, -inf  ;;  %36530 = vst [vmem:[#allocation279_spill] sm:$0xff] %v32346_v35  ;;  %36531 = vst [vmem:[#allocation280_spill] sm:$0xff] %v32348_v40 }
 0x729   :  { %v14350_v13 = vmul.f32 %v13776_v3, %v36527_v36  ;;  %v13854_v30 = vpop.f32.mrb[216].mxu1  ;;  %v26845_v19 = vpop.f32.mrb[217].mxu0  ;;  %v14459_v15 = vsel %vm3604_vm2, %v32335_v41, -inf  ;;  %14457 = vmax.xlane.f32.xlu0 %v14456_v8  ;;  %v36533_v8 = vld [vmem:[#allocation189_spill] sm:$0xff] }
 0x72a   :  { %v14351_v23 = vmul.f32 %v13854_v30, %v36528_v32  ;;  %v26850_v46 = vpop.f32.mrb[217].mxu1  ;;  %14460 = vmax.xlane.f32.xlu1 %v14459_v15  ;;  %v36534_v30 = vld [vmem:[#allocation192_spill] sm:$0xff] }
 0x72b   :  { %v32344_v7 = vadd.f32 %v14350_v13, %v36529_v25  ;;  %v36535_v25 = vld [vmem:[#allocation191_spill] sm:$0xff] }
 0x72c   :  { %v32351_v50 = vadd.f32 %v14351_v23, %v36532_v22  ;;  %v36536_v23 = vld [vmem:[#allocation194_spill] sm:$0xff] }
 0x72d   :  { %v13932_v3 = vpop.f32.mrb[218].mxu0  ;;  %v14010_v19 = vpop.f32.mrb[218].mxu1  ;;  %v14462_v36 = vsel %vm3604_vm2, %v32344_v7, -inf }
 0x72e   :  { %v14352_v18 = vmul.f32 %v13932_v3, %v36533_v8  ;;  %v14353_v46 = vmul.f32 %v14010_v19, %v36534_v30  ;;  %v26855_v15 = vpop.f32.mrb[219].mxu0  ;;  %v26860_v32 = vpop.f32.mrb[219].mxu1  ;;  %v14465_v13 = vsel %vm3604_vm2, %v32351_v50, -inf  ;;  %14463 = vmax.xlane.f32.xlu0 %v14462_v36  ;;  %v36538_v3 = vld [vmem:[#allocation199_spill] sm:$0xff] }
 0x72f   :  { %14466 = vmax.xlane.f32.xlu1 %v14465_v13  ;;  %v36541_v13 = vld [vmem:[#allocation198_spill] sm:$0xff] }
 0x730   :  { %v32360_v35 = vadd.f32 %v14352_v18, %v36535_v25  ;;  %v32363_v22 = vadd.f32 %v14353_v46, %v36536_v23  ;;  %v32371_v18 = vpop.permute.xlu0 %17461  ;;  %v32373_v46 = vpop.permute.xlu1 %17539  ;;  %v36544_v23 = vld [vmem:[#allocation216_spill] sm:$0xff] }
 0x731   :  { %v14088_v40 = vpop.f32.mrb[220].mxu0  ;;  %v14166_v2 = vpop.f32.mrb[220].mxu1  ;;  %36539 = vst [vmem:[#allocation281_spill] sm:$0xff] %v32371_v18  ;;  %36540 = vst [vmem:[#allocation282_spill] sm:$0xff] %v32373_v46 }
 0x732   :  { %v14354_v29 = vmul.f32 %v14088_v40, %v36537_v51  ;;  %v14355_v8 = vmul.f32 %v14166_v2, %v36538_v3  ;;  %v26865_v19 = vpop.f32.mrb[221].mxu0  ;;  %v26870_v15 = vpop.f32.mrb[221].mxu1  ;;  %v14471_v32 = vsel %vm3604_vm2, %v32363_v22, -inf  ;;  %v14468_v36 = vsel %vm3604_vm2, %v32360_v35, -inf  ;;  %v36542_v40 = vld [vmem:[#allocation201_spill] sm:$0xff] }
 0x733   :  { %14472 = vmax.xlane.f32.xlu1 %v14471_v32  ;;  %14469 = vmax.xlane.f32.xlu0 %v14468_v36  ;;  %v36543_v15 = vld [vmem:[#allocation203_spill] sm:$0xff] }
 0x734   :  { %v32376_v25 = vadd.f32 %v14354_v29, %v36541_v13  ;;  %v32379_v51 = vadd.f32 %v14355_v8, %v36542_v40  ;;  %v36545_v29 = vld [vmem:[#allocation204_spill] sm:$0xff]  ;;  %v36546_v8 = vld [vmem:[#allocation217_spill] sm:$0xff]  ;;  %v32393_v18 = vpop.permute.xlu0 %17459 }
 0x735   :  { %v14244_v2 = vpop.f32.mrb[222].mxu0  ;;  %v14322_v19 = vpop.f32.mrb[222].mxu1  ;;  %36547 = vst [vmem:[#allocation283_spill] sm:$0xff] %v32393_v18 }
 0x736   :  { %v14356_v3 = vmul.f32 %v14244_v2, %v36543_v15  ;;  %v14357_v30 = vmul.f32 %v14322_v19, %v36544_v23  ;;  %v26875_v17 = vpop.f32.mrb[223].mxu0  ;;  %v26880_v24 = vpop.f32.mrb[223].mxu1  ;;  %v14477_v32 = vsel %vm3604_vm2, %v32379_v51, -inf  ;;  %v14474_v36 = vsel %vm3604_vm2, %v32376_v25, -inf }
 0x737   :  { %14478 = vmax.xlane.f32.xlu1 %v14477_v32  ;;  %14475 = vmax.xlane.f32.xlu0 %v14474_v36  ;;  %v32399_v2 = vpop.permute.xlu1 %17537 }
 0x738   :  { %v32388_v13 = vadd.f32 %v14356_v3, %v36545_v29  ;;  %v32391_v40 = vadd.f32 %v14357_v30, %v36546_v8  ;;  %36548 = vst [vmem:[#allocation284_spill] sm:$0xff] %v32399_v2  ;;  %v32401_v19 = vpop.permute.xlu0 %17617 }
 0x739   :  { %36549 = vst [vmem:[#allocation285_spill] sm:$0xff] %v32401_v19 }
 0x73a   :  { %v14483_v17 = vsel %vm3604_vm2, %v32391_v40, -inf  ;;  %v14480_v24 = vsel %vm3604_vm2, %v32388_v13, -inf }
 0x73b   :  { %14484 = vmax.xlane.f32.xlu1 %v14483_v17  ;;  %14481 = vmax.xlane.f32.xlu0 %v14480_v24  ;;  %v32403_v32 = vpop.permute.xlu1 %17695 }
 0x73c   :  { %36550 = vst [vmem:[#allocation286_spill] sm:$0xff] %v32403_v32  ;;  %v32405_v3 = vpop.permute.xlu0 %17615 }
 0x73d   :  { %36551 = vst [vmem:[#allocation287_spill] sm:$0xff] %v32405_v3 }
 0x73f   :  { %v32407_v30 = vpop.permute.xlu1 %17693 }
 0x740   :  { %36552 = vst [vmem:[#allocation288_spill] sm:$0xff] %v32407_v30  ;;  %v32409_v36 = vpop.permute.xlu0 %17773 }
 0x741   :  { %36553 = vst [vmem:[#allocation289_spill] sm:$0xff] %v32409_v36 }
 0x743   :  { %v32411_v29 = vpop.permute.xlu1 %17851 }
 0x744   :  { %36554 = vst [vmem:[#allocation290_spill] sm:$0xff] %v32411_v29  ;;  %v32413_v8 = vpop.permute.xlu0 %17771 }
 0x745   :  { %36555 = vst [vmem:[#allocation291_spill] sm:$0xff] %v32413_v8 }
 0x747   :  { %v32415_v15 = vpop.permute.xlu1 %17849 }
 0x748   :  { %36556 = vst [vmem:[#allocation292_spill] sm:$0xff] %v32415_v15  ;;  %v32417_v23 = vpop.permute.xlu0 %17929 }
 0x749   :  { %36557 = vst [vmem:[#allocation293_spill] sm:$0xff] %v32417_v23 }
 0x74b   :  { %v32419_v17 = vpop.permute.xlu1 %18007 }
 0x74c   :  { %36558 = vst [vmem:[#allocation294_spill] sm:$0xff] %v32419_v17  ;;  %v32421_v24 = vpop.permute.xlu0 %17927 }
 0x74d   :  { %36559 = vst [vmem:[#allocation295_spill] sm:$0xff] %v32421_v24 }
 0x74f   :  { %v32423_v19 = vpop.permute.xlu1 %18005 }
 0x750   :  { %36560 = vst [vmem:[#allocation296_spill] sm:$0xff] %v32423_v19  ;;  %v32425_v32 = vpop.permute.xlu0 %18085 }
 0x751   :  { %36561 = vst [vmem:[#allocation297_spill] sm:$0xff] %v32425_v32 }
 0x753   :  { %v32427_v3 = vpop.permute.xlu1 %18163 }
 0x754   :  { %36562 = vst [vmem:[#allocation298_spill] sm:$0xff] %v32427_v3  ;;  %v32429_v30 = vpop.permute.xlu0 %18083 }
 0x755   :  { %36563 = vst [vmem:[#allocation299_spill] sm:$0xff] %v32429_v30 }
 0x757   :  { %v32431_v36 = vpop.permute.xlu1 %18161 }
 0x758   :  { %36564 = vst [vmem:[#allocation300_spill] sm:$0xff] %v32431_v36  ;;  %v32433_v29 = vpop.permute.xlu0 %18241 }
 0x759   :  { %36565 = vst [vmem:[#allocation301_spill] sm:$0xff] %v32433_v29 }
 0x75b   :  { %v32435_v8 = vpop.permute.xlu1 %18319 }
 0x75c   :  { %36566 = vst [vmem:[#allocation302_spill] sm:$0xff] %v32435_v8  ;;  %v32437_v15 = vpop.permute.xlu0 %18239 }
 0x75d   :  { %36567 = vst [vmem:[#allocation303_spill] sm:$0xff] %v32437_v15 }
 0x75f   :  { %v32439_v23 = vpop.permute.xlu1 %18317 }
 0x760   :  { %36568 = vst [vmem:[#allocation304_spill] sm:$0xff] %v32439_v23  ;;  %v32441_v17 = vpop.permute.xlu0 %18397 }
 0x761   :  { %36569 = vst [vmem:[#allocation305_spill] sm:$0xff] %v32441_v17 }
 0x763   :  { %v32443_v24 = vpop.permute.xlu1 %18475 }
 0x764   :  { %36570 = vst [vmem:[#allocation306_spill] sm:$0xff] %v32443_v24 }
 0x780   :  { %v14392_v19 = vpop.xlane.xlu0 %14391 }
 0x781   :  { %v14395_v32 = vpop.xlane.xlu1 %14394  ;;  %v14486_v3 = vsub.f32 %v32164_v20, %v14392_v19 }
 0x782   :  { %v14487_v30 = vsub.f32 %v32167_v12, %v14395_v32 }
 0x783   :  { %v14518_v18 = vmul.f32 1.442695, %v14486_v3 }
 0x784   :  { %v14520_v36 = vmul.f32 1.442695, %v14487_v30  ;;  %v14398_v2 = vpop.xlane.xlu0 %14397 }
 0x785   :  { %27994 = vpow2.f32 %v14518_v18  ;;  %v14488_v29 = vsub.f32 %v32180_v55, %v14398_v2 }
 0x786   :  { %27996 = vpow2.f32 %v14520_v36 }
 0x787   :  { %v14522_v15 = vmul.f32 1.442695, %v14488_v29 }
 0x788   :  { %v14401_v8 = vpop.xlane.xlu0 %14400 }
 0x789   :  { %27998 = vpow2.f32 %v14522_v15  ;;  %v14489_v17 = vsub.f32 %v32183_v42, %v14401_v8 }
 0x78a   :  { %v14407_v23 = vpop.xlane.xlu1 %14406 }
 0x78b   :  { %v14491_v24 = vsub.f32 %v32197_v31, %v14407_v23  ;;  %v14524_v46 = vmul.f32 1.442695, %v14489_v17 }
 0x78c   :  { %v14404_v6 = vpop.xlane.xlu0 %14403 }
 0x78d   :  { %v14528_v20 = vmul.f32 1.442695, %v14491_v24  ;;  %28000 = vpow2.f32 %v14524_v46  ;;  %v14490_v12 = vsub.f32 %v32194_v44, %v14404_v6 }
 0x78f   :  { %v32451_v19 = vpop.eup %27994  ;;  %28002 = vpow2.f32 %v14528_v20  ;;  %v14413_v18 = vpop.xlane.xlu1 %14412  ;;  %v14526_v55 = vmul.f32 1.442695, %v14490_v12 }
 0x790   :  { %v32453_v2 = vpop.eup %27996  ;;  %v14493_v15 = vsub.f32 %v32213_v54, %v14413_v18  ;;  %v14410_v29 = vpop.xlane.xlu0 %14409  ;;  %v14582_v42 = vsel %vm3604_vm2, %v32451_v19, 0.0 }
 0x791   :  { %28004 = vpow2.f32 %v14526_v55  ;;  %v14492_v31 = vsub.f32 %v32206_v34, %v14410_v29  ;;  %v14585_v23 = vsel %vm3604_vm2, %v32453_v2, 0.0  ;;  %14583 = vadd.xlane.f32.xlu0 %v14582_v42 }
 0x792   :  { %v14532_v6 = vmul.f32 1.442695, %v14493_v15  ;;  %14586 = vadd.xlane.f32.xlu1 %v14585_v23 }
 0x793   :  { %v32461_v44 = vpop.eup %27998  ;;  %v14530_v46 = vmul.f32 1.442695, %v14492_v31 }
 0x794   :  { %28006 = vpow2.f32 %v14532_v6  ;;  %v14419_v8 = vpop.xlane.xlu1 %14418  ;;  %v14416_v32 = vpop.xlane.xlu0 %14415  ;;  %v14588_v54 = vsel %vm3604_vm2, %v32461_v44, 0.0 }
 0x795   :  { %v14495_v3 = vsub.f32 %v32227_v21, %v14419_v8  ;;  %28008 = vpow2.f32 %v14530_v46  ;;  %v14494_v34 = vsub.f32 %v32224_v56, %v14416_v32  ;;  %14589 = vadd.xlane.f32.xlu0 %v14588_v54 }
 0x797   :  { %v32467_v30 = vpop.eup %28000  ;;  %v14536_v36 = vmul.f32 1.442695, %v14495_v3  ;;  %v14534_v17 = vmul.f32 1.442695, %v14494_v34 }
 0x798   :  { %v14422_v24 = vpop.xlane.xlu0 %14421  ;;  %v14591_v20 = vsel %vm3604_vm2, %v32467_v30, 0.0 }
 0x799   :  { %v32471_v12 = vpop.eup %28002  ;;  %28010 = vpow2.f32 %v14536_v36  ;;  %v14425_v18 = vpop.xlane.xlu1 %14424  ;;  %v14496_v55 = vsub.f32 %v32240_v33, %v14422_v24  ;;  %14592 = vadd.xlane.f32.xlu1 %v14591_v20 }
 0x79a   :  { %v14497_v21 = vsub.f32 %v32243_v28, %v14425_v18  ;;  %28012 = vpow2.f32 %v14534_v17  ;;  %v14597_v42 = vsel %vm3604_vm2, %v32471_v12, 0.0 }
 0x79b   :  { %v32475_v56 = vpop.eup %28004  ;;  %v14538_v15 = vmul.f32 1.442695, %v14496_v55 }
 0x79c   :  { %v14540_v29 = vmul.f32 1.442695, %v14497_v21  ;;  %v14594_v31 = vsel %vm3604_vm2, %v32475_v56, 0.0 }
 0x79d   :  { %28014 = vpow2.f32 %v14538_v15  ;;  %v14428_v23 = vpop.xlane.xlu0 %14427  ;;  %14598 = vadd.xlane.f32.xlu1 %v14597_v42  ;;  %14595 = vadd.xlane.f32.xlu0 %v14594_v31 }
 0x79e   :  { %v32481_v6 = vpop.eup %28006  ;;  %28016 = vpow2.f32 %v14540_v29  ;;  %v14431_v33 = vpop.xlane.xlu1 %14430  ;;  %v14498_v28 = vsub.f32 %v32256_v10, %v14428_v23 }
 0x79f   :  { %v32484_v46 = vpop.eup %28008  ;;  %v14499_v8 = vsub.f32 %v32259_v60, %v14431_v33  ;;  %v14603_v54 = vsel %vm3604_vm2, %v32481_v6, 0.0 }
 0x7a0   :  { %v14542_v32 = vmul.f32 1.442695, %v14498_v28  ;;  %v14600_v3 = vsel %vm3604_vm2, %v32484_v46, 0.0 }
 0x7a1   :  { %v14544_v34 = vmul.f32 1.442695, %v14499_v8  ;;  %14604 = vadd.xlane.f32.xlu1 %v14603_v54  ;;  %14601 = vadd.xlane.f32.xlu0 %v14600_v3 }
 0x7a2   :  { %28018 = vpow2.f32 %v14542_v32  ;;  %v14434_v36 = vpop.xlane.xlu0 %14433 }
 0x7a3   :  { %v32491_v17 = vpop.eup %28010  ;;  %28020 = vpow2.f32 %v14544_v34  ;;  %v14437_v10 = vpop.xlane.xlu1 %14436  ;;  %v14500_v24 = vsub.f32 %v32270_v0, %v14434_v36 }
 0x7a4   :  { %v32494_v20 = vpop.eup %28012  ;;  %v14501_v60 = vsub.f32 %v32275_v59, %v14437_v10  ;;  %v14609_v18 = vsel %vm3604_vm2, %v32491_v17, 0.0 }
 0x7a5   :  { %v14546_v55 = vmul.f32 1.442695, %v14500_v24  ;;  %14610 = vadd.xlane.f32.xlu1 %v14609_v18  ;;  %v14606_v21 = vsel %vm3604_vm2, %v32494_v20, 0.0 }
 0x7a6   :  { %v14548_v15 = vmul.f32 1.442695, %v14501_v60  ;;  %14607 = vadd.xlane.f32.xlu0 %v14606_v21 }
 0x7a7   :  { %v32501_v29 = vpop.eup %28014  ;;  %28022 = vpow2.f32 %v14546_v55  ;;  %v14440_v42 = vpop.xlane.xlu0 %14439 }
 0x7a8   :  { %v32503_v31 = vpop.eup %28016  ;;  %28024 = vpow2.f32 %v14548_v15  ;;  %v14443_v0 = vpop.xlane.xlu1 %14442  ;;  %v14502_v59 = vsub.f32 %v32284_v9, %v14440_v42  ;;  %v14612_v23 = vsel %vm3604_vm2, %v32501_v29, 0.0 }
 0x7a9   :  { %v14503_v33 = vsub.f32 %v32289_v27, %v14443_v0  ;;  %v14615_v28 = vsel %vm3604_vm2, %v32503_v31, 0.0 }
 0x7aa   :  { %v14550_v8 = vmul.f32 1.442695, %v14502_v59  ;;  %14616 = vadd.xlane.f32.xlu1 %v14615_v28  ;;  %14613 = vadd.xlane.f32.xlu0 %v14612_v23 }
 0x7ab   :  { %v14552_v32 = vmul.f32 1.442695, %v14503_v33 }
 0x7ac   :  { %v32511_v54 = vpop.eup %28018  ;;  %28026 = vpow2.f32 %v14550_v8  ;;  %v14446_v3 = vpop.xlane.xlu0 %14445 }
 0x7ad   :  { %v32513_v34 = vpop.eup %28020  ;;  %28028 = vpow2.f32 %v14552_v32  ;;  %v14449_v9 = vpop.xlane.xlu1 %14448  ;;  %v14504_v36 = vsub.f32 %v32300_v38, %v14446_v3  ;;  %v14618_v27 = vsel %vm3604_vm2, %v32511_v54, 0.0 }
 0x7ae   :  { %v14505_v10 = vsub.f32 %v32303_v16, %v14449_v9  ;;  %v14621_v24 = vsel %vm3604_vm2, %v32513_v34, 0.0  ;;  %14619 = vadd.xlane.f32.xlu0 %v14618_v27 }
 0x7af   :  { %v14554_v60 = vmul.f32 1.442695, %v14504_v36  ;;  %14622 = vadd.xlane.f32.xlu1 %v14621_v24 }
 0x7b0   :  { %v14556_v18 = vmul.f32 1.442695, %v14505_v10 }
 0x7b1   :  { %v32521_v55 = vpop.eup %28022  ;;  %28030 = vpow2.f32 %v14554_v60  ;;  %v14452_v21 = vpop.xlane.xlu0 %14451 }
 0x7b2   :  { %v32523_v15 = vpop.eup %28024  ;;  %28032 = vpow2.f32 %v14556_v18  ;;  %v14455_v38 = vpop.xlane.xlu1 %14454  ;;  %v14506_v42 = vsub.f32 %v32316_v58, %v14452_v21  ;;  %v14624_v16 = vsel %vm3604_vm2, %v32521_v55, 0.0 }
 0x7b3   :  { %v14507_v0 = vsub.f32 %v32319_v62, %v14455_v38  ;;  %14625 = vadd.xlane.f32.xlu1 %v14624_v16  ;;  %v14627_v59 = vsel %vm3604_vm2, %v32523_v15, 0.0 }
 0x7b4   :  { %v14558_v23 = vmul.f32 1.442695, %v14506_v42  ;;  %14628 = vadd.xlane.f32.xlu0 %v14627_v59 }
 0x7b5   :  { %v14560_v33 = vmul.f32 1.442695, %v14507_v0 }
 0x7b6   :  { %v32531_v28 = vpop.eup %28026  ;;  %28034 = vpow2.f32 %v14558_v23  ;;  %v14458_v8 = vpop.xlane.xlu0 %14457 }
 0x7b7   :  { %v32533_v32 = vpop.eup %28028  ;;  %28036 = vpow2.f32 %v14560_v33  ;;  %v14461_v58 = vpop.xlane.xlu1 %14460  ;;  %v14508_v3 = vsub.f32 %v32332_v45, %v14458_v8  ;;  %v14630_v62 = vsel %vm3604_vm2, %v32531_v28, 0.0 }
 0x7b8   :  { %v14509_v9 = vsub.f32 %v32335_v41, %v14461_v58  ;;  %14631 = vadd.xlane.f32.xlu1 %v14630_v62  ;;  %v14633_v36 = vsel %vm3604_vm2, %v32533_v32, 0.0 }
 0x7b9   :  { %v14562_v27 = vmul.f32 1.442695, %v14508_v3  ;;  %14634 = vadd.xlane.f32.xlu0 %v14633_v36 }
 0x7ba   :  { %v14564_v10 = vmul.f32 1.442695, %v14509_v9 }
 0x7bb   :  { %v32541_v24 = vpop.eup %28030  ;;  %28038 = vpow2.f32 %v14562_v27  ;;  %v14464_v60 = vpop.xlane.xlu0 %14463 }
 0x7bc   :  { %v32543_v18 = vpop.eup %28032  ;;  %28040 = vpow2.f32 %v14564_v10  ;;  %v14467_v45 = vpop.xlane.xlu1 %14466  ;;  %v14510_v21 = vsub.f32 %v32344_v7, %v14464_v60  ;;  %v14636_v41 = vsel %vm3604_vm2, %v32541_v24, 0.0 }
 0x7bd   :  { %v14511_v38 = vsub.f32 %v32351_v50, %v14467_v45  ;;  %14637 = vadd.xlane.f32.xlu1 %v14636_v41  ;;  %v14639_v42 = vsel %vm3604_vm2, %v32543_v18, 0.0 }
 0x7be   :  { %v14566_v16 = vmul.f32 1.442695, %v14510_v21  ;;  %14640 = vadd.xlane.f32.xlu0 %v14639_v42 }
 0x7bf   :  { %v14568_v0 = vmul.f32 1.442695, %v14511_v38 }
 0x7c0   :  { %v32551_v59 = vpop.eup %28034  ;;  %v14473_v23 = vpop.xlane.xlu1 %14472  ;;  %28042 = vpow2.f32 %v14566_v16 }
 0x7c1   :  { %v14470_v33 = vpop.xlane.xlu0 %14469  ;;  %v32553_v8 = vpop.eup %28036  ;;  %28044 = vpow2.f32 %v14568_v0  ;;  %v14513_v7 = vsub.f32 %v32363_v22, %v14473_v23  ;;  %v14642_v50 = vsel %vm3604_vm2, %v32551_v59, 0.0 }
 0x7c2   :  { %v14512_v58 = vsub.f32 %v32360_v35, %v14470_v33  ;;  %14643 = vadd.xlane.f32.xlu1 %v14642_v50  ;;  %v14645_v3 = vsel %vm3604_vm2, %v32553_v8, 0.0 }
 0x7c3   :  { %v14572_v62 = vmul.f32 1.442695, %v14513_v7  ;;  %14646 = vadd.xlane.f32.xlu0 %v14645_v3 }
 0x7c4   :  { %v14570_v9 = vmul.f32 1.442695, %v14512_v58  ;;  %v14479_v36 = vpop.xlane.xlu1 %14478 }
 0x7c5   :  { %v14476_v27 = vpop.xlane.xlu0 %14475  ;;  %v32561_v10 = vpop.eup %28038  ;;  %28046 = vpow2.f32 %v14572_v62  ;;  %v14515_v60 = vsub.f32 %v32379_v51, %v14479_v36 }
 0x7c6   :  { %v14514_v22 = vsub.f32 %v32376_v25, %v14476_v27  ;;  %v32565_v35 = vpop.eup %28040  ;;  %28048 = vpow2.f32 %v14570_v9  ;;  %v14648_v45 = vsel %vm3604_vm2, %v32561_v10, 0.0 }
 0x7c7   :  { %v14576_v21 = vmul.f32 1.442695, %v14515_v60  ;;  %14649 = vadd.xlane.f32.xlu1 %v14648_v45  ;;  %v14651_v38 = vsel %vm3604_vm2, %v32565_v35, 0.0 }
 0x7c8   :  { %v14574_v41 = vmul.f32 1.442695, %v14514_v22  ;;  %14652 = vadd.xlane.f32.xlu0 %v14651_v38  ;;  %v14485_v9 = vpop.xlane.xlu1 %14484 }
 0x7c9   :  { %28050 = vpow2.f32 %v14576_v21  ;;  %v14482_v36 = vpop.xlane.xlu0 %14481  ;;  %v14517_v27 = vsub.f32 %v32391_v40, %v14485_v9  ;;  %v36574_v9 = vld [vmem:[#allocation91_spill] sm:$0xff] }
 0x7ca   :  { %v32571_v42 = vpop.eup %28042  ;;  %28052 = vpow2.f32 %v14574_v41  ;;  %v14516_v60 = vsub.f32 %v32388_v13, %v14482_v36  ;;  %v36575_v36 = vld [vmem:[#allocation49_spill] sm:$0xff] }
 0x7cb   :  { %v32573_v51 = vpop.eup %28044  ;;  %v14654_v25 = vsel %vm3604_vm2, %v32571_v42, 0.0  ;;  %v14580_v22 = vmul.f32 1.442695, %v14517_v27 }
 0x7cc   :  { %14655 = vadd.xlane.f32.xlu1 %v14654_v25  ;;  %v14657_v16 = vsel %vm3604_vm2, %v32573_v51, 0.0  ;;  %v14578_v45 = vmul.f32 1.442695, %v14516_v60  ;;  %v36576_v60 = vld [vmem:[#allocation264_spill] sm:$0xff] }
 0x7cd   :  { %14658 = vadd.xlane.f32.xlu0 %v14657_v16  ;;  %28054 = vpow2.f32 %v14580_v22 }
 0x7ce   :  { %28056 = vpow2.f32 %v14578_v45 }
 0x7cf   :  { %v32579_v0 = vpop.eup %28046 }
 0x7d0   :  { %v32581_v23 = vpop.eup %28048  ;;  %v14663_v33 = vsel %vm3604_vm2, %v32579_v0, 0.0 }
 0x7d1   :  { %v14660_v7 = vsel %vm3604_vm2, %v32581_v23, 0.0  ;;  %14664 = vadd.xlane.f32.xlu0 %v14663_v33 }
 0x7d2   :  { %14661 = vadd.xlane.f32.xlu1 %v14660_v7 }
 0x7d3   :  { %v32587_v58 = vpop.eup %28050 }
 0x7d4   :  { %v32589_v50 = vpop.eup %28052  ;;  %v14669_v3 = vsel %vm3604_vm2, %v32587_v58, 0.0 }
 0x7d5   :  { %v14666_v62 = vsel %vm3604_vm2, %v32589_v50, 0.0  ;;  %14670 = vadd.xlane.f32.xlu0 %v14669_v3 }
 0x7d6   :  { %14667 = vadd.xlane.f32.xlu1 %v14666_v62 }
 0x7d7   :  { %v32601_v21 = vpop.eup %28054 }
 0x7d8   :  { %v32603_v41 = vpop.eup %28056 }
 0x7e7   :  { %18473 = vrot.lane.b32.xlu1 %v29203_v1, %s28342_s4  ;;  %v14675_v1 = vsel %vm3604_vm2, %v32601_v21, 0.0 }
 0x7eb   :  { %18395 = vrot.lane.b32.xlu0 %v29186_v61, %s28342_s4  ;;  %v14672_v61 = vsel %vm3604_vm2, %v32603_v41, 0.0 }
 0x80a   :  { %14676 = vadd.xlane.f32.xlu0 %v14675_v1 }
 0x80b   :  { %14673 = vadd.xlane.f32.xlu1 %v14672_v61  ;;  %v36578_v61 = vld [vmem:[#allocation52_spill] sm:$0xff] }
 0x81c   :  { %18631 = vrot.lane.b32.xlu1 %v35994_v53, %s28342_s4 }
 0x81e   :  { %v14584_v13 = vpop.xlane.xlu0 %14583 }
 0x81f   :  { %v14587_v40 = vpop.xlane.xlu1 %14586  ;;  %28058 = vrcp.f32 %v14584_v13  ;;  %v36579_v13 = vld [vmem:[#allocation87_spill] sm:$0xff] }
 0x820   :  { %18629 = vrot.lane.b32.xlu1 %v35997_v26, %s28342_s4  ;;  %18553 = vrot.lane.b32.xlu0 %v29078_v39, %s28342_s4  ;;  %28060 = vrcp.f32 %v14587_v40 }
 0x822   :  { %v14590_v38 = vpop.xlane.xlu0 %14589 }
 0x823   :  { %28062 = vrcp.f32 %v14590_v38 }
 0x824   :  { %18787 = vrot.lane.b32.xlu1 %v36000_v4, %s28342_s4  ;;  %18551 = vrot.lane.b32.xlu0 %v29220_v52, %s28342_s4 }
 0x826   :  { %v14593_v25 = vpop.xlane.xlu1 %14592 }
 0x827   :  { %28064 = vrcp.f32 %v14593_v25  ;;  %v36581_v25 = vld [vmem:[#allocation268_spill] sm:$0xff] }
 0x828   :  { %18785 = vrot.lane.b32.xlu1 %v36003_v49, %s28342_s4  ;;  %18709 = vrot.lane.b32.xlu0 %v29097_v43, %s28342_s4 }
 0x829   :  { %v28059_v53 = vpop.eup %28058 }
 0x82a   :  { %v28061_v26 = vpop.eup %28060  ;;  %v14599_v39 = vpop.xlane.xlu1 %14598  ;;  %v32624_v33 = vmul.f32 %v28059_v53, %v32451_v19 }
 0x82b   :  { %v14596_v16 = vpop.xlane.xlu0 %14595  ;;  %28066 = vrcp.f32 %v14599_v39  ;;  %v32627_v4 = vmul.f32 %v28061_v26, %v32453_v2  ;;  %v36582_v39 = vld [vmem:[#allocation99_spill] sm:$0xff] }
 0x82c   :  { %18943 = vrot.lane.b32.xlu1 %v36006_v14, %s28342_s4  ;;  %18707 = vrot.lane.b32.xlu0 %v29250_v48, %s28342_s4  ;;  %28068 = vrcp.f32 %v14596_v16  ;;  %v36583_v16 = vld [vmem:[#allocation53_spill] sm:$0xff] }
 0x82d   :  { %v28063_v52 = vpop.eup %28062  ;;  %26889 = vmatmul.mubr.msk.f32.vlgmr.msra.gmra.mrb[224].mxu1 %vm3604_vm2, %v32627_v4  ;;  %26884 = vmatmul.mubr.msk.f32.vlgmr.msra.gmra.mrb[224].mxu0 %vm3604_vm2, %v32624_v33 }
 0x82e   :  { %26897 = vmatpush3.msra.mxu1 %v32101_v11  ;;  %26892 = vmatpush3.msra.mxu0 %v32113_v37  ;;  %v14605_v43 = vpop.xlane.xlu1 %14604  ;;  %v32640_v19 = vmul.f32 %v28063_v52, %v32461_v44  ;;  %v36572_v11 = vld [vmem:[#allocation79_spill] sm:$0xff]  ;;  %v36573_v44 = vld [vmem:[#allocation262_spill] sm:$0xff] }
 0x82f   :  { %v14602_v49 = vpop.xlane.xlu0 %14601  ;;  %28070 = vrcp.f32 %v14605_v43  ;;  %26893 = vmatprep.mubr.msk.f32.mxu0 %vm28339_vm0, %v36250_v57  ;;  %26901 = vmatprep.subr.mxu0 %v36250_v57 }
 0x830   :  { %18941 = vrot.lane.b32.xlu1 %v36009_v63, %s28342_s4  ;;  %18865 = vrot.lane.b32.xlu0 %v29116_v47, %s28342_s4  ;;  %28072 = vrcp.f32 %v14602_v49  ;;  %v36571_v47 = vld [vmem:[#allocation48_spill] sm:$0xff] }
 0x831   :  { %v28065_v48 = vpop.eup %28064  ;;  %26894 = vmatmul.mubr.msk.f32.vlgmr.msra.gmra.mrb[226].mxu0 %vm3604_vm2, %v32640_v19  ;;  %26898 = vmatprep.mubr.msk.f32.mxu1 %vm28339_vm0, %v36250_v57 }
 0x832   :  { %26902 = vmatpush3.msra.mxu0 %v32121_v5  ;;  %v14611_v14 = vpop.xlane.xlu1 %14610  ;;  %26906 = vmatprep.subr.mxu1 %v36250_v57  ;;  %v32656_v37 = vmul.f32 %v28065_v48, %v32467_v30  ;;  %v36585_v48 = vld [vmem:[#allocation95_spill] sm:$0xff] }
 0x833   :  { %28074 = vrcp.f32 %v14611_v14  ;;  %v14608_v63 = vpop.xlane.xlu0 %14607  ;;  %26903 = vmatprep.mubr.msk.f32.mxu0 %vm28339_vm0, %v36250_v57  ;;  %26911 = vmatprep.subr.mxu0 %v36250_v57  ;;  %v36586_v14 = vld [vmem:[#allocation267_spill] sm:$0xff] }
 0x834   :  { %19099 = vrot.lane.b32.xlu1 %v36571_v47, %s28342_s4  ;;  %18863 = vrot.lane.b32.xlu0 %v36572_v11, %s28342_s4  ;;  %28076 = vrcp.f32 %v14608_v63  ;;  %v36587_v63 = vld [vmem:[#allocation34_spill] sm:$0xff] }
 0x835   :  { %v28067_v5 = vpop.eup %28066  ;;  %26899 = vmatmul.mubr.msk.f32.vlgmr.msra.gmra.mrb[226].mxu1 %vm3604_vm2, %v32656_v37 }
 0x836   :  { %v28069_v2 = vpop.eup %28068  ;;  %26907 = vmatpush3.msra.mxu1 %v36573_v44  ;;  %26908 = vmatprep.mubr.msk.f32.mxu1 %vm28339_vm0, %v36250_v57  ;;  %v32671_v30 = vmul.f32 %v28067_v5, %v32471_v12 }
 0x837   :  { %v14617_v7 = vpop.xlane.xlu1 %14616  ;;  %v14614_v3 = vpop.xlane.xlu0 %14613  ;;  %26916 = vmatprep.subr.mxu1 %v36250_v57  ;;  %v32675_v62 = vmul.f32 %v28069_v2, %v32475_v56  ;;  %v36577_v56 = vld [vmem:[#allocation266_spill] sm:$0xff] }
 0x838   :  { %19097 = vrot.lane.b32.xlu1 %v36574_v9, %s28342_s4  ;;  %19021 = vrot.lane.b32.xlu0 %v36575_v36, %s28342_s4  ;;  %28078 = vrcp.f32 %v14617_v7  ;;  %v36592_v9 = vld [vmem:[#allocation24_spill] sm:$0xff] }
 0x839   :  { %v28071_v27 = vpop.eup %28070  ;;  %28080 = vrcp.f32 %v14614_v3  ;;  %26909 = vmatmul.mubr.msk.f32.vlgmr.msra.gmra.mrb[228].mxu1 %vm3604_vm2, %v32671_v30  ;;  %26904 = vmatmul.mubr.msk.f32.vlgmr.msra.gmra.mrb[228].mxu0 %vm3604_vm2, %v32675_v62  ;;  %v36591_v3 = vld [vmem:[#allocation257_spill] sm:$0xff] }
 0x83a   :  { %v28073_v12 = vpop.eup %28072  ;;  %26917 = vmatpush3.msra.mxu1 %v36576_v60  ;;  %26912 = vmatpush3.msra.mxu0 %v36577_v56  ;;  %v32688_v22 = vmul.f32 %v28071_v27, %v32481_v6 }
 0x83b   :  { %v14620_v45 = vpop.xlane.xlu0 %14619  ;;  %26918 = vmatprep.mubr.msk.f32.mxu1 %vm28339_vm0, %v36250_v57  ;;  %26926 = vmatprep.subr.mxu1 %v36250_v57  ;;  %v32694_v1 = vmul.f32 %v28073_v12, %v32484_v46  ;;  %v36580_v46 = vld [vmem:[#allocation265_spill] sm:$0xff] }
 0x83c   :  { %19255 = vrot.lane.b32.xlu1 %v36578_v61, %s28342_s4  ;;  %19019 = vrot.lane.b32.xlu0 %v36579_v13, %s28342_s4  ;;  %v14623_v40 = vpop.xlane.xlu1 %14622  ;;  %28082 = vrcp.f32 %v14620_v45  ;;  %v36595_v61 = vld [vmem:[#allocation59_spill] sm:$0xff] }
 0x83d   :  { %v28075_v38 = vpop.eup %28074  ;;  %28084 = vrcp.f32 %v14623_v40  ;;  %26913 = vmatprep.mubr.msk.f32.mxu0 %vm28339_vm0, %v36250_v57  ;;  %26921 = vmatprep.subr.mxu0 %v36250_v57  ;;  %v36596_v13 = vld [vmem:[#allocation103_spill] sm:$0xff] }
 0x83e   :  { %v28077_v6 = vpop.eup %28076  ;;  %26919 = vmatmul.mubr.msk.f32.vlgmr.msra.gmra.mrb[230].mxu1 %vm3604_vm2, %v32688_v22  ;;  %26914 = vmatmul.mubr.msk.f32.vlgmr.msra.gmra.mrb[230].mxu0 %vm3604_vm2, %v32694_v1  ;;  %v32710_v53 = vmul.f32 %v28075_v38, %v32491_v17 }
 0x83f   :  { %26927 = vmatpush3.msra.mxu1 %v36580_v46  ;;  %26922 = vmatpush3.msra.mxu0 %v36581_v25  ;;  %v32713_v26 = vmul.f32 %v28077_v6, %v32494_v20  ;;  %v36584_v20 = vld [vmem:[#allocation56_spill] sm:$0xff]  ;;  %v36601_v46 = vld [vmem:[#allocation115_spill] sm:$0xff] }
 0x840   :  { %19253 = vrot.lane.b32.xlu1 %v36582_v39, %s28342_s4  ;;  %19177 = vrot.lane.b32.xlu0 %v36583_v16, %s28342_s4  ;;  %v14626_v52 = vpop.xlane.xlu1 %14625  ;;  %v36602_v25 = vld [vmem:[#allocation60_spill] sm:$0xff] }
 0x841   :  { %28086 = vrcp.f32 %v14626_v52  ;;  %v14629_v43 = vpop.xlane.xlu0 %14628  ;;  %26928 = vmatprep.mubr.msk.f32.mxu1 %vm28339_vm0, %v36250_v57  ;;  %26936 = vmatprep.subr.mxu1 %v36250_v57 }
 0x842   :  { %v28079_v49 = vpop.eup %28078  ;;  %28088 = vrcp.f32 %v14629_v43  ;;  %26923 = vmatprep.mubr.msk.f32.mxu0 %vm28339_vm0, %v36250_v57  ;;  %26931 = vmatprep.subr.mxu0 %v36250_v57 }
 0x843   :  { %v28081_v17 = vpop.eup %28080  ;;  %26929 = vmatmul.mubr.msk.f32.vlgmr.msra.gmra.mrb[232].mxu1 %vm3604_vm2, %v32710_v53  ;;  %26924 = vmatmul.mubr.msk.f32.vlgmr.msra.gmra.mrb[232].mxu0 %vm3604_vm2, %v32713_v26  ;;  %v32736_v11 = vmul.f32 %v28079_v49, %v32503_v31  ;;  %v36589_v31 = vld [vmem:[#allocation107_spill] sm:$0xff]  ;;  %v36605_v49 = vld [vmem:[#allocation272_spill] sm:$0xff] }
 0x844   :  { %19411 = vrot.lane.b32.xlu1 %v36584_v20, %s28342_s4  ;;  %19175 = vrot.lane.b32.xlu0 %v36585_v48, %s28342_s4  ;;  %v32739_v5 = vmul.f32 %v28081_v17, %v32501_v29  ;;  %v36590_v29 = vld [vmem:[#allocation57_spill] sm:$0xff]  ;;  %v36606_v17 = vld [vmem:[#allocation271_spill] sm:$0xff] }
 0x845   :  { %26937 = vmatpush3.msra.mxu1 %v36586_v14  ;;  %26932 = vmatpush3.msra.mxu0 %v36587_v63  ;;  %v14632_v47 = vpop.xlane.xlu1 %14631  ;;  %36588 = vst [vmem:[#allocation48_spill] sm:$0xff] %v32736_v11 }
 0x846   :  { %v28083_v2 = vpop.eup %28082  ;;  %v14635_v44 = vpop.xlane.xlu0 %14634  ;;  %26938 = vmatprep.mubr.msk.f32.mxu1 %vm28339_vm0, %v36250_v57  ;;  %26946 = vmatprep.subr.mxu1 %v36250_v57  ;;  %28090 = vrcp.f32 %v14632_v47 }
 0x847   :  { %v28085_v7 = vpop.eup %28084  ;;  %26933 = vmatprep.mubr.msk.f32.mxu0 %vm28339_vm0, %v36250_v57  ;;  %26941 = vmatprep.subr.mxu0 %v36250_v57  ;;  %28092 = vrcp.f32 %v14635_v44  ;;  %v32761_v12 = vmul.f32 %v28083_v2, %v32511_v54  ;;  %v36597_v54 = vld [vmem:[#allocation259_spill] sm:$0xff]  ;;  %v36611_v44 = vld [vmem:[#allocation41_spill] sm:$0xff] }
 0x848   :  { %19409 = vrot.lane.b32.xlu1 %v36589_v31, %s28342_s4  ;;  %19333 = vrot.lane.b32.xlu0 %v36590_v29, %s28342_s4  ;;  %v32758_v27 = vmul.f32 %v28085_v7, %v32513_v34  ;;  %v36598_v34 = vld [vmem:[#allocation23_spill] sm:$0xff] }
 0x849   :  { %26939 = vmatmul.mubr.msk.f32.vlgmr.msra.gmra.mrb[234].mxu1 %vm3604_vm2, %v32736_v11  ;;  %26934 = vmatmul.mubr.msk.f32.vlgmr.msra.gmra.mrb[234].mxu0 %vm3604_vm2, %v32739_v5  ;;  %36594 = vst [vmem:[#allocation262_spill] sm:$0xff] %v32761_v12  ;;  %v36612_v7 = vld [vmem:[#allocation263_spill] sm:$0xff] }
 0x84a   :  { %26947 = vmatpush3.msra.mxu1 %v36591_v3  ;;  %26942 = vmatpush3.msra.mxu0 %v36592_v9  ;;  %v14638_v36 = vpop.xlane.xlu1 %14637  ;;  %36593 = vst [vmem:[#allocation79_spill] sm:$0xff] %v32758_v27 }
 0x84b   :  { %v28087_v60 = vpop.eup %28086  ;;  %v14641_v56 = vpop.xlane.xlu0 %14640  ;;  %26948 = vmatprep.mubr.msk.f32.mxu1 %vm28339_vm0, %v36250_v57  ;;  %26956 = vmatprep.subr.mxu1 %v36250_v57  ;;  %28094 = vrcp.f32 %v14638_v36 }
 0x84c   :  { %v28089_v45 = vpop.eup %28088  ;;  %19567 = vrot.lane.b32.xlu1 %v36595_v61, %s28342_s4  ;;  %19331 = vrot.lane.b32.xlu0 %v36596_v13, %s28342_s4  ;;  %28096 = vrcp.f32 %v14641_v56  ;;  %v32780_v38 = vmul.f32 %v28087_v60, %v32521_v55  ;;  %v36603_v55 = vld [vmem:[#allocation62_spill] sm:$0xff]  ;;  %v36615_v60 = vld [vmem:[#allocation65_spill] sm:$0xff]  ;;  %v36617_v56 = vld [vmem:[#allocation27_spill] sm:$0xff] }
 0x84d   :  { %26943 = vmatprep.mubr.msk.f32.mxu0 %vm28339_vm0, %v36250_v57  ;;  %26951 = vmatprep.subr.mxu0 %v36250_v57  ;;  %v32783_v6 = vmul.f32 %v28089_v45, %v32523_v15  ;;  %v36604_v15 = vld [vmem:[#allocation111_spill] sm:$0xff]  ;;  %v36618_v45 = vld [vmem:[#allocation38_spill] sm:$0xff] }
 0x84e   :  { %26949 = vmatmul.mubr.msk.f32.vlgmr.msra.gmra.mrb[236].mxu1 %vm3604_vm2, %v32758_v27  ;;  %26944 = vmatmul.mubr.msk.f32.vlgmr.msra.gmra.mrb[236].mxu0 %vm3604_vm2, %v32761_v12  ;;  %36599 = vst [vmem:[#allocation91_spill] sm:$0xff] %v32780_v38 }
 0x84f   :  { %26957 = vmatpush3.msra.mxu1 %v36597_v54  ;;  %26952 = vmatpush3.msra.mxu0 %v36598_v34  ;;  %v14644_v40 = vpop.xlane.xlu1 %14643  ;;  %36600 = vst [vmem:[#allocation49_spill] sm:$0xff] %v32783_v6 }
 0x850   :  { %19565 = vrot.lane.b32.xlu1 %v36601_v46, %s28342_s4  ;;  %19489 = vrot.lane.b32.xlu0 %v36602_v25, %s28342_s4  ;;  %v14647_v39 = vpop.xlane.xlu0 %14646  ;;  %v28091_v16 = vpop.eup %28090  ;;  %28098 = vrcp.f32 %v14644_v40  ;;  %v36621_v40 = vld [vmem:[#allocation69_spill] sm:$0xff] }
 0x851   :  { %26958 = vmatprep.mubr.msk.f32.mxu1 %vm28339_vm0, %v36250_v57  ;;  %26966 = vmatprep.subr.mxu1 %v36250_v57  ;;  %v28093_v52 = vpop.eup %28092  ;;  %28100 = vrcp.f32 %v14647_v39  ;;  %v32806_v48 = vmul.f32 %v28091_v16, %v32531_v28  ;;  %v36609_v28 = vld [vmem:[#allocation123_spill] sm:$0xff]  ;;  %v36623_v39 = vld [vmem:[#allocation28_spill] sm:$0xff] }
 0x852   :  { %26953 = vmatprep.mubr.msk.f32.mxu0 %vm28339_vm0, %v36250_v57  ;;  %26961 = vmatprep.subr.mxu0 %v36250_v57  ;;  %v32809_v14 = vmul.f32 %v28093_v52, %v32533_v32  ;;  %v36610_v32 = vld [vmem:[#allocation63_spill] sm:$0xff]  ;;  %v36624_v16 = vld [vmem:[#allocation44_spill] sm:$0xff] }
 0x853   :  { %26954 = vmatmul.mubr.msk.f32.vlgmr.msra.gmra.mrb[238].mxu0 %vm3604_vm2, %v32780_v38  ;;  %26959 = vmatmul.mubr.msk.f32.vlgmr.msra.gmra.mrb[238].mxu1 %vm3604_vm2, %v32783_v6  ;;  %36607 = vst [vmem:[#allocation264_spill] sm:$0xff] %v32806_v48 }
 0x854   :  { %19723 = vrot.lane.b32.xlu1 %v36603_v55, %s28342_s4  ;;  %19487 = vrot.lane.b32.xlu0 %v36604_v15, %s28342_s4  ;;  %v14650_v43 = vpop.xlane.xlu1 %14649  ;;  %36608 = vst [vmem:[#allocation266_spill] sm:$0xff] %v32809_v14 }
 0x855   :  { %26962 = vmatpush3.msra.mxu0 %v36605_v49  ;;  %26967 = vmatpush3.msra.mxu1 %v36606_v17  ;;  %v14653_v20 = vpop.xlane.xlu0 %14652  ;;  %v28095_v63 = vpop.eup %28094  ;;  %28102 = vrcp.f32 %v14650_v43  ;;  %v36627_v43 = vld [vmem:[#allocation72_spill] sm:$0xff] }
 0x856   :  { %26963 = vmatprep.mubr.msk.f32.mxu0 %vm28339_vm0, %v36250_v57  ;;  %26968 = vmatprep.mubr.msk.f32.mxu1 %vm28339_vm0, %v36250_v57  ;;  %v28097_v47 = vpop.eup %28096  ;;  %28104 = vrcp.f32 %v14653_v20  ;;  %v32828_v29 = vmul.f32 %v28095_v63, %v32541_v24  ;;  %v36616_v24 = vld [vmem:[#allocation119_spill] sm:$0xff]  ;;  %v36630_v17 = vld [vmem:[#allocation32_spill] sm:$0xff] }
 0x857   :  { %26971 = vmatprep.subr.mxu0 %v36250_v57  ;;  %26976 = vmatprep.subr.mxu1 %v36250_v57  ;;  %v32831_v3 = vmul.f32 %v28097_v47, %v32543_v18 }
 0x858   :  { %19721 = vrot.lane.b32.xlu1 %v36609_v28, %s28342_s4  ;;  %19645 = vrot.lane.b32.xlu0 %v36610_v32, %s28342_s4  ;;  %36613 = vst [vmem:[#allocation52_spill] sm:$0xff] %v32828_v29  ;;  %v36633_v28 = vld [vmem:[#allocation76_spill] sm:$0xff] }
 0x859   :  { %26964 = vmatmul.mubr.msk.f32.vlgmr.msra.gmra.mrb[240].mxu0 %vm3604_vm2, %v32806_v48  ;;  %26969 = vmatmul.mubr.msk.f32.vlgmr.msra.gmra.mrb[240].mxu1 %vm3604_vm2, %v32809_v14  ;;  %v14656_v2 = vpop.xlane.xlu1 %14655  ;;  %36614 = vst [vmem:[#allocation87_spill] sm:$0xff] %v32831_v3 }
 0x85a   :  { %26972 = vmatpush3.msra.mxu0 %v36611_v44  ;;  %26977 = vmatpush3.msra.mxu1 %v36612_v7  ;;  %v14659_v31 = vpop.xlane.xlu0 %14658  ;;  %v28099_v9 = vpop.eup %28098  ;;  %28106 = vrcp.f32 %v14656_v2  ;;  %v36636_v2 = vld [vmem:[#allocation51_spill] sm:$0xff] }
 0x85b   :  { %26973 = vmatprep.mubr.msk.f32.mxu0 %vm28339_vm0, %v36250_v57  ;;  %26978 = vmatprep.mubr.msk.f32.mxu1 %vm28339_vm0, %v36250_v57  ;;  %v28101_v36 = vpop.eup %28100  ;;  %28108 = vrcp.f32 %v14659_v31  ;;  %v32850_v13 = vmul.f32 %v28099_v9, %v32551_v59  ;;  %v36622_v59 = vld [vmem:[#allocation66_spill] sm:$0xff]  ;;  %v36639_v9 = vld [vmem:[#allocation80_spill] sm:$0xff] }
 0x85c   :  { %20451 = vrot.lane.b32.xlu1 %v36615_v60, %s28342_s4  ;;  %26981 = vmatprep.subr.mxu0 %v36250_v57  ;;  %v32853_v54 = vmul.f32 %v28101_v36, %v32553_v8  ;;  %v36642_v60 = vld [vmem:[#allocation36_spill] sm:$0xff] }
 0x85d   :  { %26986 = vmatprep.subr.mxu1 %v36250_v57  ;;  %19643 = vrot.lane.b32.xlu0 %v36616_v24, %s28342_s4  ;;  %36619 = vst [vmem:[#allocation265_spill] sm:$0xff] %v32850_v13 }
 0x85e   :  { %26974 = vmatmul.mubr.msk.f32.vlgmr.msra.gmra.mrb[242].mxu0 %vm3604_vm2, %v32828_v29  ;;  %26979 = vmatmul.mubr.msk.f32.vlgmr.msra.gmra.mrb[242].mxu1 %vm3604_vm2, %v32831_v3  ;;  %v14665_v18 = vpop.xlane.xlu0 %14664  ;;  %36620 = vst [vmem:[#allocation268_spill] sm:$0xff] %v32853_v54 }
 0x85f   :  { %26982 = vmatpush3.msra.mxu0 %v36617_v56  ;;  %26987 = vmatpush3.msra.mxu1 %v36618_v45  ;;  %v14662_v61 = vpop.xlane.xlu1 %14661  ;;  %v28103_v34 = vpop.eup %28102  ;;  %28110 = vrcp.f32 %v14665_v18  ;;  %v36645_v56 = vld [vmem:[#allocation84_spill] sm:$0xff]  ;;  %v36646_v45 = vld [vmem:[#allocation81_spill] sm:$0xff] }
 0x860   :  { %20601 = vrot.lane.b32.xlu1 %v36621_v40, %s28342_s4  ;;  %26983 = vmatprep.mubr.msk.f32.mxu0 %vm28339_vm0, %v36250_v57  ;;  %v28105_v46 = vpop.eup %28104  ;;  %28112 = vrcp.f32 %v14662_v61  ;;  %v32872_v52 = vmul.f32 %v28103_v34, %v32561_v10  ;;  %v36628_v10 = vld [vmem:[#allocation70_spill] sm:$0xff]  ;;  %v36649_v61 = vld [vmem:[#allocation88_spill] sm:$0xff]  ;;  %v36650_v34 = vld [vmem:[#allocation85_spill] sm:$0xff] }
 0x861   :  { %26988 = vmatprep.mubr.msk.f32.mxu1 %vm28339_vm0, %v36250_v57  ;;  %26991 = vmatprep.subr.mxu0 %v36250_v57  ;;  %v32875_v55 = vmul.f32 %v28105_v46, %v32565_v35  ;;  %v36629_v35 = vld [vmem:[#allocation47_spill] sm:$0xff]  ;;  %v36651_v40 = vld [vmem:[#allocation92_spill] sm:$0xff]  ;;  %v36652_v46 = vld [vmem:[#allocation89_spill] sm:$0xff] }
 0x862   :  { %26996 = vmatprep.subr.mxu1 %v36250_v57  ;;  %20376 = vrot.lane.b32.xlu0 %v36622_v59, %s28342_s4  ;;  %v14671_v8 = vpop.xlane.xlu0 %14670  ;;  %36625 = vst [vmem:[#allocation99_spill] sm:$0xff] %v32872_v52  ;;  %v36653_v59 = vld [vmem:[#allocation96_spill] sm:$0xff] }
 0x863   :  { %26984 = vmatmul.mubr.msk.f32.vlgmr.msra.gmra.mrb[244].mxu0 %vm3604_vm2, %v32850_v13  ;;  %26989 = vmatmul.mubr.msk.f32.vlgmr.msra.gmra.mrb[244].mxu1 %vm3604_vm2, %v32853_v54  ;;  %v14668_v25 = vpop.xlane.xlu1 %14667  ;;  %36626 = vst [vmem:[#allocation53_spill] sm:$0xff] %v32875_v55  ;;  %28114 = vrcp.f32 %v14671_v8  ;;  %v36654_v8 = vld [vmem:[#allocation93_spill] sm:$0xff] }
 0x864   :  { %26992 = vmatpush3.msra.mxu0 %v36623_v39  ;;  %26997 = vmatpush3.msra.mxu1 %v36624_v16  ;;  %v28107_v15 = vpop.eup %28106  ;;  %28116 = vrcp.f32 %v14668_v25  ;;  %v36655_v25 = vld [vmem:[#allocation100_spill] sm:$0xff]  ;;  %v36656_v39 = vld [vmem:[#allocation97_spill] sm:$0xff] }
 0x865   :  { %20751 = vrot.lane.b32.xlu1 %v36627_v43, %s28342_s4  ;;  %26993 = vmatprep.mubr.msk.f32.mxu0 %vm28339_vm0, %v36250_v57  ;;  %v28109_v49 = vpop.eup %28108  ;;  %v32894_v20 = vmul.f32 %v28107_v15, %v32571_v42  ;;  %v36634_v42 = vld [vmem:[#allocation73_spill] sm:$0xff]  ;;  %v36659_v43 = vld [vmem:[#allocation104_spill] sm:$0xff] }
 0x866   :  { %26998 = vmatprep.mubr.msk.f32.mxu1 %vm28339_vm0, %v36250_v57  ;;  %27001 = vmatprep.subr.mxu0 %v36250_v57  ;;  %v32897_v63 = vmul.f32 %v28109_v49, %v32573_v51  ;;  %v36635_v51 = vld [vmem:[#allocation31_spill] sm:$0xff]  ;;  %v36657_v16 = vld [vmem:[#allocation105_spill] sm:$0xff] }
 0x867   :  { %27006 = vmatprep.subr.mxu1 %v36250_v57  ;;  %20526 = vrot.lane.b32.xlu0 %v36628_v10, %s28342_s4  ;;  %36631 = vst [vmem:[#allocation56_spill] sm:$0xff] %v32894_v20  ;;  %v36658_v15 = vld [vmem:[#allocation101_spill] sm:$0xff]  ;;  %v36661_v10 = vld [vmem:[#allocation108_spill] sm:$0xff] }
 0x868   :  { %26994 = vmatmul.mubr.msk.f32.vlgmr.msra.gmra.mrb[246].mxu0 %vm3604_vm2, %v32872_v52  ;;  %26999 = vmatmul.mubr.msk.f32.vlgmr.msra.gmra.mrb[246].mxu1 %vm3604_vm2, %v32875_v55  ;;  %36632 = vst [vmem:[#allocation95_spill] sm:$0xff] %v32897_v63  ;;  %v36660_v49 = vld [vmem:[#allocation109_spill] sm:$0xff] }
 0x869   :  { %27002 = vmatpush3.msra.mxu0 %v36629_v35  ;;  %27007 = vmatpush3.msra.mxu1 %v36630_v17  ;;  %v28111_v47 = vpop.eup %28110  ;;  %v36662_v35 = vld [vmem:[#allocation113_spill] sm:$0xff]  ;;  %v32993_v17 = vpop.permute.xlu0 %18395 }
 0x86a   :  { %20901 = vrot.lane.b32.xlu1 %v36633_v28, %s28342_s4  ;;  %27003 = vmatprep.mubr.msk.f32.mxu0 %vm28339_vm0, %v36250_v57  ;;  %v28113_v32 = vpop.eup %28112  ;;  %v32919_v7 = vmul.f32 %v28111_v47, %v32579_v0  ;;  %v36641_v0 = vld [vmem:[#allocation55_spill] sm:$0xff]  ;;  %v32995_v47 = vpop.permute.xlu1 %18473  ;;  %v36663_v28 = vld [vmem:[#allocation112_spill] sm:$0xff] }
 0x86b   :  { %27008 = vmatprep.mubr.msk.f32.mxu1 %vm28339_vm0, %v36250_v57  ;;  %27011 = vmatprep.subr.mxu0 %v36250_v57  ;;  %v32916_v44 = vmul.f32 %v28113_v32, %v32581_v23  ;;  %v36640_v23 = vld [vmem:[#allocation77_spill] sm:$0xff] }
 0x86c   :  { %27016 = vmatprep.subr.mxu1 %v36250_v57  ;;  %20676 = vrot.lane.b32.xlu0 %v36634_v42, %s28342_s4  ;;  %36638 = vst [vmem:[#allocation34_spill] sm:$0xff] %v32919_v7  ;;  %v36664_v32 = vld [vmem:[#allocation117_spill] sm:$0xff] }
 0x86d   :  { %27004 = vmatmul.mubr.msk.f32.vlgmr.msra.gmra.mrb[248].mxu0 %vm3604_vm2, %v32894_v20  ;;  %27009 = vmatmul.mubr.msk.f32.vlgmr.msra.gmra.mrb[248].mxu1 %vm3604_vm2, %v32897_v63  ;;  %36637 = vst [vmem:[#allocation267_spill] sm:$0xff] %v32916_v44  ;;  %v28115_v31 = vpop.eup %28114 }
 0x86e   :  { %27012 = vmatpush3.msra.mxu0 %v36635_v51  ;;  %27017 = vmatpush3.msra.mxu1 %v36636_v2  ;;  %v28117_v36 = vpop.eup %28116  ;;  %v32941_v18 = vmul.f32 %v28115_v31, %v32587_v58  ;;  %v36647_v58 = vld [vmem:[#allocation35_spill] sm:$0xff]  ;;  %v36665_v2 = vld [vmem:[#allocation116_spill] sm:$0xff] }
 0x86f   :  { %21051 = vrot.lane.b32.xlu1 %v36639_v9, %s28342_s4  ;;  %27013 = vmatprep.mubr.msk.f32.mxu0 %vm28339_vm0, %v36250_v57  ;;  %v32938_v24 = vmul.f32 %v28117_v36, %v32589_v50  ;;  %v36648_v50 = vld [vmem:[#allocation276_spill] sm:$0xff] }
 0x870   :  { %27018 = vmatprep.mubr.msk.f32.mxu1 %vm28339_vm0, %v36250_v57  ;;  %27021 = vmatprep.subr.mxu0 %v36250_v57  ;;  %36644 = vst [vmem:[#allocation57_spill] sm:$0xff] %v32941_v18 }
 0x871   :  { %27026 = vmatprep.subr.mxu1 %v36250_v57  ;;  %20826 = vrot.lane.b32.xlu0 %v36640_v23, %s28342_s4  ;;  %36643 = vst [vmem:[#allocation107_spill] sm:$0xff] %v32938_v24 }
 0x872   :  { %27014 = vmatmul.mubr.msk.f32.vlgmr.msra.gmra.mrb[250].mxu0 %vm3604_vm2, %v32916_v44  ;;  %27019 = vmatmul.mubr.msk.f32.vlgmr.msra.gmra.mrb[250].mxu1 %vm3604_vm2, %v32919_v7 }
 0x873   :  { %27022 = vmatpush3.msra.mxu0 %v36641_v0  ;;  %27027 = vmatpush3.msra.mxu1 %v36642_v60 }
 0x874   :  { %21201 = vrot.lane.b32.xlu1 %v36645_v56, %s28342_s4  ;;  %27023 = vmatprep.mubr.msk.f32.mxu0 %vm28339_vm0, %v36250_v57 }
 0x875   :  { %27028 = vmatprep.mubr.msk.f32.mxu1 %vm28339_vm0, %v36250_v57  ;;  %27031 = vmatprep.subr.mxu0 %v36250_v57 }
 0x876   :  { %27036 = vmatprep.subr.mxu1 %v36250_v57  ;;  %20976 = vrot.lane.b32.xlu0 %v36646_v45, %s28342_s4 }
 0x877   :  { %27024 = vmatmul.mubr.msk.f32.vlgmr.msra.gmra.mrb[252].mxu0 %vm3604_vm2, %v32938_v24  ;;  %27029 = vmatmul.mubr.msk.f32.vlgmr.msra.gmra.mrb[252].mxu1 %vm3604_vm2, %v32941_v18 }
 0x878   :  { %27032 = vmatpush3.msra.mxu0 %v36647_v58  ;;  %27037 = vmatpush3.msra.mxu1 %v36648_v50 }
 0x879   :  { %21351 = vrot.lane.b32.xlu1 %v36649_v61, %s28342_s4  ;;  %27033 = vmatprep.mubr.msk.f32.mxu0 %vm28339_vm0, %v36250_v57  ;;  %v36668_v61 = vld [vmem:[#allocation278_spill] sm:$0xff] }
 0x87a   :  { %21126 = vrot.lane.b32.xlu0 %v36650_v34, %s28342_s4  ;;  %27038 = vmatprep.mubr.msk.f32.mxu1 %vm28339_vm0, %v36250_v57  ;;  %v36669_v34 = vld [vmem:[#allocation277_spill] sm:$0xff] }
 0x87b   :  { %27041 = vmatprep.subr.mxu0 %v36250_v57  ;;  %27046 = vmatprep.subr.mxu1 %v36250_v57 }
 0x87d   :  { %21501 = vrot.lane.b32.xlu1 %v36651_v40, %s28342_s4 }
 0x87e   :  { %21276 = vrot.lane.b32.xlu0 %v36652_v46, %s28342_s4  ;;  %v36671_v46 = vld [vmem:[#allocation279_spill] sm:$0xff] }
 0x881   :  { %21651 = vrot.lane.b32.xlu1 %v36653_v59, %s28342_s4  ;;  %v36672_v59 = vld [vmem:[#allocation282_spill] sm:$0xff] }
 0x882   :  { %21426 = vrot.lane.b32.xlu0 %v36654_v8, %s28342_s4  ;;  %v36673_v8 = vld [vmem:[#allocation281_spill] sm:$0xff] }
 0x885   :  { %21801 = vrot.lane.b32.xlu1 %v36655_v25, %s28342_s4 }
 0x886   :  { %21576 = vrot.lane.b32.xlu0 %v36656_v39, %s28342_s4 }
 0x889   :  { %21876 = vrot.lane.b32.xlu1 %v36657_v16, %s28342_s4  ;;  %v36674_v16 = vld [vmem:[#allocation284_spill] sm:$0xff] }
 0x88a   :  { %21726 = vrot.lane.b32.xlu0 %v36658_v15, %s28342_s4  ;;  %v36675_v15 = vld [vmem:[#allocation283_spill] sm:$0xff] }
 0x88d   :  { %21951 = vrot.lane.b32.xlu1 %v36659_v43, %s28342_s4  ;;  %v36676_v43 = vld [vmem:[#allocation286_spill] sm:$0xff] }
 0x88e   :  { %22026 = vrot.lane.b32.xlu0 %v36660_v49, %s28342_s4  ;;  %v36677_v49 = vld [vmem:[#allocation285_spill] sm:$0xff] }
 0x891   :  { %22101 = vrot.lane.b32.xlu1 %v36661_v10, %s28342_s4 }
 0x892   :  { %22176 = vrot.lane.b32.xlu0 %v36662_v35, %s28342_s4 }
 0x895   :  { %22251 = vrot.lane.b32.xlu1 %v36663_v28, %s28342_s4  ;;  %v36678_v28 = vld [vmem:[#allocation288_spill] sm:$0xff] }
 0x896   :  { %22326 = vrot.lane.b32.xlu0 %v36664_v32, %s28342_s4  ;;  %v36679_v32 = vld [vmem:[#allocation287_spill] sm:$0xff] }
 0x897   :  { %v14677_v42 = vpop.xlane.xlu0 %14676 }
 0x898   :  { %v14674_v51 = vpop.xlane.xlu1 %14673  ;;  %28118 = vrcp.f32 %v14677_v42  ;;  %v36680_v42 = vld [vmem:[#allocation290_spill] sm:$0xff] }
 0x899   :  { %22401 = vrot.lane.b32.xlu1 %v36665_v2, %s28342_s4  ;;  %28120 = vrcp.f32 %v14674_v51  ;;  %v36681_v51 = vld [vmem:[#allocation289_spill] sm:$0xff] }
 0x89b   :  { %v33003_v31 = vpop.permute.xlu0 %18553 }
 0x89c   :  { %v33005_v9 = vpop.permute.xlu1 %18631 }
 0x89f   :  { %v33007_v36 = vpop.permute.xlu0 %18551 }
 0x8a0   :  { %v33009_v23 = vpop.permute.xlu1 %18629 }
 0x8a2   :  { %v28119_v0 = vpop.eup %28118 }
 0x8a3   :  { %v28121_v60 = vpop.eup %28120  ;;  %v33011_v56 = vpop.permute.xlu0 %18709  ;;  %v33014_v45 = vmul.f32 %v28119_v0, %v32601_v21 }
 0x8a4   :  { %v33016_v58 = vpop.permute.xlu1 %18787  ;;  %v33019_v50 = vmul.f32 %v28121_v60, %v32603_v41  ;;  %v36670_v41 = vld [vmem:[#allocation280_spill] sm:$0xff] }
 0x8a5   :  { %36666 = vst [vmem:[#allocation257_spill] sm:$0xff] %v33014_v45  ;;  %27039 = vmatmul.mubr.msk.f32.vlgmr.msra.gmra.mrb[254].mxu1 %vm3604_vm2, %v33014_v45  ;;  %v36682_v60 = vld [vmem:[#allocation292_spill] sm:$0xff] }
 0x8a6   :  { %36667 = vst [vmem:[#allocation24_spill] sm:$0xff] %v33019_v50  ;;  %27034 = vmatmul.mubr.msk.f32.vlgmr.msra.gmra.mrb[254].mxu0 %vm3604_vm2, %v33019_v50  ;;  %27047 = vmatpush3.xpose.msk.msra.mxu1 %vm1107_vm1, %v36668_v61  ;;  %v36683_v61 = vld [vmem:[#allocation291_spill] sm:$0xff] }
 0x8a7   :  { %27042 = vmatpush3.xpose.msk.msra.mxu0 %vm1107_vm1, %v36669_v34  ;;  %v33029_v40 = vpop.permute.xlu0 %18707  ;;  %27043 = vmatprep.mubr.msk.f32.mxu0 %vm28339_vm0, %v36250_v57  ;;  %v36684_v34 = vld [vmem:[#allocation294_spill] sm:$0xff] }
 0x8a8   :  { %v33033_v21 = vpop.permute.xlu1 %18785  ;;  %27048 = vmatprep.mubr.msk.f32.mxu1 %vm28339_vm0, %v36250_v57  ;;  %27051 = vmatprep.subr.mxu0 %v36250_v57 }
 0x8a9   :  { %27056 = vmatprep.subr.mxu1 %v36250_v57  ;;  %27049 = vmatmul.mubr.msk.f32.vlgmr.msra.gmra.mrb[0].mxu1 %vm1107_vm1, %v36670_v41  ;;  %v36685_v41 = vld [vmem:[#allocation293_spill] sm:$0xff] }
 0x8aa   :  { %27044 = vmatmul.mubr.msk.f32.vlgmr.msra.gmra.mrb[0].mxu0 %vm1107_vm1, %v36671_v46  ;;  %27057 = vmatpush3.xpose.msk.msra.mxu1 %vm1107_vm1, %v36672_v59 }
 0x8ab   :  { %27052 = vmatpush3.xpose.msk.msra.mxu0 %vm1107_vm1, %v36673_v8  ;;  %v33047_v25 = vpop.permute.xlu0 %18865  ;;  %27053 = vmatprep.mubr.msk.f32.mxu0 %vm28339_vm0, %v36250_v57  ;;  %v36686_v8 = vld [vmem:[#allocation296_spill] sm:$0xff] }
 0x8ac   :  { %v33051_v39 = vpop.permute.xlu1 %18943  ;;  %27058 = vmatprep.mubr.msk.f32.mxu1 %vm28339_vm0, %v36250_v57  ;;  %27061 = vmatprep.subr.mxu0 %v36250_v57 }
 0x8ad   :  { %27066 = vmatprep.subr.mxu1 %v36250_v57  ;;  %27059 = vmatmul.mubr.msk.f32.vlgmr.msra.gmra.mrb[2].mxu1 %vm1107_vm1, %v36674_v16  ;;  %v36687_v16 = vld [vmem:[#allocation295_spill] sm:$0xff] }
 0x8ae   :  { %27054 = vmatmul.mubr.msk.f32.vlgmr.msra.gmra.mrb[2].mxu0 %vm1107_vm1, %v36675_v15  ;;  %27067 = vmatpush3.xpose.msk.msra.mxu1 %vm1107_vm1, %v36676_v43  ;;  %v36688_v15 = vld [vmem:[#allocation298_spill] sm:$0xff]  ;;  %v36689_v43 = vld [vmem:[#allocation297_spill] sm:$0xff] }
 0x8af   :  { %27062 = vmatpush3.xpose.msk.msra.mxu0 %vm1107_vm1, %v36677_v49  ;;  %v33065_v10 = vpop.permute.xlu0 %18863  ;;  %27063 = vmatprep.mubr.msk.f32.mxu0 %vm28339_vm0, %v36250_v57 }
 0x8b0   :  { %v33069_v35 = vpop.permute.xlu1 %18941  ;;  %27068 = vmatprep.mubr.msk.f32.mxu1 %vm28339_vm0, %v36250_v57  ;;  %27071 = vmatprep.subr.mxu0 %v36250_v57 }
 0x8b1   :  { %27076 = vmatprep.subr.mxu1 %v36250_v57  ;;  %27069 = vmatmul.mubr.msk.f32.vlgmr.msra.gmra.mrb[4].mxu1 %vm1107_vm1, %v36678_v28 }
 0x8b2   :  { %27064 = vmatmul.mubr.msk.f32.vlgmr.msra.gmra.mrb[4].mxu0 %vm1107_vm1, %v36679_v32  ;;  %27077 = vmatpush3.xpose.msk.msra.mxu1 %vm1107_vm1, %v36680_v42  ;;  %v36690_v32 = vld [vmem:[#allocation300_spill] sm:$0xff]  ;;  %v36691_v42 = vld [vmem:[#allocation299_spill] sm:$0xff] }
 0x8b3   :  { %27072 = vmatpush3.xpose.msk.msra.mxu0 %vm1107_vm1, %v36681_v51  ;;  %v33083_v2 = vpop.permute.xlu0 %19021  ;;  %27073 = vmatprep.mubr.msk.f32.mxu0 %vm28339_vm0, %v36250_v57  ;;  %v36692_v51 = vld [vmem:[#allocation302_spill] sm:$0xff] }
 0x8b4   :  { %v33087_v0 = vpop.permute.xlu1 %19099  ;;  %27078 = vmatprep.mubr.msk.f32.mxu1 %vm28339_vm0, %v36250_v57  ;;  %27081 = vmatprep.subr.mxu0 %v36250_v57 }
 0x8b5   :  { %27086 = vmatprep.subr.mxu1 %v36250_v57  ;;  %27079 = vmatmul.mubr.msk.f32.vlgmr.msra.gmra.mrb[6].mxu1 %vm1107_vm1, %v36682_v60  ;;  %v36693_v60 = vld [vmem:[#allocation301_spill] sm:$0xff] }
 0x8b6   :  { %27074 = vmatmul.mubr.msk.f32.vlgmr.msra.gmra.mrb[6].mxu0 %vm1107_vm1, %v36683_v61  ;;  %27087 = vmatpush3.xpose.msk.msra.mxu1 %vm1107_vm1, %v36684_v34 }
 0x8b7   :  { %27082 = vmatpush3.xpose.msk.msra.mxu0 %vm1107_vm1, %v36685_v41  ;;  %v33101_v46 = vpop.permute.xlu0 %19019  ;;  %27083 = vmatprep.mubr.msk.f32.mxu0 %vm28339_vm0, %v36250_v57  ;;  %v36694_v41 = vld [vmem:[#allocation304_spill] sm:$0xff] }
 0x8b8   :  { %v33105_v59 = vpop.permute.xlu1 %19097  ;;  %27088 = vmatprep.mubr.msk.f32.mxu1 %vm28339_vm0, %v36250_v57  ;;  %27091 = vmatprep.subr.mxu0 %v36250_v57 }
 0x8b9   :  { %27096 = vmatprep.subr.mxu1 %v36250_v57  ;;  %27089 = vmatmul.mubr.msk.f32.vlgmr.msra.gmra.mrb[8].mxu1 %vm1107_vm1, %v36686_v8  ;;  %v36695_v8 = vld [vmem:[#allocation303_spill] sm:$0xff] }
 0x8ba   :  { %27084 = vmatmul.mubr.msk.f32.vlgmr.msra.gmra.mrb[8].mxu0 %vm1107_vm1, %v36687_v16  ;;  %27097 = vmatpush3.xpose.msk.msra.mxu1 %vm1107_vm1, %v36688_v15  ;;  %v36696_v16 = vld [vmem:[#allocation306_spill] sm:$0xff]  ;;  %v36697_v15 = vld [vmem:[#allocation305_spill] sm:$0xff] }
 0x8bb   :  { %27092 = vmatpush3.xpose.msk.msra.mxu0 %vm1107_vm1, %v36689_v43  ;;  %v33119_v49 = vpop.permute.xlu0 %19177  ;;  %27093 = vmatprep.mubr.msk.f32.mxu0 %vm28339_vm0, %v36250_v57 }
 0x8bc   :  { %v33123_v28 = vpop.permute.xlu1 %19255  ;;  %27098 = vmatprep.mubr.msk.f32.mxu1 %vm28339_vm0, %v36250_v57  ;;  %27101 = vmatprep.subr.mxu0 %v36250_v57 }
 0x8bd   :  { %27106 = vmatprep.subr.mxu1 %v36250_v57  ;;  %27099 = vmatmul.mubr.msk.f32.vlgmr.msra.gmra.mrb[10].mxu1 %vm1107_vm1, %v36690_v32 }
 0x8be   :  { %27094 = vmatmul.mubr.msk.f32.vlgmr.msra.gmra.mrb[10].mxu0 %vm1107_vm1, %v36691_v42  ;;  %27107 = vmatpush3.xpose.msk.msra.mxu1 %vm1107_vm1, %v36692_v51 }
 0x8bf   :  { %27102 = vmatpush3.xpose.msk.msra.mxu0 %vm1107_vm1, %v36693_v60  ;;  %v33137_v61 = vpop.permute.xlu0 %19175  ;;  %27103 = vmatprep.mubr.msk.f32.mxu0 %vm28339_vm0, %v36250_v57 }
 0x8c0   :  { %v19254_v34 = vpop.permute.xlu1 %19253  ;;  %27108 = vmatprep.mubr.msk.f32.mxu1 %vm28339_vm0, %v36250_v57  ;;  %27111 = vmatprep.subr.mxu0 %v36250_v57 }
 0x8c1   :  { %27116 = vmatprep.subr.mxu1 %v36250_v57  ;;  %27109 = vmatmul.mubr.msk.f32.vlgmr.msra.gmra.mrb[12].mxu1 %vm1107_vm1, %v36694_v41 }
 0x8c2   :  { %27104 = vmatmul.mubr.msk.f32.vlgmr.msra.gmra.mrb[12].mxu0 %vm1107_vm1, %v36695_v8  ;;  %27117 = vmatpush3.xpose.msk.msra.mxu1 %vm1107_vm1, %v36696_v16 }
 0x8c3   :  { %27112 = vmatpush3.xpose.msk.msra.mxu0 %vm1107_vm1, %v36697_v15  ;;  %v19334_v43 = vpop.permute.xlu0 %19333  ;;  %27113 = vmatprep.mubr.msk.f32.mxu0 %vm28339_vm0, %v36250_v57 }
 0x8c4   :  { %v19412_v32 = vpop.permute.xlu1 %19411  ;;  %27118 = vmatprep.mubr.msk.f32.mxu1 %vm28339_vm0, %v36250_v57  ;;  %27121 = vmatprep.subr.mxu0 %v36250_v57 }
 0x8c5   :  { %27126 = vmatprep.subr.mxu1 %v36250_v57  ;;  %27119 = vmatmul.mubr.msk.f32.vlgmr.msra.gmra.mrb[14].mxu1 %vm1107_vm1, %v32995_v47 }
 0x8c6   :  { %27114 = vmatmul.mubr.msk.f32.vlgmr.msra.gmra.mrb[14].mxu0 %vm1107_vm1, %v32993_v17  ;;  %27127 = vmatpush3.xpose.msk.msra.mxu1 %vm1107_vm1, %v33005_v9 }
 0x8c7   :  { %27122 = vmatpush3.xpose.msk.msra.mxu0 %vm1107_vm1, %v33003_v31  ;;  %27123 = vmatprep.mubr.msk.f32.mxu0 %vm28339_vm0, %v36250_v57  ;;  %v19332_v51 = vpop.permute.xlu0 %19331 }
 0x8c8   :  { %v19410_v42 = vpop.permute.xlu1 %19409  ;;  %27128 = vmatprep.mubr.msk.f32.mxu1 %vm28339_vm0, %v36250_v57  ;;  %27131 = vmatprep.subr.mxu0 %v36250_v57 }
 0x8c9   :  { %27136 = vmatprep.subr.mxu1 %v36250_v57  ;;  %27129 = vmatmul.mubr.msk.f32.vlgmr.msra.gmra.mrb[16].mxu1 %vm1107_vm1, %v33009_v23 }
 0x8ca   :  { %27124 = vmatmul.mubr.msk.f32.vlgmr.msra.gmra.mrb[16].mxu0 %vm1107_vm1, %v33007_v36  ;;  %27137 = vmatpush3.xpose.msk.msra.mxu1 %vm1107_vm1, %v33016_v58 }
 0x8cb   :  { %27132 = vmatpush3.xpose.msk.msra.mxu0 %vm1107_vm1, %v33011_v56  ;;  %27133 = vmatprep.mubr.msk.f32.mxu0 %vm28339_vm0, %v36250_v57  ;;  %v19490_v47 = vpop.permute.xlu0 %19489 }
 0x8cc   :  { %27138 = vmatprep.mubr.msk.f32.mxu1 %vm28339_vm0, %v36250_v57  ;;  %27141 = vmatprep.subr.mxu0 %v36250_v57  ;;  %v19568_v17 = vpop.permute.xlu1 %19567 }
 0x8cd   :  { %27146 = vmatprep.subr.mxu1 %v36250_v57  ;;  %27139 = vmatmul.mubr.msk.f32.vlgmr.msra.gmra.mrb[18].mxu1 %vm1107_vm1, %v33033_v21 }
 0x8ce   :  { %27134 = vmatmul.mubr.msk.f32.vlgmr.msra.gmra.mrb[18].mxu0 %vm1107_vm1, %v33029_v40  ;;  %27147 = vmatpush3.xpose.msk.msra.mxu1 %vm1107_vm1, %v33051_v39 }
 0x8cf   :  { %27142 = vmatpush3.xpose.msk.msra.mxu0 %vm1107_vm1, %v33047_v25  ;;  %27143 = vmatprep.mubr.msk.f32.mxu0 %vm28339_vm0, %v36250_v57  ;;  %v19488_v9 = vpop.permute.xlu0 %19487 }
 0x8d0   :  { %27148 = vmatprep.mubr.msk.f32.mxu1 %vm28339_vm0, %v36250_v57  ;;  %27151 = vmatprep.subr.mxu0 %v36250_v57  ;;  %v19566_v31 = vpop.permute.xlu1 %19565 }
 0x8d1   :  { %27156 = vmatprep.subr.mxu1 %v36250_v57  ;;  %27149 = vmatmul.mubr.msk.f32.vlgmr.msra.gmra.mrb[20].mxu1 %vm1107_vm1, %v33069_v35 }
 0x8d2   :  { %27144 = vmatmul.mubr.msk.f32.vlgmr.msra.gmra.mrb[20].mxu0 %vm1107_vm1, %v33065_v10  ;;  %27157 = vmatpush3.xpose.msk.msra.mxu1 %vm1107_vm1, %v33087_v0 }
 0x8d3   :  { %27152 = vmatpush3.xpose.msk.msra.mxu0 %vm1107_vm1, %v33083_v2  ;;  %27153 = vmatprep.mubr.msk.f32.mxu0 %vm28339_vm0, %v36250_v57  ;;  %v19646_v23 = vpop.permute.xlu0 %19645 }
 0x8d4   :  { %27158 = vmatprep.mubr.msk.f32.mxu1 %vm28339_vm0, %v36250_v57  ;;  %27161 = vmatprep.subr.mxu0 %v36250_v57  ;;  %v19724_v36 = vpop.permute.xlu1 %19723 }
 0x8d5   :  { %27166 = vmatprep.subr.mxu1 %v36250_v57  ;;  %27159 = vmatmul.mubr.msk.f32.vlgmr.msra.gmra.mrb[22].mxu1 %vm1107_vm1, %v33105_v59 }
 0x8d6   :  { %27154 = vmatmul.mubr.msk.f32.vlgmr.msra.gmra.mrb[22].mxu0 %vm1107_vm1, %v33101_v46  ;;  %27167 = vmatpush3.xpose.msk.msra.mxu1 %vm1107_vm1, %v33123_v28 }
 0x8d7   :  { %27162 = vmatpush3.xpose.msk.msra.mxu0 %vm1107_vm1, %v33119_v49  ;;  %27163 = vmatprep.mubr.msk.f32.mxu0 %vm28339_vm0, %v36250_v57  ;;  %v19644_v58 = vpop.permute.xlu0 %19643 }
 0x8d8   :  { %27168 = vmatprep.mubr.msk.f32.mxu1 %vm28339_vm0, %v36250_v57  ;;  %27171 = vmatprep.subr.mxu0 %v36250_v57  ;;  %v19722_v56 = vpop.permute.xlu1 %19721 }
 0x8d9   :  { %27176 = vmatprep.subr.mxu1 %v36250_v57  ;;  %27169 = vmatmul.mubr.msk.f32.vlgmr.msra.gmra.mrb[24].mxu1 %vm1107_vm1, %v19254_v34 }
 0x8da   :  { %27164 = vmatmul.mubr.msk.f32.vlgmr.msra.gmra.mrb[24].mxu0 %vm1107_vm1, %v33137_v61  ;;  %27177 = vmatpush3.xpose.msk.msra.mxu1 %vm1107_vm1, %v19412_v32 }
 0x8db   :  { %27172 = vmatpush3.xpose.msk.msra.mxu0 %vm1107_vm1, %v19334_v43  ;;  %27173 = vmatprep.mubr.msk.f32.mxu0 %vm28339_vm0, %v36250_v57  ;;  %v20377_v21 = vpop.permute.xlu0 %20376 }
 0x8dc   :  { %27178 = vmatprep.mubr.msk.f32.mxu1 %vm28339_vm0, %v36250_v57  ;;  %27181 = vmatprep.subr.mxu0 %v36250_v57  ;;  %v20452_v40 = vpop.permute.xlu1 %20451 }
 0x8dd   :  { %27186 = vmatprep.subr.mxu1 %v36250_v57  ;;  %27179 = vmatmul.mubr.msk.f32.vlgmr.msra.gmra.mrb[26].mxu1 %vm1107_vm1, %v19410_v42 }
 0x8de   :  { %27174 = vmatmul.mubr.msk.f32.vlgmr.msra.gmra.mrb[26].mxu0 %vm1107_vm1, %v19332_v51  ;;  %27187 = vmatpush3.xpose.msk.msra.mxu1 %vm1107_vm1, %v19568_v17 }
 0x8df   :  { %27182 = vmatpush3.xpose.msk.msra.mxu0 %vm1107_vm1, %v19490_v47  ;;  %27183 = vmatprep.mubr.msk.f32.mxu0 %vm28339_vm0, %v36250_v57 }
 0x8e0   :  { %27188 = vmatprep.mubr.msk.f32.mxu1 %vm28339_vm0, %v36250_v57  ;;  %27191 = vmatprep.subr.mxu0 %v36250_v57 }
 0x8e1   :  { %27196 = vmatprep.subr.mxu1 %v36250_v57  ;;  %27189 = vmatmul.mubr.msk.f32.vlgmr.msra.gmra.mrb[28].mxu1 %vm1107_vm1, %v19566_v31 }
 0x8e2   :  { %27184 = vmatmul.mubr.msk.f32.vlgmr.msra.gmra.mrb[28].mxu0 %vm1107_vm1, %v19488_v9  ;;  %27197 = vmatpush3.xpose.msk.msra.mxu1 %vm1107_vm1, %v19724_v36 }
 0x8e3   :  { %27192 = vmatpush3.xpose.msk.msra.mxu0 %vm1107_vm1, %v19646_v23  ;;  %27193 = vmatprep.mubr.msk.f32.mxu0 %vm28339_vm0, %v36250_v57 }
 0x8e4   :  { %27198 = vmatprep.mubr.msk.f32.mxu1 %vm28339_vm0, %v36250_v57  ;;  %27201 = vmatprep.subr.mxu0 %v36250_v57 }
 0x8e5   :  { %27206 = vmatprep.subr.mxu1 %v36250_v57  ;;  %27199 = vmatmul.mubr.msk.f32.vlgmr.msra.gmra.mrb[30].mxu1 %vm1107_vm1, %v19722_v56 }
 0x8e6   :  { %27194 = vmatmul.mubr.msk.f32.vlgmr.msra.gmra.mrb[30].mxu0 %vm1107_vm1, %v19644_v58  ;;  %27207 = vmatpush3.msra.mxu1 %v20452_v40 }
 0x8e7   :  { %27202 = vmatpush3.msra.mxu0 %v20377_v21  ;;  %27203 = vmatprep.mubr.msk.f32.mxu0 %vm28339_vm0, %v36250_v57 }
 0x8e8   :  { %27208 = vmatprep.mubr.msk.f32.mxu1 %vm28339_vm0, %v36250_v57  ;;  %27211 = vmatprep.subr.mxu0 %v36250_v57 }
 0x8e9   :  { %27216 = vmatprep.subr.mxu1 %v36250_v57 }
 0x900   :  { %v33268_v25 = vpop.f32.mrb[224].mxu1  ;;  %v33270_v39 = vpop.f32.mrb[224].mxu0 }
 0x901   :  { %36698 = vst [vmem:[#allocation59_spill] sm:$0xff] %v33268_v25  ;;  %36699 = vst [vmem:[#allocation103_spill] sm:$0xff] %v33270_v39  ;;  %v26890_v10 = vpop.f32.mrb[225].mxu1  ;;  %v26885_v35 = vpop.f32.mrb[225].mxu0 }
 0x904   :  { %v33272_v2 = vpop.f32.mrb[226].mxu0 }
 0x905   :  { %36700 = vst [vmem:[#allocation259_spill] sm:$0xff] %v33272_v2  ;;  %v26895_v0 = vpop.f32.mrb[227].mxu0 }
 0x908   :  { %v33274_v46 = vpop.f32.mrb[226].mxu1 }
 0x909   :  { %36701 = vst [vmem:[#allocation23_spill] sm:$0xff] %v33274_v46  ;;  %v26900_v59 = vpop.f32.mrb[227].mxu1 }
 0x90c   :  { %v33276_v49 = vpop.f32.mrb[228].mxu1  ;;  %v33278_v28 = vpop.f32.mrb[228].mxu0 }
 0x90d   :  { %36702 = vst [vmem:[#allocation115_spill] sm:$0xff] %v33276_v49  ;;  %36703 = vst [vmem:[#allocation60_spill] sm:$0xff] %v33278_v28  ;;  %v26910_v60 = vpop.f32.mrb[229].mxu1  ;;  %v26905_v61 = vpop.f32.mrb[229].mxu0 }
 0x911   :  { %v33280_v34 = vpop.f32.mrb[230].mxu0  ;;  %v33282_v41 = vpop.f32.mrb[230].mxu1 }
 0x912   :  { %36704 = vst [vmem:[#allocation62_spill] sm:$0xff] %v33280_v34  ;;  %36705 = vst [vmem:[#allocation111_spill] sm:$0xff] %v33282_v41  ;;  %v26915_v8 = vpop.f32.mrb[231].mxu0  ;;  %v26920_v16 = vpop.f32.mrb[231].mxu1 }
 0x916   :  { %v33284_v15 = vpop.f32.mrb[232].mxu0  ;;  %v33286_v43 = vpop.f32.mrb[232].mxu1 }
 0x917   :  { %36706 = vst [vmem:[#allocation272_spill] sm:$0xff] %v33284_v15  ;;  %36707 = vst [vmem:[#allocation271_spill] sm:$0xff] %v33286_v43  ;;  %v26925_v32 = vpop.f32.mrb[233].mxu0  ;;  %v26930_v42 = vpop.f32.mrb[233].mxu1 }
 0x91c   :  { %v33288_v51 = vpop.f32.mrb[234].mxu0  ;;  %v33290_v17 = vpop.f32.mrb[234].mxu1 }
 0x91d   :  { %36708 = vst [vmem:[#allocation123_spill] sm:$0xff] %v33288_v51  ;;  %36709 = vst [vmem:[#allocation63_spill] sm:$0xff] %v33290_v17  ;;  %v26935_v47 = vpop.f32.mrb[235].mxu0  ;;  %v26940_v31 = vpop.f32.mrb[235].mxu1 }
 0x921   :  { %v33292_v9 = vpop.f32.mrb[236].mxu0  ;;  %v33294_v36 = vpop.f32.mrb[236].mxu1 }
 0x922   :  { %36710 = vst [vmem:[#allocation41_spill] sm:$0xff] %v33292_v9  ;;  %36711 = vst [vmem:[#allocation263_spill] sm:$0xff] %v33294_v36  ;;  %v26945_v23 = vpop.f32.mrb[237].mxu0  ;;  %v26950_v56 = vpop.f32.mrb[237].mxu1  ;;  %v36735_v9 = vld [vmem:[#allocation132_spill] sm:$0xff] }
 0x926   :  { %v33296_v58 = vpop.f32.mrb[238].mxu0  ;;  %v33298_v40 = vpop.f32.mrb[238].mxu1 }
 0x927   :  { %36712 = vst [vmem:[#allocation65_spill] sm:$0xff] %v33296_v58  ;;  %36713 = vst [vmem:[#allocation119_spill] sm:$0xff] %v33298_v40  ;;  %v26955_v21 = vpop.f32.mrb[239].mxu0  ;;  %v26960_v10 = vpop.f32.mrb[239].mxu1  ;;  %v36732_v58 = vld [vmem:[#allocation130_spill] sm:$0xff] }
 0x92c   :  { %v33300_v35 = vpop.f32.mrb[240].mxu0  ;;  %v33302_v0 = vpop.f32.mrb[240].mxu1 }
 0x92d   :  { %36714 = vst [vmem:[#allocation27_spill] sm:$0xff] %v33300_v35  ;;  %36715 = vst [vmem:[#allocation38_spill] sm:$0xff] %v33302_v0  ;;  %v26965_v59 = vpop.f32.mrb[241].mxu0  ;;  %v26970_v60 = vpop.f32.mrb[241].mxu1  ;;  %v36730_v35 = vld [vmem:[#allocation127_spill] sm:$0xff] }
 0x931   :  { %v33304_v61 = vpop.f32.mrb[242].mxu0  ;;  %v33306_v8 = vpop.f32.mrb[242].mxu1 }
 0x932   :  { %36716 = vst [vmem:[#allocation69_spill] sm:$0xff] %v33304_v61  ;;  %36717 = vst [vmem:[#allocation66_spill] sm:$0xff] %v33306_v8  ;;  %v26975_v16 = vpop.f32.mrb[243].mxu0  ;;  %v26980_v32 = vpop.f32.mrb[243].mxu1 }
 0x936   :  { %v33308_v42 = vpop.f32.mrb[244].mxu0  ;;  %v33310_v47 = vpop.f32.mrb[244].mxu1 }
 0x937   :  { %36718 = vst [vmem:[#allocation28_spill] sm:$0xff] %v33308_v42  ;;  %36719 = vst [vmem:[#allocation44_spill] sm:$0xff] %v33310_v47  ;;  %v26985_v31 = vpop.f32.mrb[245].mxu0  ;;  %v26990_v23 = vpop.f32.mrb[245].mxu1 }
 0x93b   :  { %v33312_v56 = vpop.f32.mrb[246].mxu0  ;;  %v33314_v21 = vpop.f32.mrb[246].mxu1 }
 0x93c   :  { %36720 = vst [vmem:[#allocation72_spill] sm:$0xff] %v33312_v56  ;;  %36721 = vst [vmem:[#allocation70_spill] sm:$0xff] %v33314_v21  ;;  %v26995_v10 = vpop.f32.mrb[247].mxu0  ;;  %v27000_v0 = vpop.f32.mrb[247].mxu1 }
 0x940   :  { %v33316_v59 = vpop.f32.mrb[248].mxu0  ;;  %v33318_v60 = vpop.f32.mrb[248].mxu1 }
 0x941   :  { %36722 = vst [vmem:[#allocation47_spill] sm:$0xff] %v33316_v59  ;;  %36723 = vst [vmem:[#allocation32_spill] sm:$0xff] %v33318_v60  ;;  %v27005_v61 = vpop.f32.mrb[249].mxu0  ;;  %v27010_v8 = vpop.f32.mrb[249].mxu1 }
 0x945   :  { %v33320_v16 = vpop.f32.mrb[250].mxu0  ;;  %v33322_v32 = vpop.f32.mrb[250].mxu1 }
 0x946   :  { %36724 = vst [vmem:[#allocation76_spill] sm:$0xff] %v33320_v16  ;;  %36725 = vst [vmem:[#allocation73_spill] sm:$0xff] %v33322_v32  ;;  %v27015_v42 = vpop.f32.mrb[251].mxu0  ;;  %v27020_v47 = vpop.f32.mrb[251].mxu1  ;;  %v36731_v32 = vld [vmem:[#allocation126_spill] sm:$0xff] }
 0x94a   :  { %v33324_v31 = vpop.f32.mrb[252].mxu0  ;;  %v33326_v23 = vpop.f32.mrb[252].mxu1 }
 0x94b   :  { %36726 = vst [vmem:[#allocation31_spill] sm:$0xff] %v33324_v31  ;;  %36727 = vst [vmem:[#allocation51_spill] sm:$0xff] %v33326_v23  ;;  %v27025_v56 = vpop.f32.mrb[253].mxu0  ;;  %v27030_v21 = vpop.f32.mrb[253].mxu1  ;;  %v36733_v23 = vld [vmem:[#allocation128_spill] sm:$0xff] }
 0x978   :  { %v33328_v10 = vpop.f32.mrb[254].mxu1 }
 0x979   :  { %36728 = vst [vmem:[#allocation80_spill] sm:$0xff] %v33328_v10  ;;  %v33330_v0 = vpop.f32.mrb[254].mxu0  ;;  %v27040_v59 = vpop.f32.mrb[255].mxu1 }
 0x97a   :  { %36729 = vst [vmem:[#allocation77_spill] sm:$0xff] %v33330_v0  ;;  %v27035_v60 = vpop.f32.mrb[255].mxu0 }
 0x97b   :  { %v36734_v60 = vld [vmem:[#allocation129_spill] sm:$0xff] }
 0x97c   :  { %v17455_v61 = vpop.f32.mrb[0].mxu1 }
 0x97d   :  { %v17377_v8 = vpop.f32.mrb[0].mxu0  ;;  %v19800_v16 = vmul.f32 %v17455_v61, %v36730_v35  ;;  %v27050_v40 = vpop.f32.mrb[1].mxu1 }
 0x97e   :  { %v19799_v42 = vmul.f32 %v17377_v8, %v36731_v32  ;;  %v27045_v47 = vpop.f32.mrb[1].mxu0  ;;  %v36737_v8 = vld [vmem:[#allocation136_spill] sm:$0xff] }
 0x97f   :  { %v33335_v31 = vadd.f32 %v19800_v16, %v36732_v58  ;;  %v36736_v58 = vld [vmem:[#allocation131_spill] sm:$0xff]  ;;  %v36738_v47 = vld [vmem:[#allocation133_spill] sm:$0xff] }
 0x980   :  { %v33338_v56 = vadd.f32 %v19799_v42, %v36733_v23  ;;  %v17611_v21 = vpop.f32.mrb[2].mxu1 }
 0x981   :  { %v17533_v10 = vpop.f32.mrb[2].mxu0  ;;  %v27060_v36 = vpop.f32.mrb[3].mxu1  ;;  %v19866_v59 = vsel %vm3604_vm2, %v33335_v31, -inf  ;;  %v19802_v35 = vmul.f32 %v17611_v21, %v36735_v9 }
 0x982   :  { %v19801_v0 = vmul.f32 %v17533_v10, %v36734_v60  ;;  %v27055_v40 = vpop.f32.mrb[3].mxu0  ;;  %19867 = vmax.xlane.f32.xlu1 %v19866_v59  ;;  %v19863_v32 = vsel %vm3604_vm2, %v33338_v56, -inf  ;;  %v36739_v10 = vld [vmem:[#allocation134_spill] sm:$0xff]  ;;  %v36740_v59 = vld [vmem:[#allocation137_spill] sm:$0xff] }
 0x983   :  { %19864 = vmax.xlane.f32.xlu0 %v19863_v32  ;;  %v33351_v17 = vadd.f32 %v19802_v35, %v36738_v47  ;;  %v36742_v35 = vld [vmem:[#allocation135_spill] sm:$0xff] }
 0x984   :  { %v33347_v16 = vadd.f32 %v19801_v0, %v36736_v58  ;;  %v17767_v23 = vpop.f32.mrb[4].mxu1  ;;  %v36741_v58 = vld [vmem:[#allocation140_spill] sm:$0xff] }
 0x985   :  { %v17689_v61 = vpop.f32.mrb[4].mxu0  ;;  %v19804_v36 = vmul.f32 %v17767_v23, %v36737_v8  ;;  %v27070_v42 = vpop.f32.mrb[5].mxu1 }
 0x986   :  { %v19803_v60 = vmul.f32 %v17689_v61, %v36739_v10  ;;  %v27065_v9 = vpop.f32.mrb[5].mxu0  ;;  %v19869_v21 = vsel %vm3604_vm2, %v33347_v16, -inf  ;;  %v36743_v61 = vld [vmem:[#allocation138_spill] sm:$0xff]  ;;  %v36744_v10 = vld [vmem:[#allocation141_spill] sm:$0xff] }
 0x987   :  { %v33357_v40 = vadd.f32 %v19804_v36, %v36740_v59  ;;  %19870 = vmax.xlane.f32.xlu0 %v19869_v21  ;;  %v19872_v36 = vsel %vm3604_vm2, %v33351_v17, -inf }
 0x988   :  { %v17923_v0 = vpop.f32.mrb[6].mxu1  ;;  %v33363_v8 = vadd.f32 %v19803_v60, %v36742_v35  ;;  %v36746_v35 = vld [vmem:[#allocation139_spill] sm:$0xff] }
 0x989   :  { %v17845_v32 = vpop.f32.mrb[6].mxu0  ;;  %v19806_v51 = vmul.f32 %v17923_v0, %v36741_v58  ;;  %v27080_v43 = vpop.f32.mrb[7].mxu1  ;;  %v19878_v23 = vsel %vm3604_vm2, %v33357_v40, -inf }
 0x98a   :  { %v19805_v42 = vmul.f32 %v17845_v32, %v36743_v61  ;;  %v27075_v47 = vpop.f32.mrb[7].mxu0  ;;  %19879 = vmax.xlane.f32.xlu1 %v19878_v23  ;;  %v36745_v43 = vld [vmem:[#allocation144_spill] sm:$0xff]  ;;  %v36747_v32 = vld [vmem:[#allocation142_spill] sm:$0xff] }
 0x98b   :  { %v33369_v9 = vadd.f32 %v19806_v51, %v36744_v10  ;;  %19873 = vmax.xlane.f32.xlu0 %v19872_v36  ;;  %v19875_v51 = vsel %vm3604_vm2, %v33363_v8, -inf  ;;  %v36748_v47 = vld [vmem:[#allocation145_spill] sm:$0xff] }
 0x98c   :  { %v18079_v21 = vpop.f32.mrb[8].mxu1  ;;  %v33375_v15 = vadd.f32 %v19805_v42, %v36746_v35  ;;  %v36750_v35 = vld [vmem:[#allocation143_spill] sm:$0xff] }
 0x98d   :  { %v18001_v59 = vpop.f32.mrb[8].mxu0  ;;  %v19808_v0 = vmul.f32 %v18079_v21, %v36745_v43  ;;  %v27090_v58 = vpop.f32.mrb[9].mxu1  ;;  %v19884_v60 = vsel %vm3604_vm2, %v33369_v9, -inf  ;;  %v36749_v43 = vld [vmem:[#allocation148_spill] sm:$0xff] }
 0x98e   :  { %v19807_v23 = vmul.f32 %v18001_v59, %v36747_v32  ;;  %v27085_v61 = vpop.f32.mrb[9].mxu0  ;;  %19885 = vmax.xlane.f32.xlu1 %v19884_v60  ;;  %v36751_v59 = vld [vmem:[#allocation146_spill] sm:$0xff] }
 0x98f   :  { %v33381_v36 = vadd.f32 %v19808_v0, %v36748_v47  ;;  %19876 = vmax.xlane.f32.xlu0 %v19875_v51  ;;  %v19881_v0 = vsel %vm3604_vm2, %v33375_v15, -inf  ;;  %v36752_v61 = vld [vmem:[#allocation149_spill] sm:$0xff] }
 0x990   :  { %v18235_v10 = vpop.f32.mrb[10].mxu1  ;;  %v33387_v34 = vadd.f32 %v19807_v23, %v36750_v35  ;;  %v36754_v35 = vld [vmem:[#allocation147_spill] sm:$0xff] }
 0x991   :  { %v18157_v21 = vpop.f32.mrb[10].mxu0  ;;  %v19810_v58 = vmul.f32 %v18235_v10, %v36749_v43  ;;  %v27100_v41 = vpop.f32.mrb[11].mxu1  ;;  %v19890_v42 = vsel %vm3604_vm2, %v33381_v36, -inf }
 0x992   :  { %v19809_v60 = vmul.f32 %v18157_v21, %v36751_v59  ;;  %v27095_v32 = vpop.f32.mrb[11].mxu0  ;;  %19891 = vmax.xlane.f32.xlu1 %v19890_v42  ;;  %v36753_v41 = vld [vmem:[#allocation152_spill] sm:$0xff]  ;;  %v36755_v21 = vld [vmem:[#allocation150_spill] sm:$0xff] }
 0x993   :  { %v33393_v51 = vadd.f32 %v19810_v58, %v36752_v61  ;;  %19882 = vmax.xlane.f32.xlu0 %v19881_v0  ;;  %v19887_v58 = vsel %vm3604_vm2, %v33387_v34, -inf  ;;  %v36756_v32 = vld [vmem:[#allocation153_spill] sm:$0xff] }
 0x994   :  { %v18391_v47 = vpop.f32.mrb[12].mxu1  ;;  %v33399_v28 = vadd.f32 %v19809_v60, %v36754_v35  ;;  %v36758_v35 = vld [vmem:[#allocation151_spill] sm:$0xff] }
 0x995   :  { %v18313_v10 = vpop.f32.mrb[12].mxu0  ;;  %v19812_v43 = vmul.f32 %v18391_v47, %v36753_v41  ;;  %v27110_v49 = vpop.f32.mrb[13].mxu1  ;;  %v19896_v23 = vsel %vm3604_vm2, %v33393_v51, -inf }
 0x996   :  { %v19811_v42 = vmul.f32 %v18313_v10, %v36755_v21  ;;  %v27105_v59 = vpop.f32.mrb[13].mxu0  ;;  %19897 = vmax.xlane.f32.xlu1 %v19896_v23  ;;  %v36757_v49 = vld [vmem:[#allocation156_spill] sm:$0xff]  ;;  %v36759_v10 = vld [vmem:[#allocation154_spill] sm:$0xff] }
 0x997   :  { %v33405_v0 = vadd.f32 %v19812_v43, %v36756_v32  ;;  %19888 = vmax.xlane.f32.xlu0 %v19887_v58  ;;  %v19893_v43 = vsel %vm3604_vm2, %v33399_v28, -inf  ;;  %v36760_v59 = vld [vmem:[#allocation157_spill] sm:$0xff] }
 0x998   :  { %v18547_v61 = vpop.f32.mrb[14].mxu1  ;;  %v33411_v2 = vadd.f32 %v19811_v42, %v36758_v35  ;;  %v36762_v35 = vld [vmem:[#allocation155_spill] sm:$0xff] }
 0x999   :  { %v18469_v47 = vpop.f32.mrb[14].mxu0  ;;  %v19814_v41 = vmul.f32 %v18547_v61, %v36757_v49  ;;  %v27120_v46 = vpop.f32.mrb[15].mxu1  ;;  %v19902_v60 = vsel %vm3604_vm2, %v33405_v0, -inf }
 0x99a   :  { %v19813_v23 = vmul.f32 %v18469_v47, %v36759_v10  ;;  %v27115_v21 = vpop.f32.mrb[15].mxu0  ;;  %19903 = vmax.xlane.f32.xlu1 %v19902_v60  ;;  %v36761_v46 = vld [vmem:[#allocation160_spill] sm:$0xff]  ;;  %v36763_v47 = vld [vmem:[#allocation158_spill] sm:$0xff] }
 0x99b   :  { %v33417_v58 = vadd.f32 %v19814_v41, %v36760_v59  ;;  %19894 = vmax.xlane.f32.xlu0 %v19893_v43  ;;  %v19899_v41 = vsel %vm3604_vm2, %v33411_v2, -inf  ;;  %v36764_v21 = vld [vmem:[#allocation162_spill] sm:$0xff] }
 0x99c   :  { %v18703_v32 = vpop.f32.mrb[16].mxu1  ;;  %v33423_v39 = vadd.f32 %v19813_v23, %v36762_v35  ;;  %v36766_v35 = vld [vmem:[#allocation159_spill] sm:$0xff] }
 0x99d   :  { %v18625_v61 = vpop.f32.mrb[16].mxu0  ;;  %v19816_v49 = vmul.f32 %v18703_v32, %v36761_v46  ;;  %v27130_v25 = vpop.f32.mrb[17].mxu1  ;;  %v19908_v42 = vsel %vm3604_vm2, %v33417_v58, -inf }
 0x99e   :  { %v19815_v60 = vmul.f32 %v18625_v61, %v36763_v47  ;;  %v27125_v10 = vpop.f32.mrb[17].mxu0  ;;  %19909 = vmax.xlane.f32.xlu1 %v19908_v42  ;;  %v36765_v25 = vld [vmem:[#allocation165_spill] sm:$0xff]  ;;  %v36767_v61 = vld [vmem:[#allocation163_spill] sm:$0xff] }
 0x99f   :  { %v33429_v43 = vadd.f32 %v19816_v49, %v36764_v21  ;;  %19900 = vmax.xlane.f32.xlu0 %v19899_v41  ;;  %v19905_v49 = vsel %vm3604_vm2, %v33423_v39, -inf  ;;  %v36768_v10 = vld [vmem:[#allocation168_spill] sm:$0xff] }
 0x9a0   :  { %v18859_v59 = vpop.f32.mrb[18].mxu1  ;;  %v33435_v50 = vadd.f32 %v19815_v60, %v36766_v35  ;;  %v36770_v35 = vld [vmem:[#allocation164_spill] sm:$0xff] }
 0x9a1   :  { %v18781_v32 = vpop.f32.mrb[18].mxu0  ;;  %v19818_v46 = vmul.f32 %v18859_v59, %v36765_v25  ;;  %v27140_v45 = vpop.f32.mrb[19].mxu1  ;;  %v19914_v23 = vsel %vm3604_vm2, %v33429_v43, -inf }
 0x9a2   :  { %v19817_v42 = vmul.f32 %v18781_v32, %v36767_v61  ;;  %v27135_v47 = vpop.f32.mrb[19].mxu0  ;;  %19915 = vmax.xlane.f32.xlu1 %v19914_v23  ;;  %v36769_v45 = vld [vmem:[#allocation173_spill] sm:$0xff] }
 0x9a3   :  { %v33441_v41 = vadd.f32 %v19818_v46, %v36768_v10  ;;  %19906 = vmax.xlane.f32.xlu0 %v19905_v49  ;;  %v36771_v32 = vld [vmem:[#allocation169_spill] sm:$0xff]  ;;  %v19911_v46 = vsel %vm3604_vm2, %v33435_v50, -inf  ;;  %v36772_v47 = vld [vmem:[#allocation174_spill] sm:$0xff] }
 0x9a4   :  { %v19015_v21 = vpop.f32.mrb[20].mxu1  ;;  %v33447_v24 = vadd.f32 %v19817_v42, %v36770_v35  ;;  %v36774_v35 = vld [vmem:[#allocation171_spill] sm:$0xff] }
 0x9a5   :  { %v18937_v59 = vpop.f32.mrb[20].mxu0  ;;  %v19820_v25 = vmul.f32 %v19015_v21, %v36769_v45  ;;  %v27150_v18 = vpop.f32.mrb[21].mxu1  ;;  %v19920_v60 = vsel %vm3604_vm2, %v33441_v41, -inf }
 0x9a6   :  { %v19819_v23 = vmul.f32 %v18937_v59, %v36771_v32  ;;  %v27145_v61 = vpop.f32.mrb[21].mxu0  ;;  %19921 = vmax.xlane.f32.xlu1 %v19920_v60  ;;  %v36773_v18 = vld [vmem:[#allocation179_spill] sm:$0xff]  ;;  %v36775_v59 = vld [vmem:[#allocation176_spill] sm:$0xff] }
 0x9a7   :  { %v33453_v49 = vadd.f32 %v19820_v25, %v36772_v47  ;;  %19912 = vmax.xlane.f32.xlu0 %v19911_v46  ;;  %v19917_v25 = vsel %vm3604_vm2, %v33447_v24, -inf  ;;  %v36776_v61 = vld [vmem:[#allocation181_spill] sm:$0xff] }
 0x9a8   :  { %v19171_v10 = vpop.f32.mrb[22].mxu1  ;;  %v33459_v44 = vadd.f32 %v19819_v23, %v36774_v35  ;;  %v36778_v35 = vld [vmem:[#allocation178_spill] sm:$0xff] }
 0x9a9   :  { %v19093_v21 = vpop.f32.mrb[22].mxu0  ;;  %v19822_v45 = vmul.f32 %v19171_v10, %v36773_v18  ;;  %v27160_v7 = vpop.f32.mrb[23].mxu1  ;;  %v19926_v42 = vsel %vm3604_vm2, %v33453_v49, -inf }
 0x9aa   :  { %v19821_v60 = vmul.f32 %v19093_v21, %v36775_v59  ;;  %v27155_v32 = vpop.f32.mrb[23].mxu0  ;;  %19927 = vmax.xlane.f32.xlu1 %v19926_v42  ;;  %v36777_v7 = vld [vmem:[#allocation186_spill] sm:$0xff] }
 0x9ab   :  { %v33465_v46 = vadd.f32 %v19822_v45, %v36776_v61  ;;  %19918 = vmax.xlane.f32.xlu0 %v19917_v25  ;;  %v36779_v21 = vld [vmem:[#allocation182_spill] sm:$0xff]  ;;  %v19923_v45 = vsel %vm3604_vm2, %v33459_v44, -inf  ;;  %v36780_v32 = vld [vmem:[#allocation188_spill] sm:$0xff] }
 0x9ac   :  { %v19327_v47 = vpop.f32.mrb[24].mxu1  ;;  %v33471_v20 = vadd.f32 %v19821_v60, %v36778_v35  ;;  %v36782_v35 = vld [vmem:[#allocation184_spill] sm:$0xff] }
 0x9ad   :  { %v19249_v10 = vpop.f32.mrb[24].mxu0  ;;  %v19824_v18 = vmul.f32 %v19327_v47, %v36777_v7  ;;  %v27170_v63 = vpop.f32.mrb[25].mxu1  ;;  %v19932_v23 = vsel %vm3604_vm2, %v33465_v46, -inf }
 0x9ae   :  { %v19823_v42 = vmul.f32 %v19249_v10, %v36779_v21  ;;  %v27165_v59 = vpop.f32.mrb[25].mxu0  ;;  %19933 = vmax.xlane.f32.xlu1 %v19932_v23  ;;  %v36781_v63 = vld [vmem:[#allocation192_spill] sm:$0xff]  ;;  %v36783_v10 = vld [vmem:[#allocation189_spill] sm:$0xff] }
 0x9af   :  { %v33477_v25 = vadd.f32 %v19824_v18, %v36780_v32  ;;  %19924 = vmax.xlane.f32.xlu0 %v19923_v45  ;;  %v19929_v18 = vsel %vm3604_vm2, %v33471_v20, -inf  ;;  %v36784_v59 = vld [vmem:[#allocation194_spill] sm:$0xff] }
 0x9b0   :  { %v19483_v61 = vpop.f32.mrb[26].mxu1  ;;  %v33483_v52 = vadd.f32 %v19823_v42, %v36782_v35  ;;  %v36786_v35 = vld [vmem:[#allocation191_spill] sm:$0xff] }
 0x9b1   :  { %v19405_v47 = vpop.f32.mrb[26].mxu0  ;;  %v19826_v7 = vmul.f32 %v19483_v61, %v36781_v63  ;;  %v27180_v55 = vpop.f32.mrb[27].mxu1  ;;  %v19938_v60 = vsel %vm3604_vm2, %v33477_v25, -inf }
 0x9b2   :  { %v19825_v23 = vmul.f32 %v19405_v47, %v36783_v10  ;;  %v27175_v21 = vpop.f32.mrb[27].mxu0  ;;  %19939 = vmax.xlane.f32.xlu1 %v19938_v60  ;;  %v36785_v55 = vld [vmem:[#allocation199_spill] sm:$0xff] }
 0x9b3   :  { %v33489_v45 = vadd.f32 %v19826_v7, %v36784_v59  ;;  %19930 = vmax.xlane.f32.xlu0 %v19929_v18  ;;  %v36787_v47 = vld [vmem:[#allocation195_spill] sm:$0xff]  ;;  %v19935_v7 = vsel %vm3604_vm2, %v33483_v52, -inf  ;;  %v36788_v21 = vld [vmem:[#allocation201_spill] sm:$0xff] }
 0x9b4   :  { %v19639_v32 = vpop.f32.mrb[28].mxu1  ;;  %v33495_v13 = vadd.f32 %v19825_v23, %v36786_v35  ;;  %v36790_v35 = vld [vmem:[#allocation198_spill] sm:$0xff] }
 0x9b5   :  { %v19561_v61 = vpop.f32.mrb[28].mxu0  ;;  %v19828_v63 = vmul.f32 %v19639_v32, %v36785_v55  ;;  %v27190_v54 = vpop.f32.mrb[29].mxu1  ;;  %v19944_v42 = vsel %vm3604_vm2, %v33489_v45, -inf }
 0x9b6   :  { %v19827_v60 = vmul.f32 %v19561_v61, %v36787_v47  ;;  %v27185_v10 = vpop.f32.mrb[29].mxu0  ;;  %19945 = vmax.xlane.f32.xlu1 %v19944_v42  ;;  %v36789_v54 = vld [vmem:[#allocation216_spill] sm:$0xff]  ;;  %v36791_v61 = vld [vmem:[#allocation203_spill] sm:$0xff] }
 0x9b7   :  { %v33501_v18 = vadd.f32 %v19828_v63, %v36788_v21  ;;  %19936 = vmax.xlane.f32.xlu0 %v19935_v7  ;;  %v19941_v63 = vsel %vm3604_vm2, %v33495_v13, -inf  ;;  %v36792_v10 = vld [vmem:[#allocation217_spill] sm:$0xff]  ;;  %v33515_v21 = vpop.permute.xlu1 %20601 }
 0x9b8   :  { %v19795_v59 = vpop.f32.mrb[30].mxu1  ;;  %v33507_v29 = vadd.f32 %v19827_v60, %v36790_v35  ;;  %v33530_v35 = vpop.permute.xlu0 %20526 }
 0x9b9   :  { %v19717_v32 = vpop.f32.mrb[30].mxu0  ;;  %v19830_v55 = vmul.f32 %v19795_v59, %v36789_v54  ;;  %v27200_v3 = vpop.f32.mrb[31].mxu1  ;;  %v19950_v23 = vsel %vm3604_vm2, %v33501_v18, -inf  ;;  %v36793_v59 = vld [vmem:[#allocation204_spill] sm:$0xff] }
 0x9ba   :  { %v19829_v42 = vmul.f32 %v19717_v32, %v36791_v61  ;;  %v27195_v47 = vpop.f32.mrb[31].mxu0  ;;  %19951 = vmax.xlane.f32.xlu1 %v19950_v23  ;;  %v19947_v60 = vsel %vm3604_vm2, %v33507_v29, -inf }
 0x9bb   :  { %v33513_v7 = vadd.f32 %v19830_v55, %v36792_v10  ;;  %19942 = vmax.xlane.f32.xlu0 %v19941_v63  ;;  %v33526_v23 = vpop.permute.xlu1 %20751 }
 0x9bc   :  { %v33520_v54 = vadd.f32 %v19829_v42, %v36793_v59  ;;  %v36795_v42 = vld [vmem:[#allocation120_spill] sm:$0xff]  ;;  %v33536_v47 = vpop.permute.xlu0 %20676 }
 0x9bd   :  { %v19956_v3 = vsel %vm3604_vm2, %v33513_v7, -inf }
 0x9be   :  { %19957 = vmax.xlane.f32.xlu1 %v19956_v3  ;;  %v19953_v32 = vsel %vm3604_vm2, %v33520_v54, -inf  ;;  %v36797_v3 = vld [vmem:[#allocation121_spill] sm:$0xff] }
 0x9bf   :  { %19948 = vmax.xlane.f32.xlu0 %v19947_v60  ;;  %v33528_v55 = vpop.permute.xlu1 %20901 }
 0x9c0   :  { %v33540_v10 = vpop.permute.xlu0 %20826 }
 0x9c3   :  { %19954 = vmax.xlane.f32.xlu0 %v19953_v32  ;;  %v33532_v61 = vpop.permute.xlu1 %21051 }
 0x9c4   :  { %36794 = vst [vmem:[#allocation55_spill] sm:$0xff] %v33532_v61  ;;  %v33546_v60 = vpop.permute.xlu0 %20976 }
 0x9c5   :  { %36799 = vst [vmem:[#allocation81_spill] sm:$0xff] %v33546_v60 }
 0x9c7   :  { %v33538_v63 = vpop.permute.xlu1 %21201 }
 0x9c8   :  { %36796 = vst [vmem:[#allocation36_spill] sm:$0xff] %v33538_v63  ;;  %v33550_v14 = vpop.permute.xlu0 %21126 }
 0x9c9   :  { %36801 = vst [vmem:[#allocation276_spill] sm:$0xff] %v33550_v14 }
 0x9cb   :  { %v33544_v59 = vpop.permute.xlu1 %21351 }
 0x9cc   :  { %36798 = vst [vmem:[#allocation84_spill] sm:$0xff] %v33544_v59 }
 0x9cf   :  { %22551 = vrot.lane.b32.xlu1 %v36795_v42, %s28342_s4  ;;  %v33548_v32 = vpop.permute.xlu1 %21501  ;;  %v33554_v42 = vpop.permute.xlu0 %21276 }
 0x9d0   :  { %36800 = vst [vmem:[#allocation35_spill] sm:$0xff] %v33548_v32  ;;  %36803 = vst [vmem:[#allocation85_spill] sm:$0xff] %v33554_v42 }
 0x9d3   :  { %v33552_v48 = vpop.permute.xlu1 %21651  ;;  %v33558_v38 = vpop.permute.xlu0 %21426 }
 0x9d4   :  { %36802 = vst [vmem:[#allocation88_spill] sm:$0xff] %v33552_v48  ;;  %36805 = vst [vmem:[#allocation89_spill] sm:$0xff] %v33558_v38 }
 0x9d7   :  { %v33556_v6 = vpop.permute.xlu1 %21801  ;;  %v33562_v63 = vpop.permute.xlu0 %21576 }
 0x9d8   :  { %36804 = vst [vmem:[#allocation92_spill] sm:$0xff] %v33556_v6  ;;  %36807 = vst [vmem:[#allocation93_spill] sm:$0xff] %v33562_v63 }
 0x9d9   :  { %22476 = vrot.lane.b32.xlu0 %v36797_v3, %s28342_s4 }
 0x9db   :  { %v33560_v27 = vpop.permute.xlu1 %21876  ;;  %v33566_v59 = vpop.permute.xlu0 %21726 }
 0x9dc   :  { %36806 = vst [vmem:[#allocation96_spill] sm:$0xff] %v33560_v27  ;;  %36809 = vst [vmem:[#allocation97_spill] sm:$0xff] %v33566_v59 }
 0x9df   :  { %v33564_v3 = vpop.permute.xlu1 %21951  ;;  %v33570_v32 = vpop.permute.xlu0 %22026 }
 0x9e0   :  { %36808 = vst [vmem:[#allocation100_spill] sm:$0xff] %v33564_v3  ;;  %36811 = vst [vmem:[#allocation101_spill] sm:$0xff] %v33570_v32 }
 0x9e3   :  { %v33568_v12 = vpop.permute.xlu1 %22101  ;;  %v33574_v48 = vpop.permute.xlu0 %22176 }
 0x9e4   :  { %36810 = vst [vmem:[#allocation105_spill] sm:$0xff] %v33568_v12  ;;  %36813 = vst [vmem:[#allocation109_spill] sm:$0xff] %v33574_v48 }
 0x9e7   :  { %v33572_v14 = vpop.permute.xlu1 %22251  ;;  %v33578_v6 = vpop.permute.xlu0 %22326 }
 0x9e8   :  { %36812 = vst [vmem:[#allocation104_spill] sm:$0xff] %v33572_v14  ;;  %36815 = vst [vmem:[#allocation113_spill] sm:$0xff] %v33578_v6 }
 0x9eb   :  { %v33576_v42 = vpop.permute.xlu1 %22401 }
 0x9ec   :  { %36814 = vst [vmem:[#allocation108_spill] sm:$0xff] %v33576_v42 }
 0xa0f   :  { %v19868_v38 = vpop.xlane.xlu1 %19867 }
 0xa10   :  { %v19960_v27 = vsub.f32 %v33335_v31, %v19868_v38  ;;  %v19865_v63 = vpop.xlane.xlu0 %19864 }
 0xa11   :  { %v19959_v3 = vsub.f32 %v33338_v56, %v19865_v63 }
 0xa12   :  { %v19993_v11 = vmul.f32 1.442695, %v19960_v27 }
 0xa13   :  { %v19991_v59 = vmul.f32 1.442695, %v19959_v3 }
 0xa14   :  { %28122 = vpow2.f32 %v19993_v11  ;;  %v19871_v12 = vpop.xlane.xlu0 %19870 }
 0xa15   :  { %28124 = vpow2.f32 %v19991_v59  ;;  %v19961_v32 = vsub.f32 %v33347_v16, %v19871_v12 }
 0xa17   :  { %v19995_v14 = vmul.f32 1.442695, %v19961_v32  ;;  %v19880_v61 = vpop.xlane.xlu1 %19879 }
 0xa18   :  { %v19964_v48 = vsub.f32 %v33357_v40, %v19880_v61  ;;  %v19874_v42 = vpop.xlane.xlu0 %19873 }
 0xa19   :  { %28126 = vpow2.f32 %v19995_v14  ;;  %v19962_v6 = vsub.f32 %v33351_v17, %v19874_v42 }
 0xa1a   :  { %v20001_v60 = vmul.f32 1.442695, %v19964_v48 }
 0xa1b   :  { %v19997_v38 = vmul.f32 1.442695, %v19962_v6  ;;  %v19886_v31 = vpop.xlane.xlu1 %19885 }
 0xa1c   :  { %v19966_v56 = vsub.f32 %v33369_v9, %v19886_v31  ;;  %v19877_v27 = vpop.xlane.xlu0 %19876 }
 0xa1d   :  { %28128 = vpow2.f32 %v19997_v38  ;;  %v19963_v11 = vsub.f32 %v33363_v8, %v19877_v27 }
 0xa1e   :  { %v33587_v63 = vpop.eup %28122  ;;  %28130 = vpow2.f32 %v20001_v60  ;;  %v20005_v16 = vmul.f32 1.442695, %v19966_v56 }
 0xa1f   :  { %v33589_v12 = vpop.eup %28124  ;;  %v19999_v40 = vmul.f32 1.442695, %v19963_v11  ;;  %v19892_v61 = vpop.xlane.xlu1 %19891  ;;  %v20058_v14 = vsel %vm3604_vm2, %v33587_v63, 0.0 }
 0xa20   :  { %v19968_v6 = vsub.f32 %v33381_v36, %v19892_v61  ;;  %v19883_v48 = vpop.xlane.xlu0 %19882  ;;  %20059 = vadd.xlane.f32.xlu1 %v20058_v14  ;;  %v20055_v17 = vsel %vm3604_vm2, %v33589_v12, 0.0 }
 0xa21   :  { %28132 = vpow2.f32 %v19999_v40  ;;  %v19965_v8 = vsub.f32 %v33375_v15, %v19883_v48  ;;  %20056 = vadd.xlane.f32.xlu0 %v20055_v17 }
 0xa22   :  { %28134 = vpow2.f32 %v20005_v16  ;;  %v20009_v59 = vmul.f32 1.442695, %v19968_v6 }
 0xa23   :  { %v33597_v9 = vpop.eup %28126  ;;  %v20003_v60 = vmul.f32 1.442695, %v19965_v8  ;;  %v19898_v32 = vpop.xlane.xlu1 %19897 }
 0xa24   :  { %v19970_v42 = vsub.f32 %v33393_v51, %v19898_v32  ;;  %v19889_v3 = vpop.xlane.xlu0 %19888  ;;  %v20061_v36 = vsel %vm3604_vm2, %v33597_v9, 0.0 }
 0xa25   :  { %28136 = vpow2.f32 %v20003_v60  ;;  %v19967_v38 = vsub.f32 %v33387_v34, %v19889_v3  ;;  %20062 = vadd.xlane.f32.xlu0 %v20061_v36 }
 0xa26   :  { %28138 = vpow2.f32 %v20009_v59  ;;  %v20013_v15 = vmul.f32 1.442695, %v19970_v42 }
 0xa27   :  { %v33603_v31 = vpop.eup %28128  ;;  %v20007_v56 = vmul.f32 1.442695, %v19967_v38  ;;  %v19904_v27 = vpop.xlane.xlu1 %19903 }
 0xa28   :  { %v19972_v11 = vsub.f32 %v33405_v0, %v19904_v27  ;;  %v19895_v16 = vpop.xlane.xlu0 %19894  ;;  %v20064_v51 = vsel %vm3604_vm2, %v33603_v31, 0.0  ;;  %v33608_v40 = vpop.eup %28130 }
 0xa29   :  { %28140 = vpow2.f32 %v20007_v56  ;;  %v19969_v61 = vsub.f32 %v33399_v28, %v19895_v16  ;;  %20065 = vadd.xlane.f32.xlu1 %v20064_v51  ;;  %v20070_v0 = vsel %vm3604_vm2, %v33608_v40, 0.0 }
 0xa2a   :  { %28142 = vpow2.f32 %v20013_v15  ;;  %v20017_v14 = vmul.f32 1.442695, %v19972_v11 }
 0xa2b   :  { %v33611_v34 = vpop.eup %28132  ;;  %v20011_v6 = vmul.f32 1.442695, %v19969_v61  ;;  %v19910_v48 = vpop.xlane.xlu1 %19909 }
 0xa2c   :  { %v19974_v17 = vsub.f32 %v33417_v58, %v19910_v48  ;;  %v19901_v8 = vpop.xlane.xlu0 %19900  ;;  %v20067_v59 = vsel %vm3604_vm2, %v33611_v34, 0.0  ;;  %v33618_v60 = vpop.eup %28134 }
 0xa2d   :  { %28144 = vpow2.f32 %v20011_v6  ;;  %v19971_v28 = vsub.f32 %v33411_v2, %v19901_v8  ;;  %20071 = vadd.xlane.f32.xlu1 %v20070_v0  ;;  %20068 = vadd.xlane.f32.xlu0 %v20067_v59  ;;  %v20076_v15 = vsel %vm3604_vm2, %v33618_v60, 0.0 }
 0xa2e   :  { %28146 = vpow2.f32 %v20017_v14  ;;  %v20021_v42 = vmul.f32 1.442695, %v19974_v17 }
 0xa2f   :  { %v33621_v32 = vpop.eup %28136  ;;  %v20015_v3 = vmul.f32 1.442695, %v19971_v28  ;;  %v19916_v58 = vpop.xlane.xlu1 %19915 }
 0xa30   :  { %v19976_v36 = vsub.f32 %v33429_v43, %v19916_v58  ;;  %v19907_v38 = vpop.xlane.xlu0 %19906  ;;  %v20073_v56 = vsel %vm3604_vm2, %v33621_v32, 0.0  ;;  %v33628_v27 = vpop.eup %28138 }
 0xa31   :  { %28148 = vpow2.f32 %v20015_v3  ;;  %v19973_v2 = vsub.f32 %v33423_v39, %v19907_v38  ;;  %20077 = vadd.xlane.f32.xlu1 %v20076_v15  ;;  %20074 = vadd.xlane.f32.xlu0 %v20073_v56  ;;  %v20082_v6 = vsel %vm3604_vm2, %v33628_v27, 0.0 }
 0xa32   :  { %28150 = vpow2.f32 %v20021_v42  ;;  %v20025_v16 = vmul.f32 1.442695, %v19976_v36 }
 0xa33   :  { %v33631_v11 = vpop.eup %28140  ;;  %v20019_v51 = vmul.f32 1.442695, %v19973_v2  ;;  %v19922_v43 = vpop.xlane.xlu1 %19921 }
 0xa34   :  { %v19978_v61 = vsub.f32 %v33441_v41, %v19922_v43  ;;  %v19913_v14 = vpop.xlane.xlu0 %19912  ;;  %v20079_v48 = vsel %vm3604_vm2, %v33631_v11, 0.0  ;;  %v33638_v17 = vpop.eup %28142 }
 0xa35   :  { %28152 = vpow2.f32 %v20019_v51  ;;  %v19975_v39 = vsub.f32 %v33435_v50, %v19913_v14  ;;  %20083 = vadd.xlane.f32.xlu1 %v20082_v6  ;;  %20080 = vadd.xlane.f32.xlu0 %v20079_v48  ;;  %v20088_v3 = vsel %vm3604_vm2, %v33638_v17, 0.0 }
 0xa36   :  { %28154 = vpow2.f32 %v20025_v16  ;;  %v20029_v0 = vmul.f32 1.442695, %v19978_v61 }
 0xa37   :  { %v33641_v8 = vpop.eup %28144  ;;  %v20023_v59 = vmul.f32 1.442695, %v19975_v39  ;;  %v19928_v41 = vpop.xlane.xlu1 %19927 }
 0xa38   :  { %v19980_v28 = vsub.f32 %v33453_v49, %v19928_v41  ;;  %v19919_v42 = vpop.xlane.xlu0 %19918  ;;  %v20085_v58 = vsel %vm3604_vm2, %v33641_v8, 0.0  ;;  %v33648_v36 = vpop.eup %28146 }
 0xa39   :  { %28156 = vpow2.f32 %v20023_v59  ;;  %v19977_v50 = vsub.f32 %v33447_v24, %v19919_v42  ;;  %20089 = vadd.xlane.f32.xlu1 %v20088_v3  ;;  %20086 = vadd.xlane.f32.xlu0 %v20085_v58  ;;  %v20094_v51 = vsel %vm3604_vm2, %v33648_v36, 0.0 }
 0xa3a   :  { %28158 = vpow2.f32 %v20029_v0  ;;  %v20033_v15 = vmul.f32 1.442695, %v19980_v28 }
 0xa3b   :  { %v33651_v38 = vpop.eup %28148  ;;  %v20027_v56 = vmul.f32 1.442695, %v19977_v50  ;;  %v19934_v49 = vpop.xlane.xlu1 %19933 }
 0xa3c   :  { %v19982_v2 = vsub.f32 %v33465_v46, %v19934_v49  ;;  %v19925_v16 = vpop.xlane.xlu0 %19924  ;;  %v20091_v43 = vsel %vm3604_vm2, %v33651_v38, 0.0  ;;  %v33658_v61 = vpop.eup %28150 }
 0xa3d   :  { %28160 = vpow2.f32 %v20027_v56  ;;  %v19979_v24 = vsub.f32 %v33459_v44, %v19925_v16  ;;  %20095 = vadd.xlane.f32.xlu1 %v20094_v51  ;;  %20092 = vadd.xlane.f32.xlu0 %v20091_v43  ;;  %v20100_v41 = vsel %vm3604_vm2, %v33658_v61, 0.0 }
 0xa3e   :  { %28162 = vpow2.f32 %v20033_v15  ;;  %v20037_v6 = vmul.f32 1.442695, %v19982_v2 }
 0xa3f   :  { %v33661_v14 = vpop.eup %28152  ;;  %v20031_v48 = vmul.f32 1.442695, %v19979_v24  ;;  %v19940_v46 = vpop.xlane.xlu1 %19939 }
 0xa40   :  { %v19984_v39 = vsub.f32 %v33477_v25, %v19940_v46  ;;  %v19931_v0 = vpop.xlane.xlu0 %19930  ;;  %v20097_v59 = vsel %vm3604_vm2, %v33661_v14, 0.0  ;;  %v33668_v28 = vpop.eup %28154 }
 0xa41   :  { %28164 = vpow2.f32 %v20031_v48  ;;  %v19981_v44 = vsub.f32 %v33471_v20, %v19931_v0  ;;  %20098 = vadd.xlane.f32.xlu1 %v20097_v59  ;;  %20101 = vadd.xlane.f32.xlu0 %v20100_v41  ;;  %v20106_v49 = vsel %vm3604_vm2, %v33668_v28, 0.0 }
 0xa42   :  { %28166 = vpow2.f32 %v20037_v6  ;;  %v20041_v3 = vmul.f32 1.442695, %v19984_v39 }
 0xa43   :  { %v33671_v42 = vpop.eup %28156  ;;  %v20035_v58 = vmul.f32 1.442695, %v19981_v44  ;;  %v19946_v25 = vpop.xlane.xlu1 %19945 }
 0xa44   :  { %v19986_v50 = vsub.f32 %v33489_v45, %v19946_v25  ;;  %v19937_v15 = vpop.xlane.xlu0 %19936  ;;  %v20103_v56 = vsel %vm3604_vm2, %v33671_v42, 0.0  ;;  %v33678_v2 = vpop.eup %28158 }
 0xa45   :  { %28168 = vpow2.f32 %v20035_v58  ;;  %v19983_v20 = vsub.f32 %v33483_v52, %v19937_v15  ;;  %20104 = vadd.xlane.f32.xlu1 %v20103_v56  ;;  %20107 = vadd.xlane.f32.xlu0 %v20106_v49  ;;  %v20112_v46 = vsel %vm3604_vm2, %v33678_v2, 0.0 }
 0xa46   :  { %28170 = vpow2.f32 %v20041_v3  ;;  %v20045_v51 = vmul.f32 1.442695, %v19986_v50 }
 0xa47   :  { %v33681_v16 = vpop.eup %28160  ;;  %v20039_v43 = vmul.f32 1.442695, %v19983_v20  ;;  %v19952_v45 = vpop.xlane.xlu1 %19951 }
 0xa48   :  { %v19988_v24 = vsub.f32 %v33501_v18, %v19952_v45  ;;  %v19943_v6 = vpop.xlane.xlu0 %19942  ;;  %v20109_v48 = vsel %vm3604_vm2, %v33681_v16, 0.0  ;;  %v33688_v39 = vpop.eup %28162 }
 0xa49   :  { %28172 = vpow2.f32 %v20039_v43  ;;  %v19985_v52 = vsub.f32 %v33495_v13, %v19943_v6  ;;  %20110 = vadd.xlane.f32.xlu1 %v20109_v48  ;;  %20113 = vadd.xlane.f32.xlu0 %v20112_v46  ;;  %v20118_v25 = vsel %vm3604_vm2, %v33688_v39, 0.0 }
 0xa4a   :  { %28174 = vpow2.f32 %v20045_v51  ;;  %v20049_v59 = vmul.f32 1.442695, %v19988_v24 }
 0xa4b   :  { %v33691_v0 = vpop.eup %28164  ;;  %v20043_v41 = vmul.f32 1.442695, %v19985_v52  ;;  %v19958_v18 = vpop.xlane.xlu1 %19957 }
 0xa4c   :  { %v19990_v44 = vsub.f32 %v33513_v7, %v19958_v18  ;;  %v19949_v3 = vpop.xlane.xlu0 %19948  ;;  %v20115_v58 = vsel %vm3604_vm2, %v33691_v0, 0.0  ;;  %v33698_v50 = vpop.eup %28166 }
 0xa4d   :  { %28176 = vpow2.f32 %v20043_v41  ;;  %v19987_v13 = vsub.f32 %v33507_v29, %v19949_v3  ;;  %20116 = vadd.xlane.f32.xlu1 %v20115_v58  ;;  %20119 = vadd.xlane.f32.xlu0 %v20118_v25  ;;  %v20124_v51 = vsel %vm3604_vm2, %v33698_v50, 0.0 }
 0xa4e   :  { %28178 = vpow2.f32 %v20049_v59  ;;  %v20053_v56 = vmul.f32 1.442695, %v19990_v44 }
 0xa4f   :  { %v33701_v15 = vpop.eup %28168  ;;  %v20047_v49 = vmul.f32 1.442695, %v19987_v13 }
 0xa50   :  { %v19955_v7 = vpop.xlane.xlu0 %19954  ;;  %v20121_v20 = vsel %vm3604_vm2, %v33701_v15, 0.0  ;;  %v33707_v43 = vpop.eup %28170 }
 0xa51   :  { %28180 = vpow2.f32 %v20047_v49  ;;  %v19989_v45 = vsub.f32 %v33520_v54, %v19955_v7  ;;  %20122 = vadd.xlane.f32.xlu1 %v20121_v20  ;;  %20125 = vadd.xlane.f32.xlu0 %v20124_v51  ;;  %v20130_v48 = vsel %vm3604_vm2, %v33707_v43, 0.0  ;;  %v36816_v49 = vld [vmem:[#allocation124_spill] sm:$0xff]  ;;  %v36818_v20 = vld [vmem:[#allocation125_spill] sm:$0xff]  ;;  %v36819_v51 = vld [vmem:[#allocation274_spill] sm:$0xff] }
 0xa52   :  { %28182 = vpow2.f32 %v20053_v56  ;;  %v36817_v7 = vld [vmem:[#allocation196_spill] sm:$0xff] }
 0xa53   :  { %v33710_v29 = vpop.eup %28172  ;;  %v20051_v24 = vmul.f32 1.442695, %v19989_v45  ;;  %v36820_v45 = vld [vmem:[#allocation273_spill] sm:$0xff] }
 0xa54   :  { %v20127_v6 = vsel %vm3604_vm2, %v33710_v29, 0.0  ;;  %v33716_v46 = vpop.eup %28174 }
 0xa55   :  { %28184 = vpow2.f32 %v20051_v24  ;;  %20128 = vadd.xlane.f32.xlu1 %v20127_v6  ;;  %20131 = vadd.xlane.f32.xlu0 %v20130_v48  ;;  %v20136_v59 = vsel %vm3604_vm2, %v33716_v46, 0.0  ;;  %v36821_v24 = vld [vmem:[#allocation221_spill] sm:$0xff]  ;;  %v36822_v6 = vld [vmem:[#allocation223_spill] sm:$0xff] }
 0xa56   :  { %v36823_v48 = vld [vmem:[#allocation275_spill] sm:$0xff] }
 0xa57   :  { %v33718_v52 = vpop.eup %28176 }
 0xa58   :  { %v20133_v54 = vsel %vm3604_vm2, %v33718_v52, 0.0  ;;  %v33724_v41 = vpop.eup %28178 }
 0xa59   :  { %20134 = vadd.xlane.f32.xlu1 %v20133_v54  ;;  %20137 = vadd.xlane.f32.xlu0 %v20136_v59  ;;  %v20142_v3 = vsel %vm3604_vm2, %v33724_v41, 0.0  ;;  %v36824_v54 = vld [vmem:[#allocation200_spill] sm:$0xff]  ;;  %v36825_v59 = vld [vmem:[#allocation225_spill] sm:$0xff] }
 0xa5b   :  { %v33726_v18 = vpop.eup %28180 }
 0xa5c   :  { %v20139_v44 = vsel %vm3604_vm2, %v33726_v18, 0.0  ;;  %v33732_v58 = vpop.eup %28182 }
 0xa5d   :  { %20140 = vadd.xlane.f32.xlu1 %v20139_v44  ;;  %20143 = vadd.xlane.f32.xlu0 %v20142_v3  ;;  %v20148_v13 = vsel %vm3604_vm2, %v33732_v58, 0.0  ;;  %v36826_v44 = vld [vmem:[#allocation215_spill] sm:$0xff] }
 0xa5e   :  { %v36827_v3 = vld [vmem:[#allocation227_spill] sm:$0xff] }
 0xa5f   :  { %v33734_v25 = vpop.eup %28184 }
 0xa60   :  { %v20145_v56 = vsel %vm3604_vm2, %v33734_v25, 0.0 }
 0xa61   :  { %20149 = vadd.xlane.f32.xlu0 %v20148_v13  ;;  %20146 = vadd.xlane.f32.xlu1 %v20145_v56  ;;  %v36828_v13 = vld [vmem:[#allocation218_spill] sm:$0xff]  ;;  %v36829_v56 = vld [vmem:[#allocation229_spill] sm:$0xff] }
 0xa72   :  { %22701 = vrot.lane.b32.xlu1 %v36816_v49, %s28342_s4  ;;  %v36830_v49 = vld [vmem:[#allocation219_spill] sm:$0xff] }
 0xa76   :  { %9271 = vrot.lane.b32.xlu1 %v36817_v7, %s28343_s2  ;;  %v36831_v7 = vld [vmem:[#allocation232_spill] sm:$0xff] }
 0xa77   :  { %22626 = vrot.lane.b32.xlu0 %v36818_v20, %s28342_s4  ;;  %v36832_v20 = vld [vmem:[#allocation220_spill] sm:$0xff] }
 0xa7a   :  { %9273 = vrot.lane.b32.xlu1 %v36819_v51, %s28343_s2  ;;  %v36833_v51 = vld [vmem:[#allocation234_spill] sm:$0xff] }
 0xa7b   :  { %9269 = vrot.lane.b32.xlu0 %v36820_v45, %s28343_s2  ;;  %v36834_v45 = vld [vmem:[#allocation222_spill] sm:$0xff] }
 0xa7e   :  { %9275 = vrot.lane.b32.xlu1 %v36821_v24, %s28343_s2  ;;  %v36835_v24 = vld [vmem:[#allocation236_spill] sm:$0xff] }
 0xa7f   :  { %9277 = vrot.lane.b32.xlu0 %v36822_v6, %s28343_s2  ;;  %v36836_v6 = vld [vmem:[#allocation224_spill] sm:$0xff] }
 0xa82   :  { %9279 = vrot.lane.b32.xlu1 %v36823_v48, %s28343_s2  ;;  %v36837_v48 = vld [vmem:[#allocation238_spill] sm:$0xff] }
 0xa83   :  { %9281 = vrot.lane.b32.xlu0 %v36824_v54, %s28343_s2  ;;  %v36838_v54 = vld [vmem:[#allocation226_spill] sm:$0xff] }
 0xa86   :  { %9283 = vrot.lane.b32.xlu1 %v36825_v59, %s28343_s2  ;;  %v36839_v59 = vld [vmem:[#allocation240_spill] sm:$0xff] }
 0xa87   :  { %9285 = vrot.lane.b32.xlu0 %v36826_v44, %s28343_s2  ;;  %v36840_v44 = vld [vmem:[#allocation242_spill] sm:$0xff] }
 0xa8a   :  { %9287 = vrot.lane.b32.xlu1 %v36827_v3, %s28343_s2  ;;  %v36841_v3 = vld [vmem:[#allocation244_spill] sm:$0xff] }
 0xa8b   :  { %9289 = vrot.lane.b32.xlu0 %v36828_v13, %s28343_s2  ;;  %v36842_v13 = vld [vmem:[#allocation228_spill] sm:$0xff] }
 0xa8e   :  { %9291 = vrot.lane.b32.xlu1 %v36829_v56, %s28343_s2  ;;  %v33794_v56 = vpop.permute.xlu1 %22551 }
 0xa8f   :  { %9293 = vrot.lane.b32.xlu0 %v36830_v49, %s28343_s2  ;;  %v33796_v49 = vpop.permute.xlu0 %22476 }
 0xa92   :  { %9295 = vrot.lane.b32.xlu1 %v36831_v7, %s28343_s2  ;;  %v36843_v7 = vld [vmem:[#allocation246_spill] sm:$0xff] }
 0xa93   :  { %9297 = vrot.lane.b32.xlu0 %v36832_v20, %s28343_s2  ;;  %v36844_v20 = vld [vmem:[#allocation230_spill] sm:$0xff] }
 0xa96   :  { %9299 = vrot.lane.b32.xlu1 %v36833_v51, %s28343_s2 }
 0xa97   :  { %9301 = vrot.lane.b32.xlu0 %v36834_v45, %s28343_s2  ;;  %v36845_v45 = vld [vmem:[#allocation248_spill] sm:$0xff] }
 0xa9a   :  { %9303 = vrot.lane.b32.xlu1 %v36835_v24, %s28343_s2 }
 0xa9b   :  { %9305 = vrot.lane.b32.xlu0 %v36836_v6, %s28343_s2  ;;  %v36846_v6 = vld [vmem:[#allocation233_spill] sm:$0xff] }
 0xa9e   :  { %9307 = vrot.lane.b32.xlu1 %v36837_v48, %s28343_s2  ;;  %v36847_v48 = vld [vmem:[#allocation250_spill] sm:$0xff] }
 0xa9f   :  { %9309 = vrot.lane.b32.xlu0 %v36838_v54, %s28343_s2 }
 0xaa2   :  { %9311 = vrot.lane.b32.xlu1 %v36839_v59, %s28343_s2  ;;  %v36848_v59 = vld [vmem:[#allocation8_spill] sm:$0xff] }
 0xaa3   :  { %9313 = vrot.lane.b32.xlu0 %v36840_v44, %s28343_s2 }
 0xaa6   :  { %9315 = vrot.lane.b32.xlu1 %v36841_v3, %s28343_s2  ;;  %v36849_v3 = vld [vmem:[#allocation235_spill] sm:$0xff] }
 0xaa7   :  { %9317 = vrot.lane.b32.xlu0 %v36842_v13, %s28343_s2 }
 0xaaa   :  { %9319 = vrot.lane.b32.xlu1 %v36843_v7, %s28343_s2 }
 0xaab   :  { %9321 = vrot.lane.b32.xlu0 %v36844_v20, %s28343_s2 }
 0xaad   :  { %v20060_v51 = vpop.xlane.xlu1 %20059 }
 0xaae   :  { %28186 = vrcp.f32 %v20060_v51  ;;  %9323 = vrot.lane.b32.xlu1 %v36845_v45, %s28343_s2  ;;  %v20057_v24 = vpop.xlane.xlu0 %20056 }
 0xaaf   :  { %28188 = vrcp.f32 %v20057_v24  ;;  %9325 = vrot.lane.b32.xlu0 %v36846_v6, %s28343_s2 }
 0xab2   :  { %9327 = vrot.lane.b32.xlu1 %v36847_v48, %s28343_s2  ;;  %v20063_v54 = vpop.xlane.xlu0 %20062 }
 0xab3   :  { %28190 = vrcp.f32 %v20063_v54  ;;  %9329 = vrot.lane.b32.xlu0 %v36848_v59, %s28343_s2  ;;  %v36851_v54 = vld [vmem:[#allocation55_spill] sm:$0xff]  ;;  %v36852_v59 = vld [vmem:[#allocation48_spill] sm:$0xff] }
 0xab6   :  { %v20066_v44 = vpop.xlane.xlu1 %20065  ;;  %9331 = vrot.lane.b32.xlu1 %v36849_v3, %s28343_s2  ;;  %v36853_v3 = vld [vmem:[#allocation262_spill] sm:$0xff] }
 0xab7   :  { %28192 = vrcp.f32 %v20066_v44  ;;  %14774 = vrot.lane.b32.xlu0 %v32624_v33, %s28344_s26 }
 0xab8   :  { %v28187_v13 = vpop.eup %28186 }
 0xab9   :  { %v28189_v7 = vpop.eup %28188  ;;  %v33815_v20 = vmul.f32 %v28187_v13, %v33587_v63 }
 0xaba   :  { %v33818_v51 = vmul.f32 %v28189_v7, %v33589_v12  ;;  %v20072_v45 = vpop.xlane.xlu1 %20071  ;;  %14776 = vrot.lane.b32.xlu1 %v32627_v4, %s28344_s26  ;;  %v20069_v24 = vpop.xlane.xlu0 %20068 }
 0xabb   :  { %28194 = vrcp.f32 %v20072_v45  ;;  %14778 = vrot.lane.b32.xlu0 %v32640_v19, %s28344_s26  ;;  %27209 = vmatmul.mubr.msk.f32.vlgmr.msra.gmra.mrb[32].mxu1 %vm3604_vm2, %v33815_v20  ;;  %v36854_v45 = vld [vmem:[#allocation276_spill] sm:$0xff] }
 0xabc   :  { %28196 = vrcp.f32 %v20069_v24  ;;  %27204 = vmatmul.mubr.msk.f32.vlgmr.msra.gmra.mrb[32].mxu0 %vm3604_vm2, %v33818_v51  ;;  %27217 = vmatpush3.msra.mxu1 %v33515_v21 }
 0xabd   :  { %v28191_v33 = vpop.eup %28190  ;;  %27212 = vmatpush3.msra.mxu0 %v33530_v35  ;;  %27213 = vmatprep.mubr.msk.f32.mxu0 %vm28339_vm0, %v36250_v57 }
 0xabe   :  { %v33833_v4 = vmul.f32 %v28191_v33, %v33597_v9  ;;  %v20078_v63 = vpop.xlane.xlu1 %20077  ;;  %14780 = vrot.lane.b32.xlu1 %v32656_v37, %s28344_s26  ;;  %v20075_v19 = vpop.xlane.xlu0 %20074  ;;  %27221 = vmatprep.subr.mxu0 %v36250_v57  ;;  %v36855_v33 = vld [vmem:[#allocation36_spill] sm:$0xff] }
 0xabf   :  { %28198 = vrcp.f32 %v20078_v63  ;;  %14782 = vrot.lane.b32.xlu0 %v32675_v62, %s28344_s26  ;;  %27218 = vmatprep.mubr.msk.f32.mxu1 %vm28339_vm0, %v36250_v57  ;;  %v36856_v63 = vld [vmem:[#allocation79_spill] sm:$0xff] }
 0xac0   :  { %28200 = vrcp.f32 %v20075_v19  ;;  %27214 = vmatmul.mubr.msk.f32.vlgmr.msra.gmra.mrb[34].mxu0 %vm3604_vm2, %v33833_v4  ;;  %27226 = vmatprep.subr.mxu1 %v36250_v57 }
 0xac1   :  { %v28193_v21 = vpop.eup %28192  ;;  %27222 = vmatpush3.msra.mxu0 %v33536_v47  ;;  %27223 = vmatprep.mubr.msk.f32.mxu0 %vm28339_vm0, %v36250_v57 }
 0xac2   :  { %v33849_v37 = vmul.f32 %v28193_v21, %v33603_v31  ;;  %v20084_v35 = vpop.xlane.xlu1 %20083  ;;  %14784 = vrot.lane.b32.xlu1 %v32671_v30, %s28344_s26  ;;  %v20081_v62 = vpop.xlane.xlu0 %20080  ;;  %27231 = vmatprep.subr.mxu0 %v36250_v57  ;;  %v36857_v21 = vld [vmem:[#allocation91_spill] sm:$0xff] }
 0xac3   :  { %28202 = vrcp.f32 %v20084_v35  ;;  %14786 = vrot.lane.b32.xlu0 %v32694_v1, %s28344_s26 }
 0xac4   :  { %28204 = vrcp.f32 %v20081_v62  ;;  %27219 = vmatmul.mubr.msk.f32.vlgmr.msra.gmra.mrb[34].mxu1 %vm3604_vm2, %v33849_v37 }
 0xac5   :  { %v28195_v47 = vpop.eup %28194  ;;  %27227 = vmatpush3.msra.mxu1 %v33526_v23  ;;  %27228 = vmatprep.mubr.msk.f32.mxu1 %vm28339_vm0, %v36250_v57 }
 0xac6   :  { %v28197_v12 = vpop.eup %28196  ;;  %v33862_v30 = vmul.f32 %v28195_v47, %v33608_v40  ;;  %v20090_v9 = vpop.xlane.xlu1 %20089  ;;  %14788 = vrot.lane.b32.xlu1 %v32688_v22, %s28344_s26  ;;  %27236 = vmatprep.subr.mxu1 %v36250_v57  ;;  %v36858_v47 = vld [vmem:[#allocation85_spill] sm:$0xff] }
 0xac7   :  { %v20087_v31 = vpop.xlane.xlu0 %20086  ;;  %v33868_v1 = vmul.f32 %v28197_v12, %v33611_v34  ;;  %28206 = vrcp.f32 %v20090_v9  ;;  %14790 = vrot.lane.b32.xlu0 %v32713_v26, %s28344_s26  ;;  %v36859_v9 = vld [vmem:[#allocation84_spill] sm:$0xff] }
 0xac8   :  { %28208 = vrcp.f32 %v20087_v31  ;;  %27229 = vmatmul.mubr.msk.f32.vlgmr.msra.gmra.mrb[36].mxu1 %vm3604_vm2, %v33862_v30  ;;  %v36860_v31 = vld [vmem:[#allocation49_spill] sm:$0xff] }
 0xac9   :  { %v28199_v23 = vpop.eup %28198  ;;  %27224 = vmatmul.mubr.msk.f32.vlgmr.msra.gmra.mrb[36].mxu0 %vm3604_vm2, %v33868_v1  ;;  %27237 = vmatpush3.msra.mxu1 %v33528_v55 }
 0xaca   :  { %v28201_v22 = vpop.eup %28200  ;;  %v33878_v40 = vmul.f32 %v28199_v23, %v33618_v60  ;;  %27232 = vmatpush3.msra.mxu0 %v33540_v10  ;;  %v20096_v34 = vpop.xlane.xlu1 %20095  ;;  %14792 = vrot.lane.b32.xlu1 %v32710_v53, %s28344_s26  ;;  %v36850_v10 = vld [vmem:[#allocation81_spill] sm:$0xff] }
 0xacb   :  { %v20093_v26 = vpop.xlane.xlu0 %20092  ;;  %v33884_v6 = vmul.f32 %v28201_v22, %v33621_v32  ;;  %28210 = vrcp.f32 %v20096_v34  ;;  %27238 = vmatprep.mubr.msk.f32.mxu1 %vm28339_vm0, %v36250_v57  ;;  %27246 = vmatprep.subr.mxu1 %v36250_v57 }
 0xacc   :  { %28212 = vrcp.f32 %v20093_v26  ;;  %14794 = vrot.lane.b32.xlu0 %v32739_v5, %s28344_s26  ;;  %27233 = vmatprep.mubr.msk.f32.mxu0 %vm28339_vm0, %v36250_v57  ;;  %v36861_v26 = vld [vmem:[#allocation264_spill] sm:$0xff] }
 0xacd   :  { %v28203_v55 = vpop.eup %28202  ;;  %27241 = vmatprep.subr.mxu0 %v36250_v57  ;;  %27234 = vmatmul.mubr.msk.f32.vlgmr.msra.gmra.mrb[38].mxu0 %vm3604_vm2, %v33884_v6 }
 0xace   :  { %v28205_v53 = vpop.eup %28204  ;;  %27239 = vmatmul.mubr.msk.f32.vlgmr.msra.gmra.mrb[38].mxu1 %vm3604_vm2, %v33878_v40  ;;  %27242 = vmatpush3.msra.mxu0 %v36850_v10  ;;  %v20099_v60 = vpop.xlane.xlu1 %20098  ;;  %v33900_v48 = vmul.f32 %v28203_v55, %v33628_v27  ;;  %v36862_v55 = vld [vmem:[#allocation89_spill] sm:$0xff]  ;;  %v36863_v10 = vld [vmem:[#allocation35_spill] sm:$0xff] }
 0xacf   :  { %v20102_v32 = vpop.xlane.xlu0 %20101  ;;  %v33903_v5 = vmul.f32 %v28205_v53, %v33631_v11  ;;  %27247 = vmatpush3.msra.mxu1 %v36851_v54  ;;  %14796 = vrot.lane.b32.xlu1 %v36852_v59, %s28344_s26  ;;  %28214 = vrcp.f32 %v20099_v60  ;;  %v36864_v60 = vld [vmem:[#allocation266_spill] sm:$0xff] }
 0xad0   :  { %27248 = vmatprep.mubr.msk.f32.mxu1 %vm28339_vm0, %v36250_v57  ;;  %27256 = vmatprep.subr.mxu1 %v36250_v57  ;;  %28216 = vrcp.f32 %v20102_v32 }
 0xad1   :  { %v28207_v44 = vpop.eup %28206  ;;  %14798 = vrot.lane.b32.xlu0 %v36853_v3, %s28344_s26  ;;  %27243 = vmatprep.mubr.msk.f32.mxu0 %vm28339_vm0, %v36250_v57  ;;  %v36866_v3 = vld [vmem:[#allocation93_spill] sm:$0xff] }
 0xad2   :  { %v28209_v27 = vpop.eup %28208  ;;  %27251 = vmatprep.subr.mxu0 %v36250_v57  ;;  %27244 = vmatmul.mubr.msk.f32.vlgmr.msra.gmra.mrb[40].mxu0 %vm3604_vm2, %v33903_v5  ;;  %v20105_v11 = vpop.xlane.xlu1 %20104  ;;  %v33925_v24 = vmul.f32 %v28207_v44, %v33638_v17  ;;  %v36865_v44 = vld [vmem:[#allocation52_spill] sm:$0xff] }
 0xad3   :  { %v20108_v13 = vpop.xlane.xlu0 %20107  ;;  %v33919_v7 = vmul.f32 %v28209_v27, %v33641_v8  ;;  %27249 = vmatmul.mubr.msk.f32.vlgmr.msra.gmra.mrb[40].mxu1 %vm3604_vm2, %v33900_v48  ;;  %27252 = vmatpush3.msra.mxu0 %v36854_v45  ;;  %28218 = vrcp.f32 %v20105_v11  ;;  %v36867_v45 = vld [vmem:[#allocation88_spill] sm:$0xff] }
 0xad4   :  { %27257 = vmatpush3.msra.mxu1 %v36855_v33  ;;  %14800 = vrot.lane.b32.xlu1 %v36856_v63, %s28344_s26  ;;  %28220 = vrcp.f32 %v20108_v13  ;;  %v36868_v33 = vld [vmem:[#allocation87_spill] sm:$0xff] }
 0xad5   :  { %v28211_v19 = vpop.eup %28210  ;;  %27258 = vmatprep.mubr.msk.f32.mxu1 %vm28339_vm0, %v36250_v57  ;;  %27266 = vmatprep.subr.mxu1 %v36250_v57 }
 0xad6   :  { %v28213_v8 = vpop.eup %28212  ;;  %14802 = vrot.lane.b32.xlu0 %v36857_v21, %s28344_s26  ;;  %27253 = vmatprep.mubr.msk.f32.mxu0 %vm28339_vm0, %v36250_v57  ;;  %v20111_v17 = vpop.xlane.xlu1 %20110  ;;  %v33947_v12 = vmul.f32 %v28211_v19, %v33648_v36 }
 0xad7   :  { %v20114_v35 = vpop.xlane.xlu0 %20113  ;;  %27261 = vmatprep.subr.mxu0 %v36250_v57  ;;  %27254 = vmatmul.mubr.msk.f32.vlgmr.msra.gmra.mrb[42].mxu0 %vm3604_vm2, %v33919_v7  ;;  %v33941_v62 = vmul.f32 %v28213_v8, %v33651_v38  ;;  %28222 = vrcp.f32 %v20111_v17  ;;  %v36870_v17 = vld [vmem:[#allocation97_spill] sm:$0xff] }
 0xad8   :  { %27259 = vmatmul.mubr.msk.f32.vlgmr.msra.gmra.mrb[42].mxu1 %vm3604_vm2, %v33925_v24  ;;  %27262 = vmatpush3.msra.mxu0 %v36858_v47  ;;  %28224 = vrcp.f32 %v20114_v35  ;;  %v36871_v47 = vld [vmem:[#allocation92_spill] sm:$0xff] }
 0xad9   :  { %27267 = vmatpush3.msra.mxu1 %v36859_v9  ;;  %14804 = vrot.lane.b32.xlu1 %v36860_v31, %s28344_s26  ;;  %v28215_v23 = vpop.eup %28214  ;;  %v36872_v9 = vld [vmem:[#allocation268_spill] sm:$0xff] }
 0xada   :  { %27268 = vmatprep.mubr.msk.f32.mxu1 %vm28339_vm0, %v36250_v57  ;;  %27276 = vmatprep.subr.mxu1 %v36250_v57  ;;  %v20117_v38 = vpop.xlane.xlu1 %20116  ;;  %v28217_v34 = vpop.eup %28216  ;;  %v33963_v36 = vmul.f32 %v28215_v23, %v33661_v14  ;;  %v36873_v23 = vld [vmem:[#allocation99_spill] sm:$0xff] }
 0xadb   :  { %v20120_v22 = vpop.xlane.xlu0 %20119  ;;  %14806 = vrot.lane.b32.xlu0 %v36861_v26, %s28344_s26  ;;  %27263 = vmatprep.mubr.msk.f32.mxu0 %vm28339_vm0, %v36250_v57  ;;  %v33969_v53 = vmul.f32 %v28217_v34, %v33658_v61  ;;  %28226 = vrcp.f32 %v20117_v38  ;;  %v36874_v34 = vld [vmem:[#allocation96_spill] sm:$0xff] }
 0xadc   :  { %27271 = vmatprep.subr.mxu0 %v36250_v57  ;;  %27264 = vmatmul.mubr.msk.f32.vlgmr.msra.gmra.mrb[44].mxu0 %vm3604_vm2, %v33941_v62  ;;  %28228 = vrcp.f32 %v20120_v22 }
 0xadd   :  { %27269 = vmatmul.mubr.msk.f32.vlgmr.msra.gmra.mrb[44].mxu1 %vm3604_vm2, %v33947_v12  ;;  %27272 = vmatpush3.msra.mxu0 %v36862_v55  ;;  %v28219_v59 = vpop.eup %28218  ;;  %v36875_v55 = vld [vmem:[#allocation100_spill] sm:$0xff] }
 0xade   :  { %27277 = vmatpush3.msra.mxu1 %v36863_v10  ;;  %14808 = vrot.lane.b32.xlu1 %v36864_v60, %s28344_s26  ;;  %v20123_v32 = vpop.xlane.xlu1 %20122  ;;  %v28221_v14 = vpop.eup %28220  ;;  %v33985_v61 = vmul.f32 %v28219_v59, %v33671_v42  ;;  %v36869_v42 = vld [vmem:[#allocation265_spill] sm:$0xff] }
 0xadf   :  { %v20126_v54 = vpop.xlane.xlu0 %20125  ;;  %27278 = vmatprep.mubr.msk.f32.mxu1 %vm28339_vm0, %v36250_v57  ;;  %27286 = vmatprep.subr.mxu1 %v36250_v57  ;;  %v33991_v13 = vmul.f32 %v28221_v14, %v33668_v28  ;;  %28230 = vrcp.f32 %v20123_v32  ;;  %v36876_v10 = vld [vmem:[#allocation53_spill] sm:$0xff]  ;;  %v36877_v32 = vld [vmem:[#allocation56_spill] sm:$0xff] }
 0xae0   :  { %14810 = vrot.lane.b32.xlu0 %v36865_v44, %s28344_s26  ;;  %27273 = vmatprep.mubr.msk.f32.mxu0 %vm28339_vm0, %v36250_v57  ;;  %28232 = vrcp.f32 %v20126_v54  ;;  %v36878_v14 = vld [vmem:[#allocation101_spill] sm:$0xff] }
 0xae1   :  { %27281 = vmatprep.subr.mxu0 %v36250_v57  ;;  %27274 = vmatmul.mubr.msk.f32.vlgmr.msra.gmra.mrb[46].mxu0 %vm3604_vm2, %v33963_v36  ;;  %v28223_v63 = vpop.eup %28222 }
 0xae2   :  { %27279 = vmatmul.mubr.msk.f32.vlgmr.msra.gmra.mrb[46].mxu1 %vm3604_vm2, %v33969_v53  ;;  %27282 = vmatpush3.msra.mxu0 %v36866_v3  ;;  %v20129_v27 = vpop.xlane.xlu1 %20128  ;;  %v28225_v19 = vpop.eup %28224  ;;  %v34007_v21 = vmul.f32 %v28223_v63, %v33681_v16  ;;  %v36879_v3 = vld [vmem:[#allocation105_spill] sm:$0xff] }
 0xae3   :  { %v20132_v11 = vpop.xlane.xlu0 %20131  ;;  %27287 = vmatpush3.msra.mxu1 %v36867_v45  ;;  %14812 = vrot.lane.b32.xlu1 %v36868_v33, %s28344_s26  ;;  %v34013_v35 = vmul.f32 %v28225_v19, %v33678_v2  ;;  %28234 = vrcp.f32 %v20129_v27  ;;  %v36880_v27 = vld [vmem:[#allocation95_spill] sm:$0xff] }
 0xae4   :  { %14814 = vrot.lane.b32.xlu0 %v36869_v42, %s28344_s26  ;;  %27283 = vmatprep.mubr.msk.f32.mxu0 %vm28339_vm0, %v36250_v57  ;;  %28236 = vrcp.f32 %v20132_v11  ;;  %v36882_v42 = vld [vmem:[#allocation109_spill] sm:$0xff] }
 0xae5   :  { %27288 = vmatprep.mubr.msk.f32.mxu1 %vm28339_vm0, %v36250_v57  ;;  %27291 = vmatprep.subr.mxu0 %v36250_v57  ;;  %v28227_v31 = vpop.eup %28226 }
 0xae6   :  { %27296 = vmatprep.subr.mxu1 %v36250_v57  ;;  %27284 = vmatmul.mubr.msk.f32.vlgmr.msra.gmra.mrb[48].mxu0 %vm3604_vm2, %v33985_v61  ;;  %v20135_v28 = vpop.xlane.xlu1 %20134  ;;  %v28229_v16 = vpop.eup %28228  ;;  %v34029_v22 = vmul.f32 %v28227_v31, %v33691_v0 }
 0xae7   :  { %v20138_v8 = vpop.xlane.xlu0 %20137  ;;  %27289 = vmatmul.mubr.msk.f32.vlgmr.msra.gmra.mrb[48].mxu1 %vm3604_vm2, %v33991_v13  ;;  %27292 = vmatpush3.msra.mxu0 %v36870_v17  ;;  %v34035_v26 = vmul.f32 %v28229_v16, %v33688_v39  ;;  %28238 = vrcp.f32 %v20135_v28  ;;  %v36883_v17 = vld [vmem:[#allocation104_spill] sm:$0xff] }
 0xae8   :  { %27297 = vmatpush3.msra.mxu1 %v36871_v47  ;;  %14816 = vrot.lane.b32.xlu1 %v36872_v9, %s28344_s26  ;;  %28240 = vrcp.f32 %v20138_v8  ;;  %v36884_v47 = vld [vmem:[#allocation34_spill] sm:$0xff] }
 0xae9   :  { %14818 = vrot.lane.b32.xlu0 %v36873_v23, %s28344_s26  ;;  %27293 = vmatprep.mubr.msk.f32.mxu0 %vm28339_vm0, %v36250_v57  ;;  %v28231_v60 = vpop.eup %28230 }
 0xaea   :  { %27298 = vmatprep.mubr.msk.f32.mxu1 %vm28339_vm0, %v36250_v57  ;;  %27301 = vmatprep.subr.mxu0 %v36250_v57  ;;  %v20141_v2 = vpop.xlane.xlu1 %20140  ;;  %v28233_v59 = vpop.eup %28232  ;;  %v34051_v39 = vmul.f32 %v28231_v60, %v33701_v15  ;;  %v36881_v15 = vld [vmem:[#allocation267_spill] sm:$0xff] }
 0xaeb   :  { %v20144_v38 = vpop.xlane.xlu0 %20143  ;;  %27306 = vmatprep.subr.mxu1 %v36250_v57  ;;  %27294 = vmatmul.mubr.msk.f32.vlgmr.msra.gmra.mrb[50].mxu0 %vm3604_vm2, %v34007_v21  ;;  %v34057_v44 = vmul.f32 %v28233_v59, %v33698_v50  ;;  %28242 = vrcp.f32 %v20141_v2  ;;  %v36886_v2 = vld [vmem:[#allocation113_spill] sm:$0xff] }
 0xaec   :  { %27299 = vmatmul.mubr.msk.f32.vlgmr.msra.gmra.mrb[50].mxu1 %vm3604_vm2, %v34013_v35  ;;  %27302 = vmatpush3.msra.mxu0 %v36874_v34  ;;  %28244 = vrcp.f32 %v20144_v38  ;;  %v36888_v34 = vld [vmem:[#allocation57_spill] sm:$0xff] }
 0xaed   :  { %27307 = vmatpush3.msra.mxu1 %v36875_v55  ;;  %14820 = vrot.lane.b32.xlu1 %v36876_v10, %s28344_s26  ;;  %v28235_v33 = vpop.eup %28234  ;;  %v36889_v10 = vld [vmem:[#allocation24_spill] sm:$0xff]  ;;  %v36890_v59 = vld [vmem:[#allocation257_spill] sm:$0xff] }
 0xaee   :  { %14822 = vrot.lane.b32.xlu0 %v36877_v32, %s28344_s26  ;;  %27303 = vmatprep.mubr.msk.f32.mxu0 %vm28339_vm0, %v36250_v57  ;;  %v20147_v0 = vpop.xlane.xlu1 %20146  ;;  %v28237_v63 = vpop.eup %28236  ;;  %v34077_v50 = vmul.f32 %v28235_v33, %v33710_v29 }
 0xaef   :  { %v20150_v54 = vpop.xlane.xlu0 %20149  ;;  %27308 = vmatprep.mubr.msk.f32.mxu1 %vm28339_vm0, %v36250_v57  ;;  %27311 = vmatprep.subr.mxu0 %v36250_v57  ;;  %v34083_v8 = vmul.f32 %v28237_v63, %v33707_v43  ;;  %28246 = vrcp.f32 %v20147_v0  ;;  %v36885_v43 = vld [vmem:[#allocation107_spill] sm:$0xff] }
 0xaf0   :  { %27316 = vmatprep.subr.mxu1 %v36250_v57  ;;  %27304 = vmatmul.mubr.msk.f32.vlgmr.msra.gmra.mrb[52].mxu0 %vm3604_vm2, %v34029_v22  ;;  %28248 = vrcp.f32 %v20150_v54 }
 0xaf1   :  { %27309 = vmatmul.mubr.msk.f32.vlgmr.msra.gmra.mrb[52].mxu1 %vm3604_vm2, %v34035_v26  ;;  %27312 = vmatpush3.msra.mxu0 %v36878_v14  ;;  %v28239_v29 = vpop.eup %28238  ;;  %v899_v14 = vld [vmem:[%s35410_s7] sm:$0xff] }
 0xaf2   :  { %27317 = vmatpush3.msra.mxu1 %v36879_v3  ;;  %14824 = vrot.lane.b32.xlu1 %v36880_v27, %s28344_s26  ;;  %v34062_v11 = vpop.permute.xlu1 %22701  ;;  %v28241_v9 = vpop.eup %28240  ;;  %v34107_v16 = vmul.f32 %v28239_v29, %v33718_v52  ;;  %v36887_v52 = vld [vmem:[#allocation108_spill] sm:$0xff] }
 0xaf3   :  { %v34064_v45 = vpop.permute.xlu0 %22626  ;;  %14826 = vrot.lane.b32.xlu0 %v36881_v15, %s28344_s26  ;;  %27313 = vmatprep.mubr.msk.f32.mxu0 %vm28339_vm0, %v36250_v57  ;;  %v34121_v38 = vmul.f32 %v28241_v9, %v33716_v46 }
 0xaf4   :  { %27318 = vmatprep.mubr.msk.f32.mxu1 %vm28339_vm0, %v36250_v57  ;;  %27321 = vmatprep.subr.mxu0 %v36250_v57 }
 0xaf5   :  { %27326 = vmatprep.subr.mxu1 %v36250_v57  ;;  %27314 = vmatmul.mubr.msk.f32.vlgmr.msra.gmra.mrb[54].mxu0 %vm3604_vm2, %v34051_v39  ;;  %v28243_v55 = vpop.eup %28242 }
 0xaf6   :  { %27319 = vmatmul.mubr.msk.f32.vlgmr.msra.gmra.mrb[54].mxu1 %vm3604_vm2, %v34057_v44  ;;  %27322 = vmatpush3.msra.mxu0 %v36882_v42  ;;  %v9272_v19 = vpop.permute.xlu1 %9271  ;;  %v28245_v60 = vpop.eup %28244  ;;  %v34145_v0 = vmul.f32 %v28243_v55, %v33726_v18  ;;  %v900_v18 = vld [vmem:[%s35410_s7 + $0x8] sm:$0xff] }
 0xaf7   :  { %v9270_v28 = vpop.permute.xlu0 %9269  ;;  %27327 = vmatpush3.msra.mxu1 %v36883_v17  ;;  %14828 = vrot.lane.b32.xlu1 %v36884_v47, %s28344_s26  ;;  %9367 = vst.msk [vmem:[%s35412_s9 + $0x8] sm:$0xff] %vm9365_vm3, %v9272_v19  ;;  %v34151_v54 = vmul.f32 %v28245_v60, %v33724_v41  ;;  %v903_v41 = vld [vmem:[%s35410_s7 + $0x20] sm:$0xff]  ;;  %v901_v19 = vld [vmem:[%s35410_s7 + $0x10] sm:$0xff] }
 0xaf8   :  { %9366 = vst.msk [vmem:[%s35412_s9] sm:$0xff] %vm9365_vm3, %v9270_v28  ;;  %14830 = vrot.lane.b32.xlu0 %v36885_v43, %s28344_s26  ;;  %27323 = vmatprep.mubr.msk.f32.mxu0 %vm28339_vm0, %v36250_v57  ;;  %v36891_v43 = vld [vmem:[#allocation68_spill] sm:$0xff]  ;;  %v36893_v60 = vld [vmem:[#allocation39_spill] sm:$0xff] }
 0xaf9   :  { %27328 = vmatprep.mubr.msk.f32.mxu1 %vm28339_vm0, %v36250_v57  ;;  %27331 = vmatprep.subr.mxu0 %v36250_v57  ;;  %v28247_v3 = vpop.eup %28246 }
 0xafa   :  { %27336 = vmatprep.subr.mxu1 %v36250_v57  ;;  %27324 = vmatmul.mubr.msk.f32.vlgmr.msra.gmra.mrb[56].mxu0 %vm3604_vm2, %v34077_v50  ;;  %v9274_v31 = vpop.permute.xlu1 %9273  ;;  %v28249_v33 = vpop.eup %28248  ;;  %v34187_v15 = vmul.f32 %v28247_v3, %v33734_v25  ;;  %v902_v25 = vld [vmem:[%s35410_s7 + $0x18] sm:$0xff]  ;;  %v36897_v3 = vld [vmem:[#allocation42_spill] sm:$0xff] }
 0xafb   :  { %v9278_v23 = vpop.permute.xlu0 %9277  ;;  %27329 = vmatmul.mubr.msk.f32.vlgmr.msra.gmra.mrb[56].mxu1 %vm3604_vm2, %v34083_v8  ;;  %27332 = vmatpush3.msra.mxu0 %v36886_v2  ;;  %9368 = vst.msk [vmem:[%s35412_s9 + $0x10] sm:$0xff] %vm9365_vm3, %v9274_v31  ;;  %v34193_v42 = vmul.f32 %v28249_v33, %v33732_v58  ;;  %v905_v58 = vld [vmem:[%s35410_s7 + $0x30] sm:$0xff]  ;;  %v36892_v31 = vld [vmem:[#allocation252_spill] sm:$0xff]  ;;  %v36901_v33 = vld [vmem:[#allocation45_spill] sm:$0xff] }
 0xafc   :  { %9370 = vst.msk [vmem:[%s35412_s9 + $0x20] sm:$0xff] %vm9365_vm3, %v9278_v23  ;;  %27337 = vmatpush3.msra.mxu1 %v36887_v52  ;;  %14832 = vrot.lane.b32.xlu1 %v36888_v34, %s28344_s26  ;;  %v909_v23 = vld [vmem:[%s35410_s7 + $0x50] sm:$0xff]  ;;  %v910_v2 = vld [vmem:[%s35410_s7 + $0x58] sm:$0xff] }
 0xafd   :  { %14834 = vrot.lane.b32.xlu0 %v36889_v10, %s28344_s26  ;;  %27333 = vmatprep.mubr.msk.f32.mxu0 %vm28339_vm0, %v36250_v57  ;;  %v911_v52 = vld [vmem:[%s35410_s7 + $0x60] sm:$0xff] }
 0xafe   :  { %27338 = vmatprep.mubr.msk.f32.mxu1 %vm28339_vm0, %v36250_v57  ;;  %27341 = vmatprep.subr.mxu0 %v36250_v57  ;;  %v9276_v46 = vpop.permute.xlu1 %9275 }
 0xaff   :  { %v9282_v32 = vpop.permute.xlu0 %9281  ;;  %27346 = vmatprep.subr.mxu1 %v36250_v57  ;;  %27334 = vmatmul.mubr.msk.f32.vlgmr.msra.gmra.mrb[58].mxu0 %vm3604_vm2, %v34107_v16  ;;  %9369 = vst.msk [vmem:[%s35412_s9 + $0x18] sm:$0xff] %vm9365_vm3, %v9276_v46  ;;  %v36894_v46 = vld [vmem:[#allocation7_spill] sm:$0xff] }
 0xb00   :  { %9372 = vst.msk [vmem:[%s35412_s9 + $0x30] sm:$0xff] %vm9365_vm3, %v9282_v32  ;;  %27339 = vmatmul.mubr.msk.f32.vlgmr.msra.gmra.mrb[58].mxu1 %vm3604_vm2, %v34121_v38  ;;  %27342 = vmatpush3.msra.mxu0 %v33796_v49  ;;  %v36895_v32 = vld [vmem:[#allocation75_spill] sm:$0xff] }
 0xb01   :  { %27347 = vmatpush3.msra.mxu1 %v33794_v56  ;;  %14836 = vrot.lane.b32.xlu1 %v36890_v59, %s28344_s26  ;;  %v904_v56 = vld [vmem:[%s35410_s7 + $0x28] sm:$0xff] }
 0xb02   :  { %20247 = vrot.lane.b32.xlu0 %v33818_v51, %s28345_s19  ;;  %27343 = vmatprep.mubr.msk.f32.mxu0 %vm28339_vm0, %v36250_v57  ;;  %v9280_v49 = vpop.permute.xlu1 %9279  ;;  %v27681_v51 = vpack.c.bf16 %v900_v18, %v899_v14  ;;  %v27689_v63 = vpack.c.bf16 %v904_v56, %v903_v41  ;;  %v36896_v18 = vld [vmem:[#allocation6_spill] sm:$0xff]  ;;  %v36898_v41 = vld [vmem:[#allocation11_spill] sm:$0xff] }
 0xb03   :  { %v9286_v27 = vpop.permute.xlu0 %9285  ;;  %27348 = vmatprep.mubr.msk.f32.mxu1 %vm28339_vm0, %v36250_v57  ;;  %27351 = vmatprep.subr.mxu0 %v36250_v57  ;;  %9371 = vst.msk [vmem:[%s35412_s9 + $0x28] sm:$0xff] %vm9365_vm3, %v9280_v49  ;;  %v36899_v56 = vld [vmem:[#allocation83_spill] sm:$0xff] }
 0xb04   :  { %9374 = vst.msk [vmem:[%s35412_s9 + $0x40] sm:$0xff] %vm9365_vm3, %v9286_v27  ;;  %27356 = vmatprep.subr.mxu1 %v36250_v57  ;;  %27344 = vmatmul.mubr.msk.f32.vlgmr.msra.gmra.mrb[60].mxu0 %vm3604_vm2, %v34145_v0  ;;  %v36900_v27 = vld [vmem:[#allocation12_spill] sm:$0xff] }
 0xb05   :  { %27349 = vmatmul.mubr.msk.f32.vlgmr.msra.gmra.mrb[60].mxu1 %vm3604_vm2, %v34151_v54  ;;  %27352 = vmatpush3.msra.mxu0 %v34064_v45  ;;  %v27685_v45 = vpack.c.bf16 %v902_v25, %v901_v19 }
 0xb06   :  { %27357 = vmatpush3.msra.mxu1 %v34062_v11  ;;  %20249 = vrot.lane.b32.xlu1 %v33815_v20, %s28345_s19  ;;  %v9284_v28 = vpop.permute.xlu1 %9283  ;;  %v906_v20 = vld [vmem:[%s35410_s7 + $0x38] sm:$0xff]  ;;  %v908_v11 = vld [vmem:[%s35410_s7 + $0x48] sm:$0xff] }
 0xb07   :  { %v9290_v17 = vpop.permute.xlu0 %9289  ;;  %20251 = vrot.lane.b32.xlu0 %v33833_v4, %s28345_s19  ;;  %27353 = vmatprep.mubr.msk.f32.mxu0 %vm28339_vm0, %v36250_v57  ;;  %9373 = vst.msk [vmem:[%s35412_s9 + $0x38] sm:$0xff] %vm9365_vm3, %v9284_v28  ;;  %v907_v4 = vld [vmem:[%s35410_s7 + $0x40] sm:$0xff]  ;;  %v27693_v47 = vpack.c.bf16 %v906_v20, %v905_v58  ;;  %v36904_v28 = vld [vmem:[#allocation254_spill] sm:$0xff] }
 0xb08   :  { %9376 = vst.msk [vmem:[%s35412_s9 + $0x50] sm:$0xff] %vm9365_vm3, %v9290_v17  ;;  %27358 = vmatprep.mubr.msk.f32.mxu1 %vm28339_vm0, %v36250_v57  ;;  %27682 = vmatprep.subr.bf16.mxu0 %v27681_v51  ;;  %v27697_v9 = vpack.c.bf16 %v908_v11, %v907_v4  ;;  %v36907_v17 = vld [vmem:[#allocation172_spill] sm:$0xff]  ;;  %v36908_v4 = vld [vmem:[#allocation239_spill] sm:$0xff] }
 0xb09   :  { %27690 = vmatprep.subr.bf16.mxu1 %v27689_v63  ;;  %27354 = vmatmul.mubr.msk.f32.vlgmr.msra.gmra.mrb[62].mxu0 %vm3604_vm2, %v34187_v15  ;;  %v36911_v11 = vld [vmem:[#allocation183_spill] sm:$0xff] }
 0xb0a   :  { %27359 = vmatmul.mubr.msk.f32.vlgmr.msra.gmra.mrb[62].mxu1 %vm3604_vm2, %v34193_v42  ;;  %27684 = vmatpush3.bf16.msra.mxu0 %v27681_v51  ;;  %v9288_v57 = vpop.permute.xlu1 %9287  ;;  %v36902_v51 = vld [vmem:[#allocation237_spill] sm:$0xff] }
 0xb0b   :  { %v9294_v29 = vpop.permute.xlu0 %9293  ;;  %27692 = vmatpush3.bf16.msra.mxu1 %v27689_v63  ;;  %27369 = vmatprep.mubr.msk.f32.mxu0 %vm1107_vm1, %v36891_v43  ;;  %9375 = vst.msk [vmem:[%s35412_s9 + $0x48] sm:$0xff] %vm9365_vm3, %v9288_v57  ;;  %v36903_v63 = vld [vmem:[#allocation167_spill] sm:$0xff]  ;;  %v36912_v57 = vld [vmem:[#allocation256_spill] sm:$0xff] }
 0xb0c   :  { %9378 = vst.msk [vmem:[%s35412_s9 + $0x60] sm:$0xff] %vm9365_vm3, %v9294_v29  ;;  %27425 = vmatprep.mubr.msk.f32.mxu1 %vm1107_vm1, %v36892_v31  ;;  %20253 = vrot.lane.b32.xlu1 %v33849_v37, %s28345_s19  ;;  %v912_v37 = vld [vmem:[%s35410_s7 + $0x68] sm:$0xff]  ;;  %v36915_v29 = vld [vmem:[#allocation187_spill] sm:$0xff] }
 0xb0d   :  { %20255 = vrot.lane.b32.xlu0 %v33868_v1, %s28345_s19  ;;  %27686 = vmatprep.subr.bf16.mxu0 %v27685_v45  ;;  %v27705_v10 = vpack.c.bf16 %v912_v37, %v911_v52  ;;  %v27701_v1 = vpack.c.bf16 %v910_v2, %v909_v23  ;;  %v36916_v31 = vld [vmem:[#allocation258_spill] sm:$0xff]  ;;  %v36919_v23 = vld [vmem:[#allocation197_spill] sm:$0xff]  ;;  %v36920_v37 = vld [vmem:[#allocation243_spill] sm:$0xff] }
 0xb0e   :  { %27694 = vmatprep.subr.bf16.mxu1 %v27693_v47  ;;  %27688 = vmatpush3.bf16.msra.mxu0 %v27685_v45  ;;  %v9292_v34 = vpop.permute.xlu1 %9291 }
 0xb0f   :  { %v9298_v55 = vpop.permute.xlu0 %9297  ;;  %27696 = vmatpush3.bf16.msra.mxu1 %v27693_v47  ;;  %9377 = vst.msk [vmem:[%s35412_s9 + $0x58] sm:$0xff] %vm9365_vm3, %v9292_v34  ;;  %27698 = vmatprep.subr.bf16.mxu0 %v27697_v9  ;;  %v36923_v34 = vld [vmem:[#allocation202_spill] sm:$0xff] }
 0xb10   :  { %9380 = vst.msk [vmem:[%s35412_s9 + $0x70] sm:$0xff] %vm9365_vm3, %v9298_v55  ;;  %20257 = vrot.lane.b32.xlu1 %v33862_v30, %s28345_s19  ;;  %27706 = vmatprep.subr.bf16.mxu1 %v27705_v10  ;;  %v913_v30 = vld [vmem:[%s35410_s7 + $0x70] sm:$0xff] }
 0xb11   :  { %20259 = vrot.lane.b32.xlu0 %v33884_v6, %s28345_s19  ;;  %27370 = vmatmul.mubr.msk.f32.vlgmr.msra.gmra.mrb[64].mxu0 %vm1107_vm1, %v36893_v60  ;;  %v914_v6 = vld [vmem:[%s35410_s7 + $0x78] sm:$0xff] }
 0xb12   :  { %27426 = vmatmul.mubr.msk.f32.vlgmr.msra.gmra.mrb[64].mxu1 %vm1107_vm1, %v36894_v46  ;;  %27372 = vmatprep.mubr.msk.f32.mxu0 %vm1107_vm1, %v36895_v32  ;;  %v9296_v59 = vpop.permute.xlu1 %9295  ;;  %v36927_v60 = vld [vmem:[#allocation208_spill] sm:$0xff] }
 0xb13   :  { %v9302_v14 = vpop.permute.xlu0 %9301  ;;  %27428 = vmatprep.mubr.msk.f32.mxu1 %vm1107_vm1, %v36896_v18  ;;  %9379 = vst.msk [vmem:[%s35412_s9 + $0x68] sm:$0xff] %vm9365_vm3, %v9296_v59  ;;  %27700 = vmatpush3.bf16.msra.mxu0 %v27697_v9  ;;  %v36928_v59 = vld [vmem:[#allocation15_spill] sm:$0xff] }
 0xb14   :  { %9382 = vst.msk [vmem:[%s35412_s9 + $0x80] sm:$0xff] %vm9365_vm3, %v9302_v14  ;;  %20261 = vrot.lane.b32.xlu1 %v33878_v40, %s28345_s19  ;;  %27702 = vmatprep.subr.bf16.mxu0 %v27701_v1  ;;  %v36931_v14 = vld [vmem:[#allocation161_spill] sm:$0xff] }
 0xb15   :  { %20263 = vrot.lane.b32.xlu0 %v33903_v5, %s28345_s19  ;;  %27373 = vmatmul.mubr.msk.f32.gmra.mrb[66].mxu0 %vm1107_vm1, %v36897_v3  ;;  %v27709_v5 = vpack.c.bf16 %v914_v6, %v913_v30  ;;  %v36932_v6 = vld [vmem:[#allocation22_spill] sm:$0xff] }
 0xb16   :  { %27429 = vmatmul.mubr.msk.f32.gmra.mrb[66].mxu1 %vm1107_vm1, %v36898_v41  ;;  %27375 = vmatprep.mubr.msk.f32.mxu0 %vm1107_vm1, %v36899_v56  ;;  %v9300_v40 = vpop.permute.xlu1 %9299  ;;  %v36935_v3 = vld [vmem:[#allocation170_spill] sm:$0xff] }
 0xb17   :  { %v9306_v49 = vpop.permute.xlu0 %9305  ;;  %27431 = vmatprep.mubr.msk.f32.mxu1 %vm1107_vm1, %v36900_v27  ;;  %9381 = vst.msk [vmem:[%s35412_s9 + $0x78] sm:$0xff] %vm9365_vm3, %v9300_v40  ;;  %27704 = vmatpush3.bf16.msra.mxu0 %v27701_v1  ;;  %v36924_v1 = vld [vmem:[#allocation16_spill] sm:$0xff]  ;;  %v36936_v40 = vld [vmem:[#allocation26_spill] sm:$0xff] }
 0xb18   :  { %9384 = vst.msk [vmem:[%s35412_s9 + $0x90] sm:$0xff] %vm9365_vm3, %v9306_v49  ;;  %20265 = vrot.lane.b32.xlu1 %v33900_v48, %s28345_s19  ;;  %27708 = vmatpush3.bf16.msra.mxu1 %v27705_v10  ;;  %v36905_v48 = vld [vmem:[#allocation166_spill] sm:$0xff]  ;;  %v36938_v49 = vld [vmem:[#allocation251_spill] sm:$0xff]  ;;  %v36939_v27 = vld [vmem:[#allocation180_spill] sm:$0xff] }
 0xb19   :  { %20267 = vrot.lane.b32.xlu0 %v33919_v7, %s28345_s19  ;;  %27376 = vmatmul.mubr.msk.f32.gmra.mrb[68].mxu0 %vm1107_vm1, %v36901_v33  ;;  %v36906_v7 = vld [vmem:[#allocation10_spill] sm:$0xff] }
 0xb1a   :  { %27432 = vmatmul.mubr.msk.f32.gmra.mrb[68].mxu1 %vm1107_vm1, %v36902_v51  ;;  %27378 = vmatprep.mubr.msk.f32.mxu0 %vm1107_vm1, %v36903_v63  ;;  %v9304_v19 = vpop.permute.xlu1 %9303  ;;  %v36940_v51 = vld [vmem:[#allocation20_spill] sm:$0xff]  ;;  %v36941_v63 = vld [vmem:[#allocation205_spill] sm:$0xff] }
 0xb1b   :  { %v9310_v25 = vpop.permute.xlu0 %9309  ;;  %27434 = vmatprep.mubr.msk.f32.mxu1 %vm1107_vm1, %v36904_v28  ;;  %9383 = vst.msk [vmem:[%s35412_s9 + $0x88] sm:$0xff] %vm9365_vm3, %v9304_v19  ;;  %27710 = vmatprep.subr.bf16.mxu1 %v27709_v5  ;;  %v36942_v19 = vld [vmem:[#allocation253_spill] sm:$0xff] }
 0xb1c   :  { %9386 = vst.msk [vmem:[%s35412_s9 + $0xa0] sm:$0xff] %vm9365_vm3, %v9310_v25  ;;  %20269 = vrot.lane.b32.xlu1 %v33925_v24, %s28345_s19  ;;  %27712 = vmatpush3.bf16.msra.mxu1 %v27709_v5  ;;  %v36909_v24 = vld [vmem:[#allocation177_spill] sm:$0xff] }
 0xb1d   :  { %20271 = vrot.lane.b32.xlu0 %v33941_v62, %s28345_s19  ;;  %27379 = vmatmul.mubr.msk.f32.gmra.mrb[70].mxu0 %vm1107_vm1, %v36905_v48  ;;  %v36910_v62 = vld [vmem:[#allocation14_spill] sm:$0xff]  ;;  %v36943_v25 = vld [vmem:[#allocation185_spill] sm:$0xff] }
 0xb1e   :  { %27435 = vmatmul.mubr.msk.f32.gmra.mrb[70].mxu1 %vm1107_vm1, %v36906_v7  ;;  %27381 = vmatprep.mubr.msk.f32.mxu0 %vm1107_vm1, %v36907_v17  ;;  %v9308_v58 = vpop.permute.xlu1 %9307  ;;  %v36944_v7 = vld [vmem:[#allocation19_spill] sm:$0xff]  ;;  %v36945_v17 = vld [vmem:[#allocation209_spill] sm:$0xff] }
 0xb1f   :  { %v9314_v20 = vpop.permute.xlu0 %9313  ;;  %27437 = vmatprep.mubr.msk.f32.mxu1 %vm1107_vm1, %v36908_v4  ;;  %9385 = vst.msk [vmem:[%s35412_s9 + $0x98] sm:$0xff] %vm9365_vm3, %v9308_v58  ;;  %v36946_v58 = vld [vmem:[#allocation255_spill] sm:$0xff] }
 0xb20   :  { %9388 = vst.msk [vmem:[%s35412_s9 + $0xb0] sm:$0xff] %vm9365_vm3, %v9314_v20  ;;  %20273 = vrot.lane.b32.xlu1 %v33947_v12, %s28345_s19  ;;  %v36913_v12 = vld [vmem:[#allocation193_spill] sm:$0xff]  ;;  %v36947_v20 = vld [vmem:[#allocation211_spill] sm:$0xff] }
 0xb21   :  { %20275 = vrot.lane.b32.xlu0 %v33963_v36, %s28345_s19  ;;  %27382 = vmatmul.mubr.msk.f32.gmra.mrb[72].mxu0 %vm1107_vm1, %v36909_v24  ;;  %v36914_v36 = vld [vmem:[#allocation241_spill] sm:$0xff] }
 0xb22   :  { %27438 = vmatmul.mubr.msk.f32.gmra.mrb[72].mxu1 %vm1107_vm1, %v36910_v62  ;;  %27384 = vmatprep.mubr.msk.f32.mxu0 %vm1107_vm1, %v36911_v11  ;;  %v9312_v45 = vpop.permute.xlu1 %9311  ;;  %v36948_v62 = vld [vmem:[#allocation30_spill] sm:$0xff]  ;;  %v36949_v11 = vld [vmem:[#allocation213_spill] sm:$0xff] }
 0xb23   :  { %v9318_v47 = vpop.permute.xlu0 %9317  ;;  %27440 = vmatprep.mubr.msk.f32.mxu1 %vm1107_vm1, %v36912_v57  ;;  %9387 = vst.msk [vmem:[%s35412_s9 + $0xa8] sm:$0xff] %vm9365_vm3, %v9312_v45  ;;  %v36950_v45 = vld [vmem:[#allocation269_spill] sm:$0xff] }
 0xb24   :  { %9390 = vst.msk [vmem:[%s35412_s9 + $0xc0] sm:$0xff] %vm9365_vm3, %v9318_v47  ;;  %20277 = vrot.lane.b32.xlu1 %v33969_v53, %s28345_s19  ;;  %v36917_v53 = vld [vmem:[#allocation206_spill] sm:$0xff]  ;;  %v36951_v47 = vld [vmem:[#allocation207_spill] sm:$0xff] }
 0xb25   :  { %20279 = vrot.lane.b32.xlu0 %v33985_v61, %s28345_s19  ;;  %27385 = vmatmul.mubr.msk.f32.gmra.mrb[74].mxu0 %vm1107_vm1, %v36913_v12  ;;  %v36918_v61 = vld [vmem:[#allocation18_spill] sm:$0xff] }
 0xb26   :  { %27441 = vmatmul.mubr.msk.f32.gmra.mrb[74].mxu1 %vm1107_vm1, %v36914_v36  ;;  %27387 = vmatprep.mubr.msk.f32.mxu0 %vm1107_vm1, %v36915_v29  ;;  %v9316_v43 = vpop.permute.xlu1 %9315  ;;  %v36952_v36 = vld [vmem:[#allocation270_spill] sm:$0xff]  ;;  %v36953_v29 = vld [vmem:[#allocation231_spill] sm:$0xff] }
 0xb27   :  { %v9322_v9 = vpop.permute.xlu0 %9321  ;;  %27443 = vmatprep.mubr.msk.f32.mxu1 %vm1107_vm1, %v36916_v31  ;;  %9389 = vst.msk [vmem:[%s35412_s9 + $0xb8] sm:$0xff] %vm9365_vm3, %v9316_v43  ;;  %v36954_v43 = vld [vmem:[#allocation261_spill] sm:$0xff] }
 0xb28   :  { %9392 = vst.msk [vmem:[%s35412_s9 + $0xd0] sm:$0xff] %vm9365_vm3, %v9322_v9  ;;  %20281 = vrot.lane.b32.xlu1 %v33991_v13, %s28345_s19  ;;  %v36921_v13 = vld [vmem:[#allocation210_spill] sm:$0xff]  ;;  %v36955_v9 = vld [vmem:[#allocation103_spill] sm:$0xff] }
 0xb29   :  { %20283 = vrot.lane.b32.xlu0 %v34007_v21, %s28345_s19  ;;  %27388 = vmatmul.mubr.msk.f32.gmra.mrb[76].mxu0 %vm1107_vm1, %v36917_v53  ;;  %v36922_v21 = vld [vmem:[#allocation260_spill] sm:$0xff] }
 0xb2a   :  { %27444 = vmatmul.mubr.msk.f32.gmra.mrb[76].mxu1 %vm1107_vm1, %v36918_v61  ;;  %27390 = vmatprep.mubr.msk.f32.mxu0 %vm1107_vm1, %v36919_v23  ;;  %v9320_v2 = vpop.permute.xlu1 %9319  ;;  %v36956_v61 = vld [vmem:[#allocation59_spill] sm:$0xff] }
 0xb2b   :  { %v9326_v52 = vpop.permute.xlu0 %9325  ;;  %27446 = vmatprep.mubr.msk.f32.mxu1 %vm1107_vm1, %v36920_v37  ;;  %9391 = vst.msk [vmem:[%s35412_s9 + $0xc8] sm:$0xff] %vm9365_vm3, %v9320_v2  ;;  %v36957_v23 = vld [vmem:[#allocation259_spill] sm:$0xff] }
 0xb2c   :  { %9394 = vst.msk [vmem:[%s35412_s9 + $0xe0] sm:$0xff] %vm9365_vm3, %v9326_v52  ;;  %20285 = vrot.lane.b32.xlu1 %v34013_v35, %s28345_s19  ;;  %v36925_v35 = vld [vmem:[#allocation212_spill] sm:$0xff]  ;;  %v36958_v37 = vld [vmem:[#allocation23_spill] sm:$0xff] }
 0xb2d   :  { %20287 = vrot.lane.b32.xlu0 %v34029_v22, %s28345_s19  ;;  %27391 = vmatmul.mubr.msk.f32.gmra.mrb[78].mxu0 %vm1107_vm1, %v36921_v13  ;;  %v36926_v22 = vld [vmem:[#allocation245_spill] sm:$0xff]  ;;  %v36959_v13 = vld [vmem:[#allocation60_spill] sm:$0xff] }
 0xb2e   :  { %27447 = vmatmul.mubr.msk.f32.gmra.mrb[78].mxu1 %vm1107_vm1, %v36922_v21  ;;  %27393 = vmatprep.mubr.msk.f32.mxu0 %vm1107_vm1, %v36923_v34  ;;  %v9324_v55 = vpop.permute.xlu1 %9323 }
 0xb2f   :  { %v9330_v10 = vpop.permute.xlu0 %9329  ;;  %27449 = vmatprep.mubr.msk.f32.mxu1 %vm1107_vm1, %v36924_v1  ;;  %9393 = vst.msk [vmem:[%s35412_s9 + $0xd8] sm:$0xff] %vm9365_vm3, %v9324_v55  ;;  %v36960_v55 = vld [vmem:[#allocation115_spill] sm:$0xff] }
 0xb30   :  { %9396 = vst.msk [vmem:[%s35412_s9 + $0xf0] sm:$0xff] %vm9365_vm3, %v9330_v10  ;;  %20289 = vrot.lane.b32.xlu1 %v34035_v26, %s28345_s19  ;;  %v36929_v26 = vld [vmem:[#allocation214_spill] sm:$0xff] }
 0xb31   :  { %20291 = vrot.lane.b32.xlu0 %v34051_v39, %s28345_s19  ;;  %27394 = vmatmul.mubr.msk.f32.gmra.mrb[80].mxu0 %vm1107_vm1, %v36925_v35  ;;  %v36930_v39 = vld [vmem:[#allocation247_spill] sm:$0xff]  ;;  %v36961_v10 = vld [vmem:[#allocation62_spill] sm:$0xff] }
 0xb32   :  { %27450 = vmatmul.mubr.msk.f32.gmra.mrb[80].mxu1 %vm1107_vm1, %v36926_v22  ;;  %27396 = vmatprep.mubr.msk.f32.mxu0 %vm1107_vm1, %v36927_v60  ;;  %v9328_v46 = vpop.permute.xlu1 %9327  ;;  %v36962_v22 = vld [vmem:[#allocation111_spill] sm:$0xff]  ;;  %v36963_v60 = vld [vmem:[#allocation272_spill] sm:$0xff] }
 0xb33   :  { %v14775_v32 = vpop.permute.xlu0 %14774  ;;  %27452 = vmatprep.mubr.msk.f32.mxu1 %vm1107_vm1, %v36928_v59  ;;  %9395 = vst.msk [vmem:[%s35412_s9 + $0xe8] sm:$0xff] %vm9365_vm3, %v9328_v46  ;;  %v36964_v59 = vld [vmem:[#allocation271_spill] sm:$0xff] }
 0xb34   :  { %14871 = vst.msk [vmem:[%s35412_s9] sm:$0xff] %vm14870_vm4, %v14775_v32  ;;  %20293 = vrot.lane.b32.xlu1 %v34057_v44, %s28345_s19  ;;  %v36933_v44 = vld [vmem:[#allocation175_spill] sm:$0xff] }
 0xb35   :  { %20295 = vrot.lane.b32.xlu0 %v34077_v50, %s28345_s19  ;;  %27397 = vmatmul.mubr.msk.f32.gmra.mrb[82].mxu0 %vm1107_vm1, %v36929_v26  ;;  %v36934_v50 = vld [vmem:[#allocation249_spill] sm:$0xff]  ;;  %v36965_v26 = vld [vmem:[#allocation123_spill] sm:$0xff] }
 0xb36   :  { %27453 = vmatmul.mubr.msk.f32.gmra.mrb[82].mxu1 %vm1107_vm1, %v36930_v39  ;;  %27399 = vmatprep.mubr.msk.f32.mxu0 %vm1107_vm1, %v36931_v14  ;;  %v9332_v18 = vpop.permute.xlu1 %9331 }
 0xb37   :  { %v14779_v30 = vpop.permute.xlu0 %14778  ;;  %27455 = vmatprep.mubr.msk.f32.mxu1 %vm1107_vm1, %v36932_v6  ;;  %9397 = vst.msk [vmem:[%s35412_s9 + $0xf8] sm:$0xff] %vm9365_vm3, %v9332_v18  ;;  %v36966_v18 = vld [vmem:[#allocation63_spill] sm:$0xff] }
 0xb38   :  { %14873 = vst.msk [vmem:[%s35412_s9 + $0x10] sm:$0xff] %vm14870_vm4, %v14779_v30  ;;  %20297 = vrot.lane.b32.xlu1 %v34083_v8, %s28345_s19  ;;  %v36937_v8 = vld [vmem:[#allocation190_spill] sm:$0xff]  ;;  %v36967_v30 = vld [vmem:[#allocation41_spill] sm:$0xff] }
 0xb39   :  { %27400 = vmatmul.mubr.msk.f32.gmra.mrb[84].mxu0 %vm1107_vm1, %v36933_v44 }
 0xb3a   :  { %27456 = vmatmul.mubr.msk.f32.gmra.mrb[84].mxu1 %vm1107_vm1, %v36934_v50  ;;  %27402 = vmatprep.mubr.msk.f32.mxu0 %vm1107_vm1, %v36935_v3  ;;  %v14777_v41 = vpop.permute.xlu1 %14776  ;;  %v36968_v50 = vld [vmem:[#allocation263_spill] sm:$0xff]  ;;  %v36969_v3 = vld [vmem:[#allocation65_spill] sm:$0xff] }
 0xb3b   :  { %v14783_v56 = vpop.permute.xlu0 %14782  ;;  %27458 = vmatprep.mubr.msk.f32.mxu1 %vm1107_vm1, %v36936_v40  ;;  %14872 = vst.msk [vmem:[%s35412_s9 + $0x8] sm:$0xff] %vm14870_vm4, %v14777_v41  ;;  %v36970_v40 = vld [vmem:[#allocation119_spill] sm:$0xff] }
 0xb3c   :  { %14875 = vst.msk [vmem:[%s35412_s9 + $0x20] sm:$0xff] %vm14870_vm4, %v14783_v56 }
 0xb3d   :  { %27403 = vmatmul.mubr.msk.f32.gmra.mrb[86].mxu0 %vm1107_vm1, %v36937_v8  ;;  %v36971_v8 = vld [vmem:[#allocation27_spill] sm:$0xff] }
 0xb3e   :  { %27459 = vmatmul.mubr.msk.f32.gmra.mrb[86].mxu1 %vm1107_vm1, %v36938_v49  ;;  %27405 = vmatprep.mubr.msk.f32.mxu0 %vm1107_vm1, %v36939_v27  ;;  %v14781_v5 = vpop.permute.xlu1 %14780 }
 0xb3f   :  { %v14787_v33 = vpop.permute.xlu0 %14786  ;;  %27461 = vmatprep.mubr.msk.f32.mxu1 %vm1107_vm1, %v36940_v51  ;;  %14874 = vst.msk [vmem:[%s35412_s9 + $0x18] sm:$0xff] %vm14870_vm4, %v14781_v5  ;;  %v36972_v5 = vld [vmem:[#allocation38_spill] sm:$0xff] }
 0xb40   :  { %14877 = vst.msk [vmem:[%s35412_s9 + $0x30] sm:$0xff] %vm14870_vm4, %v14787_v33  ;;  %v36973_v33 = vld [vmem:[#allocation69_spill] sm:$0xff] }
 0xb41   :  { %27406 = vmatmul.mubr.msk.f32.gmra.mrb[88].mxu0 %vm1107_vm1, %v36941_v63 }
 0xb42   :  { %27462 = vmatmul.mubr.msk.f32.gmra.mrb[88].mxu1 %vm1107_vm1, %v36942_v19  ;;  %27408 = vmatprep.mubr.msk.f32.mxu0 %vm1107_vm1, %v36943_v25  ;;  %v14785_v28 = vpop.permute.xlu1 %14784  ;;  %v36974_v19 = vld [vmem:[#allocation66_spill] sm:$0xff]  ;;  %v36975_v25 = vld [vmem:[#allocation28_spill] sm:$0xff] }
 0xb43   :  { %v14791_v48 = vpop.permute.xlu0 %14790  ;;  %27464 = vmatprep.mubr.msk.f32.mxu1 %vm1107_vm1, %v36944_v7  ;;  %14876 = vst.msk [vmem:[%s35412_s9 + $0x28] sm:$0xff] %vm14870_vm4, %v14785_v28 }
 0xb44   :  { %14879 = vst.msk [vmem:[%s35412_s9 + $0x40] sm:$0xff] %vm14870_vm4, %v14791_v48  ;;  %v36976_v48 = vld [vmem:[#allocation44_spill] sm:$0xff] }
 0xb45   :  { %27409 = vmatmul.mubr.msk.f32.gmra.mrb[90].mxu0 %vm1107_vm1, %v36945_v17  ;;  %v36977_v17 = vld [vmem:[#allocation72_spill] sm:$0xff] }
 0xb46   :  { %27465 = vmatmul.mubr.msk.f32.gmra.mrb[90].mxu1 %vm1107_vm1, %v36946_v58  ;;  %27411 = vmatprep.mubr.msk.f32.mxu0 %vm1107_vm1, %v36947_v20  ;;  %v14789_v4 = vpop.permute.xlu1 %14788  ;;  %v36978_v20 = vld [vmem:[#allocation70_spill] sm:$0xff] }
 0xb47   :  { %v14795_v24 = vpop.permute.xlu0 %14794  ;;  %27467 = vmatprep.mubr.msk.f32.mxu1 %vm1107_vm1, %v36948_v62  ;;  %14878 = vst.msk [vmem:[%s35412_s9 + $0x38] sm:$0xff] %vm14870_vm4, %v14789_v4  ;;  %v36979_v4 = vld [vmem:[#allocation47_spill] sm:$0xff] }
 0xb48   :  { %14881 = vst.msk [vmem:[%s35412_s9 + $0x50] sm:$0xff] %vm14870_vm4, %v14795_v24 }
 0xb49   :  { %27412 = vmatmul.mubr.msk.f32.gmra.mrb[92].mxu0 %vm1107_vm1, %v36949_v11  ;;  %v36980_v11 = vld [vmem:[#allocation32_spill] sm:$0xff] }
 0xb4a   :  { %27468 = vmatmul.mubr.msk.f32.gmra.mrb[92].mxu1 %vm1107_vm1, %v36950_v45  ;;  %27414 = vmatprep.mubr.msk.f32.mxu0 %vm1107_vm1, %v36951_v47  ;;  %v14793_v57 = vpop.permute.xlu1 %14792  ;;  %v36981_v45 = vld [vmem:[#allocation76_spill] sm:$0xff] }
 0xb4b   :  { %v14799_v12 = vpop.permute.xlu0 %14798  ;;  %27470 = vmatprep.mubr.msk.f32.mxu1 %vm1107_vm1, %v36952_v36  ;;  %14880 = vst.msk [vmem:[%s35412_s9 + $0x48] sm:$0xff] %vm14870_vm4, %v14793_v57  ;;  %v36983_v36 = vld [vmem:[#allocation31_spill] sm:$0xff] }
 0xb4c   :  { %14883 = vst.msk [vmem:[%s35412_s9 + $0x60] sm:$0xff] %vm14870_vm4, %v14799_v12  ;;  %v36982_v12 = vld [vmem:[#allocation73_spill] sm:$0xff] }
 0xb4d   :  { %27415 = vmatmul.mubr.msk.f32.gmra.mrb[94].mxu0 %vm1107_vm1, %v36953_v29 }
 0xb4e   :  { %27471 = vmatmul.mubr.msk.f32.gmra.mrb[94].mxu1 %vm1107_vm1, %v36954_v43  ;;  %27481 = vmatprep.mubr.msk.f32.mxu0 %vm1107_vm1, %v36955_v9  ;;  %v14797_v31 = vpop.permute.xlu1 %14796  ;;  %v36984_v9 = vld [vmem:[#allocation51_spill] sm:$0xff] }
 0xb4f   :  { %v14803_v53 = vpop.permute.xlu0 %14802  ;;  %14882 = vst.msk [vmem:[%s35412_s9 + $0x58] sm:$0xff] %vm14870_vm4, %v14797_v31  ;;  %v36985_v31 = vld [vmem:[#allocation77_spill] sm:$0xff] }
 0xb50   :  { %14885 = vst.msk [vmem:[%s35412_s9 + $0x70] sm:$0xff] %vm14870_vm4, %v14803_v53 }
 0xb51   :  { %27482 = vmatmul.mubr.msk.f32.vlgmr.msra.gmra.mrb[96].mxu0 %vm1107_vm1, %v36956_v61 }
 0xb52   :  { %27484 = vmatprep.mubr.msk.f32.mxu0 %vm1107_vm1, %v36957_v23  ;;  %v14801_v2 = vpop.permute.xlu1 %14800  ;;  %v36986_v23 = vld [vmem:[#allocation80_spill] sm:$0xff] }
 0xb53   :  { %v14807_v52 = vpop.permute.xlu0 %14806  ;;  %14884 = vst.msk [vmem:[%s35412_s9 + $0x68] sm:$0xff] %vm14870_vm4, %v14801_v2 }
 0xb54   :  { %14887 = vst.msk [vmem:[%s35412_s9 + $0x80] sm:$0xff] %vm14870_vm4, %v14807_v52 }
 0xb55   :  { %27485 = vmatmul.mubr.msk.f32.gmra.mrb[98].mxu0 %vm1107_vm1, %v36958_v37 }
 0xb56   :  { %27487 = vmatprep.mubr.msk.f32.mxu0 %vm1107_vm1, %v36959_v13  ;;  %v14805_v21 = vpop.permute.xlu1 %14804 }
 0xb57   :  { %v14811_v34 = vpop.permute.xlu0 %14810  ;;  %14886 = vst.msk [vmem:[%s35412_s9 + $0x78] sm:$0xff] %vm14870_vm4, %v14805_v21 }
 0xb58   :  { %14889 = vst.msk [vmem:[%s35412_s9 + $0x90] sm:$0xff] %vm14870_vm4, %v14811_v34 }
 0xb59   :  { %27488 = vmatmul.mubr.msk.f32.gmra.mrb[100].mxu0 %vm1107_vm1, %v36960_v55 }
 0xb5a   :  { %27490 = vmatprep.mubr.msk.f32.mxu0 %vm1107_vm1, %v36961_v10  ;;  %v14809_v1 = vpop.permute.xlu1 %14808 }
 0xb5b   :  { %v14815_v35 = vpop.permute.xlu0 %14814  ;;  %14888 = vst.msk [vmem:[%s35412_s9 + $0x88] sm:$0xff] %vm14870_vm4, %v14809_v1 }
 0xb5c   :  { %14891 = vst.msk [vmem:[%s35412_s9 + $0xa0] sm:$0xff] %vm14870_vm4, %v14815_v35 }
 0xb5d   :  { %27491 = vmatmul.mubr.msk.f32.gmra.mrb[102].mxu0 %vm1107_vm1, %v36962_v22 }
 0xb5e   :  { %27493 = vmatprep.mubr.msk.f32.mxu0 %vm1107_vm1, %v36963_v60  ;;  %v14813_v46 = vpop.permute.xlu1 %14812 }
 0xb5f   :  { %v14819_v32 = vpop.permute.xlu0 %14818  ;;  %14890 = vst.msk [vmem:[%s35412_s9 + $0x98] sm:$0xff] %vm14870_vm4, %v14813_v46 }
 0xb60   :  { %14893 = vst.msk [vmem:[%s35412_s9 + $0xb0] sm:$0xff] %vm14870_vm4, %v14819_v32 }
 0xb61   :  { %27494 = vmatmul.mubr.msk.f32.gmra.mrb[104].mxu0 %vm1107_vm1, %v36964_v59 }
 0xb62   :  { %27496 = vmatprep.mubr.msk.f32.mxu0 %vm1107_vm1, %v36965_v26  ;;  %v14817_v39 = vpop.permute.xlu1 %14816 }
 0xb63   :  { %v14823_v14 = vpop.permute.xlu0 %14822  ;;  %14892 = vst.msk [vmem:[%s35412_s9 + $0xa8] sm:$0xff] %vm14870_vm4, %v14817_v39 }
 0xb64   :  { %14895 = vst.msk [vmem:[%s35412_s9 + $0xc0] sm:$0xff] %vm14870_vm4, %v14823_v14 }
 0xb65   :  { %27497 = vmatmul.mubr.msk.f32.gmra.mrb[106].mxu0 %vm1107_vm1, %v36966_v18 }
 0xb66   :  { %27499 = vmatprep.mubr.msk.f32.mxu0 %vm1107_vm1, %v36967_v30  ;;  %v14821_v6 = vpop.permute.xlu1 %14820 }
 0xb67   :  { %v14827_v44 = vpop.permute.xlu0 %14826  ;;  %14894 = vst.msk [vmem:[%s35412_s9 + $0xb8] sm:$0xff] %vm14870_vm4, %v14821_v6 }
 0xb68   :  { %14897 = vst.msk [vmem:[%s35412_s9 + $0xd0] sm:$0xff] %vm14870_vm4, %v14827_v44 }
 0xb69   :  { %27500 = vmatmul.mubr.msk.f32.gmra.mrb[108].mxu0 %vm1107_vm1, %v36968_v50 }
 0xb6a   :  { %27502 = vmatprep.mubr.msk.f32.mxu0 %vm1107_vm1, %v36969_v3  ;;  %v14825_v41 = vpop.permute.xlu1 %14824 }
 0xb6b   :  { %v14831_v56 = vpop.permute.xlu0 %14830  ;;  %14896 = vst.msk [vmem:[%s35412_s9 + $0xc8] sm:$0xff] %vm14870_vm4, %v14825_v41 }
 0xb6c   :  { %14899 = vst.msk [vmem:[%s35412_s9 + $0xe0] sm:$0xff] %vm14870_vm4, %v14831_v56 }
 0xb6d   :  { %27503 = vmatmul.mubr.msk.f32.gmra.mrb[110].mxu0 %vm1107_vm1, %v36970_v40 }
 0xb6e   :  { %27505 = vmatprep.mubr.msk.f32.mxu0 %vm1107_vm1, %v36971_v8  ;;  %v14829_v49 = vpop.permute.xlu1 %14828 }
 0xb6f   :  { %14898 = vst.msk [vmem:[%s35412_s9 + $0xd8] sm:$0xff] %vm14870_vm4, %v14829_v49  ;;  %v14835_v27 = vpop.permute.xlu0 %14834 }
 0xb70   :  { %14901 = vst.msk [vmem:[%s35412_s9 + $0xf0] sm:$0xff] %vm14870_vm4, %v14835_v27 }
 0xb71   :  { %27506 = vmatmul.mubr.msk.f32.gmra.mrb[112].mxu0 %vm1107_vm1, %v36972_v5 }
 0xb72   :  { %27508 = vmatprep.mubr.msk.f32.mxu0 %vm1107_vm1, %v36973_v33  ;;  %v14833_v51 = vpop.permute.xlu1 %14832 }
 0xb73   :  { %14900 = vst.msk [vmem:[%s35412_s9 + $0xe8] sm:$0xff] %vm14870_vm4, %v14833_v51 }
 0xb74   :  { %v20248_v63 = vpop.permute.xlu0 %20247 }
 0xb75   :  { %27509 = vmatmul.mubr.msk.f32.gmra.mrb[114].mxu0 %vm1107_vm1, %v36974_v19  ;;  %20344 = vst.msk [vmem:[%s35412_s9] sm:$0xff] %vm20343_vm5, %v20248_v63 }
 0xb76   :  { %27511 = vmatprep.mubr.msk.f32.mxu0 %vm1107_vm1, %v36975_v25  ;;  %v14837_v28 = vpop.permute.xlu1 %14836 }
 0xb77   :  { %14902 = vst.msk [vmem:[%s35412_s9 + $0xf8] sm:$0xff] %vm14870_vm4, %v14837_v28 }
 0xb79   :  { %27512 = vmatmul.mubr.msk.f32.gmra.mrb[116].mxu0 %vm1107_vm1, %v36976_v48  ;;  %v20252_v7 = vpop.permute.xlu0 %20251 }
 0xb7a   :  { %27514 = vmatprep.mubr.msk.f32.mxu0 %vm1107_vm1, %v36977_v17  ;;  %20346 = vst.msk [vmem:[%s35412_s9 + $0x10] sm:$0xff] %vm20343_vm5, %v20252_v7  ;;  %v20250_v58 = vpop.permute.xlu1 %20249 }
 0xb7b   :  { %20345 = vst.msk [vmem:[%s35412_s9 + $0x8] sm:$0xff] %vm20343_vm5, %v20250_v58 }
 0xb7d   :  { %27515 = vmatmul.mubr.msk.f32.gmra.mrb[118].mxu0 %vm1107_vm1, %v36978_v20 }
 0xb7e   :  { %27517 = vmatprep.mubr.msk.f32.mxu0 %vm1107_vm1, %v36979_v4  ;;  %v20254_v24 = vpop.permute.xlu1 %20253 }
 0xb7f   :  { %v20256_v62 = vpop.permute.xlu0 %20255  ;;  %20347 = vst.msk [vmem:[%s35412_s9 + $0x18] sm:$0xff] %vm20343_vm5, %v20254_v24 }
 0xb80   :  { %20348 = vst.msk [vmem:[%s35412_s9 + $0x20] sm:$0xff] %vm20343_vm5, %v20256_v62 }
 0xb81   :  { %27518 = vmatmul.mubr.msk.f32.gmra.mrb[120].mxu0 %vm1107_vm1, %v36980_v11 }
 0xb82   :  { %27520 = vmatprep.mubr.msk.f32.mxu0 %vm1107_vm1, %v36981_v45  ;;  %v20258_v47 = vpop.permute.xlu1 %20257 }
 0xb83   :  { %v20260_v57 = vpop.permute.xlu0 %20259  ;;  %20349 = vst.msk [vmem:[%s35412_s9 + $0x28] sm:$0xff] %vm20343_vm5, %v20258_v47 }
 0xb84   :  { %20350 = vst.msk [vmem:[%s35412_s9 + $0x30] sm:$0xff] %vm20343_vm5, %v20260_v57 }
 0xb85   :  { %27521 = vmatmul.mubr.msk.f32.gmra.mrb[122].mxu0 %vm1107_vm1, %v36982_v12 }
 0xb86   :  { %27523 = vmatprep.mubr.msk.f32.mxu0 %vm1107_vm1, %v36983_v36  ;;  %v20262_v29 = vpop.permute.xlu1 %20261 }
 0xb87   :  { %v20264_v43 = vpop.permute.xlu0 %20263  ;;  %20351 = vst.msk [vmem:[%s35412_s9 + $0x38] sm:$0xff] %vm20343_vm5, %v20262_v29 }
 0xb88   :  { %20352 = vst.msk [vmem:[%s35412_s9 + $0x40] sm:$0xff] %vm20343_vm5, %v20264_v43 }
 0xb89   :  { %27524 = vmatmul.mubr.msk.f32.gmra.mrb[124].mxu0 %vm1107_vm1, %v36984_v9 }
 0xb8a   :  { %27526 = vmatprep.mubr.msk.f32.mxu0 %vm1107_vm1, %v36985_v31  ;;  %v20266_v53 = vpop.permute.xlu1 %20265 }
 0xb8b   :  { %v20268_v61 = vpop.permute.xlu0 %20267  ;;  %20353 = vst.msk [vmem:[%s35412_s9 + $0x48] sm:$0xff] %vm20343_vm5, %v20266_v53 }
 0xb8c   :  { %20354 = vst.msk [vmem:[%s35412_s9 + $0x50] sm:$0xff] %vm20343_vm5, %v20268_v61 }
 0xb8d   :  { %27527 = vmatmul.mubr.msk.f32.gmra.mrb[126].mxu0 %vm1107_vm1, %v36986_v23 }
 0xb8e   :  { %v20270_v2 = vpop.permute.xlu1 %20269  ;;  %v20522_v52 = vpop.f32.mrb[32].mxu1 }
 0xb8f   :  { %v20272_v37 = vpop.permute.xlu0 %20271  ;;  %20355 = vst.msk [vmem:[%s35412_s9 + $0x58] sm:$0xff] %vm20343_vm5, %v20270_v2  ;;  %v20447_v13 = vpop.f32.mrb[32].mxu0 }
 0xb90   :  { %20356 = vst.msk [vmem:[%s35412_s9 + $0x60] sm:$0xff] %vm20343_vm5, %v20272_v37  ;;  %v27205_v21 = vpop.f32.mrb[33].mxu0  ;;  %v27210_v34 = vpop.f32.mrb[33].mxu1  ;;  %27537 = vmatprep.mubr.msk.f32.mxu1 %vm1107_vm1, %v20447_v13 }
 0xb91   :  { %27538 = vmatmul.mubr.msk.f32.vlgmr.msra.gmra.mrb[96].mxu1 %vm1107_vm1, %v20522_v52 }
 0xb92   :  { %v20274_v55 = vpop.permute.xlu1 %20273 }
 0xb93   :  { %v20276_v10 = vpop.permute.xlu0 %20275  ;;  %20357 = vst.msk [vmem:[%s35412_s9 + $0x68] sm:$0xff] %vm20343_vm5, %v20274_v55  ;;  %v20597_v1 = vpop.f32.mrb[34].mxu0 }
 0xb94   :  { %20358 = vst.msk [vmem:[%s35412_s9 + $0x70] sm:$0xff] %vm20343_vm5, %v20276_v10  ;;  %v27215_v35 = vpop.f32.mrb[35].mxu0  ;;  %27540 = vmatprep.mubr.msk.f32.mxu1 %vm1107_vm1, %v20597_v1 }
 0xb96   :  { %v20278_v22 = vpop.permute.xlu1 %20277 }
 0xb97   :  { %v20280_v60 = vpop.permute.xlu0 %20279  ;;  %20359 = vst.msk [vmem:[%s35412_s9 + $0x78] sm:$0xff] %vm20343_vm5, %v20278_v22  ;;  %v20672_v46 = vpop.f32.mrb[34].mxu1 }
 0xb98   :  { %20360 = vst.msk [vmem:[%s35412_s9 + $0x80] sm:$0xff] %vm20343_vm5, %v20280_v60  ;;  %v27220_v32 = vpop.f32.mrb[35].mxu1  ;;  %27541 = vmatmul.mubr.msk.f32.gmra.mrb[98].mxu1 %vm1107_vm1, %v20672_v46 }
 0xb9a   :  { %v20282_v59 = vpop.permute.xlu1 %20281 }
 0xb9b   :  { %v20284_v26 = vpop.permute.xlu0 %20283  ;;  %20361 = vst.msk [vmem:[%s35412_s9 + $0x88] sm:$0xff] %vm20343_vm5, %v20282_v59  ;;  %v20822_v39 = vpop.f32.mrb[36].mxu1 }
 0xb9c   :  { %20362 = vst.msk [vmem:[%s35412_s9 + $0x90] sm:$0xff] %vm20343_vm5, %v20284_v26  ;;  %v20747_v14 = vpop.f32.mrb[36].mxu0  ;;  %v27230_v18 = vpop.f32.mrb[37].mxu1 }
 0xb9d   :  { %v27225_v30 = vpop.f32.mrb[37].mxu0  ;;  %27543 = vmatprep.mubr.msk.f32.mxu1 %vm1107_vm1, %v20747_v14 }
 0xb9e   :  { %27544 = vmatmul.mubr.msk.f32.gmra.mrb[100].mxu1 %vm1107_vm1, %v20822_v39  ;;  %v20286_v6 = vpop.permute.xlu1 %20285 }
 0xb9f   :  { %v20288_v44 = vpop.permute.xlu0 %20287  ;;  %20363 = vst.msk [vmem:[%s35412_s9 + $0x98] sm:$0xff] %vm20343_vm5, %v20286_v6 }
 0xba0   :  { %20364 = vst.msk [vmem:[%s35412_s9 + $0xa0] sm:$0xff] %vm20343_vm5, %v20288_v44  ;;  %v20897_v50 = vpop.f32.mrb[38].mxu0 }
 0xba1   :  { %v20972_v3 = vpop.f32.mrb[38].mxu1  ;;  %v27235_v41 = vpop.f32.mrb[39].mxu0  ;;  %27546 = vmatprep.mubr.msk.f32.mxu1 %vm1107_vm1, %v20897_v50  ;;  %v36987_v50 = vld [vmem:[#allocation9_spill] sm:$0xff] }
 0xba2   :  { %v27240_v56 = vpop.f32.mrb[39].mxu1  ;;  %27547 = vmatmul.mubr.msk.f32.gmra.mrb[102].mxu1 %vm1107_vm1, %v20972_v3  ;;  %v20290_v40 = vpop.permute.xlu1 %20289 }
 0xba3   :  { %v20292_v8 = vpop.permute.xlu0 %20291  ;;  %20365 = vst.msk [vmem:[%s35412_s9 + $0xa8] sm:$0xff] %vm20343_vm5, %v20290_v40  ;;  %v36988_v40 = vld [vmem:[#allocation5_spill] sm:$0xff] }
 0xba4   :  { %20366 = vst.msk [vmem:[%s35412_s9 + $0xb0] sm:$0xff] %vm20343_vm5, %v20292_v8 }
 0xba5   :  { %v21047_v49 = vpop.f32.mrb[40].mxu0 }
 0xba6   :  { %v21122_v27 = vpop.f32.mrb[40].mxu1  ;;  %v27245_v5 = vpop.f32.mrb[41].mxu0  ;;  %27549 = vmatprep.mubr.msk.f32.mxu1 %vm1107_vm1, %v21047_v49 }
 0xba7   :  { %v20296_v33 = vpop.permute.xlu0 %20295  ;;  %v27250_v51 = vpop.f32.mrb[41].mxu1  ;;  %27550 = vmatmul.mubr.msk.f32.gmra.mrb[104].mxu1 %vm1107_vm1, %v21122_v27 }
 0xba8   :  { %20368 = vst.msk [vmem:[%s35412_s9 + $0xc0] sm:$0xff] %vm20343_vm5, %v20296_v33  ;;  %v20294_v63 = vpop.permute.xlu1 %20293  ;;  %v36989_v51 = vld [vmem:[#allocation17_spill] sm:$0xff] }
 0xba9   :  { %20367 = vst.msk [vmem:[%s35412_s9 + $0xb8] sm:$0xff] %vm20343_vm5, %v20294_v63 }
 0xbaa   :  { %v21197_v19 = vpop.f32.mrb[42].mxu0 }
 0xbab   :  { %v21272_v25 = vpop.f32.mrb[42].mxu1  ;;  %v27255_v28 = vpop.f32.mrb[43].mxu0  ;;  %27552 = vmatprep.mubr.msk.f32.mxu1 %vm1107_vm1, %v21197_v19 }
 0xbac   :  { %v27260_v48 = vpop.f32.mrb[43].mxu1  ;;  %27553 = vmatmul.mubr.msk.f32.gmra.mrb[106].mxu1 %vm1107_vm1, %v21272_v25  ;;  %v20298_v7 = vpop.permute.xlu1 %20297  ;;  %v36990_v28 = vld [vmem:[#allocation13_spill] sm:$0xff] }
 0xbad   :  { %20369 = vst.msk [vmem:[%s35412_s9 + $0xc8] sm:$0xff] %vm20343_vm5, %v20298_v7 }
 0xbaf   :  { %v21347_v17 = vpop.f32.mrb[44].mxu0 }
 0xbb0   :  { %v21422_v58 = vpop.f32.mrb[44].mxu1  ;;  %v27265_v20 = vpop.f32.mrb[45].mxu0  ;;  %27555 = vmatprep.mubr.msk.f32.mxu1 %vm1107_vm1, %v21347_v17 }
 0xbb1   :  { %v27270_v4 = vpop.f32.mrb[45].mxu1  ;;  %27556 = vmatmul.mubr.msk.f32.gmra.mrb[108].mxu1 %vm1107_vm1, %v21422_v58 }
 0xbb2   :  { %v36991_v4 = vld [vmem:[#allocation25_spill] sm:$0xff] }
 0xbb4   :  { %v21497_v24 = vpop.f32.mrb[46].mxu0 }
 0xbb5   :  { %v21572_v62 = vpop.f32.mrb[46].mxu1  ;;  %v27275_v11 = vpop.f32.mrb[47].mxu0  ;;  %27558 = vmatprep.mubr.msk.f32.mxu1 %vm1107_vm1, %v21497_v24 }
 0xbb6   :  { %v27280_v45 = vpop.f32.mrb[47].mxu1  ;;  %27559 = vmatmul.mubr.msk.f32.gmra.mrb[110].mxu1 %vm1107_vm1, %v21572_v62 }
 0xbb7   :  { %v36992_v45 = vld [vmem:[#allocation21_spill] sm:$0xff] }
 0xbb9   :  { %v21647_v47 = vpop.f32.mrb[48].mxu0 }
 0xbba   :  { %v21722_v57 = vpop.f32.mrb[48].mxu1  ;;  %v27285_v12 = vpop.f32.mrb[49].mxu0  ;;  %27561 = vmatprep.mubr.msk.f32.mxu1 %vm1107_vm1, %v21647_v47 }
 0xbbb   :  { %v27290_v36 = vpop.f32.mrb[49].mxu1  ;;  %27562 = vmatmul.mubr.msk.f32.gmra.mrb[112].mxu1 %vm1107_vm1, %v21722_v57 }
 0xbbe   :  { %v21797_v29 = vpop.f32.mrb[50].mxu0 }
 0xbbf   :  { %v21872_v43 = vpop.f32.mrb[50].mxu1  ;;  %v27295_v9 = vpop.f32.mrb[51].mxu0  ;;  %27564 = vmatprep.mubr.msk.f32.mxu1 %vm1107_vm1, %v21797_v29 }
 0xbc0   :  { %v27300_v31 = vpop.f32.mrb[51].mxu1  ;;  %27565 = vmatmul.mubr.msk.f32.gmra.mrb[114].mxu1 %vm1107_vm1, %v21872_v43  ;;  %v36993_v43 = vld [vmem:[#allocation33_spill] sm:$0xff] }
 0xbc3   :  { %v21947_v53 = vpop.f32.mrb[52].mxu0 }
 0xbc4   :  { %v22022_v61 = vpop.f32.mrb[52].mxu1  ;;  %v27305_v23 = vpop.f32.mrb[53].mxu0  ;;  %27567 = vmatprep.mubr.msk.f32.mxu1 %vm1107_vm1, %v21947_v53 }
 0xbc5   :  { %v27310_v2 = vpop.f32.mrb[53].mxu1  ;;  %27568 = vmatmul.mubr.msk.f32.gmra.mrb[116].mxu1 %vm1107_vm1, %v22022_v61  ;;  %v36994_v61 = vld [vmem:[#allocation29_spill] sm:$0xff] }
 0xbc8   :  { %v22097_v52 = vpop.f32.mrb[54].mxu0 }
 0xbc9   :  { %v22172_v37 = vpop.f32.mrb[54].mxu1  ;;  %v27315_v13 = vpop.f32.mrb[55].mxu0  ;;  %27570 = vmatprep.mubr.msk.f32.mxu1 %vm1107_vm1, %v22097_v52 }
 0xbca   :  { %v27320_v21 = vpop.f32.mrb[55].mxu1  ;;  %27571 = vmatmul.mubr.msk.f32.gmra.mrb[118].mxu1 %vm1107_vm1, %v22172_v37 }
 0xbcb   :  { %v36995_v21 = vld [vmem:[#allocation40_spill] sm:$0xff] }
 0xbcd   :  { %v22247_v34 = vpop.f32.mrb[56].mxu0 }
 0xbce   :  { %v22322_v55 = vpop.f32.mrb[56].mxu1  ;;  %v27325_v10 = vpop.f32.mrb[57].mxu0  ;;  %27573 = vmatprep.mubr.msk.f32.mxu1 %vm1107_vm1, %v22247_v34 }
 0xbcf   :  { %v27330_v1 = vpop.f32.mrb[57].mxu1  ;;  %27574 = vmatmul.mubr.msk.f32.gmra.mrb[120].mxu1 %vm1107_vm1, %v22322_v55 }
 0xbd0   :  { %v36996_v1 = vld [vmem:[#allocation37_spill] sm:$0xff] }
 0xbd2   :  { %v22397_v35 = vpop.f32.mrb[58].mxu0 }
 0xbd3   :  { %v22472_v22 = vpop.f32.mrb[58].mxu1  ;;  %v27335_v60 = vpop.f32.mrb[59].mxu0  ;;  %27576 = vmatprep.mubr.msk.f32.mxu1 %vm1107_vm1, %v22397_v35 }
 0xbd4   :  { %v27340_v46 = vpop.f32.mrb[59].mxu1  ;;  %27577 = vmatmul.mubr.msk.f32.gmra.mrb[122].mxu1 %vm1107_vm1, %v22472_v22 }
 0xbd7   :  { %v22547_v32 = vpop.f32.mrb[60].mxu0 }
 0xbd8   :  { %v22622_v59 = vpop.f32.mrb[60].mxu1  ;;  %v27345_v26 = vpop.f32.mrb[61].mxu0  ;;  %27579 = vmatprep.mubr.msk.f32.mxu1 %vm1107_vm1, %v22547_v32 }
 0xbd9   :  { %v27350_v39 = vpop.f32.mrb[61].mxu1  ;;  %27580 = vmatmul.mubr.msk.f32.gmra.mrb[124].mxu1 %vm1107_vm1, %v22622_v59  ;;  %v36997_v59 = vld [vmem:[#allocation46_spill] sm:$0xff] }
 0xbdc   :  { %v22697_v14 = vpop.f32.mrb[62].mxu0 }
 0xbdd   :  { %v22772_v18 = vpop.f32.mrb[62].mxu1  ;;  %v27355_v30 = vpop.f32.mrb[63].mxu0  ;;  %27582 = vmatprep.mubr.msk.f32.mxu1 %vm1107_vm1, %v22697_v14 }
 0xbde   :  { %v27360_v6 = vpop.f32.mrb[63].mxu1  ;;  %27583 = vmatmul.mubr.msk.f32.gmra.mrb[126].mxu1 %vm1107_vm1, %v22772_v18  ;;  %v36998_v18 = vld [vmem:[#allocation43_spill] sm:$0xff] }
 0xbe4   :  { %v27371_v44 = vpop.f32.mrb[64].mxu0 }
 0xbe5   :  { %v23098_v3 = vadd.f32 %v27371_v44, %v36987_v50  ;;  %v27427_v41 = vpop.f32.mrb[64].mxu1  ;;  %v22938_v56 = vpop.f32.mrb[65].mxu0 }
 0xbe6   :  { %v23097_v8 = vadd.f32 %v22938_v56, %v36988_v40  ;;  %v23291_v49 = vpop.f32.mrb[65].mxu1 }
 0xbe7   :  { %v34844_v27 = vadd.f32 %v27427_v41, %v23098_v3  ;;  %v36999_v41 = vld [vmem:[#allocation54_spill] sm:$0xff] }
 0xbe8   :  { %v34846_v5 = vadd.f32 %v23291_v49, %v23097_v8  ;;  %v27374_v33 = vpop.f32.mrb[66].mxu0  ;;  %v37000_v49 = vld [vmem:[#allocation50_spill] sm:$0xff] }
 0xbe9   :  { %v23100_v63 = vadd.f32 %v27374_v33, %v36989_v51  ;;  %v27430_v19 = vpop.f32.mrb[66].mxu1  ;;  %v22948_v25 = vpop.f32.mrb[67].mxu0 }
 0xbea   :  { %v23099_v48 = vadd.f32 %v22948_v25, %v36990_v28  ;;  %v23301_v7 = vpop.f32.mrb[67].mxu1  ;;  %v37001_v28 = vld [vmem:[#allocation61_spill] sm:$0xff] }
 0xbeb   :  { %v34850_v17 = vadd.f32 %v27430_v19, %v23100_v63 }
 0xbec   :  { %v34852_v58 = vadd.f32 %v23301_v7, %v23099_v48  ;;  %v27377_v20 = vpop.f32.mrb[68].mxu0 }
 0xbed   :  { %v23102_v24 = vadd.f32 %v27377_v20, %v36991_v4  ;;  %v27433_v62 = vpop.f32.mrb[68].mxu1  ;;  %v22958_v11 = vpop.f32.mrb[69].mxu0  ;;  %v37002_v4 = vld [vmem:[#allocation58_spill] sm:$0xff] }
 0xbee   :  { %v23101_v47 = vadd.f32 %v22958_v11, %v36992_v45  ;;  %v23311_v57 = vpop.f32.mrb[69].mxu1 }
 0xbef   :  { %v34856_v12 = vadd.f32 %v27433_v62, %v23102_v24 }
 0xbf0   :  { %v34858_v36 = vadd.f32 %v23311_v57, %v23101_v47  ;;  %v27380_v29 = vpop.f32.mrb[70].mxu0  ;;  %v37003_v57 = vld [vmem:[#allocation67_spill] sm:$0xff] }
 0xbf1   :  { %v23104_v9 = vadd.f32 %v27380_v29, %v36993_v43  ;;  %v27436_v31 = vpop.f32.mrb[70].mxu1  ;;  %v22968_v53 = vpop.f32.mrb[71].mxu0 }
 0xbf2   :  { %v23103_v23 = vadd.f32 %v22968_v53, %v36994_v61  ;;  %v23321_v2 = vpop.f32.mrb[71].mxu1 }
 0xbf3   :  { %v34862_v52 = vadd.f32 %v27436_v31, %v23104_v9  ;;  %v37004_v31 = vld [vmem:[#allocation64_spill] sm:$0xff] }
 0xbf4   :  { %v34864_v37 = vadd.f32 %v23321_v2, %v23103_v23  ;;  %v27383_v13 = vpop.f32.mrb[72].mxu0 }
 0xbf5   :  { %v23106_v34 = vadd.f32 %v27383_v13, %v36995_v21  ;;  %v27439_v55 = vpop.f32.mrb[72].mxu1  ;;  %v22978_v10 = vpop.f32.mrb[73].mxu0  ;;  %v37005_v21 = vld [vmem:[#allocation74_spill] sm:$0xff] }
 0xbf6   :  { %v23105_v35 = vadd.f32 %v22978_v10, %v36996_v1  ;;  %v23331_v22 = vpop.f32.mrb[73].mxu1  ;;  %v37006_v1 = vld [vmem:[#allocation71_spill] sm:$0xff] }
 0xbf7   :  { %v34868_v60 = vadd.f32 %v27439_v55, %v23106_v34 }
 0xbf8   :  { %v34870_v46 = vadd.f32 %v23331_v22, %v23105_v35  ;;  %v27386_v32 = vpop.f32.mrb[74].mxu0 }
 0xbf9   :  { %v23108_v26 = vadd.f32 %v27386_v32, %v36997_v59  ;;  %v27442_v39 = vpop.f32.mrb[74].mxu1  ;;  %v22988_v14 = vpop.f32.mrb[75].mxu0 }
 0xbfa   :  { %v23107_v30 = vadd.f32 %v22988_v14, %v36998_v18  ;;  %v23341_v6 = vpop.f32.mrb[75].mxu1 }
 0xbfb   :  { %v34874_v44 = vadd.f32 %v27442_v39, %v23108_v26  ;;  %v37007_v39 = vld [vmem:[#allocation82_spill] sm:$0xff] }
 0xbfc   :  { %v34876_v50 = vadd.f32 %v23341_v6, %v23107_v30  ;;  %v27389_v3 = vpop.f32.mrb[76].mxu0  ;;  %v37008_v6 = vld [vmem:[#allocation78_spill] sm:$0xff] }
 0xbfd   :  { %v23110_v56 = vadd.f32 %v27389_v3, %v36999_v41  ;;  %v27445_v40 = vpop.f32.mrb[76].mxu1  ;;  %v22998_v8 = vpop.f32.mrb[77].mxu0 }
 0xbfe   :  { %v23109_v33 = vadd.f32 %v22998_v8, %v37000_v49  ;;  %v23351_v51 = vpop.f32.mrb[77].mxu1  ;;  %v37009_v49 = vld [vmem:[#allocation90_spill] sm:$0xff] }
 0xbff   :  { %v34880_v63 = vadd.f32 %v27445_v40, %v23110_v56 }
 0xc00   :  { %v34882_v19 = vadd.f32 %v23351_v51, %v23109_v33  ;;  %v27392_v25 = vpop.f32.mrb[78].mxu0 }
 0xc01   :  { %v23112_v48 = vadd.f32 %v27392_v25, %v37001_v28  ;;  %v27448_v7 = vpop.f32.mrb[78].mxu1  ;;  %v23008_v20 = vpop.f32.mrb[79].mxu0  ;;  %v37010_v28 = vld [vmem:[#allocation86_spill] sm:$0xff] }
 0xc02   :  { %v23111_v24 = vadd.f32 %v23008_v20, %v37002_v4  ;;  %v23361_v62 = vpop.f32.mrb[79].mxu1 }
 0xc03   :  { %v34886_v11 = vadd.f32 %v27448_v7, %v23112_v48 }
 0xc04   :  { %v34888_v45 = vadd.f32 %v23361_v62, %v23111_v24  ;;  %v27395_v47 = vpop.f32.mrb[80].mxu0  ;;  %v37011_v62 = vld [vmem:[#allocation98_spill] sm:$0xff] }
 0xc05   :  { %v23114_v29 = vadd.f32 %v27395_v47, %v37003_v57  ;;  %v27451_v43 = vpop.f32.mrb[80].mxu1  ;;  %v23018_v9 = vpop.f32.mrb[81].mxu0 }
 0xc06   :  { %v23113_v53 = vadd.f32 %v23018_v9, %v37004_v31  ;;  %v23371_v61 = vpop.f32.mrb[81].mxu1 }
 0xc07   :  { %v34892_v23 = vadd.f32 %v27451_v43, %v23114_v29  ;;  %v37012_v43 = vld [vmem:[#allocation94_spill] sm:$0xff] }
 0xc08   :  { %v34894_v2 = vadd.f32 %v23371_v61, %v23113_v53  ;;  %v27398_v13 = vpop.f32.mrb[82].mxu0 }
 0xc09   :  { %v23116_v34 = vadd.f32 %v27398_v13, %v37005_v21  ;;  %v27454_v55 = vpop.f32.mrb[82].mxu1  ;;  %v23028_v10 = vpop.f32.mrb[83].mxu0  ;;  %v37013_v21 = vld [vmem:[#allocation106_spill] sm:$0xff] }
 0xc0a   :  { %v23115_v35 = vadd.f32 %v23028_v10, %v37006_v1  ;;  %v23381_v22 = vpop.f32.mrb[83].mxu1  ;;  %v37014_v1 = vld [vmem:[#allocation102_spill] sm:$0xff] }
 0xc0b   :  { %v34898_v32 = vadd.f32 %v27454_v55, %v23116_v34 }
 0xc0c   :  { %v34900_v59 = vadd.f32 %v23381_v22, %v23115_v35  ;;  %v27401_v26 = vpop.f32.mrb[84].mxu0 }
 0xc0d   :  { %v23118_v14 = vadd.f32 %v27401_v26, %v37007_v39  ;;  %v27457_v18 = vpop.f32.mrb[84].mxu1  ;;  %v23038_v30 = vpop.f32.mrb[85].mxu0 }
 0xc0e   :  { %v23117_v3 = vadd.f32 %v23038_v30, %v37008_v6  ;;  %v23391_v41 = vpop.f32.mrb[85].mxu1 }
 0xc0f   :  { %v34904_v56 = vadd.f32 %v27457_v18, %v23118_v14  ;;  %v37015_v18 = vld [vmem:[#allocation114_spill] sm:$0xff] }
 0xc10   :  { %v34906_v40 = vadd.f32 %v23391_v41, %v23117_v3  ;;  %v27404_v8 = vpop.f32.mrb[86].mxu0  ;;  %v37016_v41 = vld [vmem:[#allocation110_spill] sm:$0xff] }
 0xc11   :  { %v23120_v33 = vadd.f32 %v27404_v8, %v37009_v49  ;;  %v27460_v51 = vpop.f32.mrb[86].mxu1  ;;  %v23048_v25 = vpop.f32.mrb[87].mxu0 }
 0xc12   :  { %v23119_v48 = vadd.f32 %v23048_v25, %v37010_v28  ;;  %v23401_v7 = vpop.f32.mrb[87].mxu1  ;;  %v37017_v28 = vld [vmem:[#allocation122_spill] sm:$0xff] }
 0xc13   :  { %v34910_v20 = vadd.f32 %v27460_v51, %v23120_v33 }
 0xc14   :  { %v34912_v4 = vadd.f32 %v23401_v7, %v23119_v48  ;;  %v27407_v24 = vpop.f32.mrb[88].mxu0 }
 0xc15   :  { %v23122_v47 = vadd.f32 %v27407_v24, %v37011_v62  ;;  %v27463_v57 = vpop.f32.mrb[88].mxu1  ;;  %v23058_v29 = vpop.f32.mrb[89].mxu0  ;;  %v37018_v62 = vld [vmem:[#allocation118_spill] sm:$0xff] }
 0xc16   :  { %v23121_v9 = vadd.f32 %v23058_v29, %v37012_v43  ;;  %v23411_v31 = vpop.f32.mrb[89].mxu1 }
 0xc17   :  { %v34916_v53 = vadd.f32 %v27463_v57, %v23122_v47 }
 0xc18   :  { %v34918_v61 = vadd.f32 %v23411_v31, %v23121_v9  ;;  %v27410_v13 = vpop.f32.mrb[90].mxu0 }
 0xc19   :  { %v23124_v34 = vadd.f32 %v27410_v13, %v37013_v21  ;;  %v27466_v55 = vpop.f32.mrb[90].mxu1  ;;  %v23068_v10 = vpop.f32.mrb[91].mxu0 }
 0xc1a   :  { %v23123_v35 = vadd.f32 %v23068_v10, %v37014_v1  ;;  %v23421_v22 = vpop.f32.mrb[91].mxu1 }
 0xc1b   :  { %v34922_v26 = vadd.f32 %v27466_v55, %v23124_v34 }
 0xc1c   :  { %v34924_v39 = vadd.f32 %v23421_v22, %v23123_v35  ;;  %v27413_v14 = vpop.f32.mrb[92].mxu0 }
 0xc1d   :  { %v23126_v30 = vadd.f32 %v27413_v14, %v37015_v18  ;;  %v27469_v6 = vpop.f32.mrb[92].mxu1  ;;  %v23078_v3 = vpop.f32.mrb[93].mxu0 }
 0xc1e   :  { %v23125_v8 = vadd.f32 %v23078_v3, %v37016_v41  ;;  %v23431_v49 = vpop.f32.mrb[93].mxu1 }
 0xc1f   :  { %v34928_v33 = vadd.f32 %v27469_v6, %v23126_v30 }
 0xc20   :  { %v34930_v51 = vadd.f32 %v23431_v49, %v23125_v8  ;;  %v27416_v25 = vpop.f32.mrb[94].mxu0 }
 0xc21   :  { %v23128_v48 = vadd.f32 %v27416_v25, %v37017_v28  ;;  %v27472_v7 = vpop.f32.mrb[94].mxu1  ;;  %v23088_v24 = vpop.f32.mrb[95].mxu0 }
 0xc22   :  { %v23127_v47 = vadd.f32 %v23088_v24, %v37018_v62  ;;  %v23441_v57 = vpop.f32.mrb[95].mxu1 }
 0xc23   :  { %v34934_v29 = vadd.f32 %v27472_v7, %v23128_v48 }
 0xc24   :  { %v34936_v43 = vadd.f32 %v23441_v57, %v23127_v47  ;;  %v27483_v9 = vpop.f32.mrb[96].mxu0 }
 0xc25   :  { %v34939_v31 = vadd.f32 %v27483_v9, %v34844_v27  ;;  %v23644_v13 = vpop.f32.mrb[97].mxu0 }
 0xc26   :  { %v34942_v21 = vadd.f32 %v23644_v13, %v34846_v5 }
 0xc28   :  { %v27486_v34 = vpop.f32.mrb[98].mxu0 }
 0xc29   :  { %v34945_v55 = vadd.f32 %v27486_v34, %v34850_v17  ;;  %v23654_v10 = vpop.f32.mrb[99].mxu0 }
 0xc2a   :  { %v34948_v1 = vadd.f32 %v23654_v10, %v34852_v58 }
 0xc2c   :  { %v27489_v35 = vpop.f32.mrb[100].mxu0 }
 0xc2d   :  { %v34951_v22 = vadd.f32 %v27489_v35, %v34856_v12  ;;  %v23664_v14 = vpop.f32.mrb[101].mxu0 }
 0xc2e   :  { %v34954_v27 = vadd.f32 %v23664_v14, %v34858_v36 }
 0xc30   :  { %v27492_v18 = vpop.f32.mrb[102].mxu0 }
 0xc31   :  { %v34957_v5 = vadd.f32 %v27492_v18, %v34862_v52  ;;  %v23674_v30 = vpop.f32.mrb[103].mxu0 }
 0xc32   :  { %v34960_v17 = vadd.f32 %v23674_v30, %v34864_v37 }
 0xc34   :  { %v27495_v6 = vpop.f32.mrb[104].mxu0 }
 0xc35   :  { %v34963_v58 = vadd.f32 %v27495_v6, %v34868_v60  ;;  %v23684_v3 = vpop.f32.mrb[105].mxu0 }
 0xc36   :  { %v34966_v12 = vadd.f32 %v23684_v3, %v34870_v46 }
 0xc38   :  { %v27498_v41 = vpop.f32.mrb[106].mxu0 }
 0xc39   :  { %v34969_v36 = vadd.f32 %v27498_v41, %v34874_v44  ;;  %v23694_v8 = vpop.f32.mrb[107].mxu0 }
 0xc3a   :  { %v34972_v52 = vadd.f32 %v23694_v8, %v34876_v50 }
 0xc3c   :  { %v27501_v49 = vpop.f32.mrb[108].mxu0 }
 0xc3d   :  { %v34975_v37 = vadd.f32 %v27501_v49, %v34880_v63  ;;  %v23704_v25 = vpop.f32.mrb[109].mxu0 }
 0xc3e   :  { %v34978_v60 = vadd.f32 %v23704_v25, %v34882_v19 }
 0xc40   :  { %v27504_v28 = vpop.f32.mrb[110].mxu0 }
 0xc41   :  { %v34981_v46 = vadd.f32 %v27504_v28, %v34886_v11  ;;  %v23714_v48 = vpop.f32.mrb[111].mxu0 }
 0xc42   :  { %v34984_v44 = vadd.f32 %v23714_v48, %v34888_v45 }
 0xc44   :  { %v27507_v7 = vpop.f32.mrb[112].mxu0 }
 0xc45   :  { %v34987_v50 = vadd.f32 %v27507_v7, %v34892_v23  ;;  %v23724_v24 = vpop.f32.mrb[113].mxu0 }
 0xc46   :  { %v34990_v63 = vadd.f32 %v23724_v24, %v34894_v2 }
 0xc48   :  { %v27510_v62 = vpop.f32.mrb[114].mxu0 }
 0xc49   :  { %v34993_v19 = vadd.f32 %v27510_v62, %v34898_v32  ;;  %v23734_v47 = vpop.f32.mrb[115].mxu0 }
 0xc4a   :  { %v34996_v11 = vadd.f32 %v23734_v47, %v34900_v59 }
 0xc4c   :  { %v27513_v57 = vpop.f32.mrb[116].mxu0 }
 0xc4d   :  { %v34999_v45 = vadd.f32 %v27513_v57, %v34904_v56  ;;  %v23744_v9 = vpop.f32.mrb[117].mxu0 }
 0xc4e   :  { %v35002_v23 = vadd.f32 %v23744_v9, %v34906_v40 }
 0xc50   :  { %v27516_v13 = vpop.f32.mrb[118].mxu0 }
 0xc51   :  { %v35005_v2 = vadd.f32 %v27516_v13, %v34910_v20  ;;  %v23754_v34 = vpop.f32.mrb[119].mxu0 }
 0xc52   :  { %v35008_v32 = vadd.f32 %v23754_v34, %v34912_v4 }
 0xc54   :  { %v27519_v10 = vpop.f32.mrb[120].mxu0 }
 0xc55   :  { %v35011_v59 = vadd.f32 %v27519_v10, %v34916_v53  ;;  %v23764_v35 = vpop.f32.mrb[121].mxu0 }
 0xc56   :  { %v35014_v56 = vadd.f32 %v23764_v35, %v34918_v61 }
 0xc58   :  { %v27522_v14 = vpop.f32.mrb[122].mxu0 }
 0xc59   :  { %v35017_v40 = vadd.f32 %v27522_v14, %v34922_v26  ;;  %v23774_v18 = vpop.f32.mrb[123].mxu0 }
 0xc5a   :  { %v35020_v20 = vadd.f32 %v23774_v18, %v34924_v39 }
 0xc5c   :  { %v27525_v30 = vpop.f32.mrb[124].mxu0 }
 0xc5d   :  { %v35023_v4 = vadd.f32 %v27525_v30, %v34928_v33  ;;  %v23784_v6 = vpop.f32.mrb[125].mxu0 }
 0xc5e   :  { %v35026_v53 = vadd.f32 %v23784_v6, %v34930_v51 }
 0xc60   :  { %v27528_v3 = vpop.f32.mrb[126].mxu0 }
 0xc61   :  { %v35029_v61 = vadd.f32 %v27528_v3, %v34934_v29  ;;  %v23794_v41 = vpop.f32.mrb[127].mxu0 }
 0xc62   :  { %v35032_v26 = vadd.f32 %v23794_v41, %v34936_v43 }
 0xc64   :  { %v27539_v8 = vpop.f32.mrb[96].mxu1 }
 0xc65   :  { %v35035_v39 = vadd.f32 %v27539_v8, %v34939_v31  ;;  %v23997_v49 = vpop.f32.mrb[97].mxu1 }
 0xc66   :  { %v35038_v33 = vadd.f32 %v23997_v49, %v34942_v21 }
 0xc67   :  { %24190 = vadd.xlane.f32.xlu1 %v35035_v39 }
 0xc68   :  { %24188 = vadd.xlane.f32.xlu0 %v35038_v33 }
 0xc6b   :  { %v27542_v51 = vpop.f32.mrb[98].mxu1 }
 0xc6c   :  { %v35043_v29 = vadd.f32 %v27542_v51, %v34945_v55  ;;  %v24007_v25 = vpop.f32.mrb[99].mxu1 }
 0xc6d   :  { %v35046_v43 = vadd.f32 %v24007_v25, %v34948_v1 }
 0xc6e   :  { %24194 = vadd.xlane.f32.xlu0 %v35043_v29 }
 0xc71   :  { %v27545_v31 = vpop.f32.mrb[100].mxu1 }
 0xc72   :  { %v35050_v28 = vadd.f32 %v27545_v31, %v34951_v22  ;;  %v24017_v21 = vpop.f32.mrb[101].mxu1  ;;  %24192 = vadd.xlane.f32.xlu0 %v35046_v43 }
 0xc73   :  { %v35054_v48 = vadd.f32 %v24017_v21, %v34954_v27 }
 0xc74   :  { %24198 = vadd.xlane.f32.xlu1 %v35050_v28 }
 0xc75   :  { %v27548_v55 = vpop.f32.mrb[102].mxu1 }
 0xc76   :  { %v35058_v7 = vadd.f32 %v27548_v55, %v34957_v5  ;;  %v24027_v1 = vpop.f32.mrb[103].mxu1  ;;  %24196 = vadd.xlane.f32.xlu0 %v35054_v48 }
 0xc77   :  { %v35062_v24 = vadd.f32 %v24027_v1, %v34960_v17 }
 0xc78   :  { %24202 = vadd.xlane.f32.xlu1 %v35058_v7 }
 0xc7a   :  { %v27551_v22 = vpop.f32.mrb[104].mxu1  ;;  %24200 = vadd.xlane.f32.xlu0 %v35062_v24 }
 0xc7b   :  { %v35067_v27 = vadd.f32 %v27551_v22, %v34963_v58  ;;  %v24037_v62 = vpop.f32.mrb[105].mxu1 }
 0xc7c   :  { %v35070_v47 = vadd.f32 %v24037_v62, %v34966_v12 }
 0xc7d   :  { %24206 = vadd.xlane.f32.xlu1 %v35067_v27 }
 0xc7e   :  { %24204 = vadd.xlane.f32.xlu0 %v35070_v47 }
 0xc7f   :  { %v27554_v5 = vpop.f32.mrb[106].mxu1 }
 0xc80   :  { %v35075_v17 = vadd.f32 %v27554_v5, %v34969_v36  ;;  %v24047_v57 = vpop.f32.mrb[107].mxu1 }
 0xc81   :  { %v35078_v9 = vadd.f32 %v24047_v57, %v34972_v52 }
 0xc82   :  { %24210 = vadd.xlane.f32.xlu1 %v35075_v17 }
 0xc83   :  { %24208 = vadd.xlane.f32.xlu0 %v35078_v9 }
 0xc84   :  { %v27557_v58 = vpop.f32.mrb[108].mxu1 }
 0xc85   :  { %v35083_v12 = vadd.f32 %v27557_v58, %v34975_v37  ;;  %v24057_v13 = vpop.f32.mrb[109].mxu1 }
 0xc86   :  { %v35086_v34 = vadd.f32 %v24057_v13, %v34978_v60 }
 0xc87   :  { %24214 = vadd.xlane.f32.xlu1 %v35083_v12 }
 0xc88   :  { %24212 = vadd.xlane.f32.xlu0 %v35086_v34 }
 0xc89   :  { %v27560_v36 = vpop.f32.mrb[110].mxu1 }
 0xc8a   :  { %v35091_v52 = vadd.f32 %v27560_v36, %v34981_v46  ;;  %v24067_v10 = vpop.f32.mrb[111].mxu1 }
 0xc8b   :  { %v35094_v35 = vadd.f32 %v24067_v10, %v34984_v44 }
 0xc8c   :  { %24218 = vadd.xlane.f32.xlu1 %v35091_v52 }
 0xc8d   :  { %24216 = vadd.xlane.f32.xlu0 %v35094_v35 }
 0xc8e   :  { %v27563_v37 = vpop.f32.mrb[112].mxu1 }
 0xc8f   :  { %v35099_v60 = vadd.f32 %v27563_v37, %v34987_v50  ;;  %v24077_v14 = vpop.f32.mrb[113].mxu1 }
 0xc90   :  { %v35102_v18 = vadd.f32 %v24077_v14, %v34990_v63 }
 0xc91   :  { %24222 = vadd.xlane.f32.xlu1 %v35099_v60 }
 0xc92   :  { %24220 = vadd.xlane.f32.xlu0 %v35102_v18 }
 0xc93   :  { %v27566_v46 = vpop.f32.mrb[114].mxu1 }
 0xc94   :  { %v35107_v44 = vadd.f32 %v27566_v46, %v34993_v19  ;;  %v24087_v30 = vpop.f32.mrb[115].mxu1 }
 0xc95   :  { %v35110_v6 = vadd.f32 %v24087_v30, %v34996_v11 }
 0xc96   :  { %24226 = vadd.xlane.f32.xlu1 %v35107_v44 }
 0xc97   :  { %24224 = vadd.xlane.f32.xlu0 %v35110_v6 }
 0xc98   :  { %v27569_v50 = vpop.f32.mrb[116].mxu1 }
 0xc99   :  { %v35115_v63 = vadd.f32 %v27569_v50, %v34999_v45  ;;  %v24097_v3 = vpop.f32.mrb[117].mxu1 }
 0xc9a   :  { %v35118_v41 = vadd.f32 %v24097_v3, %v35002_v23 }
 0xc9b   :  { %24230 = vadd.xlane.f32.xlu1 %v35115_v63 }
 0xc9c   :  { %24228 = vadd.xlane.f32.xlu0 %v35118_v41 }
 0xc9d   :  { %v27572_v19 = vpop.f32.mrb[118].mxu1 }
 0xc9e   :  { %v35123_v11 = vadd.f32 %v27572_v19, %v35005_v2  ;;  %v24107_v8 = vpop.f32.mrb[119].mxu1 }
 0xc9f   :  { %v35126_v49 = vadd.f32 %v24107_v8, %v35008_v32 }
 0xca0   :  { %24234 = vadd.xlane.f32.xlu1 %v35123_v11 }
 0xca1   :  { %24232 = vadd.xlane.f32.xlu0 %v35126_v49 }
 0xca2   :  { %v27575_v45 = vpop.f32.mrb[120].mxu1 }
 0xca3   :  { %v35131_v23 = vadd.f32 %v27575_v45, %v35011_v59  ;;  %v24117_v51 = vpop.f32.mrb[121].mxu1 }
 0xca4   :  { %v35134_v25 = vadd.f32 %v24117_v51, %v35014_v56 }
 0xca5   :  { %24238 = vadd.xlane.f32.xlu1 %v35131_v23 }
 0xca6   :  { %24236 = vadd.xlane.f32.xlu0 %v35134_v25 }
 0xca7   :  { %v27578_v2 = vpop.f32.mrb[122].mxu1 }
 0xca8   :  { %v35139_v32 = vadd.f32 %v27578_v2, %v35017_v40  ;;  %v24127_v31 = vpop.f32.mrb[123].mxu1 }
 0xca9   :  { %v35142_v21 = vadd.f32 %v24127_v31, %v35020_v20 }
 0xcaa   :  { %24242 = vadd.xlane.f32.xlu1 %v35139_v32 }
 0xcab   :  { %24240 = vadd.xlane.f32.xlu0 %v35142_v21 }
 0xcac   :  { %v27581_v59 = vpop.f32.mrb[124].mxu1 }
 0xcad   :  { %v35147_v56 = vadd.f32 %v27581_v59, %v35023_v4  ;;  %v24137_v55 = vpop.f32.mrb[125].mxu1 }
 0xcae   :  { %v35150_v1 = vadd.f32 %v24137_v55, %v35026_v53 }
 0xcaf   :  { %24246 = vadd.xlane.f32.xlu1 %v35147_v56 }
 0xcb0   :  { %24244 = vadd.xlane.f32.xlu0 %v35150_v1 }
 0xcb1   :  { %v27584_v40 = vpop.f32.mrb[126].mxu1 }
 0xcb2   :  { %v35155_v20 = vadd.f32 %v27584_v40, %v35029_v61  ;;  %v24147_v22 = vpop.f32.mrb[127].mxu1 }
 0xcb3   :  { %v35158_v62 = vadd.f32 %v24147_v22, %v35032_v26 }
 0xcb4   :  { %24250 = vadd.xlane.f32.xlu1 %v35155_v20 }
 0xcb5   :  { %24248 = vadd.xlane.f32.xlu0 %v35158_v62 }
 0xcc5   :  { %20301 = vrot.lane.b32.xlu1 %v34121_v38, %s28345_s19 }
 0xccb   :  { %20299 = vrot.lane.b32.xlu0 %v34107_v16, %s28345_s19 }
 0xcf4   :  { %v24191_v4 = vpop.xlane.xlu1 %24190 }
 0xcf5   :  { %v24254_v53 = vmul.f32 0.0078125, %v24191_v4  ;;  %v24189_v5 = vpop.xlane.xlu0 %24188 }
 0xcf6   :  { %v24253_v57 = vmul.f32 0.0078125, %v24189_v5 }
 0xcf7   :  { %v35167_v61 = vsub.f32 %v35035_v39, %v24254_v53 }
 0xcf8   :  { %v35170_v26 = vsub.f32 %v35038_v33, %v24253_v57 }
 0xcf9   :  { %v24318_v58 = vmul.f32 %v35167_v61, %v35167_v61 }
 0xcfa   :  { %v24317_v13 = vmul.f32 %v35170_v26, %v35170_v26 }
 0xcfb   :  { %v24195_v38 = vpop.xlane.xlu0 %24194  ;;  %24351 = vadd.xlane.f32.xlu1 %v24318_v58 }
 0xcfc   :  { %v24256_v36 = vmul.f32 0.0078125, %v24195_v38  ;;  %24349 = vadd.xlane.f32.xlu0 %v24317_v13 }
 0xcfe   :  { %v35177_v16 = vsub.f32 %v35043_v29, %v24256_v36 }
 0xcff   :  { %v24193_v10 = vpop.xlane.xlu0 %24192 }
 0xd00   :  { %v24255_v37 = vmul.f32 0.0078125, %v24193_v10  ;;  %v24320_v39 = vmul.f32 %v35177_v16, %v35177_v16 }
 0xd01   :  { %v24199_v33 = vpop.xlane.xlu1 %24198 }
 0xd02   :  { %v35182_v14 = vsub.f32 %v35046_v43, %v24255_v37  ;;  %v24258_v46 = vmul.f32 0.0078125, %v24199_v33  ;;  %24355 = vadd.xlane.f32.xlu1 %v24320_v39 }
 0xd03   :  { %v24197_v30 = vpop.xlane.xlu0 %24196 }
 0xd04   :  { %v35185_v50 = vsub.f32 %v35050_v28, %v24258_v46  ;;  %v24257_v3 = vmul.f32 0.0078125, %v24197_v30  ;;  %v24319_v29 = vmul.f32 %v35182_v14, %v35182_v14 }
 0xd05   :  { %v24203_v19 = vpop.xlane.xlu1 %24202 }
 0xd06   :  { %v35190_v8 = vsub.f32 %v35054_v48, %v24257_v3  ;;  %v24260_v45 = vmul.f32 0.0078125, %v24203_v19  ;;  %24353 = vadd.xlane.f32.xlu0 %v24319_v29  ;;  %v24322_v43 = vmul.f32 %v35185_v50, %v35185_v50 }
 0xd07   :  { %v24201_v51 = vpop.xlane.xlu0 %24200 }
 0xd08   :  { %v35195_v2 = vsub.f32 %v35058_v7, %v24260_v45  ;;  %v24259_v31 = vmul.f32 0.0078125, %v24201_v51  ;;  %24359 = vadd.xlane.f32.xlu1 %v24322_v43  ;;  %v24321_v28 = vmul.f32 %v35190_v8, %v35190_v8 }
 0xd0a   :  { %v35200_v59 = vsub.f32 %v35062_v24, %v24259_v31  ;;  %v24207_v55 = vpop.xlane.xlu1 %24206  ;;  %24357 = vadd.xlane.f32.xlu0 %v24321_v28  ;;  %v24324_v48 = vmul.f32 %v35195_v2, %v35195_v2 }
 0xd0b   :  { %v24262_v40 = vmul.f32 0.0078125, %v24207_v55  ;;  %v24205_v22 = vpop.xlane.xlu0 %24204 }
 0xd0c   :  { %v24261_v4 = vmul.f32 0.0078125, %v24205_v22  ;;  %24363 = vadd.xlane.f32.xlu1 %v24324_v48  ;;  %v24323_v7 = vmul.f32 %v35200_v59, %v35200_v59 }
 0xd0d   :  { %v35207_v53 = vsub.f32 %v35067_v27, %v24262_v40 }
 0xd0e   :  { %v35210_v5 = vsub.f32 %v35070_v47, %v24261_v4  ;;  %24361 = vadd.xlane.f32.xlu0 %v24323_v7 }
 0xd0f   :  { %v24211_v24 = vpop.xlane.xlu1 %24210  ;;  %v24326_v57 = vmul.f32 %v35207_v53, %v35207_v53 }
 0xd10   :  { %v24264_v58 = vmul.f32 0.0078125, %v24211_v24  ;;  %v24209_v13 = vpop.xlane.xlu0 %24208  ;;  %v24325_v38 = vmul.f32 %v35210_v5, %v35210_v5 }
 0xd11   :  { %v24263_v36 = vmul.f32 0.0078125, %v24209_v13  ;;  %24367 = vadd.xlane.f32.xlu1 %v24326_v57 }
 0xd12   :  { %v35217_v10 = vsub.f32 %v35075_v17, %v24264_v58  ;;  %24365 = vadd.xlane.f32.xlu0 %v24325_v38 }
 0xd13   :  { %v35220_v27 = vsub.f32 %v35078_v9, %v24263_v36 }
 0xd14   :  { %v24215_v47 = vpop.xlane.xlu1 %24214  ;;  %v24328_v37 = vmul.f32 %v35217_v10, %v35217_v10 }
 0xd15   :  { %v24266_v39 = vmul.f32 0.0078125, %v24215_v47  ;;  %v24213_v33 = vpop.xlane.xlu0 %24212  ;;  %v24327_v46 = vmul.f32 %v35220_v27, %v35220_v27 }
 0xd16   :  { %v24265_v30 = vmul.f32 0.0078125, %v24213_v33  ;;  %24371 = vadd.xlane.f32.xlu1 %v24328_v37 }
 0xd17   :  { %v35227_v3 = vsub.f32 %v35083_v12, %v24266_v39  ;;  %24369 = vadd.xlane.f32.xlu0 %v24327_v46 }
 0xd18   :  { %v35230_v17 = vsub.f32 %v35086_v34, %v24265_v30 }
 0xd19   :  { %v24219_v9 = vpop.xlane.xlu1 %24218  ;;  %v24330_v29 = vmul.f32 %v35227_v3, %v35227_v3 }
 0xd1a   :  { %v24268_v19 = vmul.f32 0.0078125, %v24219_v9  ;;  %v24217_v45 = vpop.xlane.xlu0 %24216  ;;  %v24329_v43 = vmul.f32 %v35230_v17, %v35230_v17 }
 0xd1b   :  { %v24267_v51 = vmul.f32 0.0078125, %v24217_v45  ;;  %24375 = vadd.xlane.f32.xlu1 %v24330_v29 }
 0xd1c   :  { %v35237_v31 = vsub.f32 %v35091_v52, %v24268_v19  ;;  %24373 = vadd.xlane.f32.xlu0 %v24329_v43 }
 0xd1d   :  { %v35240_v12 = vsub.f32 %v35094_v35, %v24267_v51 }
 0xd1e   :  { %v24223_v34 = vpop.xlane.xlu1 %24222  ;;  %v24332_v28 = vmul.f32 %v35237_v31, %v35237_v31 }
 0xd1f   :  { %v24270_v55 = vmul.f32 0.0078125, %v24223_v34  ;;  %v24221_v48 = vpop.xlane.xlu0 %24220  ;;  %v24331_v40 = vmul.f32 %v35240_v12, %v35240_v12 }
 0xd20   :  { %v24269_v22 = vmul.f32 0.0078125, %v24221_v48  ;;  %24379 = vadd.xlane.f32.xlu1 %v24332_v28 }
 0xd21   :  { %v35247_v4 = vsub.f32 %v35099_v60, %v24270_v55  ;;  %24377 = vadd.xlane.f32.xlu0 %v24331_v40 }
 0xd22   :  { %v35250_v52 = vsub.f32 %v35102_v18, %v24269_v22 }
 0xd23   :  { %v24227_v35 = vpop.xlane.xlu1 %24226  ;;  %v24334_v7 = vmul.f32 %v35247_v4, %v35247_v4 }
 0xd24   :  { %v24272_v24 = vmul.f32 0.0078125, %v24227_v35  ;;  %v24225_v57 = vpop.xlane.xlu0 %24224  ;;  %v24333_v58 = vmul.f32 %v35250_v52, %v35250_v52 }
 0xd25   :  { %v24271_v13 = vmul.f32 0.0078125, %v24225_v57  ;;  %24383 = vadd.xlane.f32.xlu1 %v24334_v7 }
 0xd26   :  { %v35257_v38 = vsub.f32 %v35107_v44, %v24272_v24  ;;  %24381 = vadd.xlane.f32.xlu0 %v24333_v58 }
 0xd27   :  { %v35260_v60 = vsub.f32 %v35110_v6, %v24271_v13 }
 0xd28   :  { %v24231_v18 = vpop.xlane.xlu1 %24230  ;;  %v24336_v36 = vmul.f32 %v35257_v38, %v35257_v38 }
 0xd29   :  { %v24274_v47 = vmul.f32 0.0078125, %v24231_v18  ;;  %v24229_v37 = vpop.xlane.xlu0 %24228  ;;  %v24335_v39 = vmul.f32 %v35260_v60, %v35260_v60 }
 0xd2a   :  { %v24273_v33 = vmul.f32 0.0078125, %v24229_v37  ;;  %24387 = vadd.xlane.f32.xlu1 %v24336_v36 }
 0xd2b   :  { %v35267_v46 = vsub.f32 %v35115_v63, %v24274_v47  ;;  %24385 = vadd.xlane.f32.xlu0 %v24335_v39 }
 0xd2c   :  { %v35270_v44 = vsub.f32 %v35118_v41, %v24273_v33 }
 0xd2d   :  { %v24235_v6 = vpop.xlane.xlu1 %24234  ;;  %v24338_v30 = vmul.f32 %v35267_v46, %v35267_v46 }
 0xd2e   :  { %v24276_v9 = vmul.f32 0.0078125, %v24235_v6  ;;  %v24233_v29 = vpop.xlane.xlu0 %24232  ;;  %v24337_v19 = vmul.f32 %v35270_v44, %v35270_v44 }
 0xd2f   :  { %v24275_v45 = vmul.f32 0.0078125, %v24233_v29  ;;  %24391 = vadd.xlane.f32.xlu1 %v24338_v30 }
 0xd30   :  { %v35277_v43 = vsub.f32 %v35123_v11, %v24276_v9  ;;  %24389 = vadd.xlane.f32.xlu0 %v24337_v19 }
 0xd31   :  { %v35280_v63 = vsub.f32 %v35126_v49, %v24275_v45 }
 0xd32   :  { %v24239_v41 = vpop.xlane.xlu1 %24238  ;;  %v24340_v51 = vmul.f32 %v35277_v43, %v35277_v43 }
 0xd33   :  { %v24278_v34 = vmul.f32 0.0078125, %v24239_v41  ;;  %v24237_v28 = vpop.xlane.xlu0 %24236  ;;  %v24339_v55 = vmul.f32 %v35280_v63, %v35280_v63 }
 0xd34   :  { %v24277_v48 = vmul.f32 0.0078125, %v24237_v28  ;;  %24395 = vadd.xlane.f32.xlu1 %v24340_v51 }
 0xd35   :  { %v35287_v40 = vsub.f32 %v35131_v23, %v24278_v34  ;;  %24393 = vadd.xlane.f32.xlu0 %v24339_v55 }
 0xd36   :  { %v35290_v11 = vsub.f32 %v35134_v25, %v24277_v48 }
 0xd37   :  { %v24243_v49 = vpop.xlane.xlu1 %24242  ;;  %v24342_v22 = vmul.f32 %v35287_v40, %v35287_v40 }
 0xd38   :  { %v24280_v35 = vmul.f32 0.0078125, %v24243_v49  ;;  %v24241_v7 = vpop.xlane.xlu0 %24240  ;;  %v24341_v24 = vmul.f32 %v35290_v11, %v35290_v11 }
 0xd39   :  { %v24279_v57 = vmul.f32 0.0078125, %v24241_v7  ;;  %24399 = vadd.xlane.f32.xlu1 %v24342_v22 }
 0xd3a   :  { %v35297_v58 = vsub.f32 %v35139_v32, %v24280_v35  ;;  %24397 = vadd.xlane.f32.xlu0 %v24341_v24 }
 0xd3b   :  { %v35300_v23 = vsub.f32 %v35142_v21, %v24279_v57 }
 0xd3c   :  { %v24247_v25 = vpop.xlane.xlu1 %24246  ;;  %v24344_v13 = vmul.f32 %v35297_v58, %v35297_v58 }
 0xd3d   :  { %v24282_v18 = vmul.f32 0.0078125, %v24247_v25  ;;  %v24245_v36 = vpop.xlane.xlu0 %24244  ;;  %v24343_v47 = vmul.f32 %v35300_v23, %v35300_v23 }
 0xd3e   :  { %v24281_v37 = vmul.f32 0.0078125, %v24245_v36  ;;  %24403 = vadd.xlane.f32.xlu1 %v24344_v13 }
 0xd3f   :  { %v35307_v39 = vsub.f32 %v35147_v56, %v24282_v18  ;;  %24401 = vadd.xlane.f32.xlu0 %v24343_v47 }
 0xd40   :  { %v35310_v32 = vsub.f32 %v35150_v1, %v24281_v37 }
 0xd41   :  { %v24251_v21 = vpop.xlane.xlu1 %24250  ;;  %v24346_v33 = vmul.f32 %v35307_v39, %v35307_v39 }
 0xd42   :  { %v24284_v6 = vmul.f32 0.0078125, %v24251_v21  ;;  %v24249_v30 = vpop.xlane.xlu0 %24248  ;;  %v24345_v9 = vmul.f32 %v35310_v32, %v35310_v32 }
 0xd43   :  { %24407 = vadd.xlane.f32.xlu1 %v24346_v33  ;;  %v24283_v29 = vmul.f32 0.0078125, %v24249_v30 }
 0xd44   :  { %v35317_v19 = vsub.f32 %v35155_v20, %v24284_v6  ;;  %24405 = vadd.xlane.f32.xlu0 %v24345_v9 }
 0xd45   :  { %v35320_v56 = vsub.f32 %v35158_v62, %v24283_v29  ;;  %v20302_v1 = vpop.permute.xlu1 %20301 }
 0xd46   :  { %20371 = vst.msk [vmem:[%s35412_s9 + $0xd8] sm:$0xff] %vm20343_vm5, %v20302_v1  ;;  %v24348_v45 = vmul.f32 %v35317_v19, %v35317_v19  ;;  %v20300_v41 = vpop.permute.xlu0 %20299 }
 0xd47   :  { %20370 = vst.msk [vmem:[%s35412_s9 + $0xd0] sm:$0xff] %vm20343_vm5, %v20300_v41  ;;  %v24347_v20 = vmul.f32 %v35320_v56, %v35320_v56 }
 0xd48   :  { %24411 = vadd.xlane.f32.xlu1 %v24348_v45 }
 0xd49   :  { %24409 = vadd.xlane.f32.xlu0 %v24347_v20 }
 0xd59   :  { %20305 = vrot.lane.b32.xlu1 %v34151_v54, %s28345_s19 }
 0xd5d   :  { %20309 = vrot.lane.b32.xlu1 %v34193_v42, %s28345_s19 }
 0xd5f   :  { %20303 = vrot.lane.b32.xlu0 %v34145_v0, %s28345_s19 }
 0xd63   :  { %20307 = vrot.lane.b32.xlu0 %v34187_v15, %s28345_s19 }
 0xd88   :  { %v24352_v62 = vpop.xlane.xlu1 %24351 }
 0xd89   :  { %v24414_v51 = vmul.f32 0.0078125, %v24352_v62  ;;  %v24350_v34 = vpop.xlane.xlu0 %24349 }
 0xd8a   :  { %v24413_v28 = vmul.f32 0.0078125, %v24350_v34 }
 0xd8b   :  { %v24446_v55 = vadd.f32 1e-05, %v24414_v51 }
 0xd8c   :  { %v24445_v48 = vadd.f32 1e-05, %v24413_v28 }
 0xd8d   :  { %28250 = vrsqrt.f32 %v24446_v55 }
 0xd8e   :  { %28252 = vrsqrt.f32 %v24445_v48 }
 0xd8f   :  { %v24356_v49 = vpop.xlane.xlu1 %24355 }
 0xd90   :  { %v24416_v22 = vmul.f32 0.0078125, %v24356_v49 }
 0xd92   :  { %v24448_v54 = vadd.f32 1e-05, %v24416_v22 }
 0xd93   :  { %v24354_v35 = vpop.xlane.xlu0 %24353 }
 0xd94   :  { %28254 = vrsqrt.f32 %v24448_v54  ;;  %v24415_v42 = vmul.f32 0.0078125, %v24354_v35 }
 0xd95   :  { %v24360_v7 = vpop.xlane.xlu1 %24359 }
 0xd96   :  { %v24447_v24 = vadd.f32 1e-05, %v24415_v42  ;;  %v24418_v0 = vmul.f32 0.0078125, %v24360_v7 }
 0xd97   :  { %v28251_v57 = vpop.eup %28250  ;;  %v24358_v25 = vpop.xlane.xlu0 %24357 }
 0xd98   :  { %v28253_v15 = vpop.eup %28252  ;;  %v24510_v13 = vmul.f32 %v28251_v57, %v35167_v61  ;;  %28256 = vrsqrt.f32 %v24447_v24  ;;  %v24450_v18 = vadd.f32 1e-05, %v24418_v0  ;;  %v24417_v36 = vmul.f32 0.0078125, %v24358_v25 }
 0xd99   :  { %v24509_v47 = vmul.f32 %v28253_v15, %v35170_v26  ;;  %v24364_v37 = vpop.xlane.xlu1 %24363 }
 0xd9a   :  { %24542 = vst [vmem:[#allocation2 + $0x8] sm:$0xff] %v24510_v13  ;;  %28258 = vrsqrt.f32 %v24450_v18  ;;  %v24449_v21 = vadd.f32 1e-05, %v24417_v36  ;;  %v24420_v33 = vmul.f32 0.0078125, %v24364_v37 }
 0xd9b   :  { %24541 = vst [vmem:[#allocation2] sm:$0xff] %v24509_v47  ;;  %v24362_v6 = vpop.xlane.xlu0 %24361 }
 0xd9c   :  { %28260 = vrsqrt.f32 %v24449_v21  ;;  %v24452_v30 = vadd.f32 1e-05, %v24420_v33  ;;  %v24419_v9 = vmul.f32 0.0078125, %v24362_v6 }
 0xd9e   :  { %v28255_v29 = vpop.eup %28254  ;;  %28262 = vrsqrt.f32 %v24452_v30  ;;  %v24451_v1 = vadd.f32 1e-05, %v24419_v9  ;;  %v24368_v45 = vpop.xlane.xlu1 %24367 }
 0xd9f   :  { %v24512_v61 = vmul.f32 %v28255_v29, %v35177_v16  ;;  %v24422_v41 = vmul.f32 0.0078125, %v24368_v45  ;;  %v24366_v20 = vpop.xlane.xlu0 %24365 }
 0xda0   :  { %28264 = vrsqrt.f32 %v24451_v1  ;;  %v24421_v26 = vmul.f32 0.0078125, %v24366_v20 }
 0xda1   :  { %24544 = vst [vmem:[#allocation2 + $0x18] sm:$0xff] %v24512_v61  ;;  %v24454_v62 = vadd.f32 1e-05, %v24422_v41 }
 0xda2   :  { %v28257_v51 = vpop.eup %28256  ;;  %v24453_v34 = vadd.f32 1e-05, %v24421_v26 }
 0xda3   :  { %v24511_v28 = vmul.f32 %v28257_v51, %v35182_v14  ;;  %28266 = vrsqrt.f32 %v24454_v62  ;;  %v24372_v55 = vpop.xlane.xlu1 %24371 }
 0xda4   :  { %v28259_v48 = vpop.eup %28258  ;;  %28268 = vrsqrt.f32 %v24453_v34  ;;  %v24424_v49 = vmul.f32 0.0078125, %v24372_v55  ;;  %v24370_v22 = vpop.xlane.xlu0 %24369 }
 0xda5   :  { %24543 = vst [vmem:[#allocation2 + $0x10] sm:$0xff] %v24511_v28  ;;  %v24514_v54 = vmul.f32 %v28259_v48, %v35185_v50  ;;  %v24423_v16 = vmul.f32 0.0078125, %v24370_v22 }
 0xda6   :  { %v28261_v35 = vpop.eup %28260  ;;  %v24456_v42 = vadd.f32 1e-05, %v24424_v49 }
 0xda7   :  { %24546 = vst [vmem:[#allocation2 + $0x28] sm:$0xff] %v24514_v54  ;;  %v24513_v7 = vmul.f32 %v28261_v35, %v35190_v8  ;;  %v24455_v24 = vadd.f32 1e-05, %v24423_v16 }
 0xda8   :  { %v28263_v0 = vpop.eup %28262  ;;  %28270 = vrsqrt.f32 %v24456_v42  ;;  %v24376_v57 = vpop.xlane.xlu1 %24375 }
 0xda9   :  { %24545 = vst [vmem:[#allocation2 + $0x20] sm:$0xff] %v24513_v7  ;;  %v24516_v14 = vmul.f32 %v28263_v0, %v35195_v2  ;;  %28272 = vrsqrt.f32 %v24455_v24  ;;  %v24426_v25 = vmul.f32 0.0078125, %v24376_v57  ;;  %v24374_v15 = vpop.xlane.xlu0 %24373 }
 0xdaa   :  { %v28265_v13 = vpop.eup %28264  ;;  %v24425_v18 = vmul.f32 0.0078125, %v24374_v15 }
 0xdab   :  { %24548 = vst [vmem:[#allocation2 + $0x38] sm:$0xff] %v24516_v14  ;;  %v24515_v50 = vmul.f32 %v28265_v13, %v35200_v59  ;;  %v24458_v36 = vadd.f32 1e-05, %v24426_v25 }
 0xdac   :  { %v24457_v47 = vadd.f32 1e-05, %v24425_v18 }
 0xdad   :  { %v28267_v37 = vpop.eup %28266  ;;  %24547 = vst [vmem:[#allocation2 + $0x30] sm:$0xff] %v24515_v50  ;;  %28274 = vrsqrt.f32 %v24458_v36  ;;  %v24380_v8 = vpop.xlane.xlu1 %24379 }
 0xdae   :  { %v28269_v21 = vpop.eup %28268  ;;  %v24518_v33 = vmul.f32 %v28267_v37, %v35207_v53  ;;  %28276 = vrsqrt.f32 %v24457_v47  ;;  %v24428_v6 = vmul.f32 0.0078125, %v24380_v8  ;;  %v24378_v2 = vpop.xlane.xlu0 %24377 }
 0xdaf   :  { %v24517_v30 = vmul.f32 %v28269_v21, %v35210_v5  ;;  %v24427_v9 = vmul.f32 0.0078125, %v24378_v2 }
 0xdb0   :  { %24550 = vst [vmem:[#allocation2 + $0x48] sm:$0xff] %v24518_v33  ;;  %v24460_v29 = vadd.f32 1e-05, %v24428_v6 }
 0xdb1   :  { %24549 = vst [vmem:[#allocation2 + $0x40] sm:$0xff] %v24517_v30  ;;  %v24459_v1 = vadd.f32 1e-05, %v24427_v9 }
 0xdb2   :  { %v28271_v59 = vpop.eup %28270  ;;  %28278 = vrsqrt.f32 %v24460_v29  ;;  %v24384_v45 = vpop.xlane.xlu1 %24383 }
 0xdb3   :  { %v28273_v61 = vpop.eup %28272  ;;  %v24520_v41 = vmul.f32 %v28271_v59, %v35217_v10  ;;  %28280 = vrsqrt.f32 %v24459_v1  ;;  %v24430_v20 = vmul.f32 0.0078125, %v24384_v45  ;;  %v24382_v26 = vpop.xlane.xlu0 %24381 }
 0xdb4   :  { %v24519_v53 = vmul.f32 %v28273_v61, %v35220_v27  ;;  %v24429_v62 = vmul.f32 0.0078125, %v24382_v26 }
 0xdb5   :  { %24552 = vst [vmem:[#allocation2 + $0x58] sm:$0xff] %v24520_v41  ;;  %v24462_v51 = vadd.f32 1e-05, %v24430_v20 }
 0xdb6   :  { %24551 = vst [vmem:[#allocation2 + $0x50] sm:$0xff] %v24519_v53  ;;  %v24461_v5 = vadd.f32 1e-05, %v24429_v62 }
 0xdb7   :  { %v28275_v34 = vpop.eup %28274  ;;  %28282 = vrsqrt.f32 %v24462_v51  ;;  %v24388_v28 = vpop.xlane.xlu1 %24387 }
 0xdb8   :  { %v28277_v55 = vpop.eup %28276  ;;  %v24522_v48 = vmul.f32 %v28275_v34, %v35227_v3  ;;  %28284 = vrsqrt.f32 %v24461_v5  ;;  %v24432_v49 = vmul.f32 0.0078125, %v24388_v28  ;;  %v24386_v22 = vpop.xlane.xlu0 %24385 }
 0xdb9   :  { %v24521_v10 = vmul.f32 %v28277_v55, %v35230_v17  ;;  %v24431_v54 = vmul.f32 0.0078125, %v24386_v22 }
 0xdba   :  { %24554 = vst [vmem:[#allocation2 + $0x68] sm:$0xff] %v24522_v48  ;;  %v24464_v16 = vadd.f32 1e-05, %v24432_v49 }
 0xdbb   :  { %24553 = vst [vmem:[#allocation2 + $0x60] sm:$0xff] %v24521_v10  ;;  %v24463_v27 = vadd.f32 1e-05, %v24431_v54 }
 0xdbc   :  { %v28279_v35 = vpop.eup %28278  ;;  %28286 = vrsqrt.f32 %v24464_v16  ;;  %v24392_v42 = vpop.xlane.xlu1 %24391 }
 0xdbd   :  { %v28281_v7 = vpop.eup %28280  ;;  %v24524_v24 = vmul.f32 %v28279_v35, %v35237_v31  ;;  %28288 = vrsqrt.f32 %v24463_v27  ;;  %v24434_v0 = vmul.f32 0.0078125, %v24392_v42  ;;  %v24390_v57 = vpop.xlane.xlu0 %24389 }
 0xdbe   :  { %v24523_v3 = vmul.f32 %v28281_v7, %v35240_v12  ;;  %v24433_v14 = vmul.f32 0.0078125, %v24390_v57 }
 0xdbf   :  { %24556 = vst [vmem:[#allocation2 + $0x78] sm:$0xff] %v24524_v24  ;;  %v24466_v25 = vadd.f32 1e-05, %v24434_v0 }
 0xdc0   :  { %24555 = vst [vmem:[#allocation2 + $0x70] sm:$0xff] %v24523_v3  ;;  %v24465_v17 = vadd.f32 1e-05, %v24433_v14 }
 0xdc1   :  { %v28283_v15 = vpop.eup %28282  ;;  %28290 = vrsqrt.f32 %v24466_v25  ;;  %v24396_v13 = vpop.xlane.xlu1 %24395 }
 0xdc2   :  { %v28285_v18 = vpop.eup %28284  ;;  %v24526_v50 = vmul.f32 %v28283_v15, %v35247_v4  ;;  %28292 = vrsqrt.f32 %v24465_v17  ;;  %v24436_v36 = vmul.f32 0.0078125, %v24396_v13  ;;  %v24394_v47 = vpop.xlane.xlu0 %24393 }
 0xdc3   :  { %v24525_v31 = vmul.f32 %v28285_v18, %v35250_v52  ;;  %v24435_v37 = vmul.f32 0.0078125, %v24394_v47 }
 0xdc4   :  { %24558 = vst [vmem:[#allocation2 + $0x88] sm:$0xff] %v24526_v50  ;;  %v24468_v8 = vadd.f32 1e-05, %v24436_v36 }
 0xdc5   :  { %24557 = vst [vmem:[#allocation2 + $0x80] sm:$0xff] %v24525_v31  ;;  %v24467_v12 = vadd.f32 1e-05, %v24435_v37 }
 0xdc6   :  { %v28287_v21 = vpop.eup %28286  ;;  %28294 = vrsqrt.f32 %v24468_v8  ;;  %v24400_v33 = vpop.xlane.xlu1 %24399 }
 0xdc7   :  { %v28289_v6 = vpop.eup %28288  ;;  %v24528_v2 = vmul.f32 %v28287_v21, %v35257_v38  ;;  %28296 = vrsqrt.f32 %v24467_v12  ;;  %v24438_v30 = vmul.f32 0.0078125, %v24400_v33  ;;  %v24398_v9 = vpop.xlane.xlu0 %24397 }
 0xdc8   :  { %v24527_v4 = vmul.f32 %v28289_v6, %v35260_v60  ;;  %v24437_v29 = vmul.f32 0.0078125, %v24398_v9 }
 0xdc9   :  { %24560 = vst [vmem:[#allocation2 + $0x98] sm:$0xff] %v24528_v2  ;;  %v24470_v1 = vadd.f32 1e-05, %v24438_v30 }
 0xdca   :  { %24559 = vst [vmem:[#allocation2 + $0x90] sm:$0xff] %v24527_v4  ;;  %v24469_v52 = vadd.f32 1e-05, %v24437_v29 }
 0xdcb   :  { %v28291_v59 = vpop.eup %28290  ;;  %28298 = vrsqrt.f32 %v24470_v1  ;;  %v24404_v45 = vpop.xlane.xlu1 %24403 }
 0xdcc   :  { %v28293_v61 = vpop.eup %28292  ;;  %v24530_v41 = vmul.f32 %v28291_v59, %v35267_v46  ;;  %28300 = vrsqrt.f32 %v24469_v52  ;;  %v24440_v20 = vmul.f32 0.0078125, %v24404_v45  ;;  %v24402_v26 = vpop.xlane.xlu0 %24401 }
 0xdcd   :  { %v24529_v38 = vmul.f32 %v28293_v61, %v35270_v44  ;;  %v24439_v53 = vmul.f32 0.0078125, %v24402_v26 }
 0xdce   :  { %24562 = vst [vmem:[#allocation2 + $0xa8] sm:$0xff] %v24530_v41  ;;  %v24472_v62 = vadd.f32 1e-05, %v24440_v20 }
 0xdcf   :  { %24561 = vst [vmem:[#allocation2 + $0xa0] sm:$0xff] %v24529_v38  ;;  %v24471_v60 = vadd.f32 1e-05, %v24439_v53 }
 0xdd0   :  { %v28295_v51 = vpop.eup %28294  ;;  %28302 = vrsqrt.f32 %v24472_v62  ;;  %v24408_v5 = vpop.xlane.xlu1 %24407 }
 0xdd1   :  { %v28297_v34 = vpop.eup %28296  ;;  %v24532_v28 = vmul.f32 %v28295_v51, %v35277_v43  ;;  %28304 = vrsqrt.f32 %v24471_v60  ;;  %v24442_v55 = vmul.f32 0.0078125, %v24408_v5  ;;  %v24406_v48 = vpop.xlane.xlu0 %24405 }
 0xdd2   :  { %v24531_v46 = vmul.f32 %v28297_v34, %v35280_v63  ;;  %v24441_v49 = vmul.f32 0.0078125, %v24406_v48 }
 0xdd3   :  { %24564 = vst [vmem:[#allocation2 + $0xb8] sm:$0xff] %v24532_v28  ;;  %v24474_v22 = vadd.f32 1e-05, %v24442_v55 }
 0xdd4   :  { %24563 = vst [vmem:[#allocation2 + $0xb0] sm:$0xff] %v24531_v46  ;;  %v24473_v44 = vadd.f32 1e-05, %v24441_v49 }
 0xdd5   :  { %v28299_v10 = vpop.eup %28298  ;;  %28306 = vrsqrt.f32 %v24474_v22  ;;  %v24412_v54 = vpop.xlane.xlu1 %24411 }
 0xdd6   :  { %v28301_v16 = vpop.eup %28300  ;;  %v24534_v27 = vmul.f32 %v28299_v10, %v35287_v40  ;;  %28308 = vrsqrt.f32 %v24473_v44  ;;  %v24444_v35 = vmul.f32 0.0078125, %v24412_v54  ;;  %v24410_v42 = vpop.xlane.xlu0 %24409 }
 0xdd7   :  { %v24533_v43 = vmul.f32 %v28301_v16, %v35290_v11  ;;  %v24443_v7 = vmul.f32 0.0078125, %v24410_v42 }
 0xdd8   :  { %24566 = vst [vmem:[#allocation2 + $0xc8] sm:$0xff] %v24534_v27  ;;  %v24476_v24 = vadd.f32 1e-05, %v24444_v35 }
 0xdd9   :  { %24565 = vst [vmem:[#allocation2 + $0xc0] sm:$0xff] %v24533_v43  ;;  %v24475_v63 = vadd.f32 1e-05, %v24443_v7  ;;  %v20306_v0 = vpop.permute.xlu1 %20305 }
 0xdda   :  { %v28303_v57 = vpop.eup %28302  ;;  %28310 = vrsqrt.f32 %v24476_v24  ;;  %20373 = vst.msk [vmem:[%s35412_s9 + $0xe8] sm:$0xff] %vm20343_vm5, %v20306_v0  ;;  %v20304_v3 = vpop.permute.xlu0 %20303 }
 0xddb   :  { %v28305_v40 = vpop.eup %28304  ;;  %v24536_v14 = vmul.f32 %v28303_v57, %v35297_v58  ;;  %28312 = vrsqrt.f32 %v24475_v63  ;;  %20372 = vst.msk [vmem:[%s35412_s9 + $0xe0] sm:$0xff] %vm20343_vm5, %v20304_v3 }
 0xddc   :  { %v24535_v11 = vmul.f32 %v28305_v40, %v35300_v23 }
 0xddd   :  { %24568 = vst [vmem:[#allocation2 + $0xd8] sm:$0xff] %v24536_v14  ;;  %v20310_v25 = vpop.permute.xlu1 %20309 }
 0xdde   :  { %24567 = vst [vmem:[#allocation2 + $0xd0] sm:$0xff] %v24535_v11  ;;  %20375 = vst.msk [vmem:[%s35412_s9 + $0xf8] sm:$0xff] %vm20343_vm5, %v20310_v25  ;;  %v20308_v17 = vpop.permute.xlu0 %20307 }
 0xddf   :  { %v28307_v15 = vpop.eup %28306  ;;  %20374 = vst.msk [vmem:[%s35412_s9 + $0xf0] sm:$0xff] %vm20343_vm5, %v20308_v17 }
 0xde0   :  { %v28309_v58 = vpop.eup %28308  ;;  %v24538_v13 = vmul.f32 %v28307_v15, %v35307_v39 }
 0xde1   :  { %v24537_v23 = vmul.f32 %v28309_v58, %v35310_v32 }
 0xde2   :  { %24570 = vst [vmem:[#allocation2 + $0xe8] sm:$0xff] %v24538_v13 }
 0xde3   :  { %24569 = vst [vmem:[#allocation2 + $0xe0] sm:$0xff] %v24537_v23 }
 0xde4   :  { %v28311_v18 = vpop.eup %28310 }
 0xde5   :  { %v28313_v50 = vpop.eup %28312  ;;  %v24540_v36 = vmul.f32 %v28311_v18, %v35317_v19 }
 0xde6   :  { %v24539_v47 = vmul.f32 %v28313_v50, %v35320_v56 }
 0xde7   :  { %24572 = vst [vmem:[#allocation2 + $0xf8] sm:$0xff] %v24540_v36 }
 0xde8   :  { %24571 = vst [vmem:[#allocation2 + $0xf0] sm:$0xff] %v24539_v47 }
 0xde9   :  { %28325 = shalt.err (!%p28322_p4)
}
 0xdea   :  { %s28326_s7 = scalar_lea.hbm %s35411_s8, 4096 }
 0xdeb   :  { %p28327_p5 = scmp.ne.s32.totalorder %s35411_s8, %s28326_s7  ;;  %p28330_p6 = scmp.lt.u32.totalorder %s28326_s7, %s35411_s8 }
 0xded   :  { %p28332_p7 = pnand %p28330_p6, %p28327_p5 }
 0xdef   :  { %28335 = shalt.err (!%p28332_p7)
}
 0xdf0   :  { %s28347_s21 = smov 128  }
 0xdf1   :  { %24584 = dma.vmem_to_hbm [thread:$0]  %s24579_s15, 4096, %s35411_s8, [#allocation3], %s28347_s21, %s28347_s21, %s28343_s2  }
 0xdf2   :  { %28336 = dma.done.wait [#allocation3], 4096  }
 0xdf3   :  { %28337 = vsyncadd [#allocation3], 4294963200 }
 0xdf4   :  { %24592 = vsyncpa [#allocation3], 1 }

</bundles_post_ra>
